<compile_context>
chip_gen: v7x
topology: tpu7x:2x2x1
jax: 0.10.0
libtpu: 0.0.40
codegen_flags: <defaults>
</compile_context>

<pallas_src>
import math
import functools

import jax
import jax.numpy as jnp
from jax.experimental import pallas as pl
from jax.experimental.pallas import tpu as pltpu

# ----------------------------- module config (PyTorch defaults) --------------
IDIM = 80
CONV_LAYERS = 6
CONV_CHANNELS = (32, 32, 64, 64, 128, 128)
KSIZE = 3
STRIDE = 2
PAD = (KSIZE - 1) // 2
GRU_UNITS = 128
GST_TOKENS = 10
GST_TOKEN_DIM = 256
GST_HEADS = 4

MATMUL_TILE_M = 512
VMEM_LIMIT = 32 * 1024 * 1024

VMEM = pl.BlockSpec(memory_space=pltpu.MemorySpace.VMEM)

# TODO(synk): BatchNorm is implemented in eval mode (running stats); PyTorch
# training-mode batch statistics are not reproduced here.


def _conv_out(n):
    """Output spatial size of Conv2d(k=3, s=2, p=1)."""
    return (n - 1) // 2 + 1


# ----------------------------- kernel: tiled matmul + affine (+ReLU) ---------
def _matmul_affine_kernel(x_ref, w_ref, scale_ref, shift_ref, o_ref, *, relu):
    """o = [relu]((x @ w) * scale + shift).  x/w may be bf16; math in f32."""
    y = jnp.dot(x_ref[...], w_ref[...], preferred_element_type=jnp.float32)
    y = y * scale_ref[...] + shift_ref[...]
    if relu:
        y = jnp.maximum(y, 0.0)
    o_ref[...] = y.astype(o_ref.dtype)


def matmul_affine(x, w, scale, shift, *, relu, out_dtype):
    """M-tiled, pipelined matmul with resident weights (used for conv layer 1
    via im2col and for the hoisted GRU input projection)."""
    m, k = x.shape
    n = w.shape[1]
    tm = min(MATMUL_TILE_M, m)
    grid = (pl.cdiv(m, tm),)
    kernel = functools.partial(_matmul_affine_kernel, relu=relu)
    return pl.pallas_call(
        kernel,
        out_shape=jax.ShapeDtypeStruct((m, n), out_dtype),
        grid=grid,
        in_specs=[
            pl.BlockSpec((tm, k), lambda i: (i, 0)),
            pl.BlockSpec((k, n), lambda i: (0, 0)),      # resident weight
            pl.BlockSpec((1, n), lambda i: (0, 0)),      # resident scale
            pl.BlockSpec((1, n), lambda i: (0, 0)),      # resident shift
        ],
        out_specs=pl.BlockSpec((tm, n), lambda i: (i, 0)),
        compiler_params=pltpu.CompilerParams(
            dimension_semantics=("parallel",),
            vmem_limit_bytes=VMEM_LIMIT,
        ),
    )(x, w, scale, shift)


# ----------------------------- kernel: conv (s2d, 4 taps) + BN + ReLU --------
def _conv_s2d_kernel(x_ref, w_ref, scale_ref, shift_ref, o_ref, *, ho, wo):
    """3x3/stride-2 conv as 4 shifted, accumulating matmuls over a
    space-to-depth packed input block, fused with BN(eval) + ReLU.

    x_ref:  [ho+1, wo+1, 4*Cin]   (space-to-depth packed input, one batch elem)
    w_ref:  [4, 4*Cin, Cout]      (rearranged conv weights, resident)
    o_ref:  [ho*wo, Cout]
    """
    acc = None
    for t in range(4):
        dh, dw = divmod(t, 2)
        lhs = x_ref[dh:dh + ho, dw:dw + wo, :]
        lhs = lhs.reshape(ho * wo, lhs.shape[-1])   # wo % 8 == 0 -> trivial merge
        contrib = jnp.dot(lhs, w_ref[t], preferred_element_type=jnp.float32)
        acc = contrib if acc is None else acc + contrib
    y = acc * scale_ref[...] + shift_ref[...]
    o_ref[...] = jnp.maximum(y, 0.0).astype(o_ref.dtype)


def conv_s2d_bn_relu(s2d, wr, scale, shift, ho, wo_p):
    """s2d: [B, ho+1, wo_p+1, 4*Cin] -> [B, ho*wo_p, Cout]."""
    b = s2d.shape[0]
    c4 = s2d.shape[-1]
    cout = wr.shape[-1]
    kernel = functools.partial(_conv_s2d_kernel, ho=ho, wo=wo_p)
    return pl.pallas_call(
        kernel,
        out_shape=jax.ShapeDtypeStruct((b, ho * wo_p, cout), jnp.bfloat16),
        grid=(b,),
        in_specs=[
            pl.BlockSpec((None, ho + 1, wo_p + 1, c4), lambda i: (i, 0, 0, 0)),
            pl.BlockSpec((4, c4, cout), lambda i: (0, 0, 0)),   # resident
            pl.BlockSpec((1, cout), lambda i: (0, 0)),          # resident
            pl.BlockSpec((1, cout), lambda i: (0, 0)),          # resident
        ],
        out_specs=pl.BlockSpec((None, ho * wo_p, cout), lambda i: (i, 0, 0)),
        compiler_params=pltpu.CompilerParams(
            dimension_semantics=("parallel",),
            vmem_limit_bytes=VMEM_LIMIT,
        ),
    )(s2d, wr, scale, shift)


# ----------------------------- kernel: fused GRU recurrence ------------------
def _gru_fused_kernel(gi_ref, whh_ref, bhh_ref, h_ref):
    """One timestep per grid iteration; h is carried in the resident output
    block, whh/bhh stay resident in VMEM.  gi = x @ Wih + bih is precomputed.
    PyTorch gate order (r, z, n)."""
    t = pl.program_id(0)

    @pl.when(t == 0)
    def _():
        h_ref[...] = jnp.zeros_like(h_ref)           # default h0 = 0

    h = h_ref[...]
    gi = gi_ref[...]                                  # [B, 3H]
    gh = jnp.dot(h, whh_ref[...], preferred_element_type=jnp.float32) + bhh_ref[...]
    hid = h.shape[-1]
    r = jax.nn.sigmoid(gi[:, :hid] + gh[:, :hid])
    z = jax.nn.sigmoid(gi[:, hid:2 * hid] + gh[:, hid:2 * hid])
    n = jnp.tanh(gi[:, 2 * hid:] + r * gh[:, 2 * hid:])
    h_ref[...] = (1.0 - z) * n + z * h


def gru_recurrence(gi_all, whh, bhh):
    """gi_all: [Tp, B, 3H] (precomputed input projections) -> final h [B, H]."""
    tp, b, h3 = gi_all.shape
    hid = h3 // 3
    return pl.pallas_call(
        _gru_fused_kernel,
        out_shape=jax.ShapeDtypeStruct((b, hid), jnp.float32),
        grid=(tp,),
        in_specs=[
            pl.BlockSpec((None, b, h3), lambda t: (t, 0, 0)),
            pl.BlockSpec((hid, h3), lambda t: (0, 0)),   # resident
            pl.BlockSpec((1, h3), lambda t: (0, 0)),     # resident
        ],
        out_specs=pl.BlockSpec((b, hid), lambda t: (0, 0)),  # resident carry
        compiler_params=pltpu.CompilerParams(
            dimension_semantics=("arbitrary",),
        ),
    )(gi_all, whh, bhh)


# ----------------------------- kernel: GST multi-head attention --------------
def _gst_mha_kernel(ref_ref, tok_ref, wq_ref, bq_ref, wk_ref, bk_ref,
                    wv_ref, bv_ref, wo_ref, bo_ref, o_ref, *, n_head):
    """tanh(tokens) -> Q/K/V -> batched-head attention -> output projection."""
    ref = ref_ref[...]                       # [B, gru_units] (query, seq len 1)
    tok = jnp.tanh(tok_ref[...])             # [T, d_k]       (shared K=V source)
    q = jnp.dot(ref, wq_ref[...], preferred_element_type=jnp.float32) + bq_ref[...]  # [B, F]
    k = jnp.dot(tok, wk_ref[...], preferred_element_type=jnp.float32) + bk_ref[...]  # [T, F]
    v = jnp.dot(tok, wv_ref[...], preferred_element_type=jnp.float32) + bv_ref[...]  # [T, F]

    bsz, n_feat = q.shape
    tlen = k.shape[0]
    d = n_feat // n_head
    inv_sqrt_d = 1.0 / math.sqrt(d)

    qh = jnp.transpose(q.reshape(bsz, n_head, d), (1, 0, 2))    # [H, B, d]
    kh = jnp.transpose(k.reshape(tlen, n_head, d), (1, 0, 2))   # [H, T, d]
    vh = jnp.transpose(v.reshape(tlen, n_head, d), (1, 0, 2))   # [H, T, d]

    scores = jnp.einsum('hbd,htd->hbt', qh, kh,
                        preferred_element_type=jnp.float32) * inv_sqrt_d  # [H, B, T]
    m = jnp.max(scores, axis=-1, keepdims=True)
    e = jnp.exp(scores - m)
    attn = e * pl.reciprocal(jnp.sum(e, axis=-1, keepdims=True), approx=True)
    ctx = jnp.einsum('hbt,htd->hbd', attn, vh,
                     preferred_element_type=jnp.float32)                   # [H, B, d]

    x = jnp.transpose(ctx, (1, 0, 2)).reshape(bsz, n_feat)                 # [B, F]
    o_ref[...] = jnp.dot(x, wo_ref[...], preferred_element_type=jnp.float32) + bo_ref[...]


def gst_style_token(ref_embeds, p):
    b = ref_embeds.shape[0]
    kernel = functools.partial(_gst_mha_kernel, n_head=GST_HEADS)
    return pl.pallas_call(
        kernel,
        out_shape=jax.ShapeDtypeStruct((b, GST_TOKEN_DIM), jnp.float32),
        in_specs=[VMEM] * 10,
        out_specs=VMEM,
    )(ref_embeds, p["tokens"], p["wq"], p["bq"], p["wk"], p["bk"],
      p["wv"], p["bv"], p["wo"], p["bo"])


# ----------------------------- JAX glue (layout prep only) -------------------
def im2col_k3s2(x):
    """JAX-side im2col for conv layer 1 only (Cin=1, tiny data)."""
    b, h, w, c = x.shape
    ho, wo = _conv_out(h), _conv_out(w)
    xp = jnp.pad(x, ((0, 0), (PAD, PAD), (PAD, PAD), (0, 0)))
    cols = []
    for kh in range(KSIZE):
        for kw in range(KSIZE):
            cols.append(xp[:, kh:kh + (ho - 1) * STRIDE + 1:STRIDE,
                           kw:kw + (wo - 1) * STRIDE + 1:STRIDE, :])
    patches = jnp.stack(cols, axis=3)                  # [B, Ho, Wo, 9, C]
    return patches.reshape(b * ho * wo, KSIZE * KSIZE * c), ho, wo


def space_to_depth(x, wo_p):
    """Pack 2x2 pixel blocks into channels: [B,H,W,C] -> [B,Ho+1,wo_p+1,4C].
    Total bytes == input bytes (vs. the 9x/2.25x of a full im2col)."""
    b, h, w, c = x.shape
    ho = _conv_out(h)
    hp = 2 * (ho + 1)
    wp = 2 * (wo_p + 1)
    xp = jnp.pad(x, ((0, 0), (1, hp - h - 1), (1, wp - w - 1), (0, 0)))
    s2d = xp.reshape(b, ho + 1, 2, wo_p + 1, 2, c)
    s2d = jnp.transpose(s2d, (0, 1, 3, 2, 4, 5)).reshape(b, ho + 1, wo_p + 1, 4 * c)
    return s2d, ho


def style_encoder_forward(params, speech):
    """speech: [B, T, idim]  ->  style embeddings [B, gst_token_dim]."""
    x = speech.astype(jnp.bfloat16)[:, :, :, None]     # NHWC [B, T, idim, 1]
    b = x.shape[0]

    # ---- conv layer 1: im2col (JAX) + M-tiled fused matmul/BN/ReLU kernel ----
    l0 = params["convs"][0]
    patches, ho, wo = im2col_k3s2(x)
    y = matmul_affine(patches, l0["w"], l0["scale"], l0["shift"],
                      relu=True, out_dtype=jnp.bfloat16)
    x = y.reshape(b, ho, wo, -1)

    # ---- conv layers 2..6: in-kernel 4-tap accumulating conv + BN + ReLU -----
    for layer in params["convs"][1:]:
        wo = _conv_out(x.shape[2])
        wo_p = ((wo + 7) // 8) * 8                     # pad width for clean layout
        s2d, ho = space_to_depth(x, wo_p)
        y = conv_s2d_bn_relu(s2d, layer["wr"], layer["scale"], layer["shift"],
                             ho, wo_p)                 # [B, ho*wo_p, Cout]
        x = y.reshape(b, ho, wo_p, -1)[:, :, :wo, :]

    _, tp, fp, cc = x.shape
    # Natural NHWC flatten (freq-major, channel-minor); Wih rows are laid out
    # to match, which folds away PyTorch's transpose(1, 2) of the conv output.
    hs = x.reshape(b * tp, fp * cc)

    # ---- GRU: hoisted input projection (one big matmul) + fused recurrence ---
    g = params["gru"]
    ones = jnp.ones((1, 3 * GRU_UNITS), jnp.float32)
    gi = matmul_affine(hs, g["wih"], ones, g["bih"],
                       relu=False, out_dtype=jnp.float32)       # [B*Tp, 3H]
    gi = jnp.transpose(gi.reshape(b, tp, 3 * GRU_UNITS), (1, 0, 2))  # [Tp, B, 3H]
    ref_embeds = gru_recurrence(gi, g["whh"], g["bhh"])         # [B, H]

    # ---- GST style-token multi-head attention --------------------------------
    return gst_style_token(ref_embeds, params["gst"])


# ----------------------------- deterministic parameter init ------------------
def init_params(key):
    ks = iter(jax.random.split(key, 64))
    params = {"convs": []}
    cin = 1
    for li, cout in enumerate(CONV_CHANNELS):
        w = jax.random.normal(next(ks), (KSIZE, KSIZE, cin, cout), jnp.float32)
        w = w * (1.0 / math.sqrt(KSIZE * KSIZE * cin))
        gamma = 1.0 + 0.1 * jax.random.normal(next(ks), (cout,), jnp.float32)
        beta = 0.1 * jax.random.normal(next(ks), (cout,), jnp.float32)
        # BN eval mode: running_mean=0, running_var=1.
        scale = (gamma / jnp.sqrt(1.0 + 1e-5)).reshape(1, cout)
        shift = beta.reshape(1, cout)
        layer = {"scale": scale, "shift": shift}
        if li == 0:
            layer["w"] = w.reshape(KSIZE * KSIZE * cin, cout).astype(jnp.bfloat16)
        else:
            # Rearranged weights for the space-to-depth / 4-tap formulation:
            # Wr[2*dh+dw][(2*ph+pw)*Cin + ci, co] = W[2*dh+ph, 2*dw+pw, ci, co].
            wpad = jnp.pad(w, ((0, 1), (0, 1), (0, 0), (0, 0)))       # [4,4,Ci,Co]
            wr = wpad.reshape(2, 2, 2, 2, cin, cout)
            wr = jnp.transpose(wr, (0, 2, 1, 3, 4, 5)).reshape(4, 4 * cin, cout)
            layer["wr"] = wr.astype(jnp.bfloat16)
        params["convs"].append(layer)
        cin = cout

    f = IDIM
    for _ in range(CONV_LAYERS):
        f = _conv_out(f)
    gru_in = f * CONV_CHANNELS[-1]
    s = 1.0 / math.sqrt(GRU_UNITS)
    # NOTE: wih rows correspond to the (freq-major, channel-minor) NHWC flatten
    # of the conv output; a PyTorch checkpoint's weight_ih_l0 (channel-major
    # flatten) would need its rows permuted accordingly.
    params["gru"] = {
        "wih": (s * jax.random.normal(next(ks), (gru_in, 3 * GRU_UNITS),
                                      jnp.float32)).astype(jnp.bfloat16),
        "whh": s * jax.random.normal(next(ks), (GRU_UNITS, 3 * GRU_UNITS), jnp.float32),
        "bih": s * jax.random.normal(next(ks), (1, 3 * GRU_UNITS), jnp.float32),
        "bhh": s * jax.random.normal(next(ks), (1, 3 * GRU_UNITS), jnp.float32),
    }

    d_k = GST_TOKEN_DIM // GST_HEADS
    params["gst"] = {
        "tokens": jax.random.normal(next(ks), (GST_TOKENS, d_k), jnp.float32),
        "wq": (1.0 / math.sqrt(GRU_UNITS)) *
              jax.random.normal(next(ks), (GRU_UNITS, GST_TOKEN_DIM), jnp.float32),
        "bq": 0.01 * jax.random.normal(next(ks), (1, GST_TOKEN_DIM), jnp.float32),
        "wk": (1.0 / math.sqrt(d_k)) *
              jax.random.normal(next(ks), (d_k, GST_TOKEN_DIM), jnp.float32),
        "bk": 0.01 * jax.random.normal(next(ks), (1, GST_TOKEN_DIM), jnp.float32),
        "wv": (1.0 / math.sqrt(d_k)) *
              jax.random.normal(next(ks), (d_k, GST_TOKEN_DIM), jnp.float32),
        "bv": 0.01 * jax.random.normal(next(ks), (1, GST_TOKEN_DIM), jnp.float32),
        "wo": (1.0 / math.sqrt(GST_TOKEN_DIM)) *
              jax.random.normal(next(ks), (GST_TOKEN_DIM, GST_TOKEN_DIM), jnp.float32),
        "bo": 0.01 * jax.random.normal(next(ks), (1, GST_TOKEN_DIM), jnp.float32),
    }
    return params


# ----------------------------- main ------------------------------------------
if __name__ == "__main__":
    key = jax.random.PRNGKey(0)
    pkey, xkey = jax.random.split(key)
    params = init_params(pkey)

    # speech: [B=2, T=128 frames, idim=80]  (T'=2 after the 6 stride-2 convs)
    speech = jax.random.normal(xkey, (2, 128, IDIM), jnp.float32)

    fwd = jax.jit(style_encoder_forward)
    out = jax.block_until_ready(fwd(params, speech))

    assert out.shape == (2, GST_TOKEN_DIM), out.shape
    assert bool(jnp.all(jnp.isfinite(out)))
    print("KERNEL_OK")
</pallas_src>

<mosaic_0001>
module attributes {stable_mosaic.version = 11 : i64} {
  func.func @_matmul_affine_kernel(%arg0: i32, %arg1: memref<512x9xbf16, #tpu.memory_space<vmem>>, %arg2: memref<9x32xbf16, #tpu.memory_space<vmem>>, %arg3: memref<1x32xf32, #tpu.memory_space<vmem>>, %arg4: memref<1x32xf32, #tpu.memory_space<vmem>>, %arg5: memref<512x32xbf16, #tpu.memory_space<vmem>>) attributes {dimension_semantics = [#tpu.dimension_semantics<parallel>], iteration_bounds = array<i64: 10>, scalar_prefetch = 0 : i64, scratch_operands = 0 : i64, tpu.core_type = #tpu.core_type<tc>, window_params = [{transform_indices = @transform_0, window_bounds = array<i64: 512, 9>}, {pipeline_mode = #tpu.pipeline_mode<synchronous>, transform_indices = @transform_1, window_bounds = array<i64: 9, 32>}, {pipeline_mode = #tpu.pipeline_mode<synchronous>, transform_indices = @transform_2, window_bounds = array<i64: 1, 32>}, {pipeline_mode = #tpu.pipeline_mode<synchronous>, transform_indices = @transform_3, window_bounds = array<i64: 1, 32>}, {transform_indices = @transform_4, window_bounds = array<i64: 512, 32>}]} {
    %c0 = arith.constant 0 : index
    %c0_0 = arith.constant 0 : index
    %0 = vector.load %arg1[%c0, %c0_0] : memref<512x9xbf16, #tpu.memory_space<vmem>>, vector<512x9xbf16>
    %c0_1 = arith.constant 0 : index
    %c0_2 = arith.constant 0 : index
    %1 = vector.load %arg2[%c0_1, %c0_2] : memref<9x32xbf16, #tpu.memory_space<vmem>>, vector<9x32xbf16>
    %cst = arith.constant dense<0.000000e+00> : vector<512x32xf32>
    %2 = tpu.matmul %0, %1, %cst {dimension_numbers = #tpu.dot_dimension_numbers<[1], [0], [0], [1], [0, 0, 1, 1], [], []>} : vector<512x9xbf16>, vector<9x32xbf16>, vector<512x32xf32> -> vector<512x32xf32>
    %c0_3 = arith.constant 0 : index
    %c0_4 = arith.constant 0 : index
    %3 = vector.load %arg3[%c0_3, %c0_4] : memref<1x32xf32, #tpu.memory_space<vmem>>, vector<1x32xf32>
    %4 = vector.broadcast %3 : vector<1x32xf32> to vector<512x32xf32>
    %5 = arith.mulf %2, %4 : vector<512x32xf32>
    %c0_5 = arith.constant 0 : index
    %c0_6 = arith.constant 0 : index
    %6 = vector.load %arg4[%c0_5, %c0_6] : memref<1x32xf32, #tpu.memory_space<vmem>>, vector<1x32xf32>
    %7 = vector.broadcast %6 : vector<1x32xf32> to vector<512x32xf32>
    %8 = arith.addf %5, %7 : vector<512x32xf32>
    %cst_7 = arith.constant 0.000000e+00 : f32
    %9 = vector.broadcast %cst_7 : f32 to vector<512x32xf32>
    %10 = arith.maximumf %8, %9 : vector<512x32xf32>
    %11 = arith.truncf %10 : vector<512x32xf32> to vector<512x32xbf16>
    %c0_8 = arith.constant 0 : index
    %c0_9 = arith.constant 0 : index
    %12 = vector.load %arg5[%c0_8, %c0_9] : memref<512x32xbf16, #tpu.memory_space<vmem>>, vector<512x32xbf16>
    tpu.vector_store %arg5[%c0_8, %c0_9], %11 {strides = array<i32>} : memref<512x32xbf16, #tpu.memory_space<vmem>>, vector<512x32xbf16>,
    return
  }
  func.func @transform_0(%arg0: i32) -> (i32, i32) {
    %c0_i32 = arith.constant 0 : i32
    %c0_i32_0 = arith.constant 0 : i32
    return %arg0, %c0_i32 : i32, i32
  }
  func.func @transform_1(%arg0: i32) -> (i32, i32) {
    %c0_i32 = arith.constant 0 : i32
    %c0_i32_0 = arith.constant 0 : i32
    %c0_i32_1 = arith.constant 0 : i32
    return %c0_i32, %c0_i32_0 : i32, i32
  }
  func.func @transform_2(%arg0: i32) -> (i32, i32) {
    %c0_i32 = arith.constant 0 : i32
    %c0_i32_0 = arith.constant 0 : i32
    %c0_i32_1 = arith.constant 0 : i32
    return %c0_i32, %c0_i32_0 : i32, i32
  }
  func.func @transform_3(%arg0: i32) -> (i32, i32) {
    %c0_i32 = arith.constant 0 : i32
    %c0_i32_0 = arith.constant 0 : i32
    %c0_i32_1 = arith.constant 0 : i32
    return %c0_i32, %c0_i32_0 : i32, i32
  }
  func.func @transform_4(%arg0: i32) -> (i32, i32) {
    %c0_i32 = arith.constant 0 : i32
    %c0_i32_0 = arith.constant 0 : i32
    return %arg0, %c0_i32 : i32, i32
  }
}

module attributes {stable_mosaic.version = 11 : i64} {
  func.func @_conv_s2d_kernel(%arg0: i32, %arg1: memref<1x33x25x128xbf16, #tpu.memory_space<vmem>>, %arg2: memref<4x128x32xbf16, #tpu.memory_space<vmem>>, %arg3: memref<1x32xf32, #tpu.memory_space<vmem>>, %arg4: memref<1x32xf32, #tpu.memory_space<vmem>>, %arg5: memref<1x768x32xbf16, #tpu.memory_space<vmem>>) attributes {dimension_semantics = [#tpu.dimension_semantics<parallel>], iteration_bounds = array<i64: 2>, scalar_prefetch = 0 : i64, scratch_operands = 0 : i64, tpu.core_type = #tpu.core_type<tc>, window_params = [{transform_indices = @transform_0, window_bounds = array<i64: 1, 33, 25, 128>}, {pipeline_mode = #tpu.pipeline_mode<synchronous>, transform_indices = @transform_1, window_bounds = array<i64: 4, 128, 32>}, {pipeline_mode = #tpu.pipeline_mode<synchronous>, transform_indices = @transform_2, window_bounds = array<i64: 1, 32>}, {pipeline_mode = #tpu.pipeline_mode<synchronous>, transform_indices = @transform_3, window_bounds = array<i64: 1, 32>}, {transform_indices = @transform_4, window_bounds = array<i64: 1, 768, 32>}]} {
    %c0 = arith.constant 0 : index
    %c0_0 = arith.constant 0 : index
    %c0_1 = arith.constant 0 : index
    %c0_2 = arith.constant 0 : index
    %0 = vector.load %arg1[%c0, %c0_0, %c0_1, %c0_2] : memref<1x33x25x128xbf16, #tpu.memory_space<vmem>>, vector<1x32x24x128xbf16>
    %1 = vector.shape_cast %0 : vector<1x32x24x128xbf16> to vector<32x24x128xbf16>
    %2 = vector.shape_cast %1 : vector<32x24x128xbf16> to vector<768x128xbf16>
    %c0_3 = arith.constant 0 : index
    %c0_4 = arith.constant 0 : index
    %c0_5 = arith.constant 0 : index
    %3 = vector.load %arg2[%c0_3, %c0_4, %c0_5] : memref<4x128x32xbf16, #tpu.memory_space<vmem>>, vector<1x128x32xbf16>
    %4 = vector.shape_cast %3 : vector<1x128x32xbf16> to vector<128x32xbf16>
    %cst = arith.constant dense<0.000000e+00> : vector<768x32xf32>
    %5 = tpu.matmul %2, %4, %cst {dimension_numbers = #tpu.dot_dimension_numbers<[1], [0], [0], [1], [0, 0, 1, 1], [], []>} : vector<768x128xbf16>, vector<128x32xbf16>, vector<768x32xf32> -> vector<768x32xf32>
    %c0_6 = arith.constant 0 : index
    %c0_7 = arith.constant 0 : index
    %c1 = arith.constant 1 : index
    %c0_8 = arith.constant 0 : index
    %6 = vector.load %arg1[%c0_6, %c0_7, %c1, %c0_8] : memref<1x33x25x128xbf16, #tpu.memory_space<vmem>>, vector<1x32x24x128xbf16>
    %7 = vector.shape_cast %6 : vector<1x32x24x128xbf16> to vector<32x24x128xbf16>
    %8 = vector.shape_cast %7 : vector<32x24x128xbf16> to vector<768x128xbf16>
    %c1_9 = arith.constant 1 : index
    %c0_10 = arith.constant 0 : index
    %c0_11 = arith.constant 0 : index
    %9 = vector.load %arg2[%c1_9, %c0_10, %c0_11] : memref<4x128x32xbf16, #tpu.memory_space<vmem>>, vector<1x128x32xbf16>
    %10 = vector.shape_cast %9 : vector<1x128x32xbf16> to vector<128x32xbf16>
    %cst_12 = arith.constant dense<0.000000e+00> : vector<768x32xf32>
    %11 = tpu.matmul %8, %10, %cst_12 {dimension_numbers = #tpu.dot_dimension_numbers<[1], [0], [0], [1], [0, 0, 1, 1], [], []>} : vector<768x128xbf16>, vector<128x32xbf16>, vector<768x32xf32> -> vector<768x32xf32>
    %12 = arith.addf %5, %11 : vector<768x32xf32>
    %c0_13 = arith.constant 0 : index
    %c1_14 = arith.constant 1 : index
    %c0_15 = arith.constant 0 : index
    %c0_16 = arith.constant 0 : index
    %13 = vector.load %arg1[%c0_13, %c1_14, %c0_15, %c0_16] : memref<1x33x25x128xbf16, #tpu.memory_space<vmem>>, vector<1x32x24x128xbf16>
    %14 = vector.shape_cast %13 : vector<1x32x24x128xbf16> to vector<32x24x128xbf16>
    %15 = vector.shape_cast %14 : vector<32x24x128xbf16> to vector<768x128xbf16>
    %c2 = arith.constant 2 : index
    %c0_17 = arith.constant 0 : index
    %c0_18 = arith.constant 0 : index
    %16 = vector.load %arg2[%c2, %c0_17, %c0_18] : memref<4x128x32xbf16, #tpu.memory_space<vmem>>, vector<1x128x32xbf16>
    %17 = vector.shape_cast %16 : vector<1x128x32xbf16> to vector<128x32xbf16>
    %cst_19 = arith.constant dense<0.000000e+00> : vector<768x32xf32>
    %18 = tpu.matmul %15, %17, %cst_19 {dimension_numbers = #tpu.dot_dimension_numbers<[1], [0], [0], [1], [0, 0, 1, 1], [], []>} : vector<768x128xbf16>, vector<128x32xbf16>, vector<768x32xf32> -> vector<768x32xf32>
    %19 = arith.addf %12, %18 : vector<768x32xf32>
    %c0_20 = arith.constant 0 : index
    %c1_21 = arith.constant 1 : index
    %c1_22 = arith.constant 1 : index
    %c0_23 = arith.constant 0 : index
    %20 = vector.load %arg1[%c0_20, %c1_21, %c1_22, %c0_23] : memref<1x33x25x128xbf16, #tpu.memory_space<vmem>>, vector<1x32x24x128xbf16>
    %21 = vector.shape_cast %20 : vector<1x32x24x128xbf16> to vector<32x24x128xbf16>
    %22 = vector.shape_cast %21 : vector<32x24x128xbf16> to vector<768x128xbf16>
    %c3 = arith.constant 3 : index
    %c0_24 = arith.constant 0 : index
    %c0_25 = arith.constant 0 : index
    %23 = vector.load %arg2[%c3, %c0_24, %c0_25] : memref<4x128x32xbf16, #tpu.memory_space<vmem>>, vector<1x128x32xbf16>
    %24 = vector.shape_cast %23 : vector<1x128x32xbf16> to vector<128x32xbf16>
    %cst_26 = arith.constant dense<0.000000e+00> : vector<768x32xf32>
    %25 = tpu.matmul %22, %24, %cst_26 {dimension_numbers = #tpu.dot_dimension_numbers<[1], [0], [0], [1], [0, 0, 1, 1], [], []>} : vector<768x128xbf16>, vector<128x32xbf16>, vector<768x32xf32> -> vector<768x32xf32>
    %26 = arith.addf %19, %25 : vector<768x32xf32>
    %c0_27 = arith.constant 0 : index
    %c0_28 = arith.constant 0 : index
    %27 = vector.load %arg3[%c0_27, %c0_28] : memref<1x32xf32, #tpu.memory_space<vmem>>, vector<1x32xf32>
    %28 = vector.broadcast %27 : vector<1x32xf32> to vector<768x32xf32>
    %29 = arith.mulf %26, %28 : vector<768x32xf32>
    %c0_29 = arith.constant 0 : index
    %c0_30 = arith.constant 0 : index
    %30 = vector.load %arg4[%c0_29, %c0_30] : memref<1x32xf32, #tpu.memory_space<vmem>>, vector<1x32xf32>
    %31 = vector.broadcast %30 : vector<1x32xf32> to vector<768x32xf32>
    %32 = arith.addf %29, %31 : vector<768x32xf32>
    %cst_31 = arith.constant 0.000000e+00 : f32
    %33 = vector.broadcast %cst_31 : f32 to vector<768x32xf32>
    %34 = arith.maximumf %32, %33 : vector<768x32xf32>
    %35 = arith.truncf %34 : vector<768x32xf32> to vector<768x32xbf16>
    %c0_32 = arith.constant 0 : index
    %c0_33 = arith.constant 0 : index
    %c0_34 = arith.constant 0 : index
    %36 = vector.load %arg5[%c0_32, %c0_33, %c0_34] : memref<1x768x32xbf16, #tpu.memory_space<vmem>>, vector<1x768x32xbf16>
    %37 = vector.shape_cast %36 : vector<1x768x32xbf16> to vector<768x32xbf16>
    %38 = vector.shape_cast %35 : vector<768x32xbf16> to vector<1x768x32xbf16>
    tpu.vector_store %arg5[%c0_32, %c0_33, %c0_34], %38 {strides = array<i32>} : memref<1x768x32xbf16, #tpu.memory_space<vmem>>, vector<1x768x32xbf16>,
    return
  }
  func.func @transform_0(%arg0: i32) -> (i32, i32, i32, i32) {
    %c0_i32 = arith.constant 0 : i32
    %c0_i32_0 = arith.constant 0 : i32
    %c0_i32_1 = arith.constant 0 : i32
    %c0_i32_2 = arith.constant 0 : i32
    return %arg0, %c0_i32, %c0_i32_0, %c0_i32_1 : i32, i32, i32, i32
  }
  func.func @transform_1(%arg0: i32) -> (i32, i32, i32) {
    %c0_i32 = arith.constant 0 : i32
    %c0_i32_0 = arith.constant 0 : i32
    %c0_i32_1 = arith.constant 0 : i32
    %c0_i32_2 = arith.constant 0 : i32
    return %c0_i32, %c0_i32_0, %c0_i32_1 : i32, i32, i32
  }
  func.func @transform_2(%arg0: i32) -> (i32, i32) {
    %c0_i32 = arith.constant 0 : i32
    %c0_i32_0 = arith.constant 0 : i32
    %c0_i32_1 = arith.constant 0 : i32
    return %c0_i32, %c0_i32_0 : i32, i32
  }
  func.func @transform_3(%arg0: i32) -> (i32, i32) {
    %c0_i32 = arith.constant 0 : i32
    %c0_i32_0 = arith.constant 0 : i32
    %c0_i32_1 = arith.constant 0 : i32
    return %c0_i32, %c0_i32_0 : i32, i32
  }
  func.func @transform_4(%arg0: i32) -> (i32, i32, i32) {
    %c0_i32 = arith.constant 0 : i32
    %c0_i32_0 = arith.constant 0 : i32
    %c0_i32_1 = arith.constant 0 : i32
    return %arg0, %c0_i32, %c0_i32_0 : i32, i32, i32
  }
}

module attributes {stable_mosaic.version = 11 : i64} {
  func.func @_conv_s2d_kernel(%arg0: i32, %arg1: memref<1x17x17x128xbf16, #tpu.memory_space<vmem>>, %arg2: memref<4x128x64xbf16, #tpu.memory_space<vmem>>, %arg3: memref<1x64xf32, #tpu.memory_space<vmem>>, %arg4: memref<1x64xf32, #tpu.memory_space<vmem>>, %arg5: memref<1x256x64xbf16, #tpu.memory_space<vmem>>) attributes {dimension_semantics = [#tpu.dimension_semantics<parallel>], iteration_bounds = array<i64: 2>, scalar_prefetch = 0 : i64, scratch_operands = 0 : i64, tpu.core_type = #tpu.core_type<tc>, window_params = [{transform_indices = @transform_0, window_bounds = array<i64: 1, 17, 17, 128>}, {pipeline_mode = #tpu.pipeline_mode<synchronous>, transform_indices = @transform_1, window_bounds = array<i64: 4, 128, 64>}, {pipeline_mode = #tpu.pipeline_mode<synchronous>, transform_indices = @transform_2, window_bounds = array<i64: 1, 64>}, {pipeline_mode = #tpu.pipeline_mode<synchronous>, transform_indices = @transform_3, window_bounds = array<i64: 1, 64>}, {transform_indices = @transform_4, window_bounds = array<i64: 1, 256, 64>}]} {
    %c0 = arith.constant 0 : index
    %c0_0 = arith.constant 0 : index
    %c0_1 = arith.constant 0 : index
    %c0_2 = arith.constant 0 : index
    %0 = vector.load %arg1[%c0, %c0_0, %c0_1, %c0_2] : memref<1x17x17x128xbf16, #tpu.memory_space<vmem>>, vector<1x16x16x128xbf16>
    %1 = vector.shape_cast %0 : vector<1x16x16x128xbf16> to vector<16x16x128xbf16>
    %2 = vector.shape_cast %1 : vector<16x16x128xbf16> to vector<256x128xbf16>
    %c0_3 = arith.constant 0 : index
    %c0_4 = arith.constant 0 : index
    %c0_5 = arith.constant 0 : index
    %3 = vector.load %arg2[%c0_3, %c0_4, %c0_5] : memref<4x128x64xbf16, #tpu.memory_space<vmem>>, vector<1x128x64xbf16>
    %4 = vector.shape_cast %3 : vector<1x128x64xbf16> to vector<128x64xbf16>
    %cst = arith.constant dense<0.000000e+00> : vector<256x64xf32>
    %5 = tpu.matmul %2, %4, %cst {dimension_numbers = #tpu.dot_dimension_numbers<[1], [0], [0], [1], [0, 0, 1, 1], [], []>} : vector<256x128xbf16>, vector<128x64xbf16>, vector<256x64xf32> -> vector<256x64xf32>
    %c0_6 = arith.constant 0 : index
    %c0_7 = arith.constant 0 : index
    %c1 = arith.constant 1 : index
    %c0_8 = arith.constant 0 : index
    %6 = vector.load %arg1[%c0_6, %c0_7, %c1, %c0_8] : memref<1x17x17x128xbf16, #tpu.memory_space<vmem>>, vector<1x16x16x128xbf16>
    %7 = vector.shape_cast %6 : vector<1x16x16x128xbf16> to vector<16x16x128xbf16>
    %8 = vector.shape_cast %7 : vector<16x16x128xbf16> to vector<256x128xbf16>
    %c1_9 = arith.constant 1 : index
    %c0_10 = arith.constant 0 : index
    %c0_11 = arith.constant 0 : index
    %9 = vector.load %arg2[%c1_9, %c0_10, %c0_11] : memref<4x128x64xbf16, #tpu.memory_space<vmem>>, vector<1x128x64xbf16>
    %10 = vector.shape_cast %9 : vector<1x128x64xbf16> to vector<128x64xbf16>
    %cst_12 = arith.constant dense<0.000000e+00> : vector<256x64xf32>
    %11 = tpu.matmul %8, %10, %cst_12 {dimension_numbers = #tpu.dot_dimension_numbers<[1], [0], [0], [1], [0, 0, 1, 1], [], []>} : vector<256x128xbf16>, vector<128x64xbf16>, vector<256x64xf32> -> vector<256x64xf32>
    %12 = arith.addf %5, %11 : vector<256x64xf32>
    %c0_13 = arith.constant 0 : index
    %c1_14 = arith.constant 1 : index
    %c0_15 = arith.constant 0 : index
    %c0_16 = arith.constant 0 : index
    %13 = vector.load %arg1[%c0_13, %c1_14, %c0_15, %c0_16] : memref<1x17x17x128xbf16, #tpu.memory_space<vmem>>, vector<1x16x16x128xbf16>
    %14 = vector.shape_cast %13 : vector<1x16x16x128xbf16> to vector<16x16x128xbf16>
    %15 = vector.shape_cast %14 : vector<16x16x128xbf16> to vector<256x128xbf16>
    %c2 = arith.constant 2 : index
    %c0_17 = arith.constant 0 : index
    %c0_18 = arith.constant 0 : index
    %16 = vector.load %arg2[%c2, %c0_17, %c0_18] : memref<4x128x64xbf16, #tpu.memory_space<vmem>>, vector<1x128x64xbf16>
    %17 = vector.shape_cast %16 : vector<1x128x64xbf16> to vector<128x64xbf16>
    %cst_19 = arith.constant dense<0.000000e+00> : vector<256x64xf32>
    %18 = tpu.matmul %15, %17, %cst_19 {dimension_numbers = #tpu.dot_dimension_numbers<[1], [0], [0], [1], [0, 0, 1, 1], [], []>} : vector<256x128xbf16>, vector<128x64xbf16>, vector<256x64xf32> -> vector<256x64xf32>
    %19 = arith.addf %12, %18 : vector<256x64xf32>
    %c0_20 = arith.constant 0 : index
    %c1_21 = arith.constant 1 : index
    %c1_22 = arith.constant 1 : index
    %c0_23 = arith.constant 0 : index
    %20 = vector.load %arg1[%c0_20, %c1_21, %c1_22, %c0_23] : memref<1x17x17x128xbf16, #tpu.memory_space<vmem>>, vector<1x16x16x128xbf16>
    %21 = vector.shape_cast %20 : vector<1x16x16x128xbf16> to vector<16x16x128xbf16>
    %22 = vector.shape_cast %21 : vector<16x16x128xbf16> to vector<256x128xbf16>
    %c3 = arith.constant 3 : index
    %c0_24 = arith.constant 0 : index
    %c0_25 = arith.constant 0 : index
    %23 = vector.load %arg2[%c3, %c0_24, %c0_25] : memref<4x128x64xbf16, #tpu.memory_space<vmem>>, vector<1x128x64xbf16>
    %24 = vector.shape_cast %23 : vector<1x128x64xbf16> to vector<128x64xbf16>
    %cst_26 = arith.constant dense<0.000000e+00> : vector<256x64xf32>
    %25 = tpu.matmul %22, %24, %cst_26 {dimension_numbers = #tpu.dot_dimension_numbers<[1], [0], [0], [1], [0, 0, 1, 1], [], []>} : vector<256x128xbf16>, vector<128x64xbf16>, vector<256x64xf32> -> vector<256x64xf32>
    %26 = arith.addf %19, %25 : vector<256x64xf32>
    %c0_27 = arith.constant 0 : index
    %c0_28 = arith.constant 0 : index
    %27 = vector.load %arg3[%c0_27, %c0_28] : memref<1x64xf32, #tpu.memory_space<vmem>>, vector<1x64xf32>
    %28 = vector.broadcast %27 : vector<1x64xf32> to vector<256x64xf32>
    %29 = arith.mulf %26, %28 : vector<256x64xf32>
    %c0_29 = arith.constant 0 : index
    %c0_30 = arith.constant 0 : index
    %30 = vector.load %arg4[%c0_29, %c0_30] : memref<1x64xf32, #tpu.memory_space<vmem>>, vector<1x64xf32>
    %31 = vector.broadcast %30 : vector<1x64xf32> to vector<256x64xf32>
    %32 = arith.addf %29, %31 : vector<256x64xf32>
    %cst_31 = arith.constant 0.000000e+00 : f32
    %33 = vector.broadcast %cst_31 : f32 to vector<256x64xf32>
    %34 = arith.maximumf %32, %33 : vector<256x64xf32>
    %35 = arith.truncf %34 : vector<256x64xf32> to vector<256x64xbf16>
    %c0_32 = arith.constant 0 : index
    %c0_33 = arith.constant 0 : index
    %c0_34 = arith.constant 0 : index
    %36 = vector.load %arg5[%c0_32, %c0_33, %c0_34] : memref<1x256x64xbf16, #tpu.memory_space<vmem>>, vector<1x256x64xbf16>
    %37 = vector.shape_cast %36 : vector<1x256x64xbf16> to vector<256x64xbf16>
    %38 = vector.shape_cast %35 : vector<256x64xbf16> to vector<1x256x64xbf16>
    tpu.vector_store %arg5[%c0_32, %c0_33, %c0_34], %38 {strides = array<i32>} : memref<1x256x64xbf16, #tpu.memory_space<vmem>>, vector<1x256x64xbf16>,
    return
  }
  func.func @transform_0(%arg0: i32) -> (i32, i32, i32, i32) {
    %c0_i32 = arith.constant 0 : i32
    %c0_i32_0 = arith.constant 0 : i32
    %c0_i32_1 = arith.constant 0 : i32
    %c0_i32_2 = arith.constant 0 : i32
    return %arg0, %c0_i32, %c0_i32_0, %c0_i32_1 : i32, i32, i32, i32
  }
  func.func @transform_1(%arg0: i32) -> (i32, i32, i32) {
    %c0_i32 = arith.constant 0 : i32
    %c0_i32_0 = arith.constant 0 : i32
    %c0_i32_1 = arith.constant 0 : i32
    %c0_i32_2 = arith.constant 0 : i32
    return %c0_i32, %c0_i32_0, %c0_i32_1 : i32, i32, i32
  }
  func.func @transform_2(%arg0: i32) -> (i32, i32) {
    %c0_i32 = arith.constant 0 : i32
    %c0_i32_0 = arith.constant 0 : i32
    %c0_i32_1 = arith.constant 0 : i32
    return %c0_i32, %c0_i32_0 : i32, i32
  }
  func.func @transform_3(%arg0: i32) -> (i32, i32) {
    %c0_i32 = arith.constant 0 : i32
    %c0_i32_0 = arith.constant 0 : i32
    %c0_i32_1 = arith.constant 0 : i32
    return %c0_i32, %c0_i32_0 : i32, i32
  }
  func.func @transform_4(%arg0: i32) -> (i32, i32, i32) {
    %c0_i32 = arith.constant 0 : i32
    %c0_i32_0 = arith.constant 0 : i32
    %c0_i32_1 = arith.constant 0 : i32
    return %arg0, %c0_i32, %c0_i32_0 : i32, i32, i32
  }
}

module attributes {stable_mosaic.version = 11 : i64} {
  func.func @_conv_s2d_kernel(%arg0: i32, %arg1: memref<1x9x9x256xbf16, #tpu.memory_space<vmem>>, %arg2: memref<4x256x64xbf16, #tpu.memory_space<vmem>>, %arg3: memref<1x64xf32, #tpu.memory_space<vmem>>, %arg4: memref<1x64xf32, #tpu.memory_space<vmem>>, %arg5: memref<1x64x64xbf16, #tpu.memory_space<vmem>>) attributes {dimension_semantics = [#tpu.dimension_semantics<parallel>], iteration_bounds = array<i64: 2>, scalar_prefetch = 0 : i64, scratch_operands = 0 : i64, tpu.core_type = #tpu.core_type<tc>, window_params = [{transform_indices = @transform_0, window_bounds = array<i64: 1, 9, 9, 256>}, {pipeline_mode = #tpu.pipeline_mode<synchronous>, transform_indices = @transform_1, window_bounds = array<i64: 4, 256, 64>}, {pipeline_mode = #tpu.pipeline_mode<synchronous>, transform_indices = @transform_2, window_bounds = array<i64: 1, 64>}, {pipeline_mode = #tpu.pipeline_mode<synchronous>, transform_indices = @transform_3, window_bounds = array<i64: 1, 64>}, {transform_indices = @transform_4, window_bounds = array<i64: 1, 64, 64>}]} {
    %c0 = arith.constant 0 : index
    %c0_0 = arith.constant 0 : index
    %c0_1 = arith.constant 0 : index
    %c0_2 = arith.constant 0 : index
    %0 = vector.load %arg1[%c0, %c0_0, %c0_1, %c0_2] : memref<1x9x9x256xbf16, #tpu.memory_space<vmem>>, vector<1x8x8x256xbf16>
    %1 = vector.shape_cast %0 : vector<1x8x8x256xbf16> to vector<8x8x256xbf16>
    %2 = vector.shape_cast %1 : vector<8x8x256xbf16> to vector<64x256xbf16>
    %c0_3 = arith.constant 0 : index
    %c0_4 = arith.constant 0 : index
    %c0_5 = arith.constant 0 : index
    %3 = vector.load %arg2[%c0_3, %c0_4, %c0_5] : memref<4x256x64xbf16, #tpu.memory_space<vmem>>, vector<1x256x64xbf16>
    %4 = vector.shape_cast %3 : vector<1x256x64xbf16> to vector<256x64xbf16>
    %cst = arith.constant dense<0.000000e+00> : vector<64x64xf32>
    %5 = tpu.matmul %2, %4, %cst {dimension_numbers = #tpu.dot_dimension_numbers<[1], [0], [0], [1], [0, 0, 1, 1], [], []>} : vector<64x256xbf16>, vector<256x64xbf16>, vector<64x64xf32> -> vector<64x64xf32>
    %c0_6 = arith.constant 0 : index
    %c0_7 = arith.constant 0 : index
    %c1 = arith.constant 1 : index
    %c0_8 = arith.constant 0 : index
    %6 = vector.load %arg1[%c0_6, %c0_7, %c1, %c0_8] : memref<1x9x9x256xbf16, #tpu.memory_space<vmem>>, vector<1x8x8x256xbf16>
    %7 = vector.shape_cast %6 : vector<1x8x8x256xbf16> to vector<8x8x256xbf16>
    %8 = vector.shape_cast %7 : vector<8x8x256xbf16> to vector<64x256xbf16>
    %c1_9 = arith.constant 1 : index
    %c0_10 = arith.constant 0 : index
    %c0_11 = arith.constant 0 : index
    %9 = vector.load %arg2[%c1_9, %c0_10, %c0_11] : memref<4x256x64xbf16, #tpu.memory_space<vmem>>, vector<1x256x64xbf16>
    %10 = vector.shape_cast %9 : vector<1x256x64xbf16> to vector<256x64xbf16>
    %cst_12 = arith.constant dense<0.000000e+00> : vector<64x64xf32>
    %11 = tpu.matmul %8, %10, %cst_12 {dimension_numbers = #tpu.dot_dimension_numbers<[1], [0], [0], [1], [0, 0, 1, 1], [], []>} : vector<64x256xbf16>, vector<256x64xbf16>, vector<64x64xf32> -> vector<64x64xf32>
    %12 = arith.addf %5, %11 : vector<64x64xf32>
    %c0_13 = arith.constant 0 : index
    %c1_14 = arith.constant 1 : index
    %c0_15 = arith.constant 0 : index
    %c0_16 = arith.constant 0 : index
    %13 = vector.load %arg1[%c0_13, %c1_14, %c0_15, %c0_16] : memref<1x9x9x256xbf16, #tpu.memory_space<vmem>>, vector<1x8x8x256xbf16>
    %14 = vector.shape_cast %13 : vector<1x8x8x256xbf16> to vector<8x8x256xbf16>
    %15 = vector.shape_cast %14 : vector<8x8x256xbf16> to vector<64x256xbf16>
    %c2 = arith.constant 2 : index
    %c0_17 = arith.constant 0 : index
    %c0_18 = arith.constant 0 : index
    %16 = vector.load %arg2[%c2, %c0_17, %c0_18] : memref<4x256x64xbf16, #tpu.memory_space<vmem>>, vector<1x256x64xbf16>
    %17 = vector.shape_cast %16 : vector<1x256x64xbf16> to vector<256x64xbf16>
    %cst_19 = arith.constant dense<0.000000e+00> : vector<64x64xf32>
    %18 = tpu.matmul %15, %17, %cst_19 {dimension_numbers = #tpu.dot_dimension_numbers<[1], [0], [0], [1], [0, 0, 1, 1], [], []>} : vector<64x256xbf16>, vector<256x64xbf16>, vector<64x64xf32> -> vector<64x64xf32>
    %19 = arith.addf %12, %18 : vector<64x64xf32>
    %c0_20 = arith.constant 0 : index
    %c1_21 = arith.constant 1 : index
    %c1_22 = arith.constant 1 : index
    %c0_23 = arith.constant 0 : index
    %20 = vector.load %arg1[%c0_20, %c1_21, %c1_22, %c0_23] : memref<1x9x9x256xbf16, #tpu.memory_space<vmem>>, vector<1x8x8x256xbf16>
    %21 = vector.shape_cast %20 : vector<1x8x8x256xbf16> to vector<8x8x256xbf16>
    %22 = vector.shape_cast %21 : vector<8x8x256xbf16> to vector<64x256xbf16>
    %c3 = arith.constant 3 : index
    %c0_24 = arith.constant 0 : index
    %c0_25 = arith.constant 0 : index
    %23 = vector.load %arg2[%c3, %c0_24, %c0_25] : memref<4x256x64xbf16, #tpu.memory_space<vmem>>, vector<1x256x64xbf16>
    %24 = vector.shape_cast %23 : vector<1x256x64xbf16> to vector<256x64xbf16>
    %cst_26 = arith.constant dense<0.000000e+00> : vector<64x64xf32>
    %25 = tpu.matmul %22, %24, %cst_26 {dimension_numbers = #tpu.dot_dimension_numbers<[1], [0], [0], [1], [0, 0, 1, 1], [], []>} : vector<64x256xbf16>, vector<256x64xbf16>, vector<64x64xf32> -> vector<64x64xf32>
    %26 = arith.addf %19, %25 : vector<64x64xf32>
    %c0_27 = arith.constant 0 : index
    %c0_28 = arith.constant 0 : index
    %27 = vector.load %arg3[%c0_27, %c0_28] : memref<1x64xf32, #tpu.memory_space<vmem>>, vector<1x64xf32>
    %28 = vector.broadcast %27 : vector<1x64xf32> to vector<64x64xf32>
    %29 = arith.mulf %26, %28 : vector<64x64xf32>
    %c0_29 = arith.constant 0 : index
    %c0_30 = arith.constant 0 : index
    %30 = vector.load %arg4[%c0_29, %c0_30] : memref<1x64xf32, #tpu.memory_space<vmem>>, vector<1x64xf32>
    %31 = vector.broadcast %30 : vector<1x64xf32> to vector<64x64xf32>
    %32 = arith.addf %29, %31 : vector<64x64xf32>
    %cst_31 = arith.constant 0.000000e+00 : f32
    %33 = vector.broadcast %cst_31 : f32 to vector<64x64xf32>
    %34 = arith.maximumf %32, %33 : vector<64x64xf32>
    %35 = arith.truncf %34 : vector<64x64xf32> to vector<64x64xbf16>
    %c0_32 = arith.constant 0 : index
    %c0_33 = arith.constant 0 : index
    %c0_34 = arith.constant 0 : index
    %36 = vector.load %arg5[%c0_32, %c0_33, %c0_34] : memref<1x64x64xbf16, #tpu.memory_space<vmem>>, vector<1x64x64xbf16>
    %37 = vector.shape_cast %36 : vector<1x64x64xbf16> to vector<64x64xbf16>
    %38 = vector.shape_cast %35 : vector<64x64xbf16> to vector<1x64x64xbf16>
    tpu.vector_store %arg5[%c0_32, %c0_33, %c0_34], %38 {strides = array<i32>} : memref<1x64x64xbf16, #tpu.memory_space<vmem>>, vector<1x64x64xbf16>,
    return
  }
  func.func @transform_0(%arg0: i32) -> (i32, i32, i32, i32) {
    %c0_i32 = arith.constant 0 : i32
    %c0_i32_0 = arith.constant 0 : i32
    %c0_i32_1 = arith.constant 0 : i32
    %c0_i32_2 = arith.constant 0 : i32
    return %arg0, %c0_i32, %c0_i32_0, %c0_i32_1 : i32, i32, i32, i32
  }
  func.func @transform_1(%arg0: i32) -> (i32, i32, i32) {
    %c0_i32 = arith.constant 0 : i32
    %c0_i32_0 = arith.constant 0 : i32
    %c0_i32_1 = arith.constant 0 : i32
    %c0_i32_2 = arith.constant 0 : i32
    return %c0_i32, %c0_i32_0, %c0_i32_1 : i32, i32, i32
  }
  func.func @transform_2(%arg0: i32) -> (i32, i32) {
    %c0_i32 = arith.constant 0 : i32
    %c0_i32_0 = arith.constant 0 : i32
    %c0_i32_1 = arith.constant 0 : i32
    return %c0_i32, %c0_i32_0 : i32, i32
  }
  func.func @transform_3(%arg0: i32) -> (i32, i32) {
    %c0_i32 = arith.constant 0 : i32
    %c0_i32_0 = arith.constant 0 : i32
    %c0_i32_1 = arith.constant 0 : i32
    return %c0_i32, %c0_i32_0 : i32, i32
  }
  func.func @transform_4(%arg0: i32) -> (i32, i32, i32) {
    %c0_i32 = arith.constant 0 : i32
    %c0_i32_0 = arith.constant 0 : i32
    %c0_i32_1 = arith.constant 0 : i32
    return %arg0, %c0_i32, %c0_i32_0 : i32, i32, i32
  }
}

module attributes {stable_mosaic.version = 11 : i64} {
  func.func @_conv_s2d_kernel(%arg0: i32, %arg1: memref<1x5x9x256xbf16, #tpu.memory_space<vmem>>, %arg2: memref<4x256x128xbf16, #tpu.memory_space<vmem>>, %arg3: memref<1x128xf32, #tpu.memory_space<vmem>>, %arg4: memref<1x128xf32, #tpu.memory_space<vmem>>, %arg5: memref<1x32x128xbf16, #tpu.memory_space<vmem>>) attributes {dimension_semantics = [#tpu.dimension_semantics<parallel>], iteration_bounds = array<i64: 2>, scalar_prefetch = 0 : i64, scratch_operands = 0 : i64, tpu.core_type = #tpu.core_type<tc>, window_params = [{transform_indices = @transform_0, window_bounds = array<i64: 1, 5, 9, 256>}, {pipeline_mode = #tpu.pipeline_mode<synchronous>, transform_indices = @transform_1, window_bounds = array<i64: 4, 256, 128>}, {pipeline_mode = #tpu.pipeline_mode<synchronous>, transform_indices = @transform_2, window_bounds = array<i64: 1, 128>}, {pipeline_mode = #tpu.pipeline_mode<synchronous>, transform_indices = @transform_3, window_bounds = array<i64: 1, 128>}, {transform_indices = @transform_4, window_bounds = array<i64: 1, 32, 128>}]} {
    %c0 = arith.constant 0 : index
    %c0_0 = arith.constant 0 : index
    %c0_1 = arith.constant 0 : index
    %c0_2 = arith.constant 0 : index
    %0 = vector.load %arg1[%c0, %c0_0, %c0_1, %c0_2] : memref<1x5x9x256xbf16, #tpu.memory_space<vmem>>, vector<1x4x8x256xbf16>
    %1 = vector.shape_cast %0 : vector<1x4x8x256xbf16> to vector<4x8x256xbf16>
    %2 = vector.shape_cast %1 : vector<4x8x256xbf16> to vector<32x256xbf16>
    %c0_3 = arith.constant 0 : index
    %c0_4 = arith.constant 0 : index
    %c0_5 = arith.constant 0 : index
    %3 = vector.load %arg2[%c0_3, %c0_4, %c0_5] : memref<4x256x128xbf16, #tpu.memory_space<vmem>>, vector<1x256x128xbf16>
    %4 = vector.shape_cast %3 : vector<1x256x128xbf16> to vector<256x128xbf16>
    %cst = arith.constant dense<0.000000e+00> : vector<32x128xf32>
    %5 = tpu.matmul %2, %4, %cst {dimension_numbers = #tpu.dot_dimension_numbers<[1], [0], [0], [1], [0, 0, 1, 1], [], []>} : vector<32x256xbf16>, vector<256x128xbf16>, vector<32x128xf32> -> vector<32x128xf32>
    %c0_6 = arith.constant 0 : index
    %c0_7 = arith.constant 0 : index
    %c1 = arith.constant 1 : index
    %c0_8 = arith.constant 0 : index
    %6 = vector.load %arg1[%c0_6, %c0_7, %c1, %c0_8] : memref<1x5x9x256xbf16, #tpu.memory_space<vmem>>, vector<1x4x8x256xbf16>
    %7 = vector.shape_cast %6 : vector<1x4x8x256xbf16> to vector<4x8x256xbf16>
    %8 = vector.shape_cast %7 : vector<4x8x256xbf16> to vector<32x256xbf16>
    %c1_9 = arith.constant 1 : index
    %c0_10 = arith.constant 0 : index
    %c0_11 = arith.constant 0 : index
    %9 = vector.load %arg2[%c1_9, %c0_10, %c0_11] : memref<4x256x128xbf16, #tpu.memory_space<vmem>>, vector<1x256x128xbf16>
    %10 = vector.shape_cast %9 : vector<1x256x128xbf16> to vector<256x128xbf16>
    %cst_12 = arith.constant dense<0.000000e+00> : vector<32x128xf32>
    %11 = tpu.matmul %8, %10, %cst_12 {dimension_numbers = #tpu.dot_dimension_numbers<[1], [0], [0], [1], [0, 0, 1, 1], [], []>} : vector<32x256xbf16>, vector<256x128xbf16>, vector<32x128xf32> -> vector<32x128xf32>
    %12 = arith.addf %5, %11 : vector<32x128xf32>
    %c0_13 = arith.constant 0 : index
    %c1_14 = arith.constant 1 : index
    %c0_15 = arith.constant 0 : index
    %c0_16 = arith.constant 0 : index
    %13 = vector.load %arg1[%c0_13, %c1_14, %c0_15, %c0_16] : memref<1x5x9x256xbf16, #tpu.memory_space<vmem>>, vector<1x4x8x256xbf16>
    %14 = vector.shape_cast %13 : vector<1x4x8x256xbf16> to vector<4x8x256xbf16>
    %15 = vector.shape_cast %14 : vector<4x8x256xbf16> to vector<32x256xbf16>
    %c2 = arith.constant 2 : index
    %c0_17 = arith.constant 0 : index
    %c0_18 = arith.constant 0 : index
    %16 = vector.load %arg2[%c2, %c0_17, %c0_18] : memref<4x256x128xbf16, #tpu.memory_space<vmem>>, vector<1x256x128xbf16>
    %17 = vector.shape_cast %16 : vector<1x256x128xbf16> to vector<256x128xbf16>
    %cst_19 = arith.constant dense<0.000000e+00> : vector<32x128xf32>
    %18 = tpu.matmul %15, %17, %cst_19 {dimension_numbers = #tpu.dot_dimension_numbers<[1], [0], [0], [1], [0, 0, 1, 1], [], []>} : vector<32x256xbf16>, vector<256x128xbf16>, vector<32x128xf32> -> vector<32x128xf32>
    %19 = arith.addf %12, %18 : vector<32x128xf32>
    %c0_20 = arith.constant 0 : index
    %c1_21 = arith.constant 1 : index
    %c1_22 = arith.constant 1 : index
    %c0_23 = arith.constant 0 : index
    %20 = vector.load %arg1[%c0_20, %c1_21, %c1_22, %c0_23] : memref<1x5x9x256xbf16, #tpu.memory_space<vmem>>, vector<1x4x8x256xbf16>
    %21 = vector.shape_cast %20 : vector<1x4x8x256xbf16> to vector<4x8x256xbf16>
    %22 = vector.shape_cast %21 : vector<4x8x256xbf16> to vector<32x256xbf16>
    %c3 = arith.constant 3 : index
    %c0_24 = arith.constant 0 : index
    %c0_25 = arith.constant 0 : index
    %23 = vector.load %arg2[%c3, %c0_24, %c0_25] : memref<4x256x128xbf16, #tpu.memory_space<vmem>>, vector<1x256x128xbf16>
    %24 = vector.shape_cast %23 : vector<1x256x128xbf16> to vector<256x128xbf16>
    %cst_26 = arith.constant dense<0.000000e+00> : vector<32x128xf32>
    %25 = tpu.matmul %22, %24, %cst_26 {dimension_numbers = #tpu.dot_dimension_numbers<[1], [0], [0], [1], [0, 0, 1, 1], [], []>} : vector<32x256xbf16>, vector<256x128xbf16>, vector<32x128xf32> -> vector<32x128xf32>
    %26 = arith.addf %19, %25 : vector<32x128xf32>
    %c0_27 = arith.constant 0 : index
    %c0_28 = arith.constant 0 : index
    %27 = vector.load %arg3[%c0_27, %c0_28] : memref<1x128xf32, #tpu.memory_space<vmem>>, vector<1x128xf32>
    %28 = vector.broadcast %27 : vector<1x128xf32> to vector<32x128xf32>
    %29 = arith.mulf %26, %28 : vector<32x128xf32>
    %c0_29 = arith.constant 0 : index
    %c0_30 = arith.constant 0 : index
    %30 = vector.load %arg4[%c0_29, %c0_30] : memref<1x128xf32, #tpu.memory_space<vmem>>, vector<1x128xf32>
    %31 = vector.broadcast %30 : vector<1x128xf32> to vector<32x128xf32>
    %32 = arith.addf %29, %31 : vector<32x128xf32>
    %cst_31 = arith.constant 0.000000e+00 : f32
    %33 = vector.broadcast %cst_31 : f32 to vector<32x128xf32>
    %34 = arith.maximumf %32, %33 : vector<32x128xf32>
    %35 = arith.truncf %34 : vector<32x128xf32> to vector<32x128xbf16>
    %c0_32 = arith.constant 0 : index
    %c0_33 = arith.constant 0 : index
    %c0_34 = arith.constant 0 : index
    %36 = vector.load %arg5[%c0_32, %c0_33, %c0_34] : memref<1x32x128xbf16, #tpu.memory_space<vmem>>, vector<1x32x128xbf16>
    %37 = vector.shape_cast %36 : vector<1x32x128xbf16> to vector<32x128xbf16>
    %38 = vector.shape_cast %35 : vector<32x128xbf16> to vector<1x32x128xbf16>
    tpu.vector_store %arg5[%c0_32, %c0_33, %c0_34], %38 {strides = array<i32>} : memref<1x32x128xbf16, #tpu.memory_space<vmem>>, vector<1x32x128xbf16>,
    return
  }
  func.func @transform_0(%arg0: i32) -> (i32, i32, i32, i32) {
    %c0_i32 = arith.constant 0 : i32
    %c0_i32_0 = arith.constant 0 : i32
    %c0_i32_1 = arith.constant 0 : i32
    %c0_i32_2 = arith.constant 0 : i32
    return %arg0, %c0_i32, %c0_i32_0, %c0_i32_1 : i32, i32, i32, i32
  }
  func.func @transform_1(%arg0: i32) -> (i32, i32, i32) {
    %c0_i32 = arith.constant 0 : i32
    %c0_i32_0 = arith.constant 0 : i32
    %c0_i32_1 = arith.constant 0 : i32
    %c0_i32_2 = arith.constant 0 : i32
    return %c0_i32, %c0_i32_0, %c0_i32_1 : i32, i32, i32
  }
  func.func @transform_2(%arg0: i32) -> (i32, i32) {
    %c0_i32 = arith.constant 0 : i32
    %c0_i32_0 = arith.constant 0 : i32
    %c0_i32_1 = arith.constant 0 : i32
    return %c0_i32, %c0_i32_0 : i32, i32
  }
  func.func @transform_3(%arg0: i32) -> (i32, i32) {
    %c0_i32 = arith.constant 0 : i32
    %c0_i32_0 = arith.constant 0 : i32
    %c0_i32_1 = arith.constant 0 : i32
    return %c0_i32, %c0_i32_0 : i32, i32
  }
  func.func @transform_4(%arg0: i32) -> (i32, i32, i32) {
    %c0_i32 = arith.constant 0 : i32
    %c0_i32_0 = arith.constant 0 : i32
    %c0_i32_1 = arith.constant 0 : i32
    return %arg0, %c0_i32, %c0_i32_0 : i32, i32, i32
  }
}

module attributes {stable_mosaic.version = 11 : i64} {
  func.func @_conv_s2d_kernel(%arg0: i32, %arg1: memref<1x3x9x512xbf16, #tpu.memory_space<vmem>>, %arg2: memref<4x512x128xbf16, #tpu.memory_space<vmem>>, %arg3: memref<1x128xf32, #tpu.memory_space<vmem>>, %arg4: memref<1x128xf32, #tpu.memory_space<vmem>>, %arg5: memref<1x16x128xbf16, #tpu.memory_space<vmem>>) attributes {dimension_semantics = [#tpu.dimension_semantics<parallel>], iteration_bounds = array<i64: 2>, scalar_prefetch = 0 : i64, scratch_operands = 0 : i64, tpu.core_type = #tpu.core_type<tc>, window_params = [{transform_indices = @transform_0, window_bounds = array<i64: 1, 3, 9, 512>}, {pipeline_mode = #tpu.pipeline_mode<synchronous>, transform_indices = @transform_1, window_bounds = array<i64: 4, 512, 128>}, {pipeline_mode = #tpu.pipeline_mode<synchronous>, transform_indices = @transform_2, window_bounds = array<i64: 1, 128>}, {pipeline_mode = #tpu.pipeline_mode<synchronous>, transform_indices = @transform_3, window_bounds = array<i64: 1, 128>}, {transform_indices = @transform_4, window_bounds = array<i64: 1, 16, 128>}]} {
    %c0 = arith.constant 0 : index
    %c0_0 = arith.constant 0 : index
    %c0_1 = arith.constant 0 : index
    %c0_2 = arith.constant 0 : index
    %0 = vector.load %arg1[%c0, %c0_0, %c0_1, %c0_2] : memref<1x3x9x512xbf16, #tpu.memory_space<vmem>>, vector<1x2x8x512xbf16>
    %1 = vector.shape_cast %0 : vector<1x2x8x512xbf16> to vector<2x8x512xbf16>
    %2 = vector.shape_cast %1 : vector<2x8x512xbf16> to vector<16x512xbf16>
    %c0_3 = arith.constant 0 : index
    %c0_4 = arith.constant 0 : index
    %c0_5 = arith.constant 0 : index
    %3 = vector.load %arg2[%c0_3, %c0_4, %c0_5] : memref<4x512x128xbf16, #tpu.memory_space<vmem>>, vector<1x512x128xbf16>
    %4 = vector.shape_cast %3 : vector<1x512x128xbf16> to vector<512x128xbf16>
    %cst = arith.constant dense<0.000000e+00> : vector<16x128xf32>
    %5 = tpu.matmul %2, %4, %cst {dimension_numbers = #tpu.dot_dimension_numbers<[1], [0], [0], [1], [0, 0, 1, 1], [], []>} : vector<16x512xbf16>, vector<512x128xbf16>, vector<16x128xf32> -> vector<16x128xf32>
    %c0_6 = arith.constant 0 : index
    %c0_7 = arith.constant 0 : index
    %c1 = arith.constant 1 : index
    %c0_8 = arith.constant 0 : index
    %6 = vector.load %arg1[%c0_6, %c0_7, %c1, %c0_8] : memref<1x3x9x512xbf16, #tpu.memory_space<vmem>>, vector<1x2x8x512xbf16>
    %7 = vector.shape_cast %6 : vector<1x2x8x512xbf16> to vector<2x8x512xbf16>
    %8 = vector.shape_cast %7 : vector<2x8x512xbf16> to vector<16x512xbf16>
    %c1_9 = arith.constant 1 : index
    %c0_10 = arith.constant 0 : index
    %c0_11 = arith.constant 0 : index
    %9 = vector.load %arg2[%c1_9, %c0_10, %c0_11] : memref<4x512x128xbf16, #tpu.memory_space<vmem>>, vector<1x512x128xbf16>
    %10 = vector.shape_cast %9 : vector<1x512x128xbf16> to vector<512x128xbf16>
    %cst_12 = arith.constant dense<0.000000e+00> : vector<16x128xf32>
    %11 = tpu.matmul %8, %10, %cst_12 {dimension_numbers = #tpu.dot_dimension_numbers<[1], [0], [0], [1], [0, 0, 1, 1], [], []>} : vector<16x512xbf16>, vector<512x128xbf16>, vector<16x128xf32> -> vector<16x128xf32>
    %12 = arith.addf %5, %11 : vector<16x128xf32>
    %c0_13 = arith.constant 0 : index
    %c1_14 = arith.constant 1 : index
    %c0_15 = arith.constant 0 : index
    %c0_16 = arith.constant 0 : index
    %13 = vector.load %arg1[%c0_13, %c1_14, %c0_15, %c0_16] : memref<1x3x9x512xbf16, #tpu.memory_space<vmem>>, vector<1x2x8x512xbf16>
    %14 = vector.shape_cast %13 : vector<1x2x8x512xbf16> to vector<2x8x512xbf16>
    %15 = vector.shape_cast %14 : vector<2x8x512xbf16> to vector<16x512xbf16>
    %c2 = arith.constant 2 : index
    %c0_17 = arith.constant 0 : index
    %c0_18 = arith.constant 0 : index
    %16 = vector.load %arg2[%c2, %c0_17, %c0_18] : memref<4x512x128xbf16, #tpu.memory_space<vmem>>, vector<1x512x128xbf16>
    %17 = vector.shape_cast %16 : vector<1x512x128xbf16> to vector<512x128xbf16>
    %cst_19 = arith.constant dense<0.000000e+00> : vector<16x128xf32>
    %18 = tpu.matmul %15, %17, %cst_19 {dimension_numbers = #tpu.dot_dimension_numbers<[1], [0], [0], [1], [0, 0, 1, 1], [], []>} : vector<16x512xbf16>, vector<512x128xbf16>, vector<16x128xf32> -> vector<16x128xf32>
    %19 = arith.addf %12, %18 : vector<16x128xf32>
    %c0_20 = arith.constant 0 : index
    %c1_21 = arith.constant 1 : index
    %c1_22 = arith.constant 1 : index
    %c0_23 = arith.constant 0 : index
    %20 = vector.load %arg1[%c0_20, %c1_21, %c1_22, %c0_23] : memref<1x3x9x512xbf16, #tpu.memory_space<vmem>>, vector<1x2x8x512xbf16>
    %21 = vector.shape_cast %20 : vector<1x2x8x512xbf16> to vector<2x8x512xbf16>
    %22 = vector.shape_cast %21 : vector<2x8x512xbf16> to vector<16x512xbf16>
    %c3 = arith.constant 3 : index
    %c0_24 = arith.constant 0 : index
    %c0_25 = arith.constant 0 : index
    %23 = vector.load %arg2[%c3, %c0_24, %c0_25] : memref<4x512x128xbf16, #tpu.memory_space<vmem>>, vector<1x512x128xbf16>
    %24 = vector.shape_cast %23 : vector<1x512x128xbf16> to vector<512x128xbf16>
    %cst_26 = arith.constant dense<0.000000e+00> : vector<16x128xf32>
    %25 = tpu.matmul %22, %24, %cst_26 {dimension_numbers = #tpu.dot_dimension_numbers<[1], [0], [0], [1], [0, 0, 1, 1], [], []>} : vector<16x512xbf16>, vector<512x128xbf16>, vector<16x128xf32> -> vector<16x128xf32>
    %26 = arith.addf %19, %25 : vector<16x128xf32>
    %c0_27 = arith.constant 0 : index
    %c0_28 = arith.constant 0 : index
    %27 = vector.load %arg3[%c0_27, %c0_28] : memref<1x128xf32, #tpu.memory_space<vmem>>, vector<1x128xf32>
    %28 = vector.broadcast %27 : vector<1x128xf32> to vector<16x128xf32>
    %29 = arith.mulf %26, %28 : vector<16x128xf32>
    %c0_29 = arith.constant 0 : index
    %c0_30 = arith.constant 0 : index
    %30 = vector.load %arg4[%c0_29, %c0_30] : memref<1x128xf32, #tpu.memory_space<vmem>>, vector<1x128xf32>
    %31 = vector.broadcast %30 : vector<1x128xf32> to vector<16x128xf32>
    %32 = arith.addf %29, %31 : vector<16x128xf32>
    %cst_31 = arith.constant 0.000000e+00 : f32
    %33 = vector.broadcast %cst_31 : f32 to vector<16x128xf32>
    %34 = arith.maximumf %32, %33 : vector<16x128xf32>
    %35 = arith.truncf %34 : vector<16x128xf32> to vector<16x128xbf16>
    %c0_32 = arith.constant 0 : index
    %c0_33 = arith.constant 0 : index
    %c0_34 = arith.constant 0 : index
    %36 = vector.load %arg5[%c0_32, %c0_33, %c0_34] : memref<1x16x128xbf16, #tpu.memory_space<vmem>>, vector<1x16x128xbf16>
    %37 = vector.shape_cast %36 : vector<1x16x128xbf16> to vector<16x128xbf16>
    %38 = vector.shape_cast %35 : vector<16x128xbf16> to vector<1x16x128xbf16>
    tpu.vector_store %arg5[%c0_32, %c0_33, %c0_34], %38 {strides = array<i32>} : memref<1x16x128xbf16, #tpu.memory_space<vmem>>, vector<1x16x128xbf16>,
    return
  }
  func.func @transform_0(%arg0: i32) -> (i32, i32, i32, i32) {
    %c0_i32 = arith.constant 0 : i32
    %c0_i32_0 = arith.constant 0 : i32
    %c0_i32_1 = arith.constant 0 : i32
    %c0_i32_2 = arith.constant 0 : i32
    return %arg0, %c0_i32, %c0_i32_0, %c0_i32_1 : i32, i32, i32, i32
  }
  func.func @transform_1(%arg0: i32) -> (i32, i32, i32) {
    %c0_i32 = arith.constant 0 : i32
    %c0_i32_0 = arith.constant 0 : i32
    %c0_i32_1 = arith.constant 0 : i32
    %c0_i32_2 = arith.constant 0 : i32
    return %c0_i32, %c0_i32_0, %c0_i32_1 : i32, i32, i32
  }
  func.func @transform_2(%arg0: i32) -> (i32, i32) {
    %c0_i32 = arith.constant 0 : i32
    %c0_i32_0 = arith.constant 0 : i32
    %c0_i32_1 = arith.constant 0 : i32
    return %c0_i32, %c0_i32_0 : i32, i32
  }
  func.func @transform_3(%arg0: i32) -> (i32, i32) {
    %c0_i32 = arith.constant 0 : i32
    %c0_i32_0 = arith.constant 0 : i32
    %c0_i32_1 = arith.constant 0 : i32
    return %c0_i32, %c0_i32_0 : i32, i32
  }
  func.func @transform_4(%arg0: i32) -> (i32, i32, i32) {
    %c0_i32 = arith.constant 0 : i32
    %c0_i32_0 = arith.constant 0 : i32
    %c0_i32_1 = arith.constant 0 : i32
    return %arg0, %c0_i32, %c0_i32_0 : i32, i32, i32
  }
}

module attributes {stable_mosaic.version = 11 : i64} {
  func.func @_matmul_affine_kernel(%arg0: i32, %arg1: memref<4x256xbf16, #tpu.memory_space<vmem>>, %arg2: memref<256x384xbf16, #tpu.memory_space<vmem>>, %arg3: memref<1x384xf32, #tpu.memory_space<vmem>>, %arg4: memref<1x384xf32, #tpu.memory_space<vmem>>, %arg5: memref<4x384xf32, #tpu.memory_space<vmem>>) attributes {dimension_semantics = [#tpu.dimension_semantics<parallel>], iteration_bounds = array<i64: 1>, scalar_prefetch = 0 : i64, scratch_operands = 0 : i64, tpu.core_type = #tpu.core_type<tc>, window_params = [{transform_indices = @transform_0, window_bounds = array<i64: 4, 256>}, {pipeline_mode = #tpu.pipeline_mode<synchronous>, transform_indices = @transform_1, window_bounds = array<i64: 256, 384>}, {pipeline_mode = #tpu.pipeline_mode<synchronous>, transform_indices = @transform_2, window_bounds = array<i64: 1, 384>}, {pipeline_mode = #tpu.pipeline_mode<synchronous>, transform_indices = @transform_3, window_bounds = array<i64: 1, 384>}, {transform_indices = @transform_4, window_bounds = array<i64: 4, 384>}]} {
    %c0 = arith.constant 0 : index
    %c0_0 = arith.constant 0 : index
    %0 = vector.load %arg1[%c0, %c0_0] : memref<4x256xbf16, #tpu.memory_space<vmem>>, vector<4x256xbf16>
    %c0_1 = arith.constant 0 : index
    %c0_2 = arith.constant 0 : index
    %1 = vector.load %arg2[%c0_1, %c0_2] : memref<256x384xbf16, #tpu.memory_space<vmem>>, vector<256x384xbf16>
    %cst = arith.constant dense<0.000000e+00> : vector<4x384xf32>
    %2 = tpu.matmul %0, %1, %cst {dimension_numbers = #tpu.dot_dimension_numbers<[1], [0], [0], [1], [0, 0, 1, 1], [], []>} : vector<4x256xbf16>, vector<256x384xbf16>, vector<4x384xf32> -> vector<4x384xf32>
    %c0_3 = arith.constant 0 : index
    %c0_4 = arith.constant 0 : index
    %3 = vector.load %arg3[%c0_3, %c0_4] : memref<1x384xf32, #tpu.memory_space<vmem>>, vector<1x384xf32>
    %4 = vector.broadcast %3 : vector<1x384xf32> to vector<4x384xf32>
    %5 = arith.mulf %2, %4 : vector<4x384xf32>
    %c0_5 = arith.constant 0 : index
    %c0_6 = arith.constant 0 : index
    %6 = vector.load %arg4[%c0_5, %c0_6] : memref<1x384xf32, #tpu.memory_space<vmem>>, vector<1x384xf32>
    %7 = vector.broadcast %6 : vector<1x384xf32> to vector<4x384xf32>
    %8 = arith.addf %5, %7 : vector<4x384xf32>
    %c0_7 = arith.constant 0 : index
    %c0_8 = arith.constant 0 : index
    %9 = vector.load %arg5[%c0_7, %c0_8] : memref<4x384xf32, #tpu.memory_space<vmem>>, vector<4x384xf32>
    tpu.vector_store %arg5[%c0_7, %c0_8], %8 {strides = array<i32>} : memref<4x384xf32, #tpu.memory_space<vmem>>, vector<4x384xf32>,
    return
  }
  func.func @transform_0(%arg0: i32) -> (i32, i32) {
    %c0_i32 = arith.constant 0 : i32
    %c0_i32_0 = arith.constant 0 : i32
    return %arg0, %c0_i32 : i32, i32
  }
  func.func @transform_1(%arg0: i32) -> (i32, i32) {
    %c0_i32 = arith.constant 0 : i32
    %c0_i32_0 = arith.constant 0 : i32
    %c0_i32_1 = arith.constant 0 : i32
    return %c0_i32, %c0_i32_0 : i32, i32
  }
  func.func @transform_2(%arg0: i32) -> (i32, i32) {
    %c0_i32 = arith.constant 0 : i32
    %c0_i32_0 = arith.constant 0 : i32
    %c0_i32_1 = arith.constant 0 : i32
    return %c0_i32, %c0_i32_0 : i32, i32
  }
  func.func @transform_3(%arg0: i32) -> (i32, i32) {
    %c0_i32 = arith.constant 0 : i32
    %c0_i32_0 = arith.constant 0 : i32
    %c0_i32_1 = arith.constant 0 : i32
    return %c0_i32, %c0_i32_0 : i32, i32
  }
  func.func @transform_4(%arg0: i32) -> (i32, i32) {
    %c0_i32 = arith.constant 0 : i32
    %c0_i32_0 = arith.constant 0 : i32
    return %arg0, %c0_i32 : i32, i32
  }
}

module attributes {stable_mosaic.version = 11 : i64} {
  func.func @_gru_fused_kernel(%arg0: i32, %arg1: memref<1x2x384xf32, #tpu.memory_space<vmem>>, %arg2: memref<128x384xf32, #tpu.memory_space<vmem>>, %arg3: memref<1x384xf32, #tpu.memory_space<vmem>>, %arg4: memref<2x128xf32, #tpu.memory_space<vmem>>) attributes {dimension_semantics = [#tpu.dimension_semantics<arbitrary>], iteration_bounds = array<i64: 2>, scalar_prefetch = 0 : i64, scratch_operands = 0 : i64, tpu.core_type = #tpu.core_type<tc>, window_params = [{transform_indices = @transform_0, window_bounds = array<i64: 1, 2, 384>}, {pipeline_mode = #tpu.pipeline_mode<synchronous>, transform_indices = @transform_1, window_bounds = array<i64: 128, 384>}, {pipeline_mode = #tpu.pipeline_mode<synchronous>, transform_indices = @transform_2, window_bounds = array<i64: 1, 384>}, {pipeline_mode = #tpu.pipeline_mode<synchronous>, transform_indices = @transform_3, window_bounds = array<i64: 2, 128>}]} {
    %c0_i32 = arith.constant 0 : i32
    %0 = arith.cmpi eq, %arg0, %c0_i32 : i32
    %1 = arith.extui %0 : i1 to i32
    %c0_i32_0 = arith.constant 0 : i32
    %2 = arith.cmpi ne, %1, %c0_i32_0 : i32
    scf.if %2 {
      %cst_14 = arith.constant 0.000000e+00 : f32
      %38 = vector.broadcast %cst_14 : f32 to vector<2x128xf32>
      %c0_15 = arith.constant 0 : index
      %c0_16 = arith.constant 0 : index
      %39 = vector.load %arg4[%c0_15, %c0_16] : memref<2x128xf32, #tpu.memory_space<vmem>>, vector<2x128xf32>
      tpu.vector_store %arg4[%c0_15, %c0_16], %38 {strides = array<i32>} : memref<2x128xf32, #tpu.memory_space<vmem>>, vector<2x128xf32>,
    } else {
    }
    %c0 = arith.constant 0 : index
    %c0_1 = arith.constant 0 : index
    %3 = vector.load %arg4[%c0, %c0_1] : memref<2x128xf32, #tpu.memory_space<vmem>>, vector<2x128xf32>
    %c0_2 = arith.constant 0 : index
    %c0_3 = arith.constant 0 : index
    %c0_4 = arith.constant 0 : index
    %4 = vector.load %arg1[%c0_2, %c0_3, %c0_4] : memref<1x2x384xf32, #tpu.memory_space<vmem>>, vector<1x2x384xf32>
    %5 = vector.shape_cast %4 : vector<1x2x384xf32> to vector<2x384xf32>
    %c0_5 = arith.constant 0 : index
    %c0_6 = arith.constant 0 : index
    %6 = vector.load %arg2[%c0_5, %c0_6] : memref<128x384xf32, #tpu.memory_space<vmem>>, vector<128x384xf32>
    %cst = arith.constant dense<0.000000e+00> : vector<2x384xf32>
    %7 = tpu.matmul %3, %6, %cst {dimension_numbers = #tpu.dot_dimension_numbers<[1], [0], [0], [1], [0, 0, 1, 1], [], []>} : vector<2x128xf32>, vector<128x384xf32>, vector<2x384xf32> -> vector<2x384xf32>
    %c0_7 = arith.constant 0 : index
    %c0_8 = arith.constant 0 : index
    %8 = vector.load %arg3[%c0_7, %c0_8] : memref<1x384xf32, #tpu.memory_space<vmem>>, vector<1x384xf32>
    %9 = vector.broadcast %8 : vector<1x384xf32> to vector<2x384xf32>
    %10 = arith.addf %7, %9 : vector<2x384xf32>
    %11 = vector.extract_strided_slice %5 {offsets = [0, 0], sizes = [2, 128], strides = [1, 1]} : vector<2x384xf32> to vector<2x128xf32>
    %12 = vector.extract_strided_slice %10 {offsets = [0, 0], sizes = [2, 128], strides = [1, 1]} : vector<2x384xf32> to vector<2x128xf32>
    %13 = arith.addf %11, %12 : vector<2x128xf32>
    %14 = arith.negf %13 : vector<2x128xf32>
    %15 = math.exp %14 : vector<2x128xf32>
    %cst_9 = arith.constant 1.000000e+00 : f32
    %16 = vector.broadcast %cst_9 : f32 to vector<2x128xf32>
    %17 = arith.addf %16, %15 : vector<2x128xf32>
    %18 = arith.divf %16, %17 : vector<2x128xf32>
    %19 = vector.extract_strided_slice %5 {offsets = [0, 128], sizes = [2, 128], strides = [1, 1]} : vector<2x384xf32> to vector<2x128xf32>
    %20 = vector.extract_strided_slice %10 {offsets = [0, 128], sizes = [2, 128], strides = [1, 1]} : vector<2x384xf32> to vector<2x128xf32>
    %21 = arith.addf %19, %20 : vector<2x128xf32>
    %22 = arith.negf %21 : vector<2x128xf32>
    %23 = math.exp %22 : vector<2x128xf32>
    %cst_10 = arith.constant 1.000000e+00 : f32
    %24 = vector.broadcast %cst_10 : f32 to vector<2x128xf32>
    %25 = arith.addf %24, %23 : vector<2x128xf32>
    %26 = arith.divf %24, %25 : vector<2x128xf32>
    %27 = vector.extract_strided_slice %5 {offsets = [0, 256], sizes = [2, 128], strides = [1, 1]} : vector<2x384xf32> to vector<2x128xf32>
    %28 = vector.extract_strided_slice %10 {offsets = [0, 256], sizes = [2, 128], strides = [1, 1]} : vector<2x384xf32> to vector<2x128xf32>
    %29 = arith.mulf %18, %28 : vector<2x128xf32>
    %30 = arith.addf %27, %29 : vector<2x128xf32>
    %31 = math.tanh %30 : vector<2x128xf32>
    %cst_11 = arith.constant 1.000000e+00 : f32
    %32 = vector.broadcast %cst_11 : f32 to vector<2x128xf32>
    %33 = arith.subf %32, %26 : vector<2x128xf32>
    %34 = arith.mulf %33, %31 : vector<2x128xf32>
    %35 = arith.mulf %26, %3 : vector<2x128xf32>
    %36 = arith.addf %34, %35 : vector<2x128xf32>
    %c0_12 = arith.constant 0 : index
    %c0_13 = arith.constant 0 : index
    %37 = vector.load %arg4[%c0_12, %c0_13] : memref<2x128xf32, #tpu.memory_space<vmem>>, vector<2x128xf32>
    tpu.vector_store %arg4[%c0_12, %c0_13], %36 {strides = array<i32>} : memref<2x128xf32, #tpu.memory_space<vmem>>, vector<2x128xf32>,
    return
  }
  func.func @transform_0(%arg0: i32) -> (i32, i32, i32) {
    %c0_i32 = arith.constant 0 : i32
    %c0_i32_0 = arith.constant 0 : i32
    %c0_i32_1 = arith.constant 0 : i32
    return %arg0, %c0_i32, %c0_i32_0 : i32, i32, i32
  }
  func.func @transform_1(%arg0: i32) -> (i32, i32) {
    %c0_i32 = arith.constant 0 : i32
    %c0_i32_0 = arith.constant 0 : i32
    %c0_i32_1 = arith.constant 0 : i32
    return %c0_i32, %c0_i32_0 : i32, i32
  }
  func.func @transform_2(%arg0: i32) -> (i32, i32) {
    %c0_i32 = arith.constant 0 : i32
    %c0_i32_0 = arith.constant 0 : i32
    %c0_i32_1 = arith.constant 0 : i32
    return %c0_i32, %c0_i32_0 : i32, i32
  }
  func.func @transform_3(%arg0: i32) -> (i32, i32) {
    %c0_i32 = arith.constant 0 : i32
    %c0_i32_0 = arith.constant 0 : i32
    %c0_i32_1 = arith.constant 0 : i32
    return %c0_i32, %c0_i32_0 : i32, i32
  }
}

module attributes {stable_mosaic.version = 11 : i64} {
  func.func @_gst_mha_kernel(%arg0: memref<2x128xf32, #tpu.memory_space<vmem>>, %arg1: memref<10x64xf32, #tpu.memory_space<vmem>>, %arg2: memref<128x256xf32, #tpu.memory_space<vmem>>, %arg3: memref<1x256xf32, #tpu.memory_space<vmem>>, %arg4: memref<64x256xf32, #tpu.memory_space<vmem>>, %arg5: memref<1x256xf32, #tpu.memory_space<vmem>>, %arg6: memref<64x256xf32, #tpu.memory_space<vmem>>, %arg7: memref<1x256xf32, #tpu.memory_space<vmem>>, %arg8: memref<256x256xf32, #tpu.memory_space<vmem>>, %arg9: memref<1x256xf32, #tpu.memory_space<vmem>>, %arg10: memref<2x256xf32, #tpu.memory_space<vmem>>) attributes {dimension_semantics = [], scalar_prefetch = 0 : i64, scratch_operands = 0 : i64, tpu.core_type = #tpu.core_type<tc>} {
    %c0 = arith.constant 0 : index
    %c0_0 = arith.constant 0 : index
    %0 = vector.load %arg0[%c0, %c0_0] : memref<2x128xf32, #tpu.memory_space<vmem>>, vector<2x128xf32>
    %c0_1 = arith.constant 0 : index
    %c0_2 = arith.constant 0 : index
    %1 = vector.load %arg1[%c0_1, %c0_2] : memref<10x64xf32, #tpu.memory_space<vmem>>, vector<10x64xf32>
    %2 = math.tanh %1 : vector<10x64xf32>
    %c0_3 = arith.constant 0 : index
    %c0_4 = arith.constant 0 : index
    %3 = vector.load %arg2[%c0_3, %c0_4] : memref<128x256xf32, #tpu.memory_space<vmem>>, vector<128x256xf32>
    %cst = arith.constant dense<0.000000e+00> : vector<2x256xf32>
    %4 = tpu.matmul %0, %3, %cst {dimension_numbers = #tpu.dot_dimension_numbers<[1], [0], [0], [1], [0, 0, 1, 1], [], []>} : vector<2x128xf32>, vector<128x256xf32>, vector<2x256xf32> -> vector<2x256xf32>
    %c0_5 = arith.constant 0 : index
    %c0_6 = arith.constant 0 : index
    %5 = vector.load %arg3[%c0_5, %c0_6] : memref<1x256xf32, #tpu.memory_space<vmem>>, vector<1x256xf32>
    %6 = vector.broadcast %5 : vector<1x256xf32> to vector<2x256xf32>
    %7 = arith.addf %4, %6 : vector<2x256xf32>
    %c0_7 = arith.constant 0 : index
    %c0_8 = arith.constant 0 : index
    %8 = vector.load %arg4[%c0_7, %c0_8] : memref<64x256xf32, #tpu.memory_space<vmem>>, vector<64x256xf32>
    %cst_9 = arith.constant dense<0.000000e+00> : vector<10x256xf32>
    %9 = tpu.matmul %2, %8, %cst_9 {dimension_numbers = #tpu.dot_dimension_numbers<[1], [0], [0], [1], [0, 0, 1, 1], [], []>} : vector<10x64xf32>, vector<64x256xf32>, vector<10x256xf32> -> vector<10x256xf32>
    %c0_10 = arith.constant 0 : index
    %c0_11 = arith.constant 0 : index
    %10 = vector.load %arg5[%c0_10, %c0_11] : memref<1x256xf32, #tpu.memory_space<vmem>>, vector<1x256xf32>
    %11 = vector.broadcast %10 : vector<1x256xf32> to vector<10x256xf32>
    %12 = arith.addf %9, %11 : vector<10x256xf32>
    %c0_12 = arith.constant 0 : index
    %c0_13 = arith.constant 0 : index
    %13 = vector.load %arg6[%c0_12, %c0_13] : memref<64x256xf32, #tpu.memory_space<vmem>>, vector<64x256xf32>
    %cst_14 = arith.constant dense<0.000000e+00> : vector<10x256xf32>
    %14 = tpu.matmul %2, %13, %cst_14 {dimension_numbers = #tpu.dot_dimension_numbers<[1], [0], [0], [1], [0, 0, 1, 1], [], []>} : vector<10x64xf32>, vector<64x256xf32>, vector<10x256xf32> -> vector<10x256xf32>
    %c0_15 = arith.constant 0 : index
    %c0_16 = arith.constant 0 : index
    %15 = vector.load %arg7[%c0_15, %c0_16] : memref<1x256xf32, #tpu.memory_space<vmem>>, vector<1x256xf32>
    %16 = vector.broadcast %15 : vector<1x256xf32> to vector<10x256xf32>
    %17 = arith.addf %14, %16 : vector<10x256xf32>
    %18 = vector.shape_cast %7 : vector<2x256xf32> to vector<2x4x64xf32>
    %19 = tpu.transpose %18, [1, 0, 2] : vector<2x4x64xf32> -> vector<4x2x64xf32>
    %20 = vector.shape_cast %12 : vector<10x256xf32> to vector<10x4x64xf32>
    %21 = tpu.transpose %20, [1, 0, 2] : vector<10x4x64xf32> -> vector<4x10x64xf32>
    %22 = vector.shape_cast %17 : vector<10x256xf32> to vector<10x4x64xf32>
    %23 = tpu.transpose %22, [1, 0, 2] : vector<10x4x64xf32> -> vector<4x10x64xf32>
    "tpu.trace_start"() <{level = 10 : i32, message = "hbd,htd->hbt"}> : () -> ()
    %cst_17 = arith.constant dense<0.000000e+00> : vector<4x2x10xf32>
    %24 = tpu.matmul %19, %21, %cst_17 {dimension_numbers = #tpu.dot_dimension_numbers<[2], [2], [1], [1], [0, 0, 0, 1, 1, 1], [0], [0]>} : vector<4x2x64xf32>, vector<4x10x64xf32>, vector<4x2x10xf32> -> vector<4x2x10xf32>
    "tpu.trace_stop"() : () -> ()
    %cst_18 = arith.constant 1.250000e-01 : f32
    %25 = vector.broadcast %cst_18 : f32 to vector<4x2x10xf32>
    %26 = arith.mulf %24, %25 : vector<4x2x10xf32>
    %cst_19 = arith.constant dense<0xFF800000> : vector<4x2xf32>
    %27 = vector.multi_reduction <maximumf>, %26, %cst_19 [2] : vector<4x2x10xf32> to vector<4x2xf32>
    %28 = vector.shape_cast %27 : vector<4x2xf32> to vector<4x2x1xf32>
    %29 = vector.broadcast %28 : vector<4x2x1xf32> to vector<4x2x10xf32>
    %30 = arith.subf %26, %29 : vector<4x2x10xf32>
    %31 = math.exp %30 : vector<4x2x10xf32>
    %cst_20 = arith.constant dense<0.000000e+00> : vector<4x2xf32>
    %32 = vector.multi_reduction <add>, %31, %cst_20 [2] : vector<4x2x10xf32> to vector<4x2xf32>
    %33 = vector.shape_cast %32 : vector<4x2xf32> to vector<4x2x1xf32>
    %34 = tpu.reciprocal %33 {approx = true} : vector<4x2x1xf32> -> vector<4x2x1xf32>
    %35 = vector.broadcast %34 : vector<4x2x1xf32> to vector<4x2x10xf32>
    %36 = arith.mulf %31, %35 : vector<4x2x10xf32>
    "tpu.trace_start"() <{level = 10 : i32, message = "hbt,htd->hbd"}> : () -> ()
    %cst_21 = arith.constant dense<0.000000e+00> : vector<4x2x64xf32>
    %37 = tpu.matmul %36, %23, %cst_21 {dimension_numbers = #tpu.dot_dimension_numbers<[2], [1], [1], [2], [0, 0, 0, 1, 1, 2], [0], [0]>} : vector<4x2x10xf32>, vector<4x10x64xf32>, vector<4x2x64xf32> -> vector<4x2x64xf32>
    "tpu.trace_stop"() : () -> ()
    %38 = tpu.transpose %37, [1, 0, 2] : vector<4x2x64xf32> -> vector<2x4x64xf32>
    %39 = vector.shape_cast %38 : vector<2x4x64xf32> to vector<2x256xf32>
    %c0_22 = arith.constant 0 : index
    %c0_23 = arith.constant 0 : index
    %40 = vector.load %arg8[%c0_22, %c0_23] : memref<256x256xf32, #tpu.memory_space<vmem>>, vector<256x256xf32>
    %cst_24 = arith.constant dense<0.000000e+00> : vector<2x256xf32>
    %41 = tpu.matmul %39, %40, %cst_24 {dimension_numbers = #tpu.dot_dimension_numbers<[1], [0], [0], [1], [0, 0, 1, 1], [], []>} : vector<2x256xf32>, vector<256x256xf32>, vector<2x256xf32> -> vector<2x256xf32>
    %c0_25 = arith.constant 0 : index
    %c0_26 = arith.constant 0 : index
    %42 = vector.load %arg9[%c0_25, %c0_26] : memref<1x256xf32, #tpu.memory_space<vmem>>, vector<1x256xf32>
    %43 = vector.broadcast %42 : vector<1x256xf32> to vector<2x256xf32>
    %44 = arith.addf %41, %43 : vector<2x256xf32>
    %c0_27 = arith.constant 0 : index
    %c0_28 = arith.constant 0 : index
    %45 = vector.load %arg10[%c0_27, %c0_28] : memref<2x256xf32, #tpu.memory_space<vmem>>, vector<2x256xf32>
    tpu.vector_store %arg10[%c0_27, %c0_28], %44 {strides = array<i32>} : memref<2x256xf32, #tpu.memory_space<vmem>>, vector<2x256xf32>,
    return
  }
}

</mosaic_0001>

<bundles_post_ra>
// kernel: style_encoder_forward.9
= control target key start
LH: loop header
LB: loop body
LE: loop exit
PB: predicated region body
PF: predicated region fallthrough
CT: control target
= control target key end

     0   :  { %s1792_s15 = smov 0   ;;  %s2153_s0 = inlined_call_operand.vmem [shape: bf16[5120,9], index: 0, kind: input, shape index: {}]   ;;  %s2154_s1 = inlined_call_operand.vmem [shape: bf16[9,32], index: 1, kind: input, shape index: {}]   ;;  %s2155_s2 = inlined_call_operand.vmem [shape: f32[1,32], index: 2, kind: input, shape index: {}]   ;;  %s2156_s3 = inlined_call_operand.vmem [shape: f32[1,32], index: 3, kind: input, shape index: {}]   ;;  %s2157_s4 = inlined_call_operand.vmem [shape: bf16[5120,32], index: 4, kind: output, shape index: {}]  }
   0x1 LB: > { %s1409_s16 = sadd.s32 4294967295, %s1764_s15   ;;  %p1413_p0 = scmp.ge.s32.totalorder %s1764_s15, 1  ;;  %s1764_s15 = sphi %s1792_s15, %s14_s15  }
   0x2   : > { %p163_p1 = scmp.lt.s32.totalorder %s1764_s15, 11 }
   0x4   : > { %p164_p2 = pnand %p1413_p0, %p163_p1 }
   0x5   : > { %v1725_v0 = vld [vmem:[%s2154_s1] sm:$0x1f] (!%p164_p2)   ;;  %vm530_vm0 = vcmask (!%p164_p2), 1043456   ;;  %vm531_vm1 = vcmask (!%p164_p2), 1044480   ;;  %s1414_s19 = sshll.u32 (!%p164_p2), %s1409_s16, 6  ;;  %v1766_v1 = vmov (!%p164_p2), 65535  }
   0x6   : > { %167 = sbr.rel (%p164_p2) target bundleno = 302 (0x12e), region = 36  ;;  %v532_v2 = vsel (!%p164_p2), %vm530_vm0, 4294967295, %v1766_v1  ;;  %p190_p3 = scmp.lt.s32.totalorder (!%p164_p2), %s1414_s19, 639  ;;  %vm433_vm2 = vcmask (!%p164_p2), 72704   ;;  %v1880_v37 = vld [vmem:[%s2155_s2] ss:$0 sm:$0xff] (!%p164_p2) }
   0x7   : > { %v533_v3 = vsel (!%p164_p2), %vm531_vm1, %v532_v2, 0  ;;  %v1885_v39 = vld [vmem:[%s2156_s3] ss:$0 sm:$0xff] (!%p164_p2)  ;;  %vm1288_vm3 = vcmask (!%p164_p2), 257024  }
   0x8   : > { %v535_v4 = vand.u32 (!%p164_p2), %v1725_v0, %v533_v3 }
   0xa   : > { %1648 = vmatprep.subr.bf16.mxu0 (!%p164_p2), %v535_v4  ;;  %1714 = vmatprep.subr.bf16.mxu1 (!%p164_p2), %v535_v4 }
   0xb   : > { %1649 = vmatpush3.bf16.msra.mxu0 (!%p164_p2), %v535_v4  ;;  %1715 = vmatpush3.bf16.msra.mxu1 (!%p164_p2), %v535_v4 }
   0xd   : > { %s2159_s19 = smov (!%p190_p3, %s1414_s19), 639 }
   0xe   : > { %s1415_s20 = sshll.u32 %s2159_s19, 2 }
   0xf   : > { %s1811_s23 = scalar_lea.vmem %s2153_s0, %s1415_s20  ;;  %s1905_s30 = scalar_lea.vmem %s2157_s4, %s1415_s20 }
  0x10   : > { %v1726_v5 = vld [vmem:[%s1811_s23] sm:$0xff]   ;;  %v1728_v7 = vld [vmem:[%s1811_s23 + $0x8] sm:$0xff]   ;;  %v1730_v9 = vld [vmem:[%s1811_s23 + $0x10] sm:$0xff]  }
  0x11   : > { %v1727_v6 = vld [vmem:[%s1811_s23 + $0x80] sm:$0xff]   ;;  %1650 = vmatprep.mubr.msk.bf16.mxu0 %vm433_vm2, %v1726_v5  ;;  %v1729_v8 = vld [vmem:[%s1811_s23 + $0x88] sm:$0xff]   ;;  %v1731_v10 = vld [vmem:[%s1811_s23 + $0x90] sm:$0xff]  }
  0x12   : > { %1682 = vmatprep.mubr.msk.bf16.mxu1 %vm433_vm2, %v1727_v6  ;;  %1651 = vmatmul.mubr.msk.bf16.vlgmr.msra.gmra.mrb[0].mxu0 %vm433_vm2, %v1728_v7  ;;  %v1732_v11 = vld [vmem:[%s1811_s23 + $0x18] sm:$0xff]   ;;  %v1734_v13 = vld [vmem:[%s1811_s23 + $0x20] sm:$0xff]   ;;  %v1736_v15 = vld [vmem:[%s1811_s23 + $0x28] sm:$0xff]  }
  0x13   : > { %1683 = vmatmul.mubr.msk.bf16.vlgmr.msra.gmra.mrb[0].mxu1 %vm433_vm2, %v1729_v8  ;;  %1654 = vmatprep.mubr.msk.bf16.mxu0 %vm433_vm2, %v1730_v9  ;;  %v1733_v12 = vld [vmem:[%s1811_s23 + $0x98] sm:$0xff]   ;;  %v1735_v14 = vld [vmem:[%s1811_s23 + $0xa0] sm:$0xff]   ;;  %v1737_v16 = vld [vmem:[%s1811_s23 + $0xa8] sm:$0xff]  }
  0x14   : > { %1686 = vmatprep.mubr.msk.bf16.mxu1 %vm433_vm2, %v1731_v10  ;;  %v1738_v17 = vld [vmem:[%s1811_s23 + $0x30] sm:$0xff]   ;;  %v1740_v19 = vld [vmem:[%s1811_s23 + $0x38] sm:$0xff]   ;;  %v1742_v21 = vld [vmem:[%s1811_s23 + $0x40] sm:$0xff]  }
  0x15   : > { %v1739_v18 = vld [vmem:[%s1811_s23 + $0xb0] sm:$0xff]   ;;  %v1741_v20 = vld [vmem:[%s1811_s23 + $0xb8] sm:$0xff]   ;;  %v1743_v22 = vld [vmem:[%s1811_s23 + $0xc0] sm:$0xff]  }
  0x16   : > { %v1744_v23 = vld [vmem:[%s1811_s23 + $0x48] sm:$0xff]   ;;  %v1746_v25 = vld [vmem:[%s1811_s23 + $0x50] sm:$0xff]   ;;  %v1748_v27 = vld [vmem:[%s1811_s23 + $0x58] sm:$0xff]  }
  0x17   : > { %v1745_v24 = vld [vmem:[%s1811_s23 + $0xc8] sm:$0xff]   ;;  %v1747_v26 = vld [vmem:[%s1811_s23 + $0xd0] sm:$0xff]   ;;  %v1749_v28 = vld [vmem:[%s1811_s23 + $0xd8] sm:$0xff]  }
  0x18   : > { %v1750_v29 = vld [vmem:[%s1811_s23 + $0x60] sm:$0xff]   ;;  %v1752_v31 = vld [vmem:[%s1811_s23 + $0x68] sm:$0xff]   ;;  %v1754_v33 = vld [vmem:[%s1811_s23 + $0x70] sm:$0xff]  }
  0x19   : > { %v1751_v30 = vld [vmem:[%s1811_s23 + $0xe0] sm:$0xff]   ;;  %v1753_v32 = vld [vmem:[%s1811_s23 + $0xe8] sm:$0xff]   ;;  %v1755_v34 = vld [vmem:[%s1811_s23 + $0xf0] sm:$0xff]  }
  0x1a   : > { %1655 = vmatmul.mubr.msk.bf16.gmra.mrb[4].mxu0 %vm433_vm2, %v1732_v11  ;;  %v1756_v35 = vld [vmem:[%s1811_s23 + $0x78] sm:$0xff]  }
  0x1b   : > { %1687 = vmatmul.mubr.msk.bf16.gmra.mrb[4].mxu1 %vm433_vm2, %v1733_v12  ;;  %1658 = vmatprep.mubr.msk.bf16.mxu0 %vm433_vm2, %v1734_v13  ;;  %v1757_v36 = vld [vmem:[%s1811_s23 + $0xf8] sm:$0xff]  }
  0x1c   : > { %1690 = vmatprep.mubr.msk.bf16.mxu1 %vm433_vm2, %v1735_v14 }
  0x22   : > { %1659 = vmatmul.mubr.msk.bf16.gmra.mrb[8].mxu0 %vm433_vm2, %v1736_v15 }
  0x23   : > { %1691 = vmatmul.mubr.msk.bf16.gmra.mrb[8].mxu1 %vm433_vm2, %v1737_v16  ;;  %1662 = vmatprep.mubr.msk.bf16.mxu0 %vm433_vm2, %v1738_v17 }
  0x24   : > { %1694 = vmatprep.mubr.msk.bf16.mxu1 %vm433_vm2, %v1739_v18 }
  0x2a   : > { %1663 = vmatmul.mubr.msk.bf16.gmra.mrb[12].mxu0 %vm433_vm2, %v1740_v19 }
  0x2b   : > { %1695 = vmatmul.mubr.msk.bf16.gmra.mrb[12].mxu1 %vm433_vm2, %v1741_v20  ;;  %1666 = vmatprep.mubr.msk.bf16.mxu0 %vm433_vm2, %v1742_v21 }
  0x2c   : > { %1698 = vmatprep.mubr.msk.bf16.mxu1 %vm433_vm2, %v1743_v22 }
  0x32   : > { %1667 = vmatmul.mubr.msk.bf16.gmra.mrb[16].mxu0 %vm433_vm2, %v1744_v23 }
  0x33   : > { %1699 = vmatmul.mubr.msk.bf16.gmra.mrb[16].mxu1 %vm433_vm2, %v1745_v24  ;;  %1670 = vmatprep.mubr.msk.bf16.mxu0 %vm433_vm2, %v1746_v25 }
  0x34   : > { %1702 = vmatprep.mubr.msk.bf16.mxu1 %vm433_vm2, %v1747_v26 }
  0x3a   : > { %1671 = vmatmul.mubr.msk.bf16.gmra.mrb[20].mxu0 %vm433_vm2, %v1748_v27 }
  0x3b   : > { %1703 = vmatmul.mubr.msk.bf16.gmra.mrb[20].mxu1 %vm433_vm2, %v1749_v28  ;;  %1674 = vmatprep.mubr.msk.bf16.mxu0 %vm433_vm2, %v1750_v29 }
  0x3c   : > { %1706 = vmatprep.mubr.msk.bf16.mxu1 %vm433_vm2, %v1751_v30 }
  0x42   : > { %1675 = vmatmul.mubr.msk.bf16.gmra.mrb[24].mxu0 %vm433_vm2, %v1752_v31 }
  0x43   : > { %1707 = vmatmul.mubr.msk.bf16.gmra.mrb[24].mxu1 %vm433_vm2, %v1753_v32  ;;  %1678 = vmatprep.mubr.msk.bf16.mxu0 %vm433_vm2, %v1754_v33 }
  0x44   : > { %1710 = vmatprep.mubr.msk.bf16.mxu1 %vm433_vm2, %v1755_v34 }
  0x4a   : > { %1679 = vmatmul.mubr.msk.bf16.gmra.mrb[28].mxu0 %vm433_vm2, %v1756_v35 }
  0x4b   : > { %1711 = vmatmul.mubr.msk.bf16.gmra.mrb[28].mxu1 %vm433_vm2, %v1757_v36 }
  0xe5   : > { %v1652_v38 = vpop.f32.mrb[0].mxu0 }
  0xe6   : > { %v835_v40 = vmul.f32 %v1652_v38, %v1880_v37  ;;  %v1684_v41 = vpop.f32.mrb[0].mxu1  ;;  %v571_v42 = vpop.f32.mrb[1].mxu0 }
  0xe7   : > { %v867_v43 = vmul.f32 %v1684_v41, %v1880_v37  ;;  %v833_v44 = vmul.f32 %v1880_v37, %v571_v42  ;;  %v699_v45 = vpop.f32.mrb[1].mxu1  ;;  %v1653_v46 = vpop.f32.mrb[2].mxu0 }
  0xe8   : > { %v906_v47 = vadd.f32 %v1885_v39, %v835_v40  ;;  %v865_v48 = vmul.f32 %v1880_v37, %v699_v45  ;;  %v836_v49 = vmul.f32 %v1653_v46, %v1880_v37  ;;  %v1685_v50 = vpop.f32.mrb[2].mxu1  ;;  %v574_v51 = vpop.f32.mrb[3].mxu0 }
  0xe9   : > { %v938_v52 = vadd.f32 %v1885_v39, %v867_v43  ;;  %v904_v53 = vadd.f32 %v1885_v39, %v833_v44  ;;  %v868_v54 = vmul.f32 %v1685_v50, %v1880_v37  ;;  %v834_v55 = vmul.f32 %v1880_v37, %v574_v51  ;;  %v702_v56 = vpop.f32.mrb[3].mxu1 }
  0xea   : > { %v970_v57 = vmax.f32 %v906_v47, 0.0  ;;  %v936_v58 = vadd.f32 %v1885_v39, %v865_v48  ;;  %v907_v59 = vadd.f32 %v1885_v39, %v836_v49  ;;  %v866_v60 = vmul.f32 %v1880_v37, %v702_v56 }
  0xeb   : > { %v1002_v61 = vmax.f32 %v938_v52, 0.0  ;;  %v968_v62 = vmax.f32 %v904_v53, 0.0  ;;  %v939_v63 = vadd.f32 %v1885_v39, %v868_v54  ;;  %v905_v0 = vadd.f32 %v1885_v39, %v834_v55 }
  0xec   : > { %v1553_v1 = vpack.c.bf16 %v970_v57, %v970_v57  ;;  %v1000_v2 = vmax.f32 %v936_v58, 0.0  ;;  %v971_v3 = vmax.f32 %v907_v59, 0.0  ;;  %v937_v4 = vadd.f32 %v1885_v39, %v866_v60 }
  0xed   : > { %v1585_v5 = vpack.c.bf16 %v1002_v61, %v1002_v61  ;;  %v1551_v6 = vpack.c.bf16 %v968_v62, %v968_v62  ;;  %v1003_v7 = vmax.f32 %v939_v63, 0.0  ;;  %v969_v8 = vmax.f32 %v905_v0, 0.0  ;;  %v1656_v9 = vpop.f32.mrb[4].mxu0 }
  0xee   : > { %1291 = vst.msk [vmem:[%s1905_s30 + $0x8] sm:$0xf] %vm1288_vm3, %v1553_v1  ;;  %v1583_v10 = vpack.c.bf16 %v1000_v2, %v1000_v2  ;;  %v1554_v11 = vpack.c.bf16 %v971_v3, %v971_v3  ;;  %v1001_v12 = vmax.f32 %v937_v4, 0.0  ;;  %v839_v13 = vmul.f32 %v1656_v9, %v1880_v37  ;;  %v1688_v14 = vpop.f32.mrb[4].mxu1  ;;  %v587_v15 = vpop.f32.mrb[5].mxu0 }
  0xef   : > { %1323 = vst.msk [vmem:[%s1905_s30 + $0x88] sm:$0xf] %vm1288_vm3, %v1585_v5  ;;  %1289 = vst.msk [vmem:[%s1905_s30] sm:$0xf] %vm1288_vm3, %v1551_v6  ;;  %v1586_v16 = vpack.c.bf16 %v1003_v7, %v1003_v7  ;;  %v1552_v17 = vpack.c.bf16 %v969_v8, %v969_v8  ;;  %v871_v18 = vmul.f32 %v1688_v14, %v1880_v37  ;;  %v715_v20 = vpop.f32.mrb[5].mxu1  ;;  %v1657_v21 = vpop.f32.mrb[6].mxu0 }
  0xf0   : > { %v837_v19 = vmul.f32 %v1880_v37, %v587_v15  ;;  %1321 = vst.msk [vmem:[%s1905_s30 + $0x80] sm:$0xf] %vm1288_vm3, %v1583_v10  ;;  %1292 = vst.msk [vmem:[%s1905_s30 + $0xc] sm:$0xf] %vm1288_vm3, %v1554_v11  ;;  %v1584_v22 = vpack.c.bf16 %v1001_v12, %v1001_v12  ;;  %v910_v23 = vadd.f32 %v1885_v39, %v839_v13  ;;  %v1689_v26 = vpop.f32.mrb[6].mxu1  ;;  %v590_v27 = vpop.f32.mrb[7].mxu0 }
  0xf1   : > { %v869_v24 = vmul.f32 %v1880_v37, %v715_v20  ;;  %v840_v25 = vmul.f32 %v1657_v21, %v1880_v37  ;;  %1324 = vst.msk [vmem:[%s1905_s30 + $0x8c] sm:$0xf] %vm1288_vm3, %v1586_v16  ;;  %1290 = vst.msk [vmem:[%s1905_s30 + $0x4] sm:$0xf] %vm1288_vm3, %v1552_v17  ;;  %v942_v28 = vadd.f32 %v1885_v39, %v871_v18  ;;  %v718_v32 = vpop.f32.mrb[7].mxu1 }
  0xf2   : > { %v908_v29 = vadd.f32 %v1885_v39, %v837_v19  ;;  %v872_v30 = vmul.f32 %v1689_v26, %v1880_v37  ;;  %v838_v31 = vmul.f32 %v1880_v37, %v590_v27  ;;  %1322 = vst.msk [vmem:[%s1905_s30 + $0x84] sm:$0xf] %vm1288_vm3, %v1584_v22  ;;  %v974_v33 = vmax.f32 %v910_v23, 0.0 }
  0xf3   : > { %v940_v34 = vadd.f32 %v1885_v39, %v869_v24  ;;  %v911_v35 = vadd.f32 %v1885_v39, %v840_v25  ;;  %v870_v36 = vmul.f32 %v1880_v37, %v718_v32  ;;  %v1006_v38 = vmax.f32 %v942_v28, 0.0 }
  0xf4   : > { %v972_v40 = vmax.f32 %v908_v29, 0.0  ;;  %v943_v41 = vadd.f32 %v1885_v39, %v872_v30  ;;  %v909_v42 = vadd.f32 %v1885_v39, %v838_v31  ;;  %v1557_v43 = vpack.c.bf16 %v974_v33, %v974_v33 }
  0xf5   : > { %v1004_v44 = vmax.f32 %v940_v34, 0.0  ;;  %v975_v45 = vmax.f32 %v911_v35, 0.0  ;;  %v941_v46 = vadd.f32 %v1885_v39, %v870_v36  ;;  %v1589_v47 = vpack.c.bf16 %v1006_v38, %v1006_v38  ;;  %v1660_v51 = vpop.f32.mrb[8].mxu0 }
  0xf6   : > { %v1555_v48 = vpack.c.bf16 %v972_v40, %v972_v40  ;;  %v1007_v49 = vmax.f32 %v943_v41, 0.0  ;;  %v973_v50 = vmax.f32 %v909_v42, 0.0  ;;  %1295 = vst.msk [vmem:[%s1905_s30 + $0x18] sm:$0xf] %vm1288_vm3, %v1557_v43  ;;  %v843_v55 = vmul.f32 %v1660_v51, %v1880_v37  ;;  %v1692_v56 = vpop.f32.mrb[8].mxu1  ;;  %v603_v57 = vpop.f32.mrb[9].mxu0 }
  0xf7   : > { %v1587_v52 = vpack.c.bf16 %v1004_v44, %v1004_v44  ;;  %v1558_v53 = vpack.c.bf16 %v975_v45, %v975_v45  ;;  %v1005_v54 = vmax.f32 %v941_v46, 0.0  ;;  %1327 = vst.msk [vmem:[%s1905_s30 + $0x98] sm:$0xf] %vm1288_vm3, %v1589_v47  ;;  %v875_v60 = vmul.f32 %v1692_v56, %v1880_v37  ;;  %v731_v62 = vpop.f32.mrb[9].mxu1  ;;  %v1661_v63 = vpop.f32.mrb[10].mxu0 }
  0xf8   : > { %1293 = vst.msk [vmem:[%s1905_s30 + $0x10] sm:$0xf] %vm1288_vm3, %v1555_v48  ;;  %v1590_v58 = vpack.c.bf16 %v1007_v49, %v1007_v49  ;;  %v1556_v59 = vpack.c.bf16 %v973_v50, %v973_v50  ;;  %v841_v61 = vmul.f32 %v1880_v37, %v603_v57  ;;  %v914_v1 = vadd.f32 %v1885_v39, %v843_v55  ;;  %v1693_v4 = vpop.f32.mrb[10].mxu1  ;;  %v606_v5 = vpop.f32.mrb[11].mxu0 }
  0xf9   : > { %1325 = vst.msk [vmem:[%s1905_s30 + $0x90] sm:$0xf] %vm1288_vm3, %v1587_v52  ;;  %1296 = vst.msk [vmem:[%s1905_s30 + $0x1c] sm:$0xf] %vm1288_vm3, %v1558_v53  ;;  %v1588_v0 = vpack.c.bf16 %v1005_v54, %v1005_v54  ;;  %v873_v2 = vmul.f32 %v1880_v37, %v731_v62  ;;  %v844_v3 = vmul.f32 %v1661_v63, %v1880_v37  ;;  %v734_v10 = vpop.f32.mrb[11].mxu1 }
  0xfa   : > { %1328 = vst.msk [vmem:[%s1905_s30 + $0x9c] sm:$0xf] %vm1288_vm3, %v1590_v58  ;;  %1294 = vst.msk [vmem:[%s1905_s30 + $0x14] sm:$0xf] %vm1288_vm3, %v1556_v59  ;;  %v946_v6 = vadd.f32 %v1885_v39, %v875_v60  ;;  %v912_v7 = vadd.f32 %v1885_v39, %v841_v61  ;;  %v876_v8 = vmul.f32 %v1693_v4, %v1880_v37  ;;  %v978_v11 = vmax.f32 %v914_v1, 0.0 }
  0xfb   : > { %v842_v9 = vmul.f32 %v1880_v37, %v606_v5  ;;  %1326 = vst.msk [vmem:[%s1905_s30 + $0x94] sm:$0xf] %vm1288_vm3, %v1588_v0  ;;  %v944_v12 = vadd.f32 %v1885_v39, %v873_v2  ;;  %v915_v13 = vadd.f32 %v1885_v39, %v844_v3  ;;  %v874_v14 = vmul.f32 %v1880_v37, %v734_v10 }
  0xfc   : > { %v1010_v15 = vmax.f32 %v946_v6, 0.0  ;;  %v976_v16 = vmax.f32 %v912_v7, 0.0  ;;  %v947_v17 = vadd.f32 %v1885_v39, %v876_v8  ;;  %v1561_v19 = vpack.c.bf16 %v978_v11, %v978_v11 }
  0xfd   : > { %v913_v18 = vadd.f32 %v1885_v39, %v842_v9  ;;  %v1008_v20 = vmax.f32 %v944_v12, 0.0  ;;  %v979_v21 = vmax.f32 %v915_v13, 0.0  ;;  %v945_v22 = vadd.f32 %v1885_v39, %v874_v14  ;;  %v1664_v27 = vpop.f32.mrb[12].mxu0 }
  0xfe   : > { %v1593_v23 = vpack.c.bf16 %v1010_v15, %v1010_v15  ;;  %v1559_v24 = vpack.c.bf16 %v976_v16, %v976_v16  ;;  %v1011_v25 = vmax.f32 %v947_v17, 0.0  ;;  %1299 = vst.msk [vmem:[%s1905_s30 + $0x28] sm:$0xf] %vm1288_vm3, %v1561_v19  ;;  %v847_v31 = vmul.f32 %v1664_v27, %v1880_v37  ;;  %v1696_v32 = vpop.f32.mrb[12].mxu1  ;;  %v619_v33 = vpop.f32.mrb[13].mxu0 }
  0xff   : > { %v977_v26 = vmax.f32 %v913_v18, 0.0  ;;  %v1591_v28 = vpack.c.bf16 %v1008_v20, %v1008_v20  ;;  %v1562_v29 = vpack.c.bf16 %v979_v21, %v979_v21  ;;  %v1009_v30 = vmax.f32 %v945_v22, 0.0  ;;  %v747_v40 = vpop.f32.mrb[13].mxu1  ;;  %v1665_v41 = vpop.f32.mrb[14].mxu0 }
 0x100   : > { %1331 = vst.msk [vmem:[%s1905_s30 + $0xa8] sm:$0xf] %vm1288_vm3, %v1593_v23  ;;  %1297 = vst.msk [vmem:[%s1905_s30 + $0x20] sm:$0xf] %vm1288_vm3, %v1559_v24  ;;  %v1594_v34 = vpack.c.bf16 %v1011_v25, %v1011_v25  ;;  %v879_v36 = vmul.f32 %v1696_v32, %v1880_v37  ;;  %v845_v38 = vmul.f32 %v1880_v37, %v619_v33  ;;  %v1697_v46 = vpop.f32.mrb[14].mxu1  ;;  %v622_v47 = vpop.f32.mrb[15].mxu0 }
 0x101   : > { %v1560_v35 = vpack.c.bf16 %v977_v26, %v977_v26  ;;  %1329 = vst.msk [vmem:[%s1905_s30 + $0xa0] sm:$0xf] %vm1288_vm3, %v1591_v28  ;;  %1300 = vst.msk [vmem:[%s1905_s30 + $0x2c] sm:$0xf] %vm1288_vm3, %v1562_v29  ;;  %v1592_v42 = vpack.c.bf16 %v1009_v30, %v1009_v30  ;;  %v918_v43 = vadd.f32 %v1885_v39, %v847_v31  ;;  %v750_v52 = vpop.f32.mrb[15].mxu1 }
 0x102   : > { %v877_v44 = vmul.f32 %v1880_v37, %v747_v40  ;;  %v848_v45 = vmul.f32 %v1665_v41, %v1880_v37  ;;  %1332 = vst.msk [vmem:[%s1905_s30 + $0xac] sm:$0xf] %vm1288_vm3, %v1594_v34  ;;  %v950_v48 = vadd.f32 %v1885_v39, %v879_v36  ;;  %v916_v49 = vadd.f32 %v1885_v39, %v845_v38 }
 0x103   : > { %1298 = vst.msk [vmem:[%s1905_s30 + $0x24] sm:$0xf] %vm1288_vm3, %v1560_v35  ;;  %v880_v50 = vmul.f32 %v1697_v46, %v1880_v37  ;;  %v846_v51 = vmul.f32 %v1880_v37, %v622_v47  ;;  %1330 = vst.msk [vmem:[%s1905_s30 + $0xa4] sm:$0xf] %vm1288_vm3, %v1592_v42  ;;  %v982_v53 = vmax.f32 %v918_v43, 0.0  ;;  %v878_v56 = vmul.f32 %v1880_v37, %v750_v52 }
 0x104   : > { %v948_v54 = vadd.f32 %v1885_v39, %v877_v44  ;;  %v919_v55 = vadd.f32 %v1885_v39, %v848_v45  ;;  %v1014_v57 = vmax.f32 %v950_v48, 0.0  ;;  %v980_v58 = vmax.f32 %v916_v49, 0.0 }
 0x105   : > { %v951_v59 = vadd.f32 %v1885_v39, %v880_v50  ;;  %v917_v60 = vadd.f32 %v1885_v39, %v846_v51  ;;  %v1565_v61 = vpack.c.bf16 %v982_v53, %v982_v53  ;;  %v949_v0 = vadd.f32 %v1885_v39, %v878_v56  ;;  %v1668_v5 = vpop.f32.mrb[16].mxu0 }
 0x106   : > { %v1012_v62 = vmax.f32 %v948_v54, 0.0  ;;  %v983_v63 = vmax.f32 %v919_v55, 0.0  ;;  %v1597_v1 = vpack.c.bf16 %v1014_v57, %v1014_v57  ;;  %v1563_v2 = vpack.c.bf16 %v980_v58, %v980_v58  ;;  %v1700_v10 = vpop.f32.mrb[16].mxu1  ;;  %v635_v11 = vpop.f32.mrb[17].mxu0 }
 0x107   : > { %v1015_v3 = vmax.f32 %v951_v59, 0.0  ;;  %v981_v4 = vmax.f32 %v917_v60, 0.0  ;;  %1303 = vst.msk [vmem:[%s1905_s30 + $0x38] sm:$0xf] %vm1288_vm3, %v1565_v61  ;;  %v1013_v8 = vmax.f32 %v949_v0, 0.0  ;;  %v851_v9 = vmul.f32 %v1668_v5, %v1880_v37  ;;  %v763_v16 = vpop.f32.mrb[17].mxu1 }
 0x108   : > { %v1595_v6 = vpack.c.bf16 %v1012_v62, %v1012_v62  ;;  %v1566_v7 = vpack.c.bf16 %v983_v63, %v983_v63  ;;  %1335 = vst.msk [vmem:[%s1905_s30 + $0xb8] sm:$0xf] %vm1288_vm3, %v1597_v1  ;;  %1301 = vst.msk [vmem:[%s1905_s30 + $0x30] sm:$0xf] %vm1288_vm3, %v1563_v2  ;;  %v883_v14 = vmul.f32 %v1700_v10, %v1880_v37  ;;  %v1669_v17 = vpop.f32.mrb[18].mxu0  ;;  %v1701_v22 = vpop.f32.mrb[18].mxu1 }
 0x109   : > { %v1598_v12 = vpack.c.bf16 %v1015_v3, %v1015_v3  ;;  %v1564_v13 = vpack.c.bf16 %v981_v4, %v981_v4  ;;  %v849_v15 = vmul.f32 %v1880_v37, %v635_v11  ;;  %v1596_v18 = vpack.c.bf16 %v1013_v8, %v1013_v8  ;;  %v638_v23 = vpop.f32.mrb[19].mxu0  ;;  %v766_v28 = vpop.f32.mrb[19].mxu1 }
 0x10a   : > { %1333 = vst.msk [vmem:[%s1905_s30 + $0xb0] sm:$0xf] %vm1288_vm3, %v1595_v6  ;;  %1304 = vst.msk [vmem:[%s1905_s30 + $0x3c] sm:$0xf] %vm1288_vm3, %v1566_v7  ;;  %v922_v19 = vadd.f32 %v1885_v39, %v851_v9  ;;  %v881_v20 = vmul.f32 %v1880_v37, %v763_v16  ;;  %v852_v21 = vmul.f32 %v1669_v17, %v1880_v37 }
 0x10b   : > { %1336 = vst.msk [vmem:[%s1905_s30 + $0xbc] sm:$0xf] %vm1288_vm3, %v1598_v12  ;;  %1302 = vst.msk [vmem:[%s1905_s30 + $0x34] sm:$0xf] %vm1288_vm3, %v1564_v13  ;;  %v954_v24 = vadd.f32 %v1885_v39, %v883_v14  ;;  %v920_v25 = vadd.f32 %v1885_v39, %v849_v15  ;;  %v884_v26 = vmul.f32 %v1701_v22, %v1880_v37 }
 0x10c   : > { %v850_v27 = vmul.f32 %v1880_v37, %v638_v23  ;;  %1334 = vst.msk [vmem:[%s1905_s30 + $0xb4] sm:$0xf] %vm1288_vm3, %v1596_v18  ;;  %v986_v29 = vmax.f32 %v922_v19, 0.0  ;;  %v952_v30 = vadd.f32 %v1885_v39, %v881_v20  ;;  %v923_v31 = vadd.f32 %v1885_v39, %v852_v21 }
 0x10d   : > { %v882_v32 = vmul.f32 %v1880_v37, %v766_v28  ;;  %v1018_v33 = vmax.f32 %v954_v24, 0.0  ;;  %v984_v34 = vmax.f32 %v920_v25, 0.0  ;;  %v955_v35 = vadd.f32 %v1885_v39, %v884_v26  ;;  %v1672_v47 = vpop.f32.mrb[20].mxu0 }
 0x10e   : > { %v921_v36 = vadd.f32 %v1885_v39, %v850_v27  ;;  %v1569_v38 = vpack.c.bf16 %v986_v29, %v986_v29  ;;  %v1016_v40 = vmax.f32 %v952_v30, 0.0  ;;  %v987_v41 = vmax.f32 %v923_v31, 0.0  ;;  %v1704_v52 = vpop.f32.mrb[20].mxu1  ;;  %v651_v53 = vpop.f32.mrb[21].mxu0 }
 0x10f   : > { %v953_v42 = vadd.f32 %v1885_v39, %v882_v32  ;;  %v1601_v43 = vpack.c.bf16 %v1018_v33, %v1018_v33  ;;  %v1567_v44 = vpack.c.bf16 %v984_v34, %v984_v34  ;;  %v1019_v45 = vmax.f32 %v955_v35, 0.0  ;;  %v779_v58 = vpop.f32.mrb[21].mxu1  ;;  %v1673_v59 = vpop.f32.mrb[22].mxu0 }
 0x110   : > { %v985_v46 = vmax.f32 %v921_v36, 0.0  ;;  %1307 = vst.msk [vmem:[%s1905_s30 + $0x48] sm:$0xf] %vm1288_vm3, %v1569_v38  ;;  %v1599_v48 = vpack.c.bf16 %v1016_v40, %v1016_v40  ;;  %v1570_v49 = vpack.c.bf16 %v987_v41, %v987_v41  ;;  %v855_v51 = vmul.f32 %v1672_v47, %v1880_v37  ;;  %v1705_v0 = vpop.f32.mrb[22].mxu1  ;;  %v654_v1 = vpop.f32.mrb[23].mxu0 }
 0x111   : > { %v1017_v50 = vmax.f32 %v953_v42, 0.0  ;;  %1339 = vst.msk [vmem:[%s1905_s30 + $0xc8] sm:$0xf] %vm1288_vm3, %v1601_v43  ;;  %1305 = vst.msk [vmem:[%s1905_s30 + $0x40] sm:$0xf] %vm1288_vm3, %v1567_v44  ;;  %v1602_v54 = vpack.c.bf16 %v1019_v45, %v1019_v45  ;;  %v887_v56 = vmul.f32 %v1704_v52, %v1880_v37  ;;  %v853_v57 = vmul.f32 %v1880_v37, %v651_v53  ;;  %v782_v6 = vpop.f32.mrb[23].mxu1 }
 0x112   : > { %v1568_v55 = vpack.c.bf16 %v985_v46, %v985_v46  ;;  %1337 = vst.msk [vmem:[%s1905_s30 + $0xc0] sm:$0xf] %vm1288_vm3, %v1599_v48  ;;  %1308 = vst.msk [vmem:[%s1905_s30 + $0x4c] sm:$0xf] %vm1288_vm3, %v1570_v49  ;;  %v926_v61 = vadd.f32 %v1885_v39, %v855_v51  ;;  %v885_v62 = vmul.f32 %v1880_v37, %v779_v58 }
 0x113   : > { %v1600_v60 = vpack.c.bf16 %v1017_v50, %v1017_v50  ;;  %v856_v63 = vmul.f32 %v1673_v59, %v1880_v37  ;;  %1340 = vst.msk [vmem:[%s1905_s30 + $0xcc] sm:$0xf] %vm1288_vm3, %v1602_v54  ;;  %v958_v2 = vadd.f32 %v1885_v39, %v887_v56  ;;  %v924_v3 = vadd.f32 %v1885_v39, %v853_v57 }
 0x114   : > { %1306 = vst.msk [vmem:[%s1905_s30 + $0x44] sm:$0xf] %vm1288_vm3, %v1568_v55  ;;  %v888_v4 = vmul.f32 %v1705_v0, %v1880_v37  ;;  %v854_v5 = vmul.f32 %v1880_v37, %v654_v1  ;;  %v990_v7 = vmax.f32 %v926_v61, 0.0  ;;  %v956_v8 = vadd.f32 %v1885_v39, %v885_v62 }
 0x115   : > { %1338 = vst.msk [vmem:[%s1905_s30 + $0xc4] sm:$0xf] %vm1288_vm3, %v1600_v60  ;;  %v927_v9 = vadd.f32 %v1885_v39, %v856_v63  ;;  %v886_v10 = vmul.f32 %v1880_v37, %v782_v6  ;;  %v1022_v11 = vmax.f32 %v958_v2, 0.0  ;;  %v988_v12 = vmax.f32 %v924_v3, 0.0  ;;  %v1676_v23 = vpop.f32.mrb[24].mxu0 }
 0x116   : > { %v959_v13 = vadd.f32 %v1885_v39, %v888_v4  ;;  %v925_v14 = vadd.f32 %v1885_v39, %v854_v5  ;;  %v1573_v15 = vpack.c.bf16 %v990_v7, %v990_v7  ;;  %v1020_v16 = vmax.f32 %v956_v8, 0.0  ;;  %v1708_v28 = vpop.f32.mrb[24].mxu1  ;;  %v667_v29 = vpop.f32.mrb[25].mxu0 }
 0x117   : > { %v991_v17 = vmax.f32 %v927_v9, 0.0  ;;  %v957_v18 = vadd.f32 %v1885_v39, %v886_v10  ;;  %v1605_v19 = vpack.c.bf16 %v1022_v11, %v1022_v11  ;;  %v1571_v20 = vpack.c.bf16 %v988_v12, %v988_v12  ;;  %v795_v34 = vpop.f32.mrb[25].mxu1  ;;  %v1677_v35 = vpop.f32.mrb[26].mxu0 }
 0x118   : > { %v1023_v21 = vmax.f32 %v959_v13, 0.0  ;;  %v989_v22 = vmax.f32 %v925_v14, 0.0  ;;  %1311 = vst.msk [vmem:[%s1905_s30 + $0x58] sm:$0xf] %vm1288_vm3, %v1573_v15  ;;  %v1603_v24 = vpack.c.bf16 %v1020_v16, %v1020_v16  ;;  %v859_v27 = vmul.f32 %v1676_v23, %v1880_v37  ;;  %v1709_v42 = vpop.f32.mrb[26].mxu1  ;;  %v670_v43 = vpop.f32.mrb[27].mxu0 }
 0x119   : > { %v1574_v25 = vpack.c.bf16 %v991_v17, %v991_v17  ;;  %v1021_v26 = vmax.f32 %v957_v18, 0.0  ;;  %1343 = vst.msk [vmem:[%s1905_s30 + $0xd8] sm:$0xf] %vm1288_vm3, %v1605_v19  ;;  %1309 = vst.msk [vmem:[%s1905_s30 + $0x50] sm:$0xf] %vm1288_vm3, %v1571_v20  ;;  %v891_v32 = vmul.f32 %v1708_v28, %v1880_v37  ;;  %v857_v33 = vmul.f32 %v1880_v37, %v667_v29  ;;  %v798_v48 = vpop.f32.mrb[27].mxu1 }
 0x11a   : > { %v1606_v30 = vpack.c.bf16 %v1023_v21, %v1023_v21  ;;  %v1572_v31 = vpack.c.bf16 %v989_v22, %v989_v22  ;;  %1341 = vst.msk [vmem:[%s1905_s30 + $0xd0] sm:$0xf] %vm1288_vm3, %v1603_v24  ;;  %v930_v38 = vadd.f32 %v1885_v39, %v859_v27  ;;  %v889_v40 = vmul.f32 %v1880_v37, %v795_v34 }
 0x11b   : > { %1312 = vst.msk [vmem:[%s1905_s30 + $0x5c] sm:$0xf] %vm1288_vm3, %v1574_v25  ;;  %v1604_v36 = vpack.c.bf16 %v1021_v26, %v1021_v26  ;;  %v860_v41 = vmul.f32 %v1677_v35, %v1880_v37  ;;  %v962_v44 = vadd.f32 %v1885_v39, %v891_v32  ;;  %v928_v45 = vadd.f32 %v1885_v39, %v857_v33 }
 0x11c   : > { %1344 = vst.msk [vmem:[%s1905_s30 + $0xdc] sm:$0xf] %vm1288_vm3, %v1606_v30  ;;  %1310 = vst.msk [vmem:[%s1905_s30 + $0x54] sm:$0xf] %vm1288_vm3, %v1572_v31  ;;  %v892_v46 = vmul.f32 %v1709_v42, %v1880_v37  ;;  %v858_v47 = vmul.f32 %v1880_v37, %v670_v43  ;;  %v994_v49 = vmax.f32 %v930_v38, 0.0  ;;  %v960_v50 = vadd.f32 %v1885_v39, %v889_v40 }
 0x11d   : > { %1342 = vst.msk [vmem:[%s1905_s30 + $0xd4] sm:$0xf] %vm1288_vm3, %v1604_v36  ;;  %v931_v51 = vadd.f32 %v1885_v39, %v860_v41  ;;  %v890_v52 = vmul.f32 %v1880_v37, %v798_v48  ;;  %v1026_v53 = vmax.f32 %v962_v44, 0.0  ;;  %v992_v54 = vmax.f32 %v928_v45, 0.0  ;;  %v1680_v1 = vpop.f32.mrb[28].mxu0 }
 0x11e   : > { %v963_v55 = vadd.f32 %v1885_v39, %v892_v46  ;;  %v929_v56 = vadd.f32 %v1885_v39, %v858_v47  ;;  %v1577_v57 = vpack.c.bf16 %v994_v49, %v994_v49  ;;  %v1024_v58 = vmax.f32 %v960_v50, 0.0  ;;  %v1712_v6 = vpop.f32.mrb[28].mxu1  ;;  %v683_v7 = vpop.f32.mrb[29].mxu0 }
 0x11f   : > { %v995_v59 = vmax.f32 %v931_v51, 0.0  ;;  %v961_v60 = vadd.f32 %v1885_v39, %v890_v52  ;;  %v1609_v61 = vpack.c.bf16 %v1026_v53, %v1026_v53  ;;  %v1575_v62 = vpack.c.bf16 %v992_v54, %v992_v54  ;;  %v811_v12 = vpop.f32.mrb[29].mxu1  ;;  %v1681_v13 = vpop.f32.mrb[30].mxu0 }
 0x120   : > { %v1027_v63 = vmax.f32 %v963_v55, 0.0  ;;  %v993_v0 = vmax.f32 %v929_v56, 0.0  ;;  %1315 = vst.msk [vmem:[%s1905_s30 + $0x68] sm:$0xf] %vm1288_vm3, %v1577_v57  ;;  %v1607_v2 = vpack.c.bf16 %v1024_v58, %v1024_v58  ;;  %v863_v5 = vmul.f32 %v1680_v1, %v1880_v37  ;;  %v1713_v18 = vpop.f32.mrb[30].mxu1  ;;  %v686_v19 = vpop.f32.mrb[31].mxu0 }
 0x121   : > { %v1578_v3 = vpack.c.bf16 %v995_v59, %v995_v59  ;;  %v1025_v4 = vmax.f32 %v961_v60, 0.0  ;;  %1347 = vst.msk [vmem:[%s1905_s30 + $0xe8] sm:$0xf] %vm1288_vm3, %v1609_v61  ;;  %1313 = vst.msk [vmem:[%s1905_s30 + $0x60] sm:$0xf] %vm1288_vm3, %v1575_v62  ;;  %v895_v10 = vmul.f32 %v1712_v6, %v1880_v37  ;;  %v861_v11 = vmul.f32 %v1880_v37, %v683_v7  ;;  %v814_v24 = vpop.f32.mrb[31].mxu1 }
 0x122   : > { %v1610_v8 = vpack.c.bf16 %v1027_v63, %v1027_v63  ;;  %v1576_v9 = vpack.c.bf16 %v993_v0, %v993_v0  ;;  %1345 = vst.msk [vmem:[%s1905_s30 + $0xe0] sm:$0xf] %vm1288_vm3, %v1607_v2  ;;  %v934_v15 = vadd.f32 %v1885_v39, %v863_v5  ;;  %v893_v16 = vmul.f32 %v1880_v37, %v811_v12 }
 0x123   : > { %1316 = vst.msk [vmem:[%s1905_s30 + $0x6c] sm:$0xf] %vm1288_vm3, %v1578_v3  ;;  %v1608_v14 = vpack.c.bf16 %v1025_v4, %v1025_v4  ;;  %v864_v17 = vmul.f32 %v1681_v13, %v1880_v37  ;;  %v966_v20 = vadd.f32 %v1885_v39, %v895_v10  ;;  %v932_v21 = vadd.f32 %v1885_v39, %v861_v11 }
 0x124   : > { %1348 = vst.msk [vmem:[%s1905_s30 + $0xec] sm:$0xf] %vm1288_vm3, %v1610_v8  ;;  %1314 = vst.msk [vmem:[%s1905_s30 + $0x64] sm:$0xf] %vm1288_vm3, %v1576_v9  ;;  %v896_v22 = vmul.f32 %v1713_v18, %v1880_v37  ;;  %v862_v23 = vmul.f32 %v1880_v37, %v686_v19  ;;  %v998_v25 = vmax.f32 %v934_v15, 0.0  ;;  %v964_v26 = vadd.f32 %v1885_v39, %v893_v16 }
 0x125   : > { %1346 = vst.msk [vmem:[%s1905_s30 + $0xe4] sm:$0xf] %vm1288_vm3, %v1608_v14  ;;  %v935_v27 = vadd.f32 %v1885_v39, %v864_v17  ;;  %v894_v28 = vmul.f32 %v1880_v37, %v814_v24  ;;  %v1030_v29 = vmax.f32 %v966_v20, 0.0  ;;  %v996_v30 = vmax.f32 %v932_v21, 0.0 }
 0x126   : > { %v967_v31 = vadd.f32 %v1885_v39, %v896_v22  ;;  %v933_v32 = vadd.f32 %v1885_v39, %v862_v23  ;;  %v1581_v33 = vpack.c.bf16 %v998_v25, %v998_v25  ;;  %v1028_v34 = vmax.f32 %v964_v26, 0.0 }
 0x127   : > { %v999_v35 = vmax.f32 %v935_v27, 0.0  ;;  %v965_v36 = vadd.f32 %v1885_v39, %v894_v28  ;;  %v1613_v38 = vpack.c.bf16 %v1030_v29, %v1030_v29  ;;  %v1579_v40 = vpack.c.bf16 %v996_v30, %v996_v30 }
 0x128   : > { %v1031_v37 = vmax.f32 %v967_v31, 0.0  ;;  %v997_v41 = vmax.f32 %v933_v32, 0.0  ;;  %1319 = vst.msk [vmem:[%s1905_s30 + $0x78] sm:$0xf] %vm1288_vm3, %v1581_v33  ;;  %v1611_v42 = vpack.c.bf16 %v1028_v34, %v1028_v34 }
 0x129   : > { %v1582_v43 = vpack.c.bf16 %v999_v35, %v999_v35  ;;  %v1029_v44 = vmax.f32 %v965_v36, 0.0  ;;  %1351 = vst.msk [vmem:[%s1905_s30 + $0xf8] sm:$0xf] %vm1288_vm3, %v1613_v38  ;;  %1317 = vst.msk [vmem:[%s1905_s30 + $0x70] sm:$0xf] %vm1288_vm3, %v1579_v40 }
 0x12a   : > { %v1614_v45 = vpack.c.bf16 %v1031_v37, %v1031_v37  ;;  %v1580_v46 = vpack.c.bf16 %v997_v41, %v997_v41  ;;  %1349 = vst.msk [vmem:[%s1905_s30 + $0xf0] sm:$0xf] %vm1288_vm3, %v1611_v42 }
 0x12b   : > { %1320 = vst.msk [vmem:[%s1905_s30 + $0x7c] sm:$0xf] %vm1288_vm3, %v1582_v43  ;;  %v1612_v39 = vpack.c.bf16 %v1029_v44, %v1029_v44 }
 0x12c   : > { %1352 = vst.msk [vmem:[%s1905_s30 + $0xfc] sm:$0xf] %vm1288_vm3, %v1614_v45  ;;  %1318 = vst.msk [vmem:[%s1905_s30 + $0x74] sm:$0xf] %vm1288_vm3, %v1580_v46 }
 0x12d   : > { %1350 = vst.msk [vmem:[%s1905_s30 + $0xf4] sm:$0xf] %vm1288_vm3, %v1612_v39 }
 0x12e PF: > { %s14_s15 = sadd.s32 1, %s1764_s15  }
 0x12f   : > { %p11_p4 = scmp.ge.s32.totalorder %s14_s15, 12  }
 0x131   :  { %13 = sbr.rel (!%p11_p4) target bundleno = 1 (0x1), region = 66 }

// kernel: style_encoder_forward.10
= control target key start
LH: loop header
LB: loop body
LE: loop exit
PB: predicated region body
PF: predicated region fallthrough
CT: control target
= control target key end

     0   :  { %s8574_s15 = smov 0   ;;  %s9939_s0 = inlined_call_operand.vmem [shape: bf16[2,33,25,128], index: 0, kind: input, shape index: {}]   ;;  %s9940_s1 = inlined_call_operand.vmem [shape: bf16[4,128,32], index: 1, kind: input, shape index: {}]   ;;  %s9941_s2 = inlined_call_operand.vmem [shape: f32[1,32], index: 2, kind: input, shape index: {}]   ;;  %s9942_s3 = inlined_call_operand.vmem [shape: f32[1,32], index: 3, kind: input, shape index: {}]   ;;  %s9943_s4 = inlined_call_operand.vmem [shape: bf16[2,768,32], index: 4, kind: output, shape index: {}]  }
   0x1 LB: > { %s6648_s16 = sadd.s32 4294967295, %s8547_s15   ;;  %p6652_p0 = scmp.ge.s32.totalorder %s8547_s15, 1  ;;  %s8547_s15 = sphi %s8574_s15, %s14_s15  }
   0x2   : > { %p162_p1 = scmp.lt.s32.totalorder %s8547_s15, 3 }
   0x4   : > { %p163_p2 = pnand %p6652_p0, %p162_p1 }
   0x5   : > { %v8317_v0 = vld [vmem:[%s9940_s1 + $0x40] sm:$0xff] (!%p163_p2)   ;;  %p188_p3 = scmp.lt.s32.totalorder (!%p163_p2), %s6648_s16, 1  ;;  %v8319_v2 = vld [vmem:[%s9940_s1 + $0x48] sm:$0xff] (!%p163_p2)   ;;  %v8321_v4 = vld [vmem:[%s9940_s1 + $0x50] sm:$0xff] (!%p163_p2)   ;;  %vm343_vm0 = vsmask.f32 (!%p163_p2), 3328 }
   0x6   : > { %166 = sbr.rel (%p163_p2) target bundleno = 655 (0x28f), region = 36  ;;  %v8318_v1 = vld [vmem:[%s9940_s1 + $0x80] sm:$0xff] (!%p163_p2)   ;;  %7571 = vmatprep.subr.bf16.mxu1 (!%p163_p2), %v8317_v0  ;;  %v8320_v3 = vld [vmem:[%s9940_s1 + $0x88] sm:$0xff] (!%p163_p2)   ;;  %v8322_v5 = vld [vmem:[%s9940_s1 + $0x90] sm:$0xff] (!%p163_p2)   ;;  %vm344_vm1 = vsmask.f32 (!%p163_p2), 7440 }
   0x7   : > { %7795 = vmatprep.subr.bf16.mxu0 (!%p163_p2), %v8318_v1  ;;  %7572 = vmatpush3.bf16.msra.mxu1 (!%p163_p2), %v8317_v0  ;;  %v8323_v6 = vld [vmem:[%s9940_s1 + $0x58] sm:$0xff] (!%p163_p2)   ;;  %v8325_v8 = vld [vmem:[%s9940_s1 + $0x60] sm:$0xff] (!%p163_p2)   ;;  %v8327_v10 = vld [vmem:[%s9940_s1 + $0x68] sm:$0xff] (!%p163_p2)   ;;  %vm6496_vm3 = vcmask (!%p163_p2), 257024  }
   0x8   : > { %7796 = vmatpush3.bf16.msra.mxu0 (!%p163_p2), %v8318_v1  ;;  %7573 = vmatprep.subr.bf16.mxu1 (!%p163_p2), %v8319_v2  ;;  %v8324_v7 = vld [vmem:[%s9940_s1 + $0x98] sm:$0xff] (!%p163_p2)   ;;  %v8326_v9 = vld [vmem:[%s9940_s1 + $0xa0] sm:$0xff] (!%p163_p2)   ;;  %v8328_v11 = vld [vmem:[%s9940_s1 + $0xa8] sm:$0xff] (!%p163_p2)  }
   0x9   : > { %7797 = vmatprep.subr.bf16.mxu0 (!%p163_p2), %v8320_v3  ;;  %v8329_v16 = vld [vmem:[%s9940_s1 + $0x70] sm:$0xff] (!%p163_p2)   ;;  %vm8651_vm2 = vmor (!%p163_p2), %vm343_vm0, %vm344_vm1  ;;  %v8331_v44 = vld [vmem:[%s9940_s1 + $0x78] sm:$0xff] (!%p163_p2)  }
   0xa   : > { %v8330_v21 = vld [vmem:[%s9940_s1 + $0xb0] sm:$0xff] (!%p163_p2)   ;;  %v8332_v45 = vld [vmem:[%s9940_s1 + $0xb8] sm:$0xff] (!%p163_p2)   ;;  %v8335_v54 = vld [vmem:[%s9940_s1] sm:$0xff] (!%p163_p2)  }
   0xb   : > { %7574 = vmatpush3.bf16.msra.mxu1 (!%p163_p2), %v8319_v2  ;;  %v8337_v62 = vld [vmem:[%s9940_s1 + $0xc0] sm:$0xff] (!%p163_p2)  }
   0xc   : > { %7798 = vmatpush3.bf16.msra.mxu0 (!%p163_p2), %v8320_v3  ;;  %7575 = vmatprep.subr.bf16.mxu1 (!%p163_p2), %v8321_v4 }
   0xd   : > { %s9947_s16 = smov (!%p188_p3, %s6648_s16), 1  ;;  %7799 = vmatprep.subr.bf16.mxu0 %v8322_v5 }
   0xe   : > { %s8307_s7 = smul.u32 528, %s9947_s16 }
   0xf   : > { %7576 = vmatpush3.bf16.msra.mxu1 %v8321_v4  ;;  %s8308_s18 = smul.u32 384, %s9947_s16 }
  0x10   : > { %7800 = vmatpush3.bf16.msra.mxu0 %v8322_v5  ;;  %7577 = vmatprep.subr.bf16.mxu1 %v8323_v6  ;;  %s8618_s14 = scalar_lea.vmem %s9939_s0, %s8307_s7 }
  0x11   : > { %7801 = vmatprep.subr.bf16.mxu0 %v8324_v7  ;;  %v199_v12 = vld [vmem:[%s8618_s14] sm:$0xf]  ;;  %v200_v13 = vld [vmem:[%s8618_s14 + $0x4] sm:$0xf]  ;;  %v8629_v14 = vld [vmem:[%s8618_s14 + $0x8] sm:$0xf]  ;;  %s9547_s21 = scalar_lea.vmem %s9943_s4, %s8308_s18 }
  0x12   : > { %v8632_v15 = vld [vmem:[%s8618_s14 + $0x10] sm:$0xf]  ;;  %v347_v17 = vshrl.u32 %v199_v12, 16  ;;  %v350_v18 = vshll.u32 %v199_v12, 16  ;;  %v356_v19 = vshll.u32 %v200_v13, 16  ;;  %v360_v20 = vshrl.u32 %v200_v13, 16 }
  0x13   : > { %7578 = vmatpush3.bf16.msra.mxu1 %v8323_v6  ;;  %v366_v22 = vshll.u32 %v8629_v14, 16  ;;  %v370_v23 = vshrl.u32 %v8629_v14, 16  ;;  %v6728_v24 = vcombine.low %v8629_v14, %v8632_v15  ;;  %v8334_v25 = vld [vmem:[%s8618_s14 + $0x10] sm:$0xff]   ;;  %v381_v26 = vshrl.u32 %v8632_v15, 16  ;;  %v311_v34 = vld [vmem:[%s8618_s14 + $0xc] sm:$0x1] }
  0x14   : > { %7802 = vmatpush3.bf16.msra.mxu0 %v8324_v7  ;;  %7579 = vmatprep.subr.bf16.mxu1 %v8325_v8  ;;  %v349_v27 = vrot.slane %v347_v17, 4  ;;  %v352_v28 = vrot.slane %v350_v18, 5  ;;  %v358_v29 = vrot.slane %v356_v19, 5  ;;  %v362_v30 = vrot.slane %v360_v20, 4  ;;  %v203_v31 = vld [vmem:[%s8618_s14 + $0x14] sm:$0xf] }
  0x15   : > { %7803 = vmatprep.subr.bf16.mxu0 %v8326_v9  ;;  %v368_v32 = vrot.slane %v366_v22, 5  ;;  %v372_v33 = vrot.slane %v370_v23, 4  ;;  %7811 = vmatprep.mubr.bf16.mxu0 %v8334_v25  ;;  %v383_v35 = vrot.slane %v381_v26, 4  ;;  %v384_v36 = vshll.u32 %v8632_v15, 16  ;;  %v204_v55 = vld [vmem:[%s8618_s14 + $0x18] sm:$0xf] }
  0x16   : > { %v353_v37 = vor.u32 %v352_v28, %v349_v27  ;;  %v363_v38 = vor.u32 %v362_v30, %v358_v29  ;;  %v376_v39 = vshll.u32 %v311_v34, 16  ;;  %v390_v40 = vshll.u32 %v203_v31, 16  ;;  %v312_v56 = vld [vmem:[%s8618_s14 + $0x1c] sm:$0x1]  ;;  %v205_v2 = vld [vmem:[%s8618_s14 + $0x20] sm:$0xf] }
  0x17   : > { %7580 = vmatpush3.bf16.msra.mxu1 %v8325_v8  ;;  %v373_v42 = vor.u32 %v372_v33, %v368_v32  ;;  %v386_v43 = vrot.slane %v384_v36, 5  ;;  %v394_v57 = vshrl.u32 %v203_v31, 16  ;;  %v400_v61 = vshll.u32 %v204_v55, 16  ;;  %v8336_v4 = vld [vmem:[%s8618_s14 + $0x18] ss:$8 sps:$4 sm:$0xff]   ;;  %v8338_v13 = vld [vmem:[%s8618_s14 + $0x24] sm:$0xff]  }
  0x18   : > { %7804 = vmatpush3.bf16.msra.mxu0 %v8326_v9  ;;  %7581 = vmatprep.subr.bf16.mxu1 %v8327_v10  ;;  %v354_v46 = vrot.slane %v353_v37, 4  ;;  %v364_v47 = vrot.slane %v363_v38, 4  ;;  %v378_v48 = vrot.slane %v376_v39, 5  ;;  %v392_v51 = vrot.slane %v390_v40, 5  ;;  %v206_v6 = vld [vmem:[%s8618_s14 + $0x24] sm:$0xf] }
  0x19   : > { %7805 = vmatprep.subr.bf16.mxu0 %v8328_v11  ;;  %v374_v49 = vrot.slane %v373_v42, 4  ;;  %v387_v50 = vor.u32 %v386_v43, %v383_v35  ;;  %v396_v63 = vrot.slane %v394_v57, 4  ;;  %v404_v0 = vshrl.u32 %v204_v55, 16  ;;  %v207_v7 = vld [vmem:[%s8618_s14 + $0x28] sm:$0xf] }
  0x1a   : > { %v359_v52 = vsel %vm8651_vm2, %v354_v46, %v358_v29  ;;  %v369_v53 = vsel %vm8651_vm2, %v364_v47, %v368_v32  ;;  %v410_v1 = vshll.u32 %v312_v56, 16  ;;  %v402_v5 = vrot.slane %v400_v61, 5  ;;  %v208_v20 = vld [vmem:[%s8618_s14 + $0x30] sm:$0xf]  ;;  %v209_v25 = vld [vmem:[%s8618_s14 + $0x34] sm:$0xf] }
  0x1b   : > { %7582 = vmatpush3.bf16.msra.mxu1 %v8327_v10  ;;  %v6671_v58 = vcombine.low %v359_v52, %v369_v53  ;;  %v379_v59 = vsel %vm8651_vm2, %v374_v49, %v378_v48  ;;  %v388_v60 = vrot.slane %v387_v50, 4  ;;  %v415_v8 = vshrl.u32 %v205_v2, 16  ;;  %v313_v26 = vld [vmem:[%s8618_s14 + $0x2c] sm:$0x1]  ;;  %v210_v39 = vld [vmem:[%s8618_s14 + $0x38] sm:$0xf] }
  0x1c   : > { %7806 = vmatpush3.bf16.msra.mxu0 %v8328_v11  ;;  %7583 = vmatprep.subr.bf16.mxu1 %v8329_v16  ;;  %v397_v10 = vor.u32 %v396_v63, %v392_v51  ;;  %v406_v11 = vrot.slane %v404_v0, 4  ;;  %v412_v12 = vrot.slane %v410_v1, 5  ;;  %v418_v17 = vshll.u32 %v205_v2, 16  ;;  %v8339_v49 = vld [vmem:[%s8618_s14 + $0x30] sm:$0xff]   ;;  %v211_v55 = vld [vmem:[%s8618_s14 + $0x40] sm:$0xf] }
  0x1d   : > { %7807 = vmatprep.subr.bf16.mxu0 %v8330_v21  ;;  %7587 = vmatprep.mubr.bf16.mxu1 %v6671_v58  ;;  %v393_v3 = vsel %vm8651_vm2, %v388_v60, %v392_v51  ;;  %v424_v18 = vshll.u32 %v206_v6, 16  ;;  %v428_v19 = vshrl.u32 %v206_v6, 16  ;;  %v434_v23 = vshll.u32 %v207_v7, 16  ;;  %v212_v61 = vld [vmem:[%s8618_s14 + $0x44] sm:$0xf] }
  0x1e   : > { %v6672_v9 = vcombine.low %v379_v59, %v393_v3  ;;  %v407_v22 = vor.u32 %v406_v11, %v402_v5  ;;  %v420_v27 = vrot.slane %v418_v17, 5  ;;  %v438_v30 = vshrl.u32 %v207_v7, 16  ;;  %v8340_v59 = vld [vmem:[%s8618_s14 + $0x38] ss:$8 sps:$4 sm:$0xff]   ;;  %v8343_v7 = vld [vmem:[%s9940_s1 + $0x8] sm:$0xff]  }
  0x1f   : > { %7584 = vmatpush3.bf16.msra.mxu1 %v8329_v16  ;;  %v417_v16 = vrot.slane %v415_v8, 4  ;;  %v426_v28 = vrot.slane %v424_v18, 5  ;;  %v430_v29 = vrot.slane %v428_v19, 4  ;;  %v436_v33 = vrot.slane %v434_v23, 5 }
  0x20   : > { %7808 = vmatpush3.bf16.msra.mxu0 %v8330_v21  ;;  %7585 = vmatprep.subr.bf16.mxu1 %v8331_v44  ;;  %v398_v21 = vrot.slane %v397_v10, 4  ;;  %v408_v32 = vrot.slane %v407_v22, 4  ;;  %v444_v34 = vshll.u32 %v313_v26, 16  ;;  %v440_v37 = vrot.slane %v438_v30, 4 }
  0x21   : > { %7809 = vmatprep.subr.bf16.mxu0 %v8332_v45  ;;  %v421_v35 = vor.u32 %v420_v27, %v417_v16  ;;  %v431_v36 = vor.u32 %v430_v29, %v426_v28  ;;  %v449_v38 = vshrl.u32 %v208_v20, 16  ;;  %v452_v43 = vshll.u32 %v208_v20, 16  ;;  %v315_v20 = vld [vmem:[%s8618_s14 + $0x4c] sm:$0x1] }
  0x22   : > { %v403_v31 = vsel %vm8651_vm2, %v398_v21, %v402_v5  ;;  %v413_v40 = vsel %vm8651_vm2, %v408_v32, %v412_v12  ;;  %v446_v42 = vrot.slane %v444_v34, 5  ;;  %v441_v50 = vor.u32 %v440_v37, %v436_v33  ;;  %v213_v5 = vld [vmem:[%s8618_s14 + $0x48] sm:$0xf]  ;;  %v214_v12 = vld [vmem:[%s8618_s14 + $0x50] sm:$0xf] }
  0x23   : > { %7586 = vmatpush3.bf16.msra.mxu1 %v8331_v44  ;;  %v458_v44 = vshll.u32 %v209_v25, 16  ;;  %v6673_v46 = vcombine.low %v403_v31, %v413_v40  ;;  %v422_v47 = vrot.slane %v421_v35, 4  ;;  %v432_v48 = vrot.slane %v431_v36, 4  ;;  %v8341_v35 = vld [vmem:[%s8618_s14 + $0x44] sm:$0xff]  }
  0x24   : > { %7810 = vmatpush3.bf16.msra.mxu0 %v8332_v45  ;;  %7683 = vmatprep.subr.bf16.mxu1 %v8335_v54  ;;  %v314_v45 = vld [vmem:[%s8618_s14 + $0x3c] sm:$0x1]  ;;  %v451_v51 = vrot.slane %v449_v38, 4  ;;  %v454_v52 = vrot.slane %v452_v43, 5  ;;  %v442_v58 = vrot.slane %v441_v50, 4  ;;  %v468_v60 = vshll.u32 %v210_v39, 16 }
  0x25   : > { %7907 = vmatprep.subr.bf16.mxu0 %v8337_v62  ;;  %v460_v53 = vrot.slane %v458_v44, 5  ;;  %v427_v56 = vsel %vm8651_vm2, %v422_v47, %v426_v28  ;;  %v437_v57 = vsel %vm8651_vm2, %v432_v48, %v436_v33  ;;  %v472_v1 = vshrl.u32 %v210_v39, 16  ;;  %v215_v33 = vld [vmem:[%s8618_s14 + $0x54] sm:$0xf]  ;;  %v216_v50 = vld [vmem:[%s8618_s14 + $0x58] sm:$0xf] }
  0x26   : > { %7588 = vmatmul.mubr.bf16.vlgmr.msra.gmra.mrb[0].mxu1 %v6672_v9  ;;  %v455_v63 = vor.u32 %v454_v52, %v451_v51  ;;  %v447_v2 = vsel %vm8651_vm2, %v442_v58, %v446_v42  ;;  %v470_v3 = vrot.slane %v468_v60, 5  ;;  %v483_v6 = vshrl.u32 %v211_v55, 16  ;;  %v8342_v43 = vld [vmem:[%s8618_s14 + $0x50] sm:$0xff]  }
  0x27   : > { %7812 = vmatmul.mubr.bf16.vlgmr.msra.gmra.mrb[0].mxu0 %v8336_v4  ;;  %7684 = vmatpush3.bf16.msra.mxu1 %v8335_v54  ;;  %v462_v54 = vshrl.u32 %v209_v25, 16  ;;  %v478_v4 = vshll.u32 %v314_v45, 16  ;;  %v474_v10 = vrot.slane %v472_v1, 4  ;;  %v486_v11 = vshll.u32 %v211_v55, 16  ;;  %v316_v55 = vld [vmem:[%s8618_s14 + $0x5c] sm:$0x1] }
  0x28   : > { %7908 = vmatpush3.bf16.msra.mxu0 %v8337_v62  ;;  %7815 = vmatprep.mubr.bf16.mxu0 %v8338_v13  ;;  %v6674_v62 = vcombine.low %v427_v56, %v437_v57  ;;  %v456_v8 = vrot.slane %v455_v63, 4  ;;  %v8345_v13 = vld [vmem:[%s9940_s1 + $0xc8] sm:$0xff]   ;;  %v485_v17 = vrot.slane %v483_v6, 4  ;;  %v492_v18 = vshll.u32 %v212_v61, 16  ;;  %v8351_v60 = vld [vmem:[%s9940_s1 + $0x10] sm:$0xff]  }
  0x29   : > { %7591 = vmatprep.mubr.bf16.mxu1 %v6673_v46  ;;  %v464_v0 = vrot.slane %v462_v54, 4  ;;  %v480_v16 = vrot.slane %v478_v4, 5  ;;  %v496_v19 = vshrl.u32 %v212_v61, 16  ;;  %7685 = vmatprep.subr.bf16.mxu1 %v8343_v7  ;;  %v475_v23 = vor.u32 %v474_v10, %v470_v3  ;;  %v217_v1 = vld [vmem:[%s8618_s14 + $0x60] sm:$0xf] }
  0x2a   : > { %v461_v21 = vsel %vm8651_vm2, %v456_v8, %v460_v53  ;;  %v488_v25 = vrot.slane %v486_v11, 5  ;;  %7909 = vmatprep.subr.bf16.mxu0 %v8345_v13  ;;  %v494_v27 = vrot.slane %v492_v18, 5  ;;  %v502_v29 = vshll.u32 %v213_v5, 16  ;;  %v219_v18 = vld [vmem:[%s8618_s14 + $0x68] sm:$0xf] }
  0x2b   : > { %v465_v9 = vor.u32 %v464_v0, %v460_v53  ;;  %v6675_v26 = vcombine.low %v447_v2, %v461_v21  ;;  %v498_v28 = vrot.slane %v496_v19, 4  ;;  %7686 = vmatpush3.bf16.msra.mxu1 %v8343_v7  ;;  %v476_v31 = vrot.slane %v475_v23, 4  ;;  %v218_v2 = vld [vmem:[%s8618_s14 + $0x64] sm:$0xf] }
  0x2c   : > { %7910 = vmatpush3.bf16.msra.mxu0 %v8345_v13  ;;  %v489_v32 = vor.u32 %v488_v25, %v485_v17  ;;  %v506_v34 = vshrl.u32 %v213_v5, 16  ;;  %v504_v37 = vrot.slane %v502_v29, 5  ;;  %v512_v38 = vshll.u32 %v315_v20, 16  ;;  %7687 = vmatprep.subr.bf16.mxu1 %v8351_v60  ;;  %v8346_v21 = vld [vmem:[%s8618_s14 + $0x64] sm:$0xff]  }
  0x2d   : > { %v466_v22 = vrot.slane %v465_v9, 4  ;;  %v499_v36 = vor.u32 %v498_v28, %v494_v27  ;;  %v517_v39 = vshrl.u32 %v214_v12, 16  ;;  %v481_v40 = vsel %vm8651_vm2, %v476_v31, %v480_v16  ;;  %v317_v31 = vld [vmem:[%s8618_s14 + $0x6c] sm:$0x1] }
  0x2e   : > { %7592 = vmatmul.mubr.bf16.gmra.mrb[4].mxu1 %v6674_v62  ;;  %v490_v42 = vrot.slane %v489_v32, 4  ;;  %v508_v44 = vrot.slane %v506_v34, 4  ;;  %v520_v45 = vshll.u32 %v214_v12, 16  ;;  %v514_v48 = vrot.slane %v512_v38, 5  ;;  %v8353_v12 = vld [vmem:[%s9940_s1 + $0xd0] sm:$0xff]  }
  0x2f   : > { %7816 = vmatmul.mubr.bf16.gmra.mrb[4].mxu0 %v8339_v49  ;;  %v471_v30 = vsel %vm8651_vm2, %v466_v22, %v470_v3  ;;  %7595 = vmatprep.mubr.bf16.mxu1 %v6675_v26  ;;  %v500_v47 = vrot.slane %v499_v36, 4  ;;  %v519_v49 = vrot.slane %v517_v39, 4  ;;  %v526_v54 = vshll.u32 %v215_v33, 16  ;;  %v8344_v3 = vld [vmem:[%s8618_s14 + $0x58] ss:$8 sps:$4 sm:$0xff]  }
  0x30   : > { %7819 = vmatprep.mubr.bf16.mxu0 %v8340_v59  ;;  %v6676_v46 = vcombine.low %v471_v30, %v481_v40  ;;  %v495_v51 = vsel %vm8651_vm2, %v490_v42, %v494_v27  ;;  %v509_v52 = vor.u32 %v508_v44, %v504_v37  ;;  %v522_v53 = vrot.slane %v520_v45, 5  ;;  %7688 = vmatpush3.bf16.msra.mxu1 %v8351_v60  ;;  %v220_v26 = vld [vmem:[%s8618_s14 + $0x70] sm:$0xf]  ;;  %v221_v38 = vld [vmem:[%s8618_s14 + $0x74] sm:$0xf] }
  0x31   : > { %v505_v56 = vsel %vm8651_vm2, %v500_v47, %v504_v37  ;;  %v530_v57 = vshrl.u32 %v215_v33, 16  ;;  %v536_v58 = vshll.u32 %v216_v50, 16  ;;  %v540_v59 = vshrl.u32 %v216_v50, 16  ;;  %7911 = vmatprep.subr.bf16.mxu0 %v8353_v12  ;;  %v318_v47 = vld [vmem:[%s8618_s14 + $0x7c] sm:$0x1] }
  0x32   : > { %v6677_v61 = vcombine.low %v495_v51, %v505_v56  ;;  %v510_v62 = vrot.slane %v509_v52, 4  ;;  %v523_v63 = vor.u32 %v522_v53, %v519_v49  ;;  %v528_v0 = vrot.slane %v526_v54, 5  ;;  %7912 = vmatpush3.bf16.msra.mxu0 %v8353_v12  ;;  %v8347_v54 = vld [vmem:[%s8618_s14 + $0x70] sm:$0xff]   ;;  %v8348_v56 = vld [vmem:[%s8618_s14 + $0x78] ss:$8 sps:$4 sm:$0xff]  }
  0x33   : > { %v532_v4 = vrot.slane %v530_v57, 4  ;;  %v538_v5 = vrot.slane %v536_v58, 5  ;;  %v542_v6 = vrot.slane %v540_v59, 4  ;;  %v546_v7 = vshll.u32 %v316_v55, 16 }
  0x34   : > { %v515_v8 = vsel %vm8651_vm2, %v510_v62, %v514_v48  ;;  %v524_v9 = vrot.slane %v523_v63, 4  ;;  %v551_v10 = vshrl.u32 %v217_v1, 16  ;;  %v554_v11 = vshll.u32 %v217_v1, 16  ;;  %v223_v62 = vld [vmem:[%s8618_s14 + $0x80] sm:$0xf]  ;;  %v8359_v63 = vld [vmem:[%s9940_s1 + $0x18] sm:$0xff]  }
  0x35   : > { %v533_v13 = vor.u32 %v532_v4, %v528_v0  ;;  %v543_v16 = vor.u32 %v542_v6, %v538_v5  ;;  %v548_v17 = vrot.slane %v546_v7, 5  ;;  %v560_v19 = vshll.u32 %v218_v2, 16  ;;  %v224_v4 = vld [vmem:[%s8618_s14 + $0x84] sm:$0xf]  ;;  %7689 = vmatprep.subr.bf16.mxu1 %v8359_v63 }
  0x36   : > { %7596 = vmatmul.mubr.bf16.gmra.mrb[8].mxu1 %v6676_v46  ;;  %v529_v20 = vsel %vm8651_vm2, %v524_v9, %v528_v0  ;;  %v553_v22 = vrot.slane %v551_v10, 4  ;;  %v556_v23 = vrot.slane %v554_v11, 5  ;;  %v564_v25 = vshrl.u32 %v218_v2, 16  ;;  %v222_v46 = vld [vmem:[%s8618_s14 + $0x78] sm:$0xf] }
  0x37   : > { %7820 = vmatmul.mubr.bf16.gmra.mrb[8].mxu0 %v8341_v35  ;;  %7599 = vmatprep.mubr.bf16.mxu1 %v6677_v61  ;;  %v6678_v27 = vcombine.low %v515_v8, %v529_v20  ;;  %v534_v28 = vrot.slane %v533_v13, 4  ;;  %v544_v29 = vrot.slane %v543_v16, 4  ;;  %v562_v30 = vrot.slane %v560_v19, 5  ;;  %v225_v10 = vld [vmem:[%s8618_s14 + $0x88] sm:$0xf] }
  0x38   : > { %7823 = vmatprep.mubr.bf16.mxu0 %v8342_v43  ;;  %v557_v32 = vor.u32 %v556_v23, %v553_v22  ;;  %v566_v33 = vrot.slane %v564_v25, 4  ;;  %v570_v34 = vshll.u32 %v219_v18, 16  ;;  %v574_v35 = vshrl.u32 %v219_v18, 16  ;;  %7690 = vmatpush3.bf16.msra.mxu1 %v8359_v63 }
  0x39   : > { %v539_v36 = vsel %vm8651_vm2, %v534_v28, %v538_v5  ;;  %v549_v37 = vsel %vm8651_vm2, %v544_v29, %v548_v17  ;;  %v580_v39 = vshll.u32 %v317_v31, 16  ;;  %v585_v40 = vshrl.u32 %v220_v26, 16  ;;  %v8361_v5 = vld [vmem:[%s9940_s1 + $0xd8] sm:$0xff]   ;;  %v8349_v28 = vld [vmem:[%s8618_s14 + $0x84] sm:$0xff]  }
  0x3a   : > { %v6679_v42 = vcombine.low %v539_v36, %v549_v37  ;;  %v558_v43 = vrot.slane %v557_v32, 4  ;;  %v567_v44 = vor.u32 %v566_v33, %v562_v30  ;;  %v572_v45 = vrot.slane %v570_v34, 5  ;;  %7913 = vmatprep.subr.bf16.mxu0 %v8361_v5  ;;  %v227_v32 = vld [vmem:[%s8618_s14 + $0x94] sm:$0xf]  ;;  %v319_v33 = vld [vmem:[%s8618_s14 + $0x8c] sm:$0x1] }
  0x3b   : > { %v576_v48 = vrot.slane %v574_v35, 4  ;;  %v582_v49 = vrot.slane %v580_v39, 5  ;;  %v587_v50 = vrot.slane %v585_v40, 4  ;;  %v588_v51 = vshll.u32 %v220_v26, 16  ;;  %v226_v26 = vld [vmem:[%s8618_s14 + $0x90] sm:$0xf]  ;;  %7914 = vmatpush3.bf16.msra.mxu0 %v8361_v5 }
  0x3c   : > { %v563_v52 = vsel %vm8651_vm2, %v558_v43, %v562_v30  ;;  %v568_v53 = vrot.slane %v567_v44, 4  ;;  %v594_v55 = vshll.u32 %v221_v38, 16  ;;  %v598_v57 = vshrl.u32 %v221_v38, 16  ;;  %v8367_v43 = vld [vmem:[%s9940_s1 + $0x20] sm:$0xff]  }
  0x3d   : > { %v577_v58 = vor.u32 %v576_v48, %v572_v45  ;;  %v590_v59 = vrot.slane %v588_v51, 5  ;;  %v604_v60 = vshll.u32 %v222_v46, 16  ;;  %v608_v61 = vshrl.u32 %v222_v46, 16  ;;  %v8350_v46 = vld [vmem:[%s8618_s14 + $0x90] sm:$0xff]   ;;  %7691 = vmatprep.subr.bf16.mxu1 %v8367_v43  ;;  %v8352_v5 = vld [vmem:[%s8618_s14 + $0x98] ss:$8 sps:$4 sm:$0xff]  }
  0x3e   : > { %7600 = vmatmul.mubr.bf16.gmra.mrb[12].mxu1 %v6678_v27  ;;  %v573_v0 = vsel %vm8651_vm2, %v568_v53, %v572_v45  ;;  %v596_v1 = vrot.slane %v594_v55, 5  ;;  %v600_v2 = vrot.slane %v598_v57, 4  ;;  %v619_v16 = vshrl.u32 %v223_v62, 16 }
  0x3f   : > { %7824 = vmatmul.mubr.bf16.gmra.mrb[12].mxu0 %v8344_v3  ;;  %7603 = vmatprep.mubr.bf16.mxu1 %v6679_v42  ;;  %v614_v3 = vshll.u32 %v318_v47, 16  ;;  %v6680_v6 = vcombine.low %v563_v52, %v573_v0  ;;  %v578_v7 = vrot.slane %v577_v58, 4  ;;  %v591_v8 = vor.u32 %v590_v59, %v587_v50  ;;  %v8369_v52 = vld [vmem:[%s9940_s1 + $0xe0] sm:$0xff]  }
  0x40   : > { %7827 = vmatprep.mubr.bf16.mxu0 %v8346_v21  ;;  %v606_v9 = vrot.slane %v604_v60, 5  ;;  %v601_v11 = vor.u32 %v600_v2, %v596_v1  ;;  %v610_v12 = vrot.slane %v608_v61, 4  ;;  %v622_v19 = vshll.u32 %v223_v62, 16  ;;  %7692 = vmatpush3.bf16.msra.mxu1 %v8367_v43  ;;  %v228_v60 = vld [vmem:[%s8618_s14 + $0x98] sm:$0xf] }
  0x41   : > { %v616_v13 = vrot.slane %v614_v3, 5  ;;  %v583_v17 = vsel %vm8651_vm2, %v578_v7, %v582_v49  ;;  %v592_v18 = vrot.slane %v591_v8, 4  ;;  %v628_v20 = vshll.u32 %v224_v4, 16  ;;  %v320_v61 = vld [vmem:[%s8618_s14 + $0x9c] sm:$0x1]  ;;  %7915 = vmatprep.subr.bf16.mxu0 %v8369_v52 }
  0x42   : > { %v602_v21 = vrot.slane %v601_v11, 4  ;;  %v611_v22 = vor.u32 %v610_v12, %v606_v9  ;;  %v621_v23 = vrot.slane %v619_v16, 4  ;;  %v632_v25 = vshrl.u32 %v224_v4, 16  ;;  %v229_v8 = vld [vmem:[%s8618_s14 + $0xa0] sm:$0xf]  ;;  %7916 = vmatpush3.bf16.msra.mxu0 %v8369_v52 }
  0x43   : > { %v597_v27 = vsel %vm8651_vm2, %v592_v18, %v596_v1  ;;  %v624_v29 = vrot.slane %v622_v19, 5  ;;  %v630_v30 = vrot.slane %v628_v20, 5  ;;  %v638_v31 = vshll.u32 %v225_v10, 16  ;;  %v230_v12 = vld [vmem:[%s8618_s14 + $0xa4] sm:$0xf] }
  0x44   : > { %v6681_v34 = vcombine.low %v583_v17, %v597_v27  ;;  %v607_v35 = vsel %vm8651_vm2, %v602_v21, %v606_v9  ;;  %v612_v36 = vrot.slane %v611_v22, 4  ;;  %v634_v37 = vrot.slane %v632_v25, 4  ;;  %v231_v19 = vld [vmem:[%s8618_s14 + $0xa8] sm:$0xf]  ;;  %v234_v52 = vld [vmem:[%s8618_s14 + $0xb8] sm:$0xf] }
  0x45   : > { %v625_v38 = vor.u32 %v624_v29, %v621_v23  ;;  %v640_v39 = vrot.slane %v638_v31, 5  ;;  %v642_v40 = vshrl.u32 %v225_v10, 16  ;;  %v648_v42 = vshll.u32 %v319_v33, 16  ;;  %v8354_v23 = vld [vmem:[%s8618_s14 + $0xa4] sm:$0xff]   ;;  %v232_v31 = vld [vmem:[%s8618_s14 + $0xb0] sm:$0xf] }
  0x46   : > { %7604 = vmatmul.mubr.bf16.gmra.mrb[16].mxu1 %v6680_v6  ;;  %v617_v44 = vsel %vm8651_vm2, %v612_v36, %v616_v13  ;;  %v635_v45 = vor.u32 %v634_v37, %v630_v30  ;;  %v653_v47 = vshrl.u32 %v226_v26, 16  ;;  %v656_v48 = vshll.u32 %v226_v26, 16 }
  0x47   : > { %7828 = vmatmul.mubr.bf16.gmra.mrb[16].mxu0 %v8347_v54  ;;  %7607 = vmatprep.mubr.bf16.mxu1 %v6681_v34  ;;  %v6682_v49 = vcombine.low %v607_v35, %v617_v44  ;;  %v626_v50 = vrot.slane %v625_v38, 4  ;;  %v644_v51 = vrot.slane %v642_v40, 4  ;;  %v650_v59 = vrot.slane %v648_v42, 5  ;;  %v321_v35 = vld [vmem:[%s8618_s14 + $0xac] sm:$0x1] }
  0x48   : > { %7831 = vmatprep.mubr.bf16.mxu0 %v8348_v56  ;;  %v636_v53 = vrot.slane %v635_v45, 4  ;;  %v655_v54 = vrot.slane %v653_v47, 4  ;;  %v658_v55 = vrot.slane %v656_v48, 5  ;;  %v662_v56 = vshll.u32 %v227_v32, 16  ;;  %v233_v44 = vld [vmem:[%s8618_s14 + $0xb4] sm:$0xf] }
  0x49   : > { %v631_v57 = vsel %vm8651_vm2, %v626_v50, %v630_v30  ;;  %v645_v58 = vor.u32 %v644_v51, %v640_v39  ;;  %v666_v62 = vshrl.u32 %v227_v32, 16  ;;  %v672_v2 = vshll.u32 %v228_v60, 16 }
  0x4a   : > { %v641_v63 = vsel %vm8651_vm2, %v636_v53, %v640_v39  ;;  %v659_v0 = vor.u32 %v658_v55, %v655_v54  ;;  %v664_v1 = vrot.slane %v662_v56, 5  ;;  %v676_v7 = vshrl.u32 %v228_v60, 16 }
  0x4b   : > { %v6683_v3 = vcombine.low %v631_v57, %v641_v63  ;;  %v646_v4 = vrot.slane %v645_v58, 4  ;;  %v668_v6 = vrot.slane %v666_v62, 4  ;;  %v674_v10 = vrot.slane %v672_v2, 5  ;;  %v8356_v57 = vld [vmem:[%s8618_s14 + $0xb8] ss:$8 sps:$4 sm:$0xff]  }
  0x4c   : > { %v660_v9 = vrot.slane %v659_v0, 4  ;;  %v682_v11 = vshll.u32 %v320_v61, 16  ;;  %v687_v13 = vshrl.u32 %v229_v8, 16  ;;  %v678_v18 = vrot.slane %v676_v7, 4  ;;  %v322_v58 = vld [vmem:[%s8618_s14 + $0xbc] sm:$0x1] }
  0x4d   : > { %v651_v16 = vsel %vm8651_vm2, %v646_v4, %v650_v59  ;;  %v669_v17 = vor.u32 %v668_v6, %v664_v1  ;;  %v690_v20 = vshll.u32 %v229_v8, 16  ;;  %v696_v26 = vshll.u32 %v230_v12, 16  ;;  %v8375_v59 = vld [vmem:[%s9940_s1 + $0x28] sm:$0xff]  }
  0x4e   : > { %7608 = vmatmul.mubr.bf16.gmra.mrb[20].mxu1 %v6682_v49  ;;  %v665_v21 = vsel %vm8651_vm2, %v660_v9, %v664_v1  ;;  %v684_v22 = vrot.slane %v682_v11, 5  ;;  %v689_v25 = vrot.slane %v687_v13, 4  ;;  %v679_v29 = vor.u32 %v678_v18, %v674_v10  ;;  %v8355_v49 = vld [vmem:[%s8618_s14 + $0xb0] sm:$0xff]   ;;  %v8377_v0 = vld [vmem:[%s9940_s1 + $0xe8] sm:$0xff]   ;;  %7693 = vmatprep.subr.bf16.mxu1 %v8375_v59 }
  0x4f   : > { %7832 = vmatmul.mubr.bf16.gmra.mrb[20].mxu0 %v8349_v28  ;;  %7611 = vmatprep.mubr.bf16.mxu1 %v6683_v3  ;;  %v6684_v27 = vcombine.low %v651_v16, %v665_v21  ;;  %v670_v28 = vrot.slane %v669_v17, 4  ;;  %v692_v30 = vrot.slane %v690_v20, 5  ;;  %v698_v32 = vrot.slane %v696_v26, 5  ;;  %v237_v17 = vld [vmem:[%s8618_s14 + $0xc8] sm:$0xf] }
  0x50   : > { %7835 = vmatprep.mubr.bf16.mxu0 %v8350_v46  ;;  %v700_v33 = vshrl.u32 %v230_v12, 16  ;;  %v706_v34 = vshll.u32 %v231_v19, 16  ;;  %v710_v36 = vshrl.u32 %v231_v19, 16  ;;  %v680_v38 = vrot.slane %v679_v29, 4  ;;  %7917 = vmatprep.subr.bf16.mxu0 %v8377_v0 }
  0x51   : > { %v675_v37 = vsel %vm8651_vm2, %v670_v28, %v674_v10  ;;  %v693_v39 = vor.u32 %v692_v30, %v689_v25  ;;  %v716_v40 = vshll.u32 %v321_v35, 16  ;;  %v721_v46 = vshrl.u32 %v232_v31, 16  ;;  %v236_v10 = vld [vmem:[%s8618_s14 + $0xc4] sm:$0xf]  ;;  %7694 = vmatpush3.bf16.msra.mxu1 %v8375_v59  ;;  %7918 = vmatpush3.bf16.msra.mxu0 %v8377_v0 }
  0x52   : > { %v702_v42 = vrot.slane %v700_v33, 4  ;;  %v708_v43 = vrot.slane %v706_v34, 5  ;;  %v712_v45 = vrot.slane %v710_v36, 4  ;;  %v685_v47 = vsel %vm8651_vm2, %v680_v38, %v684_v22  ;;  %v8357_v30 = vld [vmem:[%s8618_s14 + $0xc4] sm:$0xff]   ;;  %v239_v33 = vld [vmem:[%s8618_s14 + $0xd4] sm:$0xf] }
  0x53   : > { %v694_v48 = vrot.slane %v693_v39, 4  ;;  %v718_v50 = vrot.slane %v716_v40, 5  ;;  %v724_v51 = vshll.u32 %v232_v31, 16  ;;  %v6685_v53 = vcombine.low %v675_v37, %v685_v47  ;;  %v323_v34 = vld [vmem:[%s8618_s14 + $0xcc] sm:$0x1]  ;;  %v8358_v39 = vld [vmem:[%s8618_s14 + $0xd0] sm:$0xff]  }
  0x54   : > { %v703_v54 = vor.u32 %v702_v42, %v698_v32  ;;  %v713_v55 = vor.u32 %v712_v45, %v708_v43  ;;  %v723_v56 = vrot.slane %v721_v46, 4  ;;  %v730_v62 = vshll.u32 %v233_v44, 16  ;;  %v8383_v45 = vld [vmem:[%s9940_s1 + $0x30] sm:$0xff]  }
  0x55   : > { %v699_v60 = vsel %vm8651_vm2, %v694_v48, %v698_v32  ;;  %v726_v61 = vrot.slane %v724_v51, 5  ;;  %v734_v63 = vshrl.u32 %v233_v44, 16  ;;  %v740_v3 = vshll.u32 %v234_v52, 16  ;;  %7695 = vmatprep.subr.bf16.mxu1 %v8383_v45 }
  0x56   : > { %7612 = vmatmul.mubr.bf16.gmra.mrb[24].mxu1 %v6684_v27  ;;  %v704_v1 = vrot.slane %v703_v54, 4  ;;  %v714_v2 = vrot.slane %v713_v55, 4  ;;  %v744_v4 = vshrl.u32 %v234_v52, 16  ;;  %v732_v7 = vrot.slane %v730_v62, 5  ;;  %v238_v27 = vld [vmem:[%s8618_s14 + $0xd0] sm:$0xf] }
  0x57   : > { %7836 = vmatmul.mubr.bf16.gmra.mrb[24].mxu0 %v8352_v5  ;;  %7615 = vmatprep.mubr.bf16.mxu1 %v6685_v53  ;;  %v235_v5 = vld [vmem:[%s8618_s14 + $0xc0] sm:$0xf]  ;;  %v727_v6 = vor.u32 %v726_v61, %v723_v56  ;;  %v736_v8 = vrot.slane %v734_v63, 4  ;;  %v750_v9 = vshll.u32 %v322_v58, 16  ;;  %v742_v13 = vrot.slane %v740_v3, 5 }
  0x58   : > { %7839 = vmatprep.mubr.bf16.mxu0 %v8354_v23  ;;  %v709_v11 = vsel %vm8651_vm2, %v704_v1, %v708_v43  ;;  %v719_v12 = vsel %vm8651_vm2, %v714_v2, %v718_v50  ;;  %v746_v16 = vrot.slane %v744_v4, 4  ;;  %v755_v23 = vshrl.u32 %v235_v5, 16  ;;  %7696 = vmatpush3.bf16.msra.mxu1 %v8383_v45  ;;  %v240_v61 = vld [vmem:[%s8618_s14 + $0xd8] sm:$0xf]  ;;  %v324_v2 = vld [vmem:[%s8618_s14 + $0xdc] sm:$0x1] }
  0x59   : > { %v6686_v18 = vcombine.low %v699_v60, %v709_v11  ;;  %v728_v19 = vrot.slane %v727_v6, 4  ;;  %v737_v20 = vor.u32 %v736_v8, %v732_v7  ;;  %v752_v21 = vrot.slane %v750_v9, 5  ;;  %v8360_v6 = vld [vmem:[%s8618_s14 + $0xd8] ss:$8 sps:$4 sm:$0xff]  }
  0x5a   : > { %v747_v22 = vor.u32 %v746_v16, %v742_v13  ;;  %v758_v25 = vshll.u32 %v235_v5, 16  ;;  %v764_v26 = vshll.u32 %v236_v10, 16  ;;  %v768_v31 = vshrl.u32 %v236_v10, 16  ;;  %v241_v9 = vld [vmem:[%s8618_s14 + $0xe0] sm:$0xf] }
  0x5b   : > { %v733_v28 = vsel %vm8651_vm2, %v728_v19, %v732_v7  ;;  %v738_v29 = vrot.slane %v737_v20, 4  ;;  %v774_v32 = vshll.u32 %v237_v17, 16  ;;  %v757_v37 = vrot.slane %v755_v23, 4  ;;  %v242_v16 = vld [vmem:[%s8618_s14 + $0xe4] sm:$0xf] }
  0x5c   : > { %v6687_v35 = vcombine.low %v719_v12, %v733_v28  ;;  %v748_v36 = vrot.slane %v747_v22, 4  ;;  %v760_v38 = vrot.slane %v758_v25, 5  ;;  %v766_v42 = vrot.slane %v764_v26, 5  ;;  %v8362_v26 = vld [vmem:[%s8618_s14 + $0xe4] sm:$0xff]  }
  0x5d   : > { %v743_v40 = vsel %vm8651_vm2, %v738_v29, %v742_v13  ;;  %v770_v43 = vrot.slane %v768_v31, 4  ;;  %v776_v44 = vrot.slane %v774_v32, 5  ;;  %v778_v48 = vshrl.u32 %v237_v17, 16  ;;  %v8385_v17 = vld [vmem:[%s9940_s1 + $0xf0] sm:$0xff]  }
  0x5e   : > { %7616 = vmatmul.mubr.bf16.gmra.mrb[28].mxu1 %v6686_v18  ;;  %v753_v46 = vsel %vm8651_vm2, %v748_v36, %v752_v21  ;;  %v761_v47 = vor.u32 %v760_v38, %v757_v37  ;;  %v789_v52 = vshrl.u32 %v238_v27, 16  ;;  %v792_v53 = vshll.u32 %v238_v27, 16  ;;  %v243_v21 = vld [vmem:[%s8618_s14 + $0xe8] sm:$0xf]  ;;  %7919 = vmatprep.subr.bf16.mxu0 %v8385_v17  ;;  %v245_v38 = vld [vmem:[%s8618_s14 + $0xf4] sm:$0xf] }
  0x5f   : > { %7840 = vmatmul.mubr.bf16.gmra.mrb[28].mxu0 %v8355_v49  ;;  %7619 = vmatprep.mubr.bf16.mxu1 %v6687_v35  ;;  %v784_v49 = vshll.u32 %v323_v34, 16  ;;  %v6688_v50 = vcombine.low %v743_v40, %v753_v46  ;;  %v771_v51 = vor.u32 %v770_v43, %v766_v42  ;;  %v780_v55 = vrot.slane %v778_v48, 4  ;;  %v325_v43 = vld [vmem:[%s8618_s14 + $0xec] sm:$0x1] }
  0x60   : > { %7843 = vmatprep.mubr.bf16.mxu0 %v8356_v57  ;;  %v762_v54 = vrot.slane %v761_v47, 4  ;;  %v798_v57 = vshll.u32 %v239_v33, 16  ;;  %v791_v59 = vrot.slane %v789_v52, 4  ;;  %v794_v60 = vrot.slane %v792_v53, 5  ;;  %7920 = vmatpush3.bf16.msra.mxu0 %v8385_v17  ;;  %v247_v17 = vld [vmem:[%s8618_s14 + $0x100] sm:$0xf] }
  0x61   : > { %v786_v56 = vrot.slane %v784_v49, 5  ;;  %v772_v58 = vrot.slane %v771_v51, 4  ;;  %v802_v62 = vshrl.u32 %v239_v33, 16  ;;  %v781_v0 = vor.u32 %v780_v55, %v776_v44  ;;  %v244_v33 = vld [vmem:[%s8618_s14 + $0xf0] sm:$0xf]  ;;  %v8391_v49 = vld [vmem:[%s9940_s1 + $0x38] sm:$0xff]  }
  0x62   : > { %v767_v63 = vsel %vm8651_vm2, %v762_v54, %v766_v42  ;;  %v800_v1 = vrot.slane %v798_v57, 5  ;;  %v808_v3 = vshll.u32 %v240_v61, 16  ;;  %v795_v5 = vor.u32 %v794_v60, %v791_v59  ;;  %v8393_v54 = vld [vmem:[%s9940_s1 + $0xf8] sm:$0xff]   ;;  %7697 = vmatprep.subr.bf16.mxu1 %v8391_v49 }
  0x63   : > { %v777_v4 = vsel %vm8651_vm2, %v772_v58, %v776_v44  ;;  %v804_v7 = vrot.slane %v802_v62, 4  ;;  %v812_v8 = vshrl.u32 %v240_v61, 16  ;;  %v782_v11 = vrot.slane %v781_v0, 4  ;;  %v8364_v59 = vld [vmem:[%s8618_s14 + $0xf8] ss:$8 sps:$4 sm:$0xff]   ;;  %v8363_v61 = vld [vmem:[%s8618_s14 + $0xf0] sm:$0xff]   ;;  %7921 = vmatprep.subr.bf16.mxu0 %v8393_v54  ;;  %7698 = vmatpush3.bf16.msra.mxu1 %v8391_v49 }
  0x64   : > { %v6689_v10 = vcombine.low %v767_v63, %v777_v4  ;;  %v810_v12 = vrot.slane %v808_v3, 5  ;;  %v818_v13 = vshll.u32 %v324_v2, 16  ;;  %v796_v18 = vrot.slane %v795_v5, 4  ;;  %v246_v60 = vld [vmem:[%s8618_s14 + $0xf8] sm:$0xf]  ;;  %7922 = vmatpush3.bf16.msra.mxu0 %v8393_v54 }
  0x65   : > { %v805_v19 = vor.u32 %v804_v7, %v800_v1  ;;  %v814_v20 = vrot.slane %v812_v8, 4  ;;  %v823_v22 = vshrl.u32 %v241_v9, 16  ;;  %v787_v23 = vsel %vm8651_vm2, %v782_v11, %v786_v56  ;;  %v326_v2 = vld [vmem:[%s8618_s14 + $0xfc] sm:$0x1] }
  0x66   : > { %7620 = vmatmul.mubr.bf16.gmra.mrb[32].mxu1 %v6688_v50  ;;  %v820_v25 = vrot.slane %v818_v13, 5  ;;  %v826_v27 = vshll.u32 %v241_v9, 16  ;;  %v832_v28 = vshll.u32 %v242_v16, 16  ;;  %v801_v29 = vsel %vm8651_vm2, %v796_v18, %v800_v1 }
  0x67   : > { %7844 = vmatmul.mubr.bf16.gmra.mrb[32].mxu0 %v8357_v30  ;;  %7623 = vmatprep.mubr.bf16.mxu1 %v6689_v10  ;;  %v806_v30 = vrot.slane %v805_v19, 4  ;;  %v815_v31 = vor.u32 %v814_v20, %v810_v12  ;;  %v825_v32 = vrot.slane %v823_v22, 4  ;;  %v6690_v34 = vcombine.low %v787_v23, %v801_v29  ;;  %v248_v22 = vld [vmem:[%s8618_s14 + $0x104] sm:$0xf]  ;;  %v249_v23 = vld [vmem:[%s8618_s14 + $0x108] sm:$0xf] }
  0x68   : > { %7847 = vmatprep.mubr.bf16.mxu0 %v8358_v39  ;;  %v828_v35 = vrot.slane %v826_v27, 5  ;;  %v834_v36 = vrot.slane %v832_v28, 5  ;;  %v836_v37 = vshrl.u32 %v242_v16, 16  ;;  %v842_v42 = vshll.u32 %v243_v21, 16 }
  0x69   : > { %v811_v39 = vsel %vm8651_vm2, %v806_v30, %v810_v12  ;;  %v816_v40 = vrot.slane %v815_v31, 4  ;;  %v846_v44 = vshrl.u32 %v243_v21, 16  ;;  %v852_v47 = vshll.u32 %v325_v43, 16  ;;  %v8365_v31 = vld [vmem:[%s8618_s14 + $0x104] sm:$0xff]  }
  0x6a   : > { %v829_v45 = vor.u32 %v828_v35, %v825_v32  ;;  %v838_v46 = vrot.slane %v836_v37, 4  ;;  %v857_v48 = vshrl.u32 %v244_v33, 16  ;;  %v844_v51 = vrot.slane %v842_v42, 5 }
  0x6b   : > { %v821_v50 = vsel %vm8651_vm2, %v816_v40, %v820_v25  ;;  %v848_v52 = vrot.slane %v846_v44, 4  ;;  %v860_v53 = vshll.u32 %v244_v33, 16  ;;  %v854_v58 = vrot.slane %v852_v47, 5  ;;  %v251_v40 = vld [vmem:[%s8618_s14 + $0x114] sm:$0xf] }
  0x6c   : > { %v6691_v55 = vcombine.low %v811_v39, %v821_v50  ;;  %v830_v56 = vrot.slane %v829_v45, 4  ;;  %v839_v57 = vor.u32 %v838_v46, %v834_v36  ;;  %v859_v63 = vrot.slane %v857_v48, 4  ;;  %v8366_v39 = vld [vmem:[%s8618_s14 + $0x110] sm:$0xff]   ;;  %v327_v46 = vld [vmem:[%s8618_s14 + $0x10c] sm:$0x1] }
  0x6d   : > { %v849_v62 = vor.u32 %v848_v52, %v844_v51  ;;  %v862_v0 = vrot.slane %v860_v53, 5  ;;  %v866_v1 = vshll.u32 %v245_v38, 16  ;;  %v870_v5 = vshrl.u32 %v245_v38, 16 }
  0x6e   : > { %7624 = vmatmul.mubr.bf16.gmra.mrb[36].mxu1 %v6690_v34  ;;  %v835_v3 = vsel %vm8651_vm2, %v830_v56, %v834_v36  ;;  %v840_v4 = vrot.slane %v839_v57, 4  ;;  %v880_v10 = vshrl.u32 %v246_v60, 16  ;;  %v886_v16 = vshll.u32 %v326_v2, 16  ;;  %v250_v34 = vld [vmem:[%s8618_s14 + $0x110] sm:$0xf] }
  0x6f   : > { %7848 = vmatmul.mubr.bf16.gmra.mrb[36].mxu0 %v8360_v6  ;;  %7627 = vmatprep.mubr.bf16.mxu1 %v6691_v55  ;;  %v876_v6 = vshll.u32 %v246_v60, 16  ;;  %v850_v7 = vrot.slane %v849_v62, 4  ;;  %v863_v8 = vor.u32 %v862_v0, %v859_v63  ;;  %v868_v9 = vrot.slane %v866_v1, 5  ;;  %v252_v1 = vld [vmem:[%s8618_s14 + $0x118] sm:$0xf] }
  0x70   : > { %7851 = vmatprep.mubr.bf16.mxu0 %v8362_v26  ;;  %v845_v11 = vsel %vm8651_vm2, %v840_v4, %v844_v51  ;;  %v872_v12 = vrot.slane %v870_v5, 4  ;;  %v882_v21 = vrot.slane %v880_v10, 4  ;;  %v888_v26 = vrot.slane %v886_v16, 5  ;;  %v328_v2 = vld [vmem:[%s8618_s14 + $0x11c] sm:$0x1] }
  0x71   : > { %v878_v13 = vrot.slane %v876_v6, 5  ;;  %v6692_v18 = vcombine.low %v835_v3, %v845_v11  ;;  %v855_v19 = vsel %vm8651_vm2, %v850_v7, %v854_v58  ;;  %v864_v20 = vrot.slane %v863_v8, 4  ;;  %v8898_v3 = vld [vmem:[%s8618_s14] sm:$0xf]  ;;  %v8901_v4 = vld [vmem:[%s8618_s14 + $0x4] sm:$0xf] }
  0x72   : > { %v873_v25 = vor.u32 %v872_v12, %v868_v9  ;;  %v891_v27 = vshrl.u32 %v247_v17, 16  ;;  %v894_v28 = vshll.u32 %v247_v17, 16  ;;  %v900_v32 = vshll.u32 %v248_v22, 16  ;;  %v8906_v6 = vld [vmem:[%s8618_s14 + $0x14] sm:$0xf] }
  0x73   : > { %v869_v29 = vsel %vm8651_vm2, %v864_v20, %v868_v9  ;;  %v883_v30 = vor.u32 %v882_v21, %v878_v13  ;;  %v904_v33 = vshrl.u32 %v248_v22, 16  ;;  %v910_v45 = vshll.u32 %v249_v23, 16  ;;  %v8909_v7 = vld [vmem:[%s8618_s14 + $0x18] sm:$0xf] }
  0x74   : > { %v6693_v35 = vcombine.low %v855_v19, %v869_v29  ;;  %v874_v36 = vrot.slane %v873_v25, 4  ;;  %v893_v37 = vrot.slane %v891_v27, 4  ;;  %v896_v38 = vrot.slane %v894_v28, 5  ;;  %v8368_v12 = vld [vmem:[%s8618_s14 + $0x118] ss:$8 sps:$4 sm:$0xff]  }
  0x75   : > { %v884_v42 = vrot.slane %v883_v30, 4  ;;  %v902_v43 = vrot.slane %v900_v32, 5  ;;  %v906_v44 = vrot.slane %v904_v33, 4  ;;  %v914_v49 = vshrl.u32 %v249_v23, 16  ;;  %v253_v23 = vld [vmem:[%s8618_s14 + $0x120] sm:$0xf] }
  0x76   : > { %7628 = vmatmul.mubr.bf16.gmra.mrb[40].mxu1 %v6692_v18  ;;  %v879_v47 = vsel %vm8651_vm2, %v874_v36, %v878_v13  ;;  %v897_v48 = vor.u32 %v896_v38, %v893_v37  ;;  %v920_v50 = vshll.u32 %v327_v46, 16  ;;  %v912_v53 = vrot.slane %v910_v45, 5  ;;  %v254_v25 = vld [vmem:[%s8618_s14 + $0x124] sm:$0xf]  ;;  %v255_v33 = vld [vmem:[%s8618_s14 + $0x128] sm:$0xf] }
  0x77   : > { %7852 = vmatmul.mubr.bf16.gmra.mrb[40].mxu0 %v8363_v61  ;;  %7631 = vmatprep.mubr.bf16.mxu1 %v6693_v35  ;;  %v889_v51 = vsel %vm8651_vm2, %v884_v42, %v888_v26  ;;  %v907_v52 = vor.u32 %v906_v44, %v902_v43  ;;  %v925_v54 = vshrl.u32 %v250_v34, 16  ;;  %v916_v57 = vrot.slane %v914_v49, 4  ;;  %v8919_v26 = vld [vmem:[%s8618_s14 + $0x20] sm:$0xf]  ;;  %v8922_v27 = vld [vmem:[%s8618_s14 + $0x24] sm:$0xf] }
  0x78   : > { %7855 = vmatprep.mubr.bf16.mxu0 %v8364_v59  ;;  %v6694_v55 = vcombine.low %v879_v47, %v889_v51  ;;  %v898_v56 = vrot.slane %v897_v48, 4  ;;  %v922_v58 = vrot.slane %v920_v50, 5  ;;  %v928_v61 = vshll.u32 %v250_v34, 16  ;;  %v8370_v32 = vld [vmem:[%s8618_s14 + $0x124] sm:$0xff]   ;;  %v256_v48 = vld [vmem:[%s8618_s14 + $0x130] sm:$0xf] }
  0x79   : > { %v908_v59 = vrot.slane %v907_v52, 4  ;;  %v927_v60 = vrot.slane %v925_v54, 4  ;;  %v934_v62 = vshll.u32 %v251_v40, 16  ;;  %v917_v0 = vor.u32 %v916_v57, %v912_v53  ;;  %v329_v57 = vld [vmem:[%s8618_s14 + $0x12c] sm:$0x1] }
  0x7a   : > { %v903_v63 = vsel %vm8651_vm2, %v898_v56, %v902_v43  ;;  %v6727_v5 = vcombine.low %v8898_v3, %v8901_v4  ;;  %v6729_v8 = vcombine.low %v8906_v6, %v8909_v7  ;;  %v930_v10 = vrot.slane %v928_v61, 5  ;;  %v6966_v6 = vld [vmem:[%s8618_s14 + $0x4c] sm:$0x1] }
  0x7b   : > { %v913_v9 = vsel %vm8651_vm2, %v908_v59, %v912_v53  ;;  %v936_v11 = vrot.slane %v934_v62, 5  ;;  %v938_v13 = vshrl.u32 %v251_v40, 16  ;;  %v918_v17 = vrot.slane %v917_v0, 4  ;;  %v257_v53 = vld [vmem:[%s8618_s14 + $0x134] sm:$0xf] }
  0x7c   : > { %v6695_v16 = vcombine.low %v903_v63, %v913_v9  ;;  %v944_v18 = vshll.u32 %v252_v1, 16  ;;  %v948_v19 = vshrl.u32 %v252_v1, 16  ;;  %v931_v20 = vor.u32 %v930_v10, %v927_v60  ;;  %v8372_v63 = vld [vmem:[%s8618_s14 + $0x138] ss:$8 sps:$4 sm:$0xff]  }
  0x7d   : > { %v940_v21 = vrot.slane %v938_v13, 4  ;;  %v954_v22 = vshll.u32 %v328_v2, 16  ;;  %v6730_v28 = vcombine.low %v8919_v26, %v8922_v27  ;;  %v923_v29 = vsel %vm8651_vm2, %v918_v17, %v922_v58  ;;  %v8371_v2 = vld [vmem:[%s8618_s14 + $0x130] sm:$0xff]  }
  0x7e   : > { %7632 = vmatmul.mubr.bf16.gmra.mrb[44].mxu1 %v6694_v55  ;;  %v946_v30 = vrot.slane %v944_v18, 5  ;;  %v959_v34 = vshrl.u32 %v253_v23, 16  ;;  %v932_v35 = vrot.slane %v931_v20, 4  ;;  %v962_v38 = vshll.u32 %v253_v23, 16  ;;  %v330_v18 = vld [vmem:[%s8618_s14 + $0x13c] sm:$0x1] }
  0x7f   : > { %7856 = vmatmul.mubr.bf16.gmra.mrb[44].mxu0 %v8365_v31  ;;  %7635 = vmatprep.mubr.bf16.mxu1 %v6695_v16  ;;  %v950_v31 = vrot.slane %v948_v19, 4  ;;  %v941_v36 = vor.u32 %v940_v21, %v936_v11  ;;  %v956_v37 = vrot.slane %v954_v22, 5  ;;  %v968_v42 = vshll.u32 %v254_v25, 16 }
  0x80   : > { %7859 = vmatprep.mubr.bf16.mxu0 %v8366_v39  ;;  %v961_v40 = vrot.slane %v959_v34, 4  ;;  %v972_v43 = vshrl.u32 %v254_v25, 16  ;;  %v937_v44 = vsel %vm8651_vm2, %v932_v35, %v936_v11  ;;  %v964_v46 = vrot.slane %v962_v38, 5  ;;  %v258_v11 = vld [vmem:[%s8618_s14 + $0x138] sm:$0xf] }
  0x81   : > { %v951_v39 = vor.u32 %v950_v31, %v946_v30  ;;  %v942_v45 = vrot.slane %v941_v36, 4  ;;  %v978_v47 = vshll.u32 %v255_v33, 16  ;;  %v6696_v49 = vcombine.low %v923_v29, %v937_v44  ;;  %v259_v31 = vld [vmem:[%s8618_s14 + $0x140] sm:$0xf]  ;;  %v260_v36 = vld [vmem:[%s8618_s14 + $0x144] sm:$0xf] }
  0x82   : > { %v970_v51 = vrot.slane %v968_v42, 5  ;;  %v974_v52 = vrot.slane %v972_v43, 4  ;;  %v965_v55 = vor.u32 %v964_v46, %v961_v40  ;;  %v982_v58 = vshrl.u32 %v255_v33, 16 }
  0x83   : > { %v952_v50 = vrot.slane %v951_v39, 4  ;;  %v947_v54 = vsel %vm8651_vm2, %v942_v45, %v946_v30  ;;  %v980_v56 = vrot.slane %v978_v47, 5  ;;  %v988_v61 = vshll.u32 %v329_v57, 16  ;;  %v261_v45 = vld [vmem:[%s8618_s14 + $0x148] sm:$0xf] }
  0x84   : > { %v975_v60 = vor.u32 %v974_v52, %v970_v51  ;;  %v993_v62 = vshrl.u32 %v256_v48, 16  ;;  %v966_v1 = vrot.slane %v965_v55, 4  ;;  %v984_v9 = vrot.slane %v982_v58, 4  ;;  %v263_v57 = vld [vmem:[%s8618_s14 + $0x154] sm:$0xf] }
  0x85   : > { %v957_v59 = vsel %vm8651_vm2, %v952_v50, %v956_v37  ;;  %v996_v10 = vshll.u32 %v256_v48, 16  ;;  %v990_v13 = vrot.slane %v988_v61, 5  ;;  %v1002_v17 = vshll.u32 %v257_v53, 16  ;;  %v331_v58 = vld [vmem:[%s8618_s14 + $0x14c] sm:$0x1] }
  0x86   : > { %7636 = vmatmul.mubr.bf16.gmra.mrb[48].mxu1 %v6696_v49  ;;  %v6697_v0 = vcombine.low %v947_v54, %v957_v59  ;;  %v995_v16 = vrot.slane %v993_v62, 4  ;;  %v971_v19 = vsel %vm8651_vm2, %v966_v1, %v970_v51  ;;  %v985_v20 = vor.u32 %v984_v9, %v980_v56  ;;  %v262_v51 = vld [vmem:[%s8618_s14 + $0x150] sm:$0xf]  ;;  %v8373_v54 = vld [vmem:[%s8618_s14 + $0x144] sm:$0xff]  }
  0x87   : > { %7860 = vmatmul.mubr.bf16.gmra.mrb[48].mxu0 %v8368_v12  ;;  %v976_v12 = vrot.slane %v975_v60, 4  ;;  %v998_v21 = vrot.slane %v996_v10, 5  ;;  %v1006_v22 = vshrl.u32 %v257_v53, 16  ;;  %v1004_v25 = vrot.slane %v1002_v17, 5 }
  0x88   : > { %7863 = vmatprep.mubr.bf16.mxu0 %v8370_v32  ;;  %7639 = vmatprep.mubr.bf16.mxu1 %v6697_v0  ;;  %v1012_v29 = vshll.u32 %v258_v11, 16  ;;  %v1016_v30 = vshrl.u32 %v258_v11, 16  ;;  %v986_v33 = vrot.slane %v985_v20, 4  ;;  %v1022_v39 = vshll.u32 %v330_v18, 16 }
  0x89   : > { %v981_v23 = vsel %vm8651_vm2, %v976_v12, %v980_v56  ;;  %v999_v34 = vor.u32 %v998_v21, %v995_v16  ;;  %v1008_v35 = vrot.slane %v1006_v22, 4  ;;  %v1027_v40 = vshrl.u32 %v259_v31, 16 }
  0x8a   : > { %v6698_v32 = vcombine.low %v971_v19, %v981_v23  ;;  %v1014_v37 = vrot.slane %v1012_v29, 5  ;;  %v1018_v38 = vrot.slane %v1016_v30, 4  ;;  %v991_v42 = vsel %vm8651_vm2, %v986_v33, %v990_v13  ;;  %v332_v33 = vld [vmem:[%s8618_s14 + $0x15c] sm:$0x1] }
  0x8b   : > { %v1000_v43 = vrot.slane %v999_v34, 4  ;;  %v1009_v44 = vor.u32 %v1008_v35, %v1004_v25  ;;  %v1030_v46 = vshll.u32 %v259_v31, 16  ;;  %v1024_v48 = vrot.slane %v1022_v39, 5  ;;  %v8376_v31 = vld [vmem:[%s8618_s14 + $0x158] ss:$8 sps:$4 sm:$0xff]  }
  0x8c   : > { %v1019_v47 = vor.u32 %v1018_v38, %v1014_v37  ;;  %v1029_v49 = vrot.slane %v1027_v40, 4  ;;  %v1036_v50 = vshll.u32 %v260_v36, 16  ;;  %v1040_v56 = vshrl.u32 %v260_v36, 16 }
  0x8d   : > { %v1005_v52 = vsel %vm8651_vm2, %v1000_v43, %v1004_v25  ;;  %v1010_v53 = vrot.slane %v1009_v44, 4  ;;  %v1032_v55 = vrot.slane %v1030_v46, 5  ;;  %v1046_v62 = vshll.u32 %v261_v45, 16  ;;  %v8378_v44 = vld [vmem:[%s8618_s14 + $0x164] sm:$0xff]  }
  0x8e   : > { %7640 = vmatmul.mubr.bf16.gmra.mrb[52].mxu1 %v6698_v32  ;;  %v6699_v59 = vcombine.low %v991_v42, %v1005_v52  ;;  %v1020_v60 = vrot.slane %v1019_v47, 4  ;;  %v1038_v61 = vrot.slane %v1036_v50, 5  ;;  %v1050_v9 = vshrl.u32 %v261_v45, 16  ;;  %v264_v32 = vld [vmem:[%s8618_s14 + $0x158] sm:$0xf] }
  0x8f   : > { %7864 = vmatmul.mubr.bf16.gmra.mrb[52].mxu0 %v8371_v2  ;;  %v1015_v0 = vsel %vm8651_vm2, %v1010_v53, %v1014_v37  ;;  %v1033_v1 = vor.u32 %v1032_v55, %v1029_v49  ;;  %v1042_v2 = vrot.slane %v1040_v56, 4  ;;  %v1048_v11 = vrot.slane %v1046_v62, 5  ;;  %v265_v49 = vld [vmem:[%s8618_s14 + $0x160] sm:$0xf]  ;;  %v266_v50 = vld [vmem:[%s8618_s14 + $0x164] sm:$0xf] }
  0x90   : > { %7867 = vmatprep.mubr.bf16.mxu0 %v8372_v63  ;;  %v8374_v63 = vld [vmem:[%s8618_s14 + $0x150] sm:$0xff]   ;;  %7643 = vmatprep.mubr.bf16.mxu1 %v6699_v59  ;;  %v1025_v10 = vsel %vm8651_vm2, %v1020_v60, %v1024_v48  ;;  %v1056_v12 = vshll.u32 %v331_v58, 16  ;;  %v1061_v13 = vshrl.u32 %v262_v51, 16  ;;  %v1052_v19 = vrot.slane %v1050_v9, 4 }
  0x91   : > { %v6700_v16 = vcombine.low %v1015_v0, %v1025_v10  ;;  %v1034_v17 = vrot.slane %v1033_v1, 4  ;;  %v1043_v18 = vor.u32 %v1042_v2, %v1038_v61  ;;  %v1064_v22 = vshll.u32 %v262_v51, 16  ;;  %v268_v0 = vld [vmem:[%s8618_s14 + $0x170] sm:$0xf] }
  0x92   : > { %v1058_v20 = vrot.slane %v1056_v12, 5  ;;  %v1063_v21 = vrot.slane %v1061_v13, 4  ;;  %v1070_v23 = vshll.u32 %v263_v57, 16  ;;  %v1053_v30 = vor.u32 %v1052_v19, %v1048_v11  ;;  %v333_v19 = vld [vmem:[%s8618_s14 + $0x16c] sm:$0x1] }
  0x93   : > { %v1039_v25 = vsel %vm8651_vm2, %v1034_v17, %v1038_v61  ;;  %v1044_v29 = vrot.slane %v1043_v18, 4  ;;  %v1074_v34 = vshrl.u32 %v263_v57, 16  ;;  %v1066_v35 = vrot.slane %v1064_v22, 5  ;;  %v8379_v18 = vld [vmem:[%s8618_s14 + $0x170] sm:$0xff]  }
  0x94   : > { %v1072_v36 = vrot.slane %v1070_v23, 5  ;;  %v1080_v37 = vshll.u32 %v264_v32, 16  ;;  %v1084_v38 = vshrl.u32 %v264_v32, 16  ;;  %v1054_v40 = vrot.slane %v1053_v30, 4 }
  0x95   : > { %v1049_v39 = vsel %vm8651_vm2, %v1044_v29, %v1048_v11  ;;  %v1076_v42 = vrot.slane %v1074_v34, 4  ;;  %v1090_v43 = vshll.u32 %v332_v33, 16  ;;  %v1067_v46 = vor.u32 %v1066_v35, %v1063_v21  ;;  %v269_v11 = vld [vmem:[%s8618_s14 + $0x174] sm:$0xf]  ;;  %v270_v33 = vld [vmem:[%s8618_s14 + $0x178] sm:$0xf] }
  0x96   : > { %7644 = vmatmul.mubr.bf16.gmra.mrb[56].mxu1 %v6700_v16  ;;  %v6701_v45 = vcombine.low %v1039_v25, %v1049_v39  ;;  %v1082_v47 = vrot.slane %v1080_v37, 5  ;;  %v1086_v48 = vrot.slane %v1084_v38, 4  ;;  %v1059_v51 = vsel %vm8651_vm2, %v1054_v40, %v1058_v20  ;;  %v8380_v25 = vld [vmem:[%s8618_s14 + $0x178] ss:$8 sps:$4 sm:$0xff]   ;;  %v334_v34 = vld [vmem:[%s8618_s14 + $0x17c] sm:$0x1] }
  0x97   : > { %7868 = vmatmul.mubr.bf16.gmra.mrb[56].mxu0 %v8373_v54  ;;  %v1077_v52 = vor.u32 %v1076_v42, %v1072_v36  ;;  %v1092_v53 = vrot.slane %v1090_v43, 5  ;;  %v267_v54 = vld [vmem:[%s8618_s14 + $0x168] sm:$0xf]  ;;  %v1095_v55 = vshrl.u32 %v265_v49, 16  ;;  %v1068_v56 = vrot.slane %v1067_v46, 4 }
  0x98   : > { %7871 = vmatprep.mubr.bf16.mxu0 %v8374_v63  ;;  %7647 = vmatprep.mubr.bf16.mxu1 %v6701_v45  ;;  %v1087_v57 = vor.u32 %v1086_v48, %v1082_v47  ;;  %v1098_v58 = vshll.u32 %v265_v49, 16  ;;  %v1104_v59 = vshll.u32 %v266_v50, 16  ;;  %v1108_v62 = vshrl.u32 %v266_v50, 16  ;;  %v271_v48 = vld [vmem:[%s8618_s14 + $0x180] sm:$0xf] }
  0x99   : > { %v1078_v60 = vrot.slane %v1077_v52, 4  ;;  %v1097_v61 = vrot.slane %v1095_v55, 4  ;;  %v1114_v63 = vshll.u32 %v267_v54, 16  ;;  %v1073_v1 = vsel %vm8651_vm2, %v1068_v56, %v1072_v36 }
  0x9a   : > { %v1088_v2 = vrot.slane %v1087_v57, 4  ;;  %v1100_v9 = vrot.slane %v1098_v58, 5  ;;  %v1106_v10 = vrot.slane %v1104_v59, 5  ;;  %v6702_v12 = vcombine.low %v1059_v51, %v1073_v1  ;;  %v8381_v1 = vld [vmem:[%s8618_s14 + $0x184] sm:$0xff]  }
  0x9b   : > { %v1083_v13 = vsel %vm8651_vm2, %v1078_v60, %v1082_v47  ;;  %v1110_v16 = vrot.slane %v1108_v62, 4  ;;  %v1116_v17 = vrot.slane %v1114_v63, 5  ;;  %v1118_v22 = vshrl.u32 %v267_v54, 16 }
  0x9c   : > { %v1093_v20 = vsel %vm8651_vm2, %v1088_v2, %v1092_v53  ;;  %v1101_v21 = vor.u32 %v1100_v9, %v1097_v61  ;;  %v1124_v23 = vshll.u32 %v333_v19, 16  ;;  %v1132_v32 = vshll.u32 %v268_v0, 16  ;;  %v272_v53 = vld [vmem:[%s8618_s14 + $0x184] sm:$0xf]  ;;  %v273_v61 = vld [vmem:[%s8618_s14 + $0x188] sm:$0xf] }
  0x9d   : > { %v6703_v29 = vcombine.low %v1083_v13, %v1093_v20  ;;  %v1111_v30 = vor.u32 %v1110_v16, %v1106_v10  ;;  %v1120_v36 = vrot.slane %v1118_v22, 4  ;;  %v1138_v38 = vshll.u32 %v269_v11, 16  ;;  %v8382_v22 = vld [vmem:[%s8618_s14 + $0x190] sm:$0xff]  }
  0x9e   : > { %7648 = vmatmul.mubr.bf16.gmra.mrb[60].mxu1 %v6702_v12  ;;  %v1102_v35 = vrot.slane %v1101_v21, 4  ;;  %v1126_v37 = vrot.slane %v1124_v23, 5  ;;  %v1134_v42 = vrot.slane %v1132_v32, 5  ;;  %v1142_v43 = vshrl.u32 %v269_v11, 16  ;;  %v275_v23 = vld [vmem:[%s8618_s14 + $0x194] sm:$0xf] }
  0x9f   : > { %7872 = vmatmul.mubr.bf16.gmra.mrb[60].mxu0 %v8376_v31  ;;  %v1129_v31 = vshrl.u32 %v268_v0, 16  ;;  %7651 = vmatprep.mubr.bf16.mxu1 %v6703_v29  ;;  %v1112_v39 = vrot.slane %v1111_v30, 4  ;;  %v1121_v45 = vor.u32 %v1120_v36, %v1116_v17  ;;  %v1140_v46 = vrot.slane %v1138_v38, 5 }
  0xa0   : > { %7875 = vmatprep.mubr.bf16.mxu0 %v8378_v44  ;;  %v1107_v44 = vsel %vm8651_vm2, %v1102_v35, %v1106_v10  ;;  %v1148_v47 = vshll.u32 %v270_v33, 16  ;;  %v1144_v51 = vrot.slane %v1142_v43, 4  ;;  %v1152_v52 = vshrl.u32 %v270_v33, 16  ;;  %v274_v10 = vld [vmem:[%s8618_s14 + $0x190] sm:$0xf] }
  0xa1   : > { %v1131_v40 = vrot.slane %v1129_v31, 4  ;;  %v1117_v49 = vsel %vm8651_vm2, %v1112_v39, %v1116_v17  ;;  %v1122_v55 = vrot.slane %v1121_v45, 4  ;;  %v1158_v57 = vshll.u32 %v334_v34, 16  ;;  %v335_v17 = vld [vmem:[%s8618_s14 + $0x18c] sm:$0x1] }
  0xa2   : > { %v6704_v54 = vcombine.low %v1107_v44, %v1117_v49  ;;  %v1150_v56 = vrot.slane %v1148_v47, 5  ;;  %v1145_v59 = vor.u32 %v1144_v51, %v1140_v46  ;;  %v1154_v60 = vrot.slane %v1152_v52, 4  ;;  %v8384_v49 = vld [vmem:[%s8618_s14 + $0x198] ss:$8 sps:$4 sm:$0xff]  }
  0xa3   : > { %v1135_v50 = vor.u32 %v1134_v42, %v1131_v40  ;;  %v1163_v62 = vshrl.u32 %v271_v48, 16  ;;  %v1127_v63 = vsel %vm8651_vm2, %v1122_v55, %v1126_v37  ;;  %v1160_v0 = vrot.slane %v1158_v57, 5 }
  0xa4   : > { %v1166_v2 = vshll.u32 %v271_v48, 16  ;;  %v1172_v9 = vshll.u32 %v272_v53, 16  ;;  %v1146_v12 = vrot.slane %v1145_v59, 4  ;;  %v1155_v13 = vor.u32 %v1154_v60, %v1150_v56 }
  0xa5   : > { %v1136_v58 = vrot.slane %v1135_v50, 4  ;;  %v1165_v16 = vrot.slane %v1163_v62, 4  ;;  %v1176_v21 = vshrl.u32 %v272_v53, 16  ;;  %v1182_v30 = vshll.u32 %v273_v61, 16  ;;  %v276_v50 = vld [vmem:[%s8618_s14 + $0x198] sm:$0xf] }
  0xa6   : > { %7652 = vmatmul.mubr.bf16.gmra.mrb[64].mxu1 %v6704_v54  ;;  %v1168_v19 = vrot.slane %v1166_v2, 5  ;;  %v1174_v20 = vrot.slane %v1172_v9, 5  ;;  %v1156_v29 = vrot.slane %v1155_v13, 4  ;;  %v1186_v31 = vshrl.u32 %v273_v61, 16  ;;  %v336_v53 = vld [vmem:[%s8618_s14 + $0x19c] sm:$0x1] }
  0xa7   : > { %7876 = vmatmul.mubr.bf16.gmra.mrb[64].mxu0 %v8379_v18  ;;  %v1141_v11 = vsel %vm8651_vm2, %v1136_v58, %v1140_v46  ;;  %v1178_v33 = vrot.slane %v1176_v21, 4  ;;  %v1192_v34 = vshll.u32 %v335_v17, 16  ;;  %v1197_v35 = vshrl.u32 %v274_v10, 16  ;;  %v279_v17 = vld [vmem:[%s8618_s14 + $0x1a8] sm:$0xf] }
  0xa8   : > { %7879 = vmatprep.mubr.bf16.mxu0 %v8380_v25  ;;  %v6705_v18 = vcombine.low %v1127_v63, %v1141_v11  ;;  %v1151_v25 = vsel %vm8651_vm2, %v1146_v12, %v1150_v56  ;;  %v1169_v32 = vor.u32 %v1168_v19, %v1165_v16  ;;  %v1161_v36 = vsel %vm8651_vm2, %v1156_v29, %v1160_v0  ;;  %v8386_v0 = vld [vmem:[%s8618_s14 + $0x1a4] sm:$0xff]   ;;  %v277_v11 = vld [vmem:[%s8618_s14 + $0x1a0] sm:$0xf] }
  0xa9   : > { %v1184_v37 = vrot.slane %v1182_v30, 5  ;;  %v1188_v38 = vrot.slane %v1186_v31, 4  ;;  %v1200_v39 = vshll.u32 %v274_v10, 16  ;;  %v6706_v40 = vcombine.low %v1151_v25, %v1161_v36  ;;  %v278_v12 = vld [vmem:[%s8618_s14 + $0x1a4] sm:$0xf] }
  0xaa   : > { %7655 = vmatprep.mubr.bf16.mxu1 %v6705_v18  ;;  %v1170_v42 = vrot.slane %v1169_v32, 4  ;;  %v1179_v43 = vor.u32 %v1178_v33, %v1174_v20  ;;  %v1194_v44 = vrot.slane %v1192_v34, 5  ;;  %v1199_v46 = vrot.slane %v1197_v35, 4  ;;  %v280_v32 = vld [vmem:[%s8618_s14 + $0x1b0] sm:$0xf] }
  0xab   : > { %v1189_v45 = vor.u32 %v1188_v38, %v1184_v37  ;;  %v1202_v47 = vrot.slane %v1200_v39, 5  ;;  %v1206_v48 = vshll.u32 %v275_v23, 16  ;;  %v1210_v54 = vshrl.u32 %v275_v23, 16  ;;  %v281_v38 = vld [vmem:[%s8618_s14 + $0x1b4] sm:$0xf] }
  0xac   : > { %v1175_v51 = vsel %vm8651_vm2, %v1170_v42, %v1174_v20  ;;  %v1180_v52 = vrot.slane %v1179_v43, 4  ;;  %v1216_v55 = vshll.u32 %v276_v50, 16  ;;  %v1220_v59 = vshrl.u32 %v276_v50, 16  ;;  %v337_v42 = vld [vmem:[%s8618_s14 + $0x1ac] sm:$0x1] }
  0xad   : > { %v1190_v56 = vrot.slane %v1189_v45, 4  ;;  %v1203_v57 = vor.u32 %v1202_v47, %v1199_v46  ;;  %v1208_v58 = vrot.slane %v1206_v48, 5  ;;  %v1212_v61 = vrot.slane %v1210_v54, 4  ;;  %v282_v54 = vld [vmem:[%s8618_s14 + $0x1b8] sm:$0xf] }
  0xae   : > { %7656 = vmatmul.mubr.bf16.gmra.mrb[68].mxu1 %v6706_v40  ;;  %v1185_v60 = vsel %vm8651_vm2, %v1180_v52, %v1184_v37  ;;  %v1218_v62 = vrot.slane %v1216_v55, 5  ;;  %v1226_v63 = vshll.u32 %v336_v53, 16  ;;  %v1222_v10 = vrot.slane %v1220_v59, 4  ;;  %v8387_v37 = vld [vmem:[%s8618_s14 + $0x1b0] sm:$0xff]   ;;  %v338_v59 = vld [vmem:[%s8618_s14 + $0x1bc] sm:$0x1] }
  0xaf   : > { %7880 = vmatmul.mubr.bf16.gmra.mrb[68].mxu0 %v8381_v1  ;;  %v6707_v1 = vcombine.low %v1175_v51, %v1185_v60  ;;  %v1195_v2 = vsel %vm8651_vm2, %v1190_v56, %v1194_v44  ;;  %v1204_v9 = vrot.slane %v1203_v57, 4  ;;  %v1213_v13 = vor.u32 %v1212_v61, %v1208_v58 }
  0xb0   : > { %7883 = vmatprep.mubr.bf16.mxu0 %v8382_v22  ;;  %v1228_v16 = vrot.slane %v1226_v63, 5  ;;  %v1231_v18 = vshrl.u32 %v277_v11, 16  ;;  %v1234_v19 = vshll.u32 %v277_v11, 16  ;;  %v1223_v21 = vor.u32 %v1222_v10, %v1218_v62  ;;  %v283_v10 = vld [vmem:[%s8618_s14 + $0x1c0] sm:$0xf] }
  0xb1   : > { %7659 = vmatprep.mubr.bf16.mxu1 %v6707_v1  ;;  %v1209_v20 = vsel %vm8651_vm2, %v1204_v9, %v1208_v58  ;;  %v1240_v22 = vshll.u32 %v278_v12, 16  ;;  %v1244_v23 = vshrl.u32 %v278_v12, 16  ;;  %v1214_v29 = vrot.slane %v1213_v13, 4 }
  0xb2   : > { %v6708_v25 = vcombine.low %v1195_v2, %v1209_v20  ;;  %v1233_v30 = vrot.slane %v1231_v18, 4  ;;  %v1236_v31 = vrot.slane %v1234_v19, 5  ;;  %v1224_v33 = vrot.slane %v1223_v21, 4  ;;  %v8389_v21 = vld [vmem:[%s8618_s14 + $0x1c4] sm:$0xff]  }
  0xb3   : > { %v1242_v34 = vrot.slane %v1240_v22, 5  ;;  %v1246_v35 = vrot.slane %v1244_v23, 4  ;;  %v1250_v36 = vshll.u32 %v279_v17, 16  ;;  %v1219_v39 = vsel %vm8651_vm2, %v1214_v29, %v1218_v62  ;;  %v285_v22 = vld [vmem:[%s8618_s14 + $0x1c8] sm:$0xf] }
  0xb4   : > { %v1237_v40 = vor.u32 %v1236_v31, %v1233_v30  ;;  %v1254_v43 = vshrl.u32 %v279_v17, 16  ;;  %v1265_v44 = vshrl.u32 %v280_v32, 16  ;;  %v1229_v45 = vsel %vm8651_vm2, %v1224_v33, %v1228_v16  ;;  %v284_v17 = vld [vmem:[%s8618_s14 + $0x1c4] sm:$0xf] }
  0xb5   : > { %v1247_v46 = vor.u32 %v1246_v35, %v1242_v34  ;;  %v1252_v47 = vrot.slane %v1250_v36, 5  ;;  %v1260_v48 = vshll.u32 %v337_v42, 16  ;;  %v6709_v50 = vcombine.low %v1219_v39, %v1229_v45  ;;  %v8390_v36 = vld [vmem:[%s8618_s14 + $0x1d0] sm:$0xff]  }
  0xb6   : > { %7660 = vmatmul.mubr.bf16.gmra.mrb[72].mxu1 %v6708_v25  ;;  %v1238_v51 = vrot.slane %v1237_v40, 4  ;;  %v1256_v52 = vrot.slane %v1254_v43, 4  ;;  %v1267_v53 = vrot.slane %v1265_v44, 4  ;;  %v1268_v57 = vshll.u32 %v280_v32, 16  ;;  %v287_v43 = vld [vmem:[%s8618_s14 + $0x1d4] sm:$0xf] }
  0xb7   : > { %7884 = vmatmul.mubr.bf16.gmra.mrb[72].mxu0 %v8384_v49  ;;  %v8388_v49 = vld [vmem:[%s8618_s14 + $0x1b8] ss:$8 sps:$4 sm:$0xff]   ;;  %v1248_v55 = vrot.slane %v1247_v46, 4  ;;  %v1262_v56 = vrot.slane %v1260_v48, 5  ;;  %v1274_v58 = vshll.u32 %v281_v38, 16  ;;  %7663 = vmatprep.mubr.bf16.mxu1 %v6709_v50  ;;  %v1278_v62 = vshrl.u32 %v281_v38, 16 }
  0xb8   : > { %7887 = vmatprep.mubr.bf16.mxu0 %v8386_v0  ;;  %v1243_v60 = vsel %vm8651_vm2, %v1238_v51, %v1242_v34  ;;  %v1257_v61 = vor.u32 %v1256_v52, %v1252_v47  ;;  %v1284_v63 = vshll.u32 %v282_v54, 16  ;;  %v1270_v1 = vrot.slane %v1268_v57, 5 }
  0xb9   : > { %v1253_v0 = vsel %vm8651_vm2, %v1248_v55, %v1252_v47  ;;  %v1276_v2 = vrot.slane %v1274_v58, 5  ;;  %v1288_v9 = vshrl.u32 %v282_v54, 16  ;;  %v1280_v13 = vrot.slane %v1278_v62, 4  ;;  %v339_v47 = vld [vmem:[%s8618_s14 + $0x1cc] sm:$0x1] }
  0xba   : > { %v6710_v11 = vcombine.low %v1243_v60, %v1253_v0  ;;  %v1258_v12 = vrot.slane %v1257_v61, 4  ;;  %v1286_v16 = vrot.slane %v1284_v63, 5  ;;  %v1271_v18 = vor.u32 %v1270_v1, %v1267_v53  ;;  %v8392_v1 = vld [vmem:[%s8618_s14 + $0x1d8] ss:$8 sps:$4 sm:$0xff]  }
  0xbb   : > { %v1290_v19 = vrot.slane %v1288_v9, 4  ;;  %v1294_v20 = vshll.u32 %v338_v59, 16  ;;  %v1299_v23 = vshrl.u32 %v283_v10, 16  ;;  %v1281_v29 = vor.u32 %v1280_v13, %v1276_v2  ;;  %v9063_v13 = vld [vmem:[%s8618_s14 + $0x30] sm:$0xf] }
  0xbc   : > { %v1263_v25 = vsel %vm8651_vm2, %v1258_v12, %v1262_v56  ;;  %v1302_v30 = vshll.u32 %v283_v10, 16  ;;  %v1308_v31 = vshll.u32 %v284_v17, 16  ;;  %v1272_v32 = vrot.slane %v1271_v18, 4  ;;  %v9060_v12 = vld [vmem:[%s8618_s14 + $0x28] sm:$0xf] }
  0xbd   : > { %v1291_v33 = vor.u32 %v1290_v19, %v1286_v16  ;;  %v1296_v34 = vrot.slane %v1294_v20, 5  ;;  %v1301_v35 = vrot.slane %v1299_v23, 4  ;;  %v1282_v38 = vrot.slane %v1281_v29, 4  ;;  %v340_v20 = vld [vmem:[%s8618_s14 + $0x1dc] sm:$0x1] }
  0xbe   : > { %7664 = vmatmul.mubr.bf16.gmra.mrb[76].mxu1 %v6710_v11  ;;  %v1304_v39 = vrot.slane %v1302_v30, 5  ;;  %v1310_v40 = vrot.slane %v1308_v31, 5  ;;  %v1312_v42 = vshrl.u32 %v284_v17, 16  ;;  %v1277_v44 = vsel %vm8651_vm2, %v1272_v32, %v1276_v2  ;;  %v288_v11 = vld [vmem:[%s8618_s14 + $0x1d8] sm:$0xf]  ;;  %v8394_v30 = vld [vmem:[%s8618_s14 + $0x1e4] sm:$0xff]  }
  0xbf   : > { %7888 = vmatmul.mubr.bf16.gmra.mrb[76].mxu0 %v8387_v37  ;;  %v286_v37 = vld [vmem:[%s8618_s14 + $0x1d0] sm:$0xf]  ;;  %v1292_v45 = vrot.slane %v1291_v33, 4  ;;  %v1318_v46 = vshll.u32 %v285_v22, 16  ;;  %v1322_v48 = vshrl.u32 %v285_v22, 16  ;;  %v1287_v50 = vsel %vm8651_vm2, %v1282_v38, %v1286_v16 }
  0xc0   : > { %7891 = vmatprep.mubr.bf16.mxu0 %v8388_v49  ;;  %v6711_v49 = vcombine.low %v1263_v25, %v1277_v44  ;;  %v1305_v51 = vor.u32 %v1304_v39, %v1301_v35  ;;  %v1314_v52 = vrot.slane %v1312_v42, 4  ;;  %v1328_v56 = vshll.u32 %v339_v47, 16  ;;  %v289_v35 = vld [vmem:[%s8618_s14 + $0x1e0] sm:$0xf]  ;;  %v290_v39 = vld [vmem:[%s8618_s14 + $0x1e4] sm:$0xf] }
  0xc1   : > { %v1297_v53 = vsel %vm8651_vm2, %v1292_v45, %v1296_v34  ;;  %v1320_v54 = vrot.slane %v1318_v46, 5  ;;  %v1324_v55 = vrot.slane %v1322_v48, 4  ;;  %v1333_v60 = vshrl.u32 %v286_v37, 16  ;;  %v291_v44 = vld [vmem:[%s8618_s14 + $0x1e8] sm:$0xf] }
  0xc2   : > { %7667 = vmatprep.mubr.bf16.mxu1 %v6711_v49  ;;  %v6712_v57 = vcombine.low %v1287_v50, %v1297_v53  ;;  %v1306_v58 = vrot.slane %v1305_v51, 4  ;;  %v1315_v59 = vor.u32 %v1314_v52, %v1310_v40  ;;  %v1330_v62 = vrot.slane %v1328_v56, 5 }
  0xc3   : > { %v1325_v61 = vor.u32 %v1324_v55, %v1320_v54  ;;  %v1336_v63 = vshll.u32 %v286_v37, 16  ;;  %v1342_v0 = vshll.u32 %v287_v43, 16  ;;  %v1335_v10 = vrot.slane %v1333_v60, 4  ;;  %v292_v60 = vld [vmem:[%s8618_s14 + $0x1f0] sm:$0xf] }
  0xc4   : > { %v1311_v2 = vsel %vm8651_vm2, %v1306_v58, %v1310_v40  ;;  %v1316_v9 = vrot.slane %v1315_v59, 4  ;;  %v6731_v16 = vcombine.low %v9060_v12, %v9063_v13  ;;  %v1352_v23 = vshll.u32 %v288_v11, 16  ;;  %v8395_v59 = vld [vmem:[%s8618_s14 + $0x1f0] sm:$0xff]  }
  0xc5   : > { %v1326_v17 = vrot.slane %v1325_v61, 4  ;;  %v1338_v18 = vrot.slane %v1336_v63, 5  ;;  %v1344_v19 = vrot.slane %v1342_v0, 5  ;;  %v1356_v25 = vshrl.u32 %v288_v11, 16  ;;  %v293_v63 = vld [vmem:[%s8618_s14 + $0x1f4] sm:$0xf] }
  0xc6   : > { %7668 = vmatmul.mubr.bf16.gmra.mrb[80].mxu1 %v6712_v57  ;;  %v1321_v22 = vsel %vm8651_vm2, %v1316_v9, %v1320_v54  ;;  %v1362_v29 = vshll.u32 %v340_v20, 16  ;;  %v1367_v40 = vshrl.u32 %v289_v35, 16  ;;  %v1370_v45 = vshll.u32 %v289_v35, 16  ;;  %v341_v0 = vld [vmem:[%s8618_s14 + $0x1ec] sm:$0x1] }
  0xc7   : > { %7892 = vmatmul.mubr.bf16.gmra.mrb[80].mxu0 %v8389_v21  ;;  %v1346_v21 = vshrl.u32 %v287_v43, 16  ;;  %v6713_v31 = vcombine.low %v1311_v2, %v1321_v22  ;;  %v1331_v32 = vsel %vm8651_vm2, %v1326_v17, %v1330_v62  ;;  %v1339_v33 = vor.u32 %v1338_v18, %v1335_v10  ;;  %v8396_v22 = vld [vmem:[%s8618_s14 + $0x1f8] ss:$8 sps:$4 sm:$0xff]  }
  0xc8   : > { %7895 = vmatprep.mubr.bf16.mxu0 %v8390_v36  ;;  %v1354_v36 = vrot.slane %v1352_v23, 5  ;;  %v1358_v37 = vrot.slane %v1356_v25, 4  ;;  %v1364_v38 = vrot.slane %v1362_v29, 5  ;;  %v1376_v46 = vshll.u32 %v290_v39, 16 }
  0xc9   : > { %v1348_v34 = vrot.slane %v1346_v21, 4  ;;  %7671 = vmatprep.mubr.bf16.mxu1 %v6713_v31  ;;  %v1340_v42 = vrot.slane %v1339_v33, 4  ;;  %v1369_v48 = vrot.slane %v1367_v40, 4  ;;  %v1380_v49 = vshrl.u32 %v290_v39, 16  ;;  %v294_v31 = vld [vmem:[%s8618_s14 + $0x1f8] sm:$0xf] }
  0xca   : > { %v1359_v47 = vor.u32 %v1358_v37, %v1354_v36  ;;  %v1386_v50 = vshll.u32 %v291_v44, 16  ;;  %v1372_v53 = vrot.slane %v1370_v45, 5  ;;  %v1378_v54 = vrot.slane %v1376_v46, 5 }
  0xcb   : > { %v1349_v43 = vor.u32 %v1348_v34, %v1344_v19  ;;  %v1345_v51 = vsel %vm8651_vm2, %v1340_v42, %v1344_v19  ;;  %v1382_v57 = vrot.slane %v1380_v49, 4  ;;  %v1401_v2 = vshrl.u32 %v292_v60, 16  ;;  %v342_v34 = vld [vmem:[%s8618_s14 + $0x1fc] sm:$0x1]  ;;  %v6951_v42 = vld [vmem:[%s8618_s14 + $0x10] sm:$0xf] }
  0xcc   : > { %v6714_v55 = vcombine.low %v1331_v32, %v1345_v51  ;;  %v1360_v56 = vrot.slane %v1359_v47, 4  ;;  %v1388_v58 = vrot.slane %v1386_v50, 5  ;;  %v1373_v62 = vor.u32 %v1372_v53, %v1369_v48  ;;  %v6952_v47 = vld [vmem:[%s8618_s14 + $0x14] sm:$0xf] }
  0xcd   : > { %v1350_v52 = vrot.slane %v1349_v43, 4  ;;  %v1383_v10 = vor.u32 %v1382_v57, %v1378_v54  ;;  %v1396_v11 = vshll.u32 %v341_v0, 16  ;;  %v1404_v17 = vshll.u32 %v292_v60, 16 }
  0xce   : > { %7672 = vmatmul.mubr.bf16.gmra.mrb[84].mxu1 %v6714_v55  ;;  %v1365_v9 = vsel %vm8651_vm2, %v1360_v56, %v1364_v38  ;;  %v1374_v19 = vrot.slane %v1373_v62, 4  ;;  %v1403_v21 = vrot.slane %v1401_v2, 4  ;;  %v1414_v35 = vshrl.u32 %v293_v63, 16  ;;  %v6953_v55 = vld [vmem:[%s8618_s14 + $0x18] sm:$0xf] }
  0xcf   : > { %7896 = vmatmul.mubr.bf16.gmra.mrb[84].mxu0 %v8392_v1  ;;  %v1355_v61 = vsel %vm8651_vm2, %v1350_v52, %v1354_v36  ;;  %v1390_v1 = vshrl.u32 %v291_v44, 16  ;;  %v1384_v23 = vrot.slane %v1383_v10, 4  ;;  %v1398_v25 = vrot.slane %v1396_v11, 5  ;;  %v6954_v62 = vld [vmem:[%s8618_s14 + $0x1c] sm:$0x1] }
  0xd0   : > { %7899 = vmatprep.mubr.bf16.mxu0 %v8394_v30  ;;  %v6715_v18 = vcombine.low %v1355_v61, %v1365_v9  ;;  %v1406_v29 = vrot.slane %v1404_v17, 5  ;;  %v1410_v30 = vshll.u32 %v293_v63, 16  ;;  %v1379_v32 = vsel %vm8651_vm2, %v1374_v19, %v1378_v54  ;;  %v8397_v54 = vld [vmem:[%s8618_s14 + $0x204] sm:$0xff]   ;;  %v6955_v63 = vld [vmem:[%s8618_s14 + $0x20] sm:$0xf] }
  0xd1   : > { %v1392_v20 = vrot.slane %v1390_v1, 4  ;;  %v1420_v36 = vshll.u32 %v294_v31, 16  ;;  %v1389_v37 = vsel %vm8651_vm2, %v1384_v23, %v1388_v58  ;;  %v1424_v40 = vshrl.u32 %v294_v31, 16 }
  0xd2   : > { %7675 = vmatprep.mubr.bf16.mxu1 %v6715_v18  ;;  %v1407_v38 = vor.u32 %v1406_v29, %v1403_v21  ;;  %v1412_v39 = vrot.slane %v1410_v30, 5  ;;  %v6716_v43 = vcombine.low %v1379_v32, %v1389_v37  ;;  %v1416_v45 = vrot.slane %v1414_v35, 4  ;;  %v6956_v21 = vld [vmem:[%s8618_s14 + $0x24] sm:$0xf]  ;;  %v6957_v32 = vld [vmem:[%s8618_s14 + $0x28] sm:$0xf] }
  0xd3   : > { %v1393_v33 = vor.u32 %v1392_v20, %v1388_v58  ;;  %v1422_v46 = vrot.slane %v1420_v36, 5  ;;  %v1426_v49 = vrot.slane %v1424_v40, 4  ;;  %v1430_v50 = vshll.u32 %v342_v34, 16 }
  0xd4   : > { %v1408_v48 = vrot.slane %v1407_v38, 4  ;;  %v3953_v51 = vshrl.u32 %v6951_v42, 16  ;;  %v1417_v53 = vor.u32 %v1416_v45, %v1412_v39  ;;  %v3956_v56 = vshll.u32 %v6951_v42, 16  ;;  %v6958_v42 = vld [vmem:[%s8618_s14 + $0x2c] sm:$0x1] }
  0xd5   : > { %v1394_v44 = vrot.slane %v1393_v33, 4  ;;  %v3962_v57 = vshll.u32 %v6952_v47, 16  ;;  %v1432_v60 = vrot.slane %v1430_v50, 5  ;;  %v3966_v11 = vshrl.u32 %v6952_v47, 16  ;;  %v6959_v47 = vld [vmem:[%s8618_s14 + $0x30] sm:$0xf] }
  0xd6   : > { %7676 = vmatmul.mubr.bf16.gmra.mrb[88].mxu1 %v6716_v43  ;;  %v1413_v58 = vsel %vm8651_vm2, %v1408_v48, %v1412_v39  ;;  %v3955_v61 = vrot.slane %v3953_v51, 4  ;;  %v1418_v1 = vrot.slane %v1417_v53, 4  ;;  %v3958_v2 = vrot.slane %v3956_v56, 5  ;;  %v6960_v56 = vld [vmem:[%s8618_s14 + $0x34] sm:$0xf] }
  0xd7   : > { %7900 = vmatmul.mubr.bf16.gmra.mrb[88].mxu0 %v8395_v59  ;;  %v1399_v52 = vsel %vm8651_vm2, %v1394_v44, %v1398_v25  ;;  %v1427_v59 = vor.u32 %v1426_v49, %v1422_v46  ;;  %v3964_v9 = vrot.slane %v3962_v57, 5  ;;  %v3972_v17 = vshll.u32 %v6953_v55, 16 }
  0xd8   : > { %7903 = vmatprep.mubr.bf16.mxu0 %v8396_v22  ;;  %v6717_v0 = vcombine.low %v1399_v52, %v1413_v58  ;;  %v3976_v18 = vshrl.u32 %v6953_v55, 16  ;;  %v1423_v19 = vsel %vm8651_vm2, %v1418_v1, %v1422_v46  ;;  %v3959_v20 = vor.u32 %v3958_v2, %v3955_v61 }
  0xd9   : > { %v1428_v10 = vrot.slane %v1427_v59, 4  ;;  %v3982_v22 = vshll.u32 %v6954_v62, 16  ;;  %v3987_v23 = vshrl.u32 %v6955_v63, 16  ;;  %v3968_v29 = vrot.slane %v3966_v11, 4 }
  0xda   : > { %7679 = vmatprep.mubr.bf16.mxu1 %v6717_v0  ;;  %v3974_v30 = vrot.slane %v3972_v17, 5  ;;  %v3978_v31 = vrot.slane %v3976_v18, 4  ;;  %v3960_v34 = vrot.slane %v3959_v20, 4  ;;  %v3990_v39 = vshll.u32 %v6955_v63, 16  ;;  %v6962_v18 = vld [vmem:[%s8618_s14 + $0x3c] sm:$0x1] }
  0xdb   : > { %v1433_v25 = vsel %vm8651_vm2, %v1428_v10, %v1432_v60  ;;  %v3984_v35 = vrot.slane %v3982_v22, 5  ;;  %v3989_v36 = vrot.slane %v3987_v23, 4  ;;  %v3969_v37 = vor.u32 %v3968_v29, %v3964_v9  ;;  %v6961_v60 = vld [vmem:[%s8618_s14 + $0x38] sm:$0xf]  ;;  %v6963_v23 = vld [vmem:[%s8618_s14 + $0x40] sm:$0xf] }
  0xdc   : > { %v6718_v33 = vcombine.low %v1423_v19, %v1433_v25  ;;  %v3979_v38 = vor.u32 %v3978_v31, %v3974_v30  ;;  %v3996_v40 = vshll.u32 %v6956_v21, 16  ;;  %v3965_v43 = vsel %vm8651_vm2, %v3960_v34, %v3964_v9 }
  0xdd   : > { %v4000_v44 = vshrl.u32 %v6956_v21, 16  ;;  %v4006_v45 = vshll.u32 %v6957_v32, 16  ;;  %v4010_v46 = vshrl.u32 %v6957_v32, 16  ;;  %v3970_v48 = vrot.slane %v3969_v37, 4  ;;  %v6964_v32 = vld [vmem:[%s8618_s14 + $0x44] sm:$0xf] }
  0xde   : > { %7680 = vmatmul.mubr.bf16.gmra.mrb[92].mxu1 %v6718_v33  ;;  %v3980_v49 = vrot.slane %v3979_v38, 4  ;;  %v3992_v50 = vrot.slane %v3990_v39, 5  ;;  %v3998_v51 = vrot.slane %v3996_v40, 5  ;;  %v4016_v55 = vshll.u32 %v6958_v42, 16 }
  0xdf   : > { %7904 = vmatmul.mubr.bf16.gmra.mrb[92].mxu0 %v8397_v54  ;;  %7699 = vmatprep.mubr.bf16.mxu1 %v6727_v5  ;;  %v4002_v52 = vrot.slane %v4000_v44, 4  ;;  %v4008_v53 = vrot.slane %v4006_v45, 5  ;;  %v4012_v54 = vrot.slane %v4010_v46, 4  ;;  %v3975_v57 = vsel %vm8651_vm2, %v3970_v48, %v3974_v30 }
  0xe0   : > { %v3985_v58 = vsel %vm8651_vm2, %v3980_v49, %v3984_v35  ;;  %v3993_v59 = vor.u32 %v3992_v50, %v3989_v36  ;;  %v4021_v61 = vshrl.u32 %v6959_v47, 16  ;;  %v7095_v62 = vcombine.low %v3965_v43, %v3975_v57  ;;  %v6965_v43 = vld [vmem:[%s8618_s14 + $0x48] sm:$0xf]  ;;  %v8453_v49 = vld [vmem:[%s8618_s14 + $0x34] sm:$0xf] }
  0xe1   : > { %v4003_v63 = vor.u32 %v4002_v52, %v3998_v51  ;;  %v4013_v0 = vor.u32 %v4012_v54, %v4008_v53  ;;  %v4018_v3 = vrot.slane %v4016_v55, 5  ;;  %v4024_v1 = vshll.u32 %v6959_v47, 16  ;;  %v8454_v50 = vld [vmem:[%s8618_s14 + $0x38] sm:$0xf] }
  0xe2   : > { %v3994_v4 = vrot.slane %v3993_v59, 4  ;;  %v4023_v5 = vrot.slane %v4021_v61, 4  ;;  %v4030_v2 = vshll.u32 %v6960_v56, 16  ;;  %7923 = vmatprep.mubr.bf16.mxu0 %v7095_v62  ;;  %v4034_v11 = vshrl.u32 %v6960_v56, 16  ;;  %v6967_v56 = vld [vmem:[%s8618_s14 + $0x50] sm:$0xf] }
  0xe3   : > { %v4004_v9 = vrot.slane %v4003_v63, 4  ;;  %v4014_v10 = vrot.slane %v4013_v0, 4  ;;  %v4040_v17 = vshll.u32 %v6961_v60, 16  ;;  %v4026_v20 = vrot.slane %v4024_v1, 5  ;;  %v6968_v61 = vld [vmem:[%s8618_s14 + $0x54] sm:$0xf] }
  0xe4   : > { %v3999_v19 = vsel %vm8651_vm2, %v3994_v4, %v3998_v51  ;;  %v4032_v21 = vrot.slane %v4030_v2, 5  ;;  %v4044_v22 = vshrl.u32 %v6961_v60, 16  ;;  %v4036_v31 = vrot.slane %v4034_v11, 4  ;;  %v8456_v4 = vld [vmem:[%s8618_s14 + $0x44] sm:$0xf] }
  0xe5   : > { %v7096_v25 = vcombine.low %v3985_v58, %v3999_v19  ;;  %v4009_v29 = vsel %vm8651_vm2, %v4004_v9, %v4008_v53  ;;  %v4019_v30 = vsel %vm8651_vm2, %v4014_v10, %v4018_v3  ;;  %v4027_v34 = vor.u32 %v4026_v20, %v4023_v5  ;;  %v8455_v3 = vld [vmem:[%s8618_s14 + $0x40] sm:$0xf]  ;;  %v6969_v9 = vld [vmem:[%s8618_s14 + $0x58] sm:$0xf] }
  0xe6   : > { %7700 = vmatmul.mubr.bf16.vlgmr.msra.gmra.mrb[0].mxu1 %v6728_v24  ;;  %v7097_v33 = vcombine.low %v4009_v29, %v4019_v30  ;;  %v4042_v35 = vrot.slane %v4040_v17, 5  ;;  %v4046_v36 = vrot.slane %v4044_v22, 4  ;;  %v4037_v37 = vor.u32 %v4036_v31, %v4032_v21  ;;  %v6970_v22 = vld [vmem:[%s8618_s14 + $0x5c] sm:$0x1] }
  0xe7   : > { %7924 = vmatmul.mubr.bf16.vlgmr.msra.gmra.mrb[0].mxu0 %v7096_v25  ;;  %7703 = vmatprep.mubr.bf16.mxu1 %v6729_v8  ;;  %v4050_v38 = vshll.u32 %v6962_v18, 16  ;;  %v4055_v39 = vshrl.u32 %v6963_v23, 16  ;;  %v4058_v40 = vshll.u32 %v6963_v23, 16  ;;  %v4028_v14 = vrot.slane %v4027_v34, 4  ;;  %v6971_v23 = vld [vmem:[%s8618_s14 + $0x60] sm:$0xf] }
  0xe8   : > { %7927 = vmatprep.mubr.bf16.mxu0 %v7097_v33  ;;  %v4047_v15 = vor.u32 %v4046_v36, %v4042_v35  ;;  %v4064_v24 = vshll.u32 %v6964_v32, 16  ;;  %v4068_v42 = vshrl.u32 %v6964_v32, 16  ;;  %v4038_v44 = vrot.slane %v4037_v37, 4  ;;  %v8457_v32 = vld [vmem:[%s8618_s14 + $0x48] sm:$0xf] }
  0xe9   : > { %v4052_v45 = vrot.slane %v4050_v38, 5  ;;  %v4057_v46 = vrot.slane %v4055_v39, 4  ;;  %v4060_v47 = vrot.slane %v4058_v40, 5  ;;  %v4033_v7 = vsel %vm8651_vm2, %v4028_v14, %v4032_v21  ;;  %v8458_v33 = vld [vmem:[%s8618_s14 + $0x50] sm:$0xf] }
  0xea   : > { %v4048_v8 = vrot.slane %v4047_v15, 4  ;;  %v4066_v48 = vrot.slane %v4064_v24, 5  ;;  %v6732_v51 = vcombine.low %v8453_v49, %v8454_v50  ;;  %v4043_v52 = vsel %vm8651_vm2, %v4038_v44, %v4042_v35  ;;  %v6972_v37 = vld [vmem:[%s8618_s14 + $0x64] sm:$0xf] }
  0xeb   : > { %v4061_v53 = vor.u32 %v4060_v47, %v4057_v46  ;;  %v4070_v54 = vrot.slane %v4068_v42, 4  ;;  %v4074_v55 = vshll.u32 %v6965_v43, 16  ;;  %v7098_v57 = vcombine.low %v4033_v7, %v4043_v52  ;;  %v6973_v42 = vld [vmem:[%s8618_s14 + $0x68] sm:$0xf]  ;;  %v8459_v52 = vld [vmem:[%s8618_s14 + $0x54] sm:$0xf] }
  0xec   : > { %v4053_v58 = vsel %vm8651_vm2, %v4048_v8, %v4052_v45  ;;  %v4078_v59 = vshrl.u32 %v6965_v43, 16  ;;  %v4084_v60 = vshll.u32 %v6966_v6, 16  ;;  %v6733_v5 = vcombine.low %v8455_v3, %v8456_v4 }
  0xed   : > { %v4062_v62 = vrot.slane %v4061_v53, 4  ;;  %v4071_v63 = vor.u32 %v4070_v54, %v4066_v48  ;;  %v4076_v0 = vrot.slane %v4074_v55, 5  ;;  %v4089_v10 = vshrl.u32 %v6967_v56, 16  ;;  %v8460_v53 = vld [vmem:[%s8618_s14 + $0x58] sm:$0xf] }
  0xee   : > { %7704 = vmatmul.mubr.bf16.gmra.mrb[4].mxu1 %v6730_v28  ;;  %v4080_v1 = vrot.slane %v4078_v59, 4  ;;  %v4086_v2 = vrot.slane %v4084_v60, 5  ;;  %v4092_v11 = vshll.u32 %v6967_v56, 16  ;;  %v4098_v19 = vshll.u32 %v6968_v61, 16  ;;  %v6975_v55 = vld [vmem:[%s8618_s14 + $0x70] sm:$0xf] }
  0xef   : > { %7928 = vmatmul.mubr.bf16.gmra.mrb[4].mxu0 %v7098_v57  ;;  %7707 = vmatprep.mubr.bf16.mxu1 %v6731_v16  ;;  %v4067_v17 = vsel %vm8651_vm2, %v4062_v62, %v4066_v48  ;;  %v4072_v18 = vrot.slane %v4071_v63, 4  ;;  %v4102_v26 = vshrl.u32 %v6968_v61, 16  ;;  %v4091_v20 = vrot.slane %v4089_v10, 4  ;;  %v6974_v48 = vld [vmem:[%s8618_s14 + $0x6c] sm:$0x1] }
  0xf0   : > { %v7099_v27 = vcombine.low %v4053_v58, %v4067_v17  ;;  %v4081_v28 = vor.u32 %v4080_v1, %v4076_v0  ;;  %v4094_v21 = vrot.slane %v4092_v11, 5  ;;  %v4100_v12 = vrot.slane %v4098_v19, 5  ;;  %v8462_v1 = vld [vmem:[%s8618_s14 + $0x64] sm:$0xf] }
  0xf1   : > { %v4077_v25 = vsel %vm8651_vm2, %v4072_v18, %v4076_v0  ;;  %v4104_v13 = vrot.slane %v4102_v26, 4  ;;  %v4108_v16 = vshll.u32 %v6969_v9, 16  ;;  %v4112_v31 = vshrl.u32 %v6969_v9, 16  ;;  %v6976_v0 = vld [vmem:[%s8618_s14 + $0x74] sm:$0xf] }
  0xf2   : > { %7931 = vmatprep.mubr.bf16.mxu0 %v7099_v27  ;;  %v4082_v29 = vrot.slane %v4081_v28, 4  ;;  %v4095_v30 = vor.u32 %v4094_v21, %v4091_v20  ;;  %v6734_v34 = vcombine.low %v8457_v32, %v8458_v33  ;;  %v4118_v38 = vshll.u32 %v6970_v22, 16  ;;  %v6977_v18 = vld [vmem:[%s8618_s14 + $0x78] sm:$0xf] }
  0xf3   : > { %v4105_v35 = vor.u32 %v4104_v13, %v4100_v12  ;;  %v4110_v36 = vrot.slane %v4108_v16, 5  ;;  %v4123_v39 = vshrl.u32 %v6971_v23, 16  ;;  %v4114_v15 = vrot.slane %v4112_v31, 4  ;;  %v6979_v31 = vld [vmem:[%s8618_s14 + $0x80] sm:$0xf] }
  0xf4   : > { %v4087_v40 = vsel %vm8651_vm2, %v4082_v29, %v4086_v2  ;;  %v4096_v14 = vrot.slane %v4095_v30, 4  ;;  %v4126_v24 = vshll.u32 %v6971_v23, 16  ;;  %v4120_v45 = vrot.slane %v4118_v38, 5 }
  0xf5   : > { %v7100_v43 = vcombine.low %v4077_v25, %v4087_v40  ;;  %v4106_v44 = vrot.slane %v4105_v35, 4  ;;  %v4125_v46 = vrot.slane %v4123_v39, 4  ;;  %v4115_v6 = vor.u32 %v4114_v15, %v4110_v36 }
  0xf6   : > { %7708 = vmatmul.mubr.bf16.gmra.mrb[8].mxu1 %v6732_v51  ;;  %v4101_v47 = vsel %vm8651_vm2, %v4096_v14, %v4100_v12  ;;  %v4128_v7 = vrot.slane %v4126_v24, 5  ;;  %v4132_v8 = vshll.u32 %v6972_v37, 16  ;;  %v4136_v50 = vshrl.u32 %v6972_v37, 16  ;;  %v6978_v12 = vld [vmem:[%s8618_s14 + $0x7c] sm:$0x1] }
  0xf7   : > { %7932 = vmatmul.mubr.bf16.gmra.mrb[8].mxu0 %v7100_v43  ;;  %7711 = vmatprep.mubr.bf16.mxu1 %v6733_v5  ;;  %v4111_v49 = vsel %vm8651_vm2, %v4106_v44, %v4110_v36  ;;  %v6735_v54 = vcombine.low %v8459_v52, %v8460_v53  ;;  %v4142_v51 = vshll.u32 %v6973_v42, 16  ;;  %v4116_v57 = vrot.slane %v4115_v6, 4  ;;  %v9182_v5 = vld [vmem:[%s8618_s14 + $0x60] sm:$0xf]  ;;  %v8463_v36 = vld [vmem:[%s8618_s14 + $0x68] sm:$0xf] }
  0xf8   : > { %v7101_v56 = vcombine.low %v4101_v47, %v4111_v49  ;;  %v4129_v58 = vor.u32 %v4128_v7, %v4125_v46  ;;  %v4134_v59 = vrot.slane %v4132_v8, 5  ;;  %v4138_v60 = vrot.slane %v4136_v50, 4  ;;  %v8464_v37 = vld [vmem:[%s8618_s14 + $0x70] sm:$0xf]  ;;  %v6981_v7 = vld [vmem:[%s8618_s14 + $0x88] sm:$0xf] }
  0xf9   : > { %v4144_v61 = vrot.slane %v4142_v51, 5  ;;  %v4146_v62 = vshrl.u32 %v6973_v42, 16  ;;  %v4152_v63 = vshll.u32 %v6974_v48, 16  ;;  %v4121_v3 = vsel %vm8651_vm2, %v4116_v57, %v4120_v45  ;;  %v6982_v52 = vld [vmem:[%s8618_s14 + $0x8c] sm:$0x1] }
  0xfa   : > { %7935 = vmatprep.mubr.bf16.mxu0 %v7101_v56  ;;  %v4130_v4 = vrot.slane %v4129_v58, 4  ;;  %v6736_v2 = vcombine.low %v9182_v5, %v8462_v1  ;;  %v4157_v9 = vshrl.u32 %v6975_v55, 16  ;;  %v4139_v10 = vor.u32 %v4138_v60, %v4134_v59  ;;  %v8466_v56 = vld [vmem:[%s8618_s14 + $0x78] sm:$0xf]  ;;  %v6983_v58 = vld [vmem:[%s8618_s14 + $0x90] sm:$0xf] }
  0xfb   : > { %v4148_v11 = vrot.slane %v4146_v62, 4  ;;  %v4154_v17 = vrot.slane %v4152_v63, 5  ;;  %v4160_v19 = vshll.u32 %v6975_v55, 16  ;;  %v4166_v28 = vshll.u32 %v6976_v0, 16  ;;  %v8465_v55 = vld [vmem:[%s8618_s14 + $0x74] sm:$0xf] }
  0xfc   : > { %v4135_v26 = vsel %vm8651_vm2, %v4130_v4, %v4134_v59  ;;  %v4159_v27 = vrot.slane %v4157_v9, 4  ;;  %v4170_v20 = vshrl.u32 %v6976_v0, 16  ;;  %v4140_v22 = vrot.slane %v4139_v10, 4  ;;  %v6984_v5 = vld [vmem:[%s8618_s14 + $0x94] sm:$0xf] }
  0xfd   : > { %v7102_v21 = vcombine.low %v4121_v3, %v4135_v26  ;;  %v4149_v23 = vor.u32 %v4148_v11, %v4144_v61  ;;  %v4162_v25 = vrot.slane %v4160_v19, 5  ;;  %v4168_v13 = vrot.slane %v4166_v28, 5  ;;  %v8467_v10 = vld [vmem:[%s8618_s14 + $0x80] sm:$0xf]  ;;  %v8468_v11 = vld [vmem:[%s8618_s14 + $0x84] sm:$0xf] }
  0xfe   : > { %7712 = vmatmul.mubr.bf16.gmra.mrb[12].mxu1 %v6734_v34  ;;  %v4172_v16 = vrot.slane %v4170_v20, 4  ;;  %v4176_v29 = vshll.u32 %v6977_v18, 16  ;;  %v4180_v30 = vshrl.u32 %v6977_v18, 16  ;;  %v4145_v32 = vsel %vm8651_vm2, %v4140_v22, %v4144_v61  ;;  %v6980_v34 = vld [vmem:[%s8618_s14 + $0x84] sm:$0xf] }
  0xff   : > { %7936 = vmatmul.mubr.bf16.gmra.mrb[12].mxu0 %v7102_v21  ;;  %7715 = vmatprep.mubr.bf16.mxu1 %v6735_v54  ;;  %v4150_v33 = vrot.slane %v4149_v23, 4  ;;  %v4163_v35 = vor.u32 %v4162_v25, %v4159_v27  ;;  %v6737_v38 = vcombine.low %v8463_v36, %v8464_v37  ;;  %v4186_v15 = vshll.u32 %v6978_v12, 16  ;;  %v6985_v27 = vld [vmem:[%s8618_s14 + $0x98] sm:$0xf] }
 0x100   : > { %v4173_v39 = vor.u32 %v4172_v16, %v4168_v13  ;;  %v4178_v40 = vrot.slane %v4176_v29, 5  ;;  %v4182_v14 = vrot.slane %v4180_v30, 4  ;;  %v4191_v43 = vshrl.u32 %v6979_v31, 16  ;;  %v6986_v29 = vld [vmem:[%s8618_s14 + $0x9c] sm:$0x1] }
 0x101   : > { %v4155_v24 = vsel %vm8651_vm2, %v4150_v33, %v4154_v17  ;;  %v4164_v42 = vrot.slane %v4163_v35, 4  ;;  %v4194_v44 = vshll.u32 %v6979_v31, 16  ;;  %v4188_v6 = vrot.slane %v4186_v15, 5  ;;  %v6987_v35 = vld [vmem:[%s8618_s14 + $0xa0] sm:$0xf] }
 0x102   : > { %v7103_v45 = vcombine.low %v4145_v32, %v4155_v24  ;;  %v4174_v46 = vrot.slane %v4173_v39, 4  ;;  %v4183_v47 = vor.u32 %v4182_v14, %v4178_v40  ;;  %v4193_v48 = vrot.slane %v4191_v43, 4  ;;  %v8469_v39 = vld [vmem:[%s8618_s14 + $0x88] sm:$0xf]  ;;  %v6988_v24 = vld [vmem:[%s8618_s14 + $0xa4] sm:$0xf] }
 0x103   : > { %v4169_v8 = vsel %vm8651_vm2, %v4164_v42, %v4168_v13  ;;  %v4196_v49 = vrot.slane %v4194_v44, 5  ;;  %v4200_v50 = vshll.u32 %v6980_v34, 16  ;;  %v4204_v51 = vshrl.u32 %v6980_v34, 16 }
 0x104   : > { %7939 = vmatprep.mubr.bf16.mxu0 %v7103_v45  ;;  %v4179_v53 = vsel %vm8651_vm2, %v4174_v46, %v4178_v40  ;;  %v4184_v54 = vrot.slane %v4183_v47, 4  ;;  %v6738_v57 = vcombine.low %v8465_v55, %v8466_v56  ;;  %v4210_v62 = vshll.u32 %v6981_v7, 16  ;;  %v8470_v40 = vld [vmem:[%s8618_s14 + $0x90] sm:$0xf] }
 0x105   : > { %v7104_v59 = vcombine.low %v4169_v8, %v4179_v53  ;;  %v4197_v60 = vor.u32 %v4196_v49, %v4193_v48  ;;  %v4202_v61 = vrot.slane %v4200_v50, 5  ;;  %v4206_v0 = vrot.slane %v4204_v51, 4  ;;  %v6989_v49 = vld [vmem:[%s8618_s14 + $0xa8] sm:$0xf]  ;;  %v6990_v51 = vld [vmem:[%s8618_s14 + $0xac] sm:$0x1] }
 0x106   : > { %7716 = vmatmul.mubr.bf16.gmra.mrb[16].mxu1 %v6736_v2  ;;  %v4189_v63 = vsel %vm8651_vm2, %v4184_v54, %v4188_v6  ;;  %v4214_v3 = vshrl.u32 %v6981_v7, 16  ;;  %v4220_v4 = vshll.u32 %v6982_v52, 16  ;;  %v4212_v9 = vrot.slane %v4210_v62, 5 }
 0x107   : > { %7940 = vmatmul.mubr.bf16.gmra.mrb[16].mxu0 %v7104_v59  ;;  %7719 = vmatprep.mubr.bf16.mxu1 %v6737_v38  ;;  %v4198_v1 = vrot.slane %v4197_v60, 4  ;;  %v6739_v17 = vcombine.low %v8467_v10, %v8468_v11  ;;  %v4225_v18 = vshrl.u32 %v6983_v58, 16  ;;  %v4207_v19 = vor.u32 %v4206_v0, %v4202_v61  ;;  %v8472_v59 = vld [vmem:[%s8618_s14 + $0x98] sm:$0xf]  ;;  %v6992_v10 = vld [vmem:[%s8618_s14 + $0xb4] sm:$0xf] }
 0x108   : > { %v4216_v26 = vrot.slane %v4214_v3, 4  ;;  %v4222_v2 = vrot.slane %v4220_v4, 5  ;;  %v4228_v28 = vshll.u32 %v6983_v58, 16  ;;  %v4234_v22 = vshll.u32 %v6984_v5, 16  ;;  %v8471_v58 = vld [vmem:[%s8618_s14 + $0x94] sm:$0xf] }
 0x109   : > { %v4203_v20 = vsel %vm8651_vm2, %v4198_v1, %v4202_v61  ;;  %v4227_v21 = vrot.slane %v4225_v18, 4  ;;  %v4238_v23 = vshrl.u32 %v6984_v5, 16  ;;  %v4208_v12 = vrot.slane %v4207_v19, 4  ;;  %v6991_v61 = vld [vmem:[%s8618_s14 + $0xb0] sm:$0xf] }
 0x10a   : > { %v7105_v25 = vcombine.low %v4189_v63, %v4203_v20  ;;  %v4217_v13 = vor.u32 %v4216_v26, %v4212_v9  ;;  %v4230_v16 = vrot.slane %v4228_v28, 5  ;;  %v4236_v30 = vrot.slane %v4234_v22, 5  ;;  %v8473_v18 = vld [vmem:[%s8618_s14 + $0xa0] sm:$0xf]  ;;  %v8474_v19 = vld [vmem:[%s8618_s14 + $0xa4] sm:$0xf] }
 0x10b   : > { %v4240_v31 = vrot.slane %v4238_v23, 4  ;;  %v4244_v32 = vshll.u32 %v6985_v27, 16  ;;  %v4248_v33 = vshrl.u32 %v6985_v27, 16  ;;  %v4213_v36 = vsel %vm8651_vm2, %v4208_v12, %v4212_v9 }
 0x10c   : > { %7943 = vmatprep.mubr.bf16.mxu0 %v7105_v25  ;;  %v4218_v37 = vrot.slane %v4217_v13, 4  ;;  %v4231_v38 = vor.u32 %v4230_v16, %v4227_v21  ;;  %v6740_v34 = vcombine.low %v8469_v39, %v8470_v40  ;;  %v4254_v43 = vshll.u32 %v6986_v29, 16  ;;  %v6993_v21 = vld [vmem:[%s8618_s14 + $0xb8] sm:$0xf] }
 0x10d   : > { %v4241_v14 = vor.u32 %v4240_v31, %v4236_v30  ;;  %v4246_v15 = vrot.slane %v4244_v32, 5  ;;  %v4250_v42 = vrot.slane %v4248_v33, 4  ;;  %v4259_v46 = vshrl.u32 %v6987_v35, 16  ;;  %v6994_v32 = vld [vmem:[%s8618_s14 + $0xbc] sm:$0x1] }
 0x10e   : > { %7720 = vmatmul.mubr.bf16.gmra.mrb[20].mxu1 %v6738_v57  ;;  %v4223_v44 = vsel %vm8651_vm2, %v4218_v37, %v4222_v2  ;;  %v4232_v45 = vrot.slane %v4231_v38, 4  ;;  %v4262_v47 = vshll.u32 %v6987_v35, 16  ;;  %v4256_v48 = vrot.slane %v4254_v43, 5  ;;  %v6995_v38 = vld [vmem:[%s8618_s14 + $0xc0] sm:$0xf] }
 0x10f   : > { %v7106_v6 = vcombine.low %v4213_v36, %v4223_v44  ;;  %7723 = vmatprep.mubr.bf16.mxu1 %v6739_v17  ;;  %v4242_v7 = vrot.slane %v4241_v14, 4  ;;  %v4251_v8 = vor.u32 %v4250_v42, %v4246_v15  ;;  %v4261_v52 = vrot.slane %v4259_v46, 4  ;;  %v8475_v14 = vld [vmem:[%s8618_s14 + $0xa8] sm:$0xf]  ;;  %v6996_v44 = vld [vmem:[%s8618_s14 + $0xc4] sm:$0xf] }
 0x110   : > { %v4237_v50 = vsel %vm8651_vm2, %v4232_v45, %v4236_v30  ;;  %v4264_v53 = vrot.slane %v4262_v47, 5  ;;  %v4268_v54 = vshll.u32 %v6988_v24, 16  ;;  %v4272_v57 = vshrl.u32 %v6988_v24, 16 }
 0x111   : > { %7944 = vmatmul.mubr.bf16.gmra.mrb[20].mxu0 %v7106_v6  ;;  %v4247_v55 = vsel %vm8651_vm2, %v4242_v7, %v4246_v15  ;;  %v4252_v56 = vrot.slane %v4251_v8, 4  ;;  %v6741_v60 = vcombine.low %v8471_v58, %v8472_v59  ;;  %v4278_v3 = vshll.u32 %v6989_v49, 16  ;;  %v8476_v15 = vld [vmem:[%s8618_s14 + $0xb0] sm:$0xf] }
 0x112   : > { %v7107_v62 = vcombine.low %v4237_v50, %v4247_v55  ;;  %v4265_v63 = vor.u32 %v4264_v53, %v4261_v52  ;;  %v4270_v0 = vrot.slane %v4268_v54, 5  ;;  %v4274_v5 = vrot.slane %v4272_v57, 4  ;;  %v6997_v53 = vld [vmem:[%s8618_s14 + $0xc8] sm:$0xf]  ;;  %v6998_v57 = vld [vmem:[%s8618_s14 + $0xcc] sm:$0x1] }
 0x113   : > { %v4257_v4 = vsel %vm8651_vm2, %v4252_v56, %v4256_v48  ;;  %v4282_v1 = vshrl.u32 %v6989_v49, 16  ;;  %v4288_v9 = vshll.u32 %v6990_v51, 16  ;;  %v4280_v17 = vrot.slane %v4278_v3, 5 }
 0x114   : > { %7947 = vmatprep.mubr.bf16.mxu0 %v7107_v62  ;;  %v4266_v11 = vrot.slane %v4265_v63, 4  ;;  %v6742_v26 = vcombine.low %v8473_v18, %v8474_v19  ;;  %v4293_v2 = vshrl.u32 %v6991_v61, 16  ;;  %v4275_v27 = vor.u32 %v4274_v5, %v4270_v0  ;;  %v8478_v62 = vld [vmem:[%s8618_s14 + $0xb8] sm:$0xf]  ;;  %v7000_v18 = vld [vmem:[%s8618_s14 + $0xd4] sm:$0xf] }
 0x115   : > { %v4284_v28 = vrot.slane %v4282_v1, 4  ;;  %v4290_v20 = vrot.slane %v4288_v9, 5  ;;  %v4296_v22 = vshll.u32 %v6991_v61, 16  ;;  %v4302_v12 = vshll.u32 %v6992_v10, 16  ;;  %v8477_v61 = vld [vmem:[%s8618_s14 + $0xb4] sm:$0xf] }
 0x116   : > { %7724 = vmatmul.mubr.bf16.gmra.mrb[24].mxu1 %v6740_v34  ;;  %v4271_v23 = vsel %vm8651_vm2, %v4266_v11, %v4270_v0  ;;  %v4295_v25 = vrot.slane %v4293_v2, 4  ;;  %v4306_v13 = vshrl.u32 %v6992_v10, 16  ;;  %v4276_v29 = vrot.slane %v4275_v27, 4  ;;  %v6999_v0 = vld [vmem:[%s8618_s14 + $0xd0] sm:$0xf] }
 0x117   : > { %v7108_v16 = vcombine.low %v4257_v4, %v4271_v23  ;;  %7727 = vmatprep.mubr.bf16.mxu1 %v6741_v60  ;;  %v4285_v30 = vor.u32 %v4284_v28, %v4280_v17  ;;  %v4298_v31 = vrot.slane %v4296_v22, 5  ;;  %v4304_v33 = vrot.slane %v4302_v12, 5  ;;  %v8479_v2 = vld [vmem:[%s8618_s14 + $0xc0] sm:$0xf]  ;;  %v8480_v27 = vld [vmem:[%s8618_s14 + $0xc4] sm:$0xf] }
 0x118   : > { %v4308_v35 = vrot.slane %v4306_v13, 4  ;;  %v4312_v36 = vshll.u32 %v6993_v21, 16  ;;  %v4316_v37 = vshrl.u32 %v6993_v21, 16  ;;  %v4281_v39 = vsel %vm8651_vm2, %v4276_v29, %v4280_v17 }
 0x119   : > { %7948 = vmatmul.mubr.bf16.gmra.mrb[24].mxu0 %v7108_v16  ;;  %v4286_v40 = vrot.slane %v4285_v30, 4  ;;  %v4299_v34 = vor.u32 %v4298_v31, %v4295_v25  ;;  %v6743_v24 = vcombine.low %v8475_v14, %v8476_v15  ;;  %v4322_v46 = vshll.u32 %v6994_v32, 16  ;;  %v7001_v25 = vld [vmem:[%s8618_s14 + $0xd8] sm:$0xf] }
 0x11a   : > { %v4309_v42 = vor.u32 %v4308_v35, %v4304_v33  ;;  %v4314_v43 = vrot.slane %v4312_v36, 5  ;;  %v4318_v45 = vrot.slane %v4316_v37, 4  ;;  %v4327_v7 = vshrl.u32 %v6995_v38, 16  ;;  %v7002_v36 = vld [vmem:[%s8618_s14 + $0xdc] sm:$0x1] }
 0x11b   : > { %v4291_v47 = vsel %vm8651_vm2, %v4286_v40, %v4290_v20  ;;  %v4300_v6 = vrot.slane %v4299_v34, 4  ;;  %v4330_v8 = vshll.u32 %v6995_v38, 16  ;;  %v4324_v52 = vrot.slane %v4322_v46, 5  ;;  %v7003_v34 = vld [vmem:[%s8618_s14 + $0xe0] sm:$0xf] }
 0x11c   : > { %v7109_v48 = vcombine.low %v4281_v39, %v4291_v47  ;;  %v4310_v49 = vrot.slane %v4309_v42, 4  ;;  %v4319_v50 = vor.u32 %v4318_v45, %v4314_v43  ;;  %v4329_v51 = vrot.slane %v4327_v7, 4  ;;  %v8481_v42 = vld [vmem:[%s8618_s14 + $0xc8] sm:$0xf]  ;;  %v7004_v47 = vld [vmem:[%s8618_s14 + $0xe4] sm:$0xf] }
 0x11d   : > { %v4305_v54 = vsel %vm8651_vm2, %v4300_v6, %v4304_v33  ;;  %v4332_v55 = vrot.slane %v4330_v8, 5  ;;  %v4336_v56 = vshll.u32 %v6996_v44, 16  ;;  %v4340_v60 = vshrl.u32 %v6996_v44, 16 }
 0x11e   : > { %7951 = vmatprep.mubr.bf16.mxu0 %v7109_v48  ;;  %7728 = vmatmul.mubr.bf16.gmra.mrb[28].mxu1 %v6742_v26  ;;  %v4315_v58 = vsel %vm8651_vm2, %v4310_v49, %v4314_v43  ;;  %v4320_v59 = vrot.slane %v4319_v50, 4  ;;  %v6744_v63 = vcombine.low %v8477_v61, %v8478_v62  ;;  %v4346_v1 = vshll.u32 %v6997_v53, 16  ;;  %v8482_v43 = vld [vmem:[%s8618_s14 + $0xd0] sm:$0xf] }
 0x11f   : > { %v7110_v3 = vcombine.low %v4305_v54, %v4315_v58  ;;  %7731 = vmatprep.mubr.bf16.mxu1 %v6743_v24  ;;  %v4333_v4 = vor.u32 %v4332_v55, %v4329_v51  ;;  %v4338_v5 = vrot.slane %v4336_v56, 5  ;;  %v4342_v10 = vrot.slane %v4340_v60, 4  ;;  %v7005_v55 = vld [vmem:[%s8618_s14 + $0xe8] sm:$0xf]  ;;  %v7006_v60 = vld [vmem:[%s8618_s14 + $0xec] sm:$0x1] }
 0x120   : > { %v4325_v9 = vsel %vm8651_vm2, %v4320_v59, %v4324_v52  ;;  %v4350_v11 = vshrl.u32 %v6997_v53, 16  ;;  %v4356_v17 = vshll.u32 %v6998_v57, 16  ;;  %v4348_v26 = vrot.slane %v4346_v1, 5 }
 0x121   : > { %7952 = vmatmul.mubr.bf16.gmra.mrb[28].mxu0 %v7110_v3  ;;  %v4334_v19 = vrot.slane %v4333_v4, 4  ;;  %v6745_v28 = vcombine.low %v8479_v2, %v8480_v27  ;;  %v4361_v20 = vshrl.u32 %v6999_v0, 16  ;;  %v4343_v21 = vor.u32 %v4342_v10, %v4338_v5  ;;  %v8484_v3 = vld [vmem:[%s8618_s14 + $0xd8] sm:$0xf]  ;;  %v7008_v2 = vld [vmem:[%s8618_s14 + $0xf4] sm:$0xf] }
 0x122   : > { %v4352_v22 = vrot.slane %v4350_v11, 4  ;;  %v4358_v23 = vrot.slane %v4356_v17, 5  ;;  %v4364_v12 = vshll.u32 %v6999_v0, 16  ;;  %v4370_v29 = vshll.u32 %v7000_v18, 16  ;;  %v8483_v0 = vld [vmem:[%s8618_s14 + $0xd4] sm:$0xf] }
 0x123   : > { %v4339_v13 = vsel %vm8651_vm2, %v4334_v19, %v4338_v5  ;;  %v4363_v16 = vrot.slane %v4361_v20, 4  ;;  %v4374_v30 = vshrl.u32 %v7000_v18, 16  ;;  %v4344_v32 = vrot.slane %v4343_v21, 4  ;;  %v7007_v5 = vld [vmem:[%s8618_s14 + $0xf0] sm:$0xf] }
 0x124   : > { %v7111_v31 = vcombine.low %v4325_v9, %v4339_v13  ;;  %v4353_v33 = vor.u32 %v4352_v22, %v4348_v26  ;;  %v4366_v35 = vrot.slane %v4364_v12, 5  ;;  %v4372_v37 = vrot.slane %v4370_v29, 5  ;;  %v8485_v20 = vld [vmem:[%s8618_s14 + $0xe0] sm:$0xf]  ;;  %v8486_v21 = vld [vmem:[%s8618_s14 + $0xe4] sm:$0xf] }
 0x125   : > { %v4376_v38 = vrot.slane %v4374_v30, 4  ;;  %v4380_v39 = vshll.u32 %v7001_v25, 16  ;;  %v4384_v40 = vshrl.u32 %v7001_v25, 16  ;;  %v4349_v14 = vsel %vm8651_vm2, %v4344_v32, %v4348_v26 }
 0x126   : > { %7955 = vmatprep.mubr.bf16.mxu0 %v7111_v31  ;;  %7732 = vmatmul.mubr.bf16.gmra.mrb[32].mxu1 %v6744_v63  ;;  %v4354_v15 = vrot.slane %v4353_v33, 4  ;;  %v4367_v24 = vor.u32 %v4366_v35, %v4363_v16  ;;  %v6746_v44 = vcombine.low %v8481_v42, %v8482_v43  ;;  %v4390_v7 = vshll.u32 %v7002_v36, 16  ;;  %v7009_v16 = vld [vmem:[%s8618_s14 + $0xf8] sm:$0xf] }
 0x127   : > { %7735 = vmatprep.mubr.bf16.mxu1 %v6745_v28  ;;  %v4377_v45 = vor.u32 %v4376_v38, %v4372_v37  ;;  %v4382_v46 = vrot.slane %v4380_v39, 5  ;;  %v4386_v6 = vrot.slane %v4384_v40, 4  ;;  %v4395_v49 = vshrl.u32 %v7003_v34, 16  ;;  %v7010_v39 = vld [vmem:[%s8618_s14 + $0xfc] sm:$0x1] }
 0x128   : > { %v4359_v8 = vsel %vm8651_vm2, %v4354_v15, %v4358_v23  ;;  %v4368_v48 = vrot.slane %v4367_v24, 4  ;;  %v4398_v50 = vshll.u32 %v7003_v34, 16  ;;  %v4392_v51 = vrot.slane %v4390_v7, 5  ;;  %v7011_v24 = vld [vmem:[%s8618_s14 + $0x100] sm:$0xf] }
 0x129   : > { %v7112_v52 = vcombine.low %v4349_v14, %v4359_v8  ;;  %v4378_v53 = vrot.slane %v4377_v45, 4  ;;  %v4387_v54 = vor.u32 %v4386_v6, %v4382_v46  ;;  %v4397_v57 = vrot.slane %v4395_v49, 4  ;;  %v8487_v45 = vld [vmem:[%s8618_s14 + $0xe8] sm:$0xf]  ;;  %v7012_v8 = vld [vmem:[%s8618_s14 + $0x104] sm:$0xf] }
 0x12a   : > { %v4373_v56 = vsel %vm8651_vm2, %v4368_v48, %v4372_v37  ;;  %v4400_v58 = vrot.slane %v4398_v50, 5  ;;  %v4404_v59 = vshll.u32 %v7004_v47, 16  ;;  %v4408_v63 = vshrl.u32 %v7004_v47, 16 }
 0x12b   : > { %7956 = vmatmul.mubr.bf16.gmra.mrb[32].mxu0 %v7112_v52  ;;  %v4383_v61 = vsel %vm8651_vm2, %v4378_v53, %v4382_v46  ;;  %v4388_v62 = vrot.slane %v4387_v54, 4  ;;  %v6747_v4 = vcombine.low %v8483_v0, %v8484_v3  ;;  %v4414_v11 = vshll.u32 %v7005_v55, 16  ;;  %v8488_v46 = vld [vmem:[%s8618_s14 + $0xf0] sm:$0xf] }
 0x12c   : > { %v7113_v1 = vcombine.low %v4373_v56, %v4383_v61  ;;  %v4401_v9 = vor.u32 %v4400_v58, %v4397_v57  ;;  %v4406_v10 = vrot.slane %v4404_v59, 5  ;;  %v4410_v18 = vrot.slane %v4408_v63, 4  ;;  %v7013_v58 = vld [vmem:[%s8618_s14 + $0x108] sm:$0xf]  ;;  %v7014_v63 = vld [vmem:[%s8618_s14 + $0x10c] sm:$0x1] }
 0x12d   : > { %v4393_v17 = vsel %vm8651_vm2, %v4388_v62, %v4392_v51  ;;  %v4418_v19 = vshrl.u32 %v7005_v55, 16  ;;  %v4424_v26 = vshll.u32 %v7006_v60, 16  ;;  %v4416_v28 = vrot.slane %v4414_v11, 5 }
 0x12e   : > { %7959 = vmatprep.mubr.bf16.mxu0 %v7113_v1  ;;  %7736 = vmatmul.mubr.bf16.gmra.mrb[36].mxu1 %v6746_v44  ;;  %v4402_v27 = vrot.slane %v4401_v9, 4  ;;  %v6748_v22 = vcombine.low %v8485_v20, %v8486_v21  ;;  %v4429_v23 = vshrl.u32 %v7007_v5, 16  ;;  %v4411_v25 = vor.u32 %v4410_v18, %v4406_v10  ;;  %v8490_v1 = vld [vmem:[%s8618_s14 + $0xf8] sm:$0xf]  ;;  %v7016_v20 = vld [vmem:[%s8618_s14 + $0x114] sm:$0xf] }
 0x12f   : > { %7739 = vmatprep.mubr.bf16.mxu1 %v6747_v4  ;;  %v4420_v12 = vrot.slane %v4418_v19, 4  ;;  %v4426_v13 = vrot.slane %v4424_v26, 5  ;;  %v4432_v29 = vshll.u32 %v7007_v5, 16  ;;  %v4438_v32 = vshll.u32 %v7008_v2, 16  ;;  %v8489_v5 = vld [vmem:[%s8618_s14 + $0xf4] sm:$0xf] }
 0x130   : > { %v4407_v30 = vsel %vm8651_vm2, %v4402_v27, %v4406_v10  ;;  %v4431_v31 = vrot.slane %v4429_v23, 4  ;;  %v4442_v33 = vshrl.u32 %v7008_v2, 16  ;;  %v4412_v36 = vrot.slane %v4411_v25, 4  ;;  %v7015_v10 = vld [vmem:[%s8618_s14 + $0x110] sm:$0xf] }
 0x131   : > { %v7114_v35 = vcombine.low %v4393_v17, %v4407_v30  ;;  %v4421_v37 = vor.u32 %v4420_v12, %v4416_v28  ;;  %v4434_v38 = vrot.slane %v4432_v29, 5  ;;  %v4440_v40 = vrot.slane %v4438_v32, 5  ;;  %v8491_v23 = vld [vmem:[%s8618_s14 + $0x100] sm:$0xf]  ;;  %v8492_v25 = vld [vmem:[%s8618_s14 + $0x104] sm:$0xf] }
 0x132   : > { %v4444_v34 = vrot.slane %v4442_v33, 4  ;;  %v4448_v14 = vshll.u32 %v7009_v16, 16  ;;  %v4452_v15 = vshrl.u32 %v7009_v16, 16  ;;  %v4417_v42 = vsel %vm8651_vm2, %v4412_v36, %v4416_v28 }
 0x133   : > { %7960 = vmatmul.mubr.bf16.gmra.mrb[36].mxu0 %v7114_v35  ;;  %v4422_v43 = vrot.slane %v4421_v37, 4  ;;  %v4435_v44 = vor.u32 %v4434_v38, %v4431_v31  ;;  %v6749_v47 = vcombine.low %v8487_v45, %v8488_v46  ;;  %v4458_v49 = vshll.u32 %v7010_v39, 16  ;;  %v7017_v31 = vld [vmem:[%s8618_s14 + $0x118] sm:$0xf] }
 0x134   : > { %v4445_v6 = vor.u32 %v4444_v34, %v4440_v40  ;;  %v4450_v7 = vrot.slane %v4448_v14, 5  ;;  %v4454_v48 = vrot.slane %v4452_v15, 4  ;;  %v4463_v53 = vshrl.u32 %v7011_v24, 16  ;;  %v7018_v14 = vld [vmem:[%s8618_s14 + $0x11c] sm:$0x1] }
 0x135   : > { %v4427_v50 = vsel %vm8651_vm2, %v4422_v43, %v4426_v13  ;;  %v4436_v52 = vrot.slane %v4435_v44, 4  ;;  %v4466_v54 = vshll.u32 %v7011_v24, 16  ;;  %v4460_v57 = vrot.slane %v4458_v49, 5  ;;  %v7019_v44 = vld [vmem:[%s8618_s14 + $0x120] sm:$0xf] }
 0x136   : > { %v7115_v51 = vcombine.low %v4417_v42, %v4427_v50  ;;  %7740 = vmatmul.mubr.bf16.gmra.mrb[40].mxu1 %v6748_v22  ;;  %v4446_v55 = vrot.slane %v4445_v6, 4  ;;  %v4455_v56 = vor.u32 %v4454_v48, %v4450_v7  ;;  %v4465_v60 = vrot.slane %v4463_v53, 4  ;;  %v8493_v6 = vld [vmem:[%s8618_s14 + $0x108] sm:$0xf]  ;;  %v7020_v50 = vld [vmem:[%s8618_s14 + $0x124] sm:$0xf] }
 0x137   : > { %v4441_v59 = vsel %vm8651_vm2, %v4436_v52, %v4440_v40  ;;  %7743 = vmatprep.mubr.bf16.mxu1 %v6749_v47  ;;  %v4468_v61 = vrot.slane %v4466_v54, 5  ;;  %v4472_v62 = vshll.u32 %v7012_v8, 16  ;;  %v4476_v4 = vshrl.u32 %v7012_v8, 16 }
 0x138   : > { %7963 = vmatprep.mubr.bf16.mxu0 %v7115_v51  ;;  %v4451_v0 = vsel %vm8651_vm2, %v4446_v55, %v4450_v7  ;;  %v4456_v3 = vrot.slane %v4455_v56, 4  ;;  %v6750_v9 = vcombine.low %v8489_v5, %v8490_v1  ;;  %v4482_v19 = vshll.u32 %v7013_v58, 16  ;;  %v8494_v7 = vld [vmem:[%s8618_s14 + $0x110] sm:$0xf] }
 0x139   : > { %v7116_v11 = vcombine.low %v4441_v59, %v4451_v0  ;;  %v4469_v17 = vor.u32 %v4468_v61, %v4465_v60  ;;  %v4474_v18 = vrot.slane %v4472_v62, 5  ;;  %v4478_v2 = vrot.slane %v4476_v4, 4  ;;  %v7021_v61 = vld [vmem:[%s8618_s14 + $0x128] sm:$0xf]  ;;  %v7022_v4 = vld [vmem:[%s8618_s14 + $0x12c] sm:$0x1] }
 0x13a   : > { %v4461_v26 = vsel %vm8651_vm2, %v4456_v3, %v4460_v57  ;;  %v4486_v27 = vshrl.u32 %v7013_v58, 16  ;;  %v4492_v28 = vshll.u32 %v7014_v63, 16  ;;  %v4484_v22 = vrot.slane %v4482_v19, 5 }
 0x13b   : > { %7964 = vmatmul.mubr.bf16.gmra.mrb[40].mxu0 %v7116_v11  ;;  %v4470_v21 = vrot.slane %v4469_v17, 4  ;;  %v6751_v12 = vcombine.low %v8491_v23, %v8492_v25  ;;  %v4497_v13 = vshrl.u32 %v7015_v10, 16  ;;  %v4479_v16 = vor.u32 %v4478_v2, %v4474_v18  ;;  %v8496_v11 = vld [vmem:[%s8618_s14 + $0x118] sm:$0xf]  ;;  %v7024_v23 = vld [vmem:[%s8618_s14 + $0x134] sm:$0xf] }
 0x13c   : > { %v4488_v29 = vrot.slane %v4486_v27, 4  ;;  %v4494_v30 = vrot.slane %v4492_v28, 5  ;;  %v4500_v32 = vshll.u32 %v7015_v10, 16  ;;  %v4506_v36 = vshll.u32 %v7016_v20, 16  ;;  %v8495_v10 = vld [vmem:[%s8618_s14 + $0x114] sm:$0xf] }
 0x13d   : > { %v4475_v33 = vsel %vm8651_vm2, %v4470_v21, %v4474_v18  ;;  %v4499_v35 = vrot.slane %v4497_v13, 4  ;;  %v4510_v37 = vshrl.u32 %v7016_v20, 16  ;;  %v4480_v39 = vrot.slane %v4479_v16, 4  ;;  %v7023_v18 = vld [vmem:[%s8618_s14 + $0x130] sm:$0xf] }
 0x13e   : > { %v7117_v38 = vcombine.low %v4461_v26, %v4475_v33  ;;  %7744 = vmatmul.mubr.bf16.gmra.mrb[44].mxu1 %v6750_v9  ;;  %v4489_v40 = vor.u32 %v4488_v29, %v4484_v22  ;;  %v4502_v34 = vrot.slane %v4500_v32, 5  ;;  %v4508_v15 = vrot.slane %v4506_v36, 5  ;;  %v8497_v13 = vld [vmem:[%s8618_s14 + $0x120] sm:$0xf]  ;;  %v8498_v16 = vld [vmem:[%s8618_s14 + $0x124] sm:$0xf] }
 0x13f   : > { %7747 = vmatprep.mubr.bf16.mxu1 %v6751_v12  ;;  %v4512_v24 = vrot.slane %v4510_v37, 4  ;;  %v4516_v42 = vshll.u32 %v7017_v31, 16  ;;  %v4520_v43 = vshrl.u32 %v7017_v31, 16  ;;  %v4485_v45 = vsel %vm8651_vm2, %v4480_v39, %v4484_v22 }
 0x140   : > { %7967 = vmatprep.mubr.bf16.mxu0 %v7117_v38  ;;  %v4490_v46 = vrot.slane %v4489_v40, 4  ;;  %v4503_v47 = vor.u32 %v4502_v34, %v4499_v35  ;;  %v6752_v8 = vcombine.low %v8493_v6, %v8494_v7  ;;  %v4526_v53 = vshll.u32 %v7018_v14, 16  ;;  %v7025_v35 = vld [vmem:[%s8618_s14 + $0x138] sm:$0xf] }
 0x141   : > { %v4513_v48 = vor.u32 %v4512_v24, %v4508_v15  ;;  %v4518_v49 = vrot.slane %v4516_v42, 5  ;;  %v4522_v52 = vrot.slane %v4520_v43, 4  ;;  %v4531_v55 = vshrl.u32 %v7019_v44, 16  ;;  %v7026_v42 = vld [vmem:[%s8618_s14 + $0x13c] sm:$0x1] }
 0x142   : > { %v4495_v54 = vsel %vm8651_vm2, %v4490_v46, %v4494_v30  ;;  %v4504_v51 = vrot.slane %v4503_v47, 4  ;;  %v4534_v56 = vshll.u32 %v7019_v44, 16  ;;  %v4528_v60 = vrot.slane %v4526_v53, 5  ;;  %v7027_v47 = vld [vmem:[%s8618_s14 + $0x140] sm:$0xf] }
 0x143   : > { %v7118_v57 = vcombine.low %v4485_v45, %v4495_v54  ;;  %v4514_v58 = vrot.slane %v4513_v48, 4  ;;  %v4523_v59 = vor.u32 %v4522_v52, %v4518_v49  ;;  %v4533_v63 = vrot.slane %v4531_v55, 4  ;;  %v8499_v48 = vld [vmem:[%s8618_s14 + $0x128] sm:$0xf]  ;;  %v7028_v54 = vld [vmem:[%s8618_s14 + $0x144] sm:$0xf] }
 0x144   : > { %v4509_v62 = vsel %vm8651_vm2, %v4504_v51, %v4508_v15  ;;  %v4536_v0 = vrot.slane %v4534_v56, 5  ;;  %v4540_v3 = vshll.u32 %v7020_v50, 16  ;;  %v4544_v9 = vshrl.u32 %v7020_v50, 16 }
 0x145   : > { %7968 = vmatmul.mubr.bf16.gmra.mrb[44].mxu0 %v7118_v57  ;;  %v4519_v5 = vsel %vm8651_vm2, %v4514_v58, %v4518_v49  ;;  %v4524_v1 = vrot.slane %v4523_v59, 4  ;;  %v6753_v17 = vcombine.low %v8495_v10, %v8496_v11  ;;  %v4550_v27 = vshll.u32 %v7021_v61, 16  ;;  %v8500_v49 = vld [vmem:[%s8618_s14 + $0x130] sm:$0xf] }
 0x146   : > { %v7119_v19 = vcombine.low %v4509_v62, %v4519_v5  ;;  %7748 = vmatmul.mubr.bf16.gmra.mrb[48].mxu1 %v6752_v8  ;;  %v4537_v26 = vor.u32 %v4536_v0, %v4533_v63  ;;  %v4542_v2 = vrot.slane %v4540_v3, 5  ;;  %v4546_v20 = vrot.slane %v4544_v9, 4  ;;  %v7029_v0 = vld [vmem:[%s8618_s14 + $0x148] sm:$0xf]  ;;  %v7030_v9 = vld [vmem:[%s8618_s14 + $0x14c] sm:$0x1] }
 0x147   : > { %v4529_v28 = vsel %vm8651_vm2, %v4524_v1, %v4528_v60  ;;  %7751 = vmatprep.mubr.bf16.mxu1 %v6753_v17  ;;  %v4554_v21 = vshrl.u32 %v7021_v61, 16  ;;  %v4560_v22 = vshll.u32 %v7022_v4, 16  ;;  %v4552_v12 = vrot.slane %v4550_v27, 5 }
 0x148   : > { %7971 = vmatprep.mubr.bf16.mxu0 %v7119_v19  ;;  %v4538_v25 = vrot.slane %v4537_v26, 4  ;;  %v6754_v29 = vcombine.low %v8497_v13, %v8498_v16  ;;  %v4565_v30 = vshrl.u32 %v7023_v18, 16  ;;  %v4547_v31 = vor.u32 %v4546_v20, %v4542_v2  ;;  %v8502_v19 = vld [vmem:[%s8618_s14 + $0x138] sm:$0xf]  ;;  %v7032_v13 = vld [vmem:[%s8618_s14 + $0x154] sm:$0xf] }
 0x149   : > { %v4556_v32 = vrot.slane %v4554_v21, 4  ;;  %v4562_v33 = vrot.slane %v4560_v22, 5  ;;  %v4568_v36 = vshll.u32 %v7023_v18, 16  ;;  %v4574_v39 = vshll.u32 %v7024_v23, 16  ;;  %v8501_v18 = vld [vmem:[%s8618_s14 + $0x134] sm:$0xf] }
 0x14a   : > { %v4543_v37 = vsel %vm8651_vm2, %v4538_v25, %v4542_v2  ;;  %v4567_v38 = vrot.slane %v4565_v30, 4  ;;  %v4578_v40 = vshrl.u32 %v7024_v23, 16  ;;  %v4548_v14 = vrot.slane %v4547_v31, 4  ;;  %v7031_v2 = vld [vmem:[%s8618_s14 + $0x150] sm:$0xf] }
 0x14b   : > { %v7120_v34 = vcombine.low %v4529_v28, %v4543_v37  ;;  %v4557_v15 = vor.u32 %v4556_v32, %v4552_v12  ;;  %v4570_v24 = vrot.slane %v4568_v36, 5  ;;  %v4576_v43 = vrot.slane %v4574_v39, 5  ;;  %v8503_v30 = vld [vmem:[%s8618_s14 + $0x140] sm:$0xf]  ;;  %v8504_v31 = vld [vmem:[%s8618_s14 + $0x144] sm:$0xf] }
 0x14c   : > { %v4580_v44 = vrot.slane %v4578_v40, 4  ;;  %v4584_v45 = vshll.u32 %v7025_v35, 16  ;;  %v4588_v46 = vshrl.u32 %v7025_v35, 16  ;;  %v4553_v6 = vsel %vm8651_vm2, %v4548_v14, %v4552_v12 }
 0x14d   : > { %7972 = vmatmul.mubr.bf16.gmra.mrb[48].mxu0 %v7120_v34  ;;  %v4558_v7 = vrot.slane %v4557_v15, 4  ;;  %v4571_v8 = vor.u32 %v4570_v24, %v4567_v38  ;;  %v6755_v50 = vcombine.low %v8499_v48, %v8500_v49  ;;  %v4594_v55 = vshll.u32 %v7026_v42, 16  ;;  %v7033_v38 = vld [vmem:[%s8618_s14 + $0x158] sm:$0xf] }
 0x14e   : > { %7752 = vmatmul.mubr.bf16.gmra.mrb[52].mxu1 %v6754_v29  ;;  %v4581_v52 = vor.u32 %v4580_v44, %v4576_v43  ;;  %v4586_v53 = vrot.slane %v4584_v45, 5  ;;  %v4590_v51 = vrot.slane %v4588_v46, 4  ;;  %v4599_v58 = vshrl.u32 %v7027_v47, 16  ;;  %v7034_v45 = vld [vmem:[%s8618_s14 + $0x15c] sm:$0x1] }
 0x14f   : > { %v4563_v56 = vsel %vm8651_vm2, %v4558_v7, %v4562_v33  ;;  %v4572_v57 = vrot.slane %v4571_v8, 4  ;;  %7755 = vmatprep.mubr.bf16.mxu1 %v6755_v50  ;;  %v4602_v59 = vshll.u32 %v7027_v47, 16  ;;  %v4596_v63 = vrot.slane %v4594_v55, 5  ;;  %v7035_v8 = vld [vmem:[%s8618_s14 + $0x160] sm:$0xf] }
 0x150   : > { %v7121_v60 = vcombine.low %v4553_v6, %v4563_v56  ;;  %v4582_v61 = vrot.slane %v4581_v52, 4  ;;  %v4591_v62 = vor.u32 %v4590_v51, %v4586_v53  ;;  %v4601_v4 = vrot.slane %v4599_v58, 4  ;;  %v8505_v52 = vld [vmem:[%s8618_s14 + $0x148] sm:$0xf]  ;;  %v7036_v56 = vld [vmem:[%s8618_s14 + $0x164] sm:$0xf] }
 0x151   : > { %v4577_v3 = vsel %vm8651_vm2, %v4572_v57, %v4576_v43  ;;  %v4604_v5 = vrot.slane %v4602_v59, 5  ;;  %v4608_v1 = vshll.u32 %v7028_v54, 16  ;;  %v4612_v17 = vshrl.u32 %v7028_v54, 16 }
 0x152   : > { %7975 = vmatprep.mubr.bf16.mxu0 %v7121_v60  ;;  %v4587_v10 = vsel %vm8651_vm2, %v4582_v61, %v4586_v53  ;;  %v4592_v11 = vrot.slane %v4591_v62, 4  ;;  %v6756_v26 = vcombine.low %v8501_v18, %v8502_v19  ;;  %v4618_v21 = vshll.u32 %v7029_v0, 16  ;;  %v8506_v53 = vld [vmem:[%s8618_s14 + $0x150] sm:$0xf] }
 0x153   : > { %v7122_v27 = vcombine.low %v4577_v3, %v4587_v10  ;;  %v4605_v28 = vor.u32 %v4604_v5, %v4601_v4  ;;  %v4610_v20 = vrot.slane %v4608_v1, 5  ;;  %v4614_v23 = vrot.slane %v4612_v17, 4  ;;  %v7037_v5 = vld [vmem:[%s8618_s14 + $0x168] sm:$0xf]  ;;  %v7038_v17 = vld [vmem:[%s8618_s14 + $0x16c] sm:$0x1] }
 0x154   : > { %v4597_v22 = vsel %vm8651_vm2, %v4592_v11, %v4596_v63  ;;  %v4622_v25 = vshrl.u32 %v7029_v0, 16  ;;  %v4628_v12 = vshll.u32 %v7030_v9, 16  ;;  %v4620_v29 = vrot.slane %v4618_v21, 5 }
 0x155   : > { %7976 = vmatmul.mubr.bf16.gmra.mrb[52].mxu0 %v7122_v27  ;;  %v4606_v16 = vrot.slane %v4605_v28, 4  ;;  %v6757_v32 = vcombine.low %v8503_v30, %v8504_v31  ;;  %v4633_v33 = vshrl.u32 %v7031_v2, 16  ;;  %v4615_v35 = vor.u32 %v4614_v23, %v4610_v20  ;;  %v8508_v27 = vld [vmem:[%s8618_s14 + $0x158] sm:$0xf]  ;;  %v7040_v30 = vld [vmem:[%s8618_s14 + $0x174] sm:$0xf] }
 0x156   : > { %7756 = vmatmul.mubr.bf16.gmra.mrb[56].mxu1 %v6756_v26  ;;  %v4624_v36 = vrot.slane %v4622_v25, 4  ;;  %v4630_v37 = vrot.slane %v4628_v12, 5  ;;  %v4636_v39 = vshll.u32 %v7031_v2, 16  ;;  %v4642_v14 = vshll.u32 %v7032_v13, 16  ;;  %v8507_v2 = vld [vmem:[%s8618_s14 + $0x154] sm:$0xf] }
 0x157   : > { %v4611_v40 = vsel %vm8651_vm2, %v4606_v16, %v4610_v20  ;;  %7759 = vmatprep.mubr.bf16.mxu1 %v6757_v32  ;;  %v4635_v34 = vrot.slane %v4633_v33, 4  ;;  %v4646_v15 = vshrl.u32 %v7032_v13, 16  ;;  %v4616_v42 = vrot.slane %v4615_v35, 4  ;;  %v7039_v20 = vld [vmem:[%s8618_s14 + $0x170] sm:$0xf] }
 0x158   : > { %v7123_v24 = vcombine.low %v4597_v22, %v4611_v40  ;;  %v4625_v43 = vor.u32 %v4624_v36, %v4620_v29  ;;  %v4638_v44 = vrot.slane %v4636_v39, 5  ;;  %v4644_v46 = vrot.slane %v4642_v14, 5  ;;  %v8509_v33 = vld [vmem:[%s8618_s14 + $0x160] sm:$0xf]  ;;  %v8510_v35 = vld [vmem:[%s8618_s14 + $0x164] sm:$0xf] }
 0x159   : > { %v4648_v47 = vrot.slane %v4646_v15, 4  ;;  %v4652_v6 = vshll.u32 %v7033_v38, 16  ;;  %v4656_v7 = vshrl.u32 %v7033_v38, 16  ;;  %v4621_v48 = vsel %vm8651_vm2, %v4616_v42, %v4620_v29 }
 0x15a   : > { %7979 = vmatprep.mubr.bf16.mxu0 %v7123_v24  ;;  %v4626_v49 = vrot.slane %v4625_v43, 4  ;;  %v4639_v50 = vor.u32 %v4638_v44, %v4635_v34  ;;  %v6758_v54 = vcombine.low %v8505_v52, %v8506_v53  ;;  %v4662_v58 = vshll.u32 %v7034_v45, 16  ;;  %v7041_v34 = vld [vmem:[%s8618_s14 + $0x178] sm:$0xf] }
 0x15b   : > { %v4649_v51 = vor.u32 %v4648_v47, %v4644_v46  ;;  %v4654_v55 = vrot.slane %v4652_v6, 5  ;;  %v4658_v57 = vrot.slane %v4656_v7, 4  ;;  %v4667_v61 = vshrl.u32 %v7035_v8, 16  ;;  %v7042_v6 = vld [vmem:[%s8618_s14 + $0x17c] sm:$0x1] }
 0x15c   : > { %v4631_v59 = vsel %vm8651_vm2, %v4626_v49, %v4630_v37  ;;  %v4640_v60 = vrot.slane %v4639_v50, 4  ;;  %v4670_v62 = vshll.u32 %v7035_v8, 16  ;;  %v4664_v4 = vrot.slane %v4662_v58, 5  ;;  %v7043_v50 = vld [vmem:[%s8618_s14 + $0x180] sm:$0xf] }
 0x15d   : > { %v7124_v63 = vcombine.low %v4621_v48, %v4631_v59  ;;  %v4650_v0 = vrot.slane %v4649_v51, 4  ;;  %v4659_v3 = vor.u32 %v4658_v57, %v4654_v55  ;;  %v4669_v9 = vrot.slane %v4667_v61, 4  ;;  %v8511_v51 = vld [vmem:[%s8618_s14 + $0x168] sm:$0xf]  ;;  %v7044_v59 = vld [vmem:[%s8618_s14 + $0x184] sm:$0xf] }
 0x15e   : > { %v4645_v1 = vsel %vm8651_vm2, %v4640_v60, %v4644_v46  ;;  %7760 = vmatmul.mubr.bf16.gmra.mrb[60].mxu1 %v6758_v54  ;;  %v4672_v10 = vrot.slane %v4670_v62, 5  ;;  %v4676_v11 = vshll.u32 %v7036_v56, 16  ;;  %v4680_v26 = vshrl.u32 %v7036_v56, 16 }
 0x15f   : > { %7980 = vmatmul.mubr.bf16.gmra.mrb[56].mxu0 %v7124_v63  ;;  %v4655_v18 = vsel %vm8651_vm2, %v4650_v0, %v4654_v55  ;;  %v4660_v19 = vrot.slane %v4659_v3, 4  ;;  %v6759_v28 = vcombine.low %v8507_v2, %v8508_v27  ;;  %v4686_v25 = vshll.u32 %v7037_v5, 16  ;;  %v8512_v55 = vld [vmem:[%s8618_s14 + $0x170] sm:$0xf] }
 0x160   : > { %v7125_v21 = vcombine.low %v4645_v1, %v4655_v18  ;;  %v4673_v22 = vor.u32 %v4672_v10, %v4669_v9  ;;  %v4678_v23 = vrot.slane %v4676_v11, 5  ;;  %v4682_v13 = vrot.slane %v4680_v26, 4  ;;  %v7045_v10 = vld [vmem:[%s8618_s14 + $0x188] sm:$0xf]  ;;  %v7046_v26 = vld [vmem:[%s8618_s14 + $0x18c] sm:$0x1] }
 0x161   : > { %v4665_v12 = vsel %vm8651_vm2, %v4660_v19, %v4664_v4  ;;  %7763 = vmatprep.mubr.bf16.mxu1 %v6759_v28  ;;  %v4690_v16 = vshrl.u32 %v7037_v5, 16  ;;  %v4696_v29 = vshll.u32 %v7038_v17, 16  ;;  %v4688_v32 = vrot.slane %v4686_v25, 5 }
 0x162   : > { %7983 = vmatprep.mubr.bf16.mxu0 %v7125_v21  ;;  %v4674_v31 = vrot.slane %v4673_v22, 4  ;;  %v6760_v36 = vcombine.low %v8509_v33, %v8510_v35  ;;  %v4701_v37 = vshrl.u32 %v7039_v20, 16  ;;  %v4683_v38 = vor.u32 %v4682_v13, %v4678_v23  ;;  %v8514_v21 = vld [vmem:[%s8618_s14 + $0x178] sm:$0xf]  ;;  %v7048_v33 = vld [vmem:[%s8618_s14 + $0x194] sm:$0xf] }
 0x163   : > { %v4692_v39 = vrot.slane %v4690_v16, 4  ;;  %v4698_v40 = vrot.slane %v4696_v29, 5  ;;  %v4704_v14 = vshll.u32 %v7039_v20, 16  ;;  %v4710_v42 = vshll.u32 %v7040_v30, 16  ;;  %v8513_v20 = vld [vmem:[%s8618_s14 + $0x174] sm:$0xf] }
 0x164   : > { %v4679_v15 = vsel %vm8651_vm2, %v4674_v31, %v4678_v23  ;;  %v4703_v24 = vrot.slane %v4701_v37, 4  ;;  %v4714_v43 = vshrl.u32 %v7040_v30, 16  ;;  %v4684_v45 = vrot.slane %v4683_v38, 4  ;;  %v7047_v23 = vld [vmem:[%s8618_s14 + $0x190] sm:$0xf] }
 0x165   : > { %v7126_v44 = vcombine.low %v4665_v12, %v4679_v15  ;;  %v4693_v46 = vor.u32 %v4692_v39, %v4688_v32  ;;  %v4706_v47 = vrot.slane %v4704_v14, 5  ;;  %v4712_v7 = vrot.slane %v4710_v42, 5  ;;  %v8515_v37 = vld [vmem:[%s8618_s14 + $0x180] sm:$0xf]  ;;  %v8516_v38 = vld [vmem:[%s8618_s14 + $0x184] sm:$0xf] }
 0x166   : > { %7764 = vmatmul.mubr.bf16.gmra.mrb[64].mxu1 %v6760_v36  ;;  %v4716_v8 = vrot.slane %v4714_v43, 4  ;;  %v4720_v48 = vshll.u32 %v7041_v34, 16  ;;  %v4724_v49 = vshrl.u32 %v7041_v34, 16  ;;  %v4689_v52 = vsel %vm8651_vm2, %v4684_v45, %v4688_v32 }
 0x167   : > { %7984 = vmatmul.mubr.bf16.gmra.mrb[60].mxu0 %v7126_v44  ;;  %v4694_v53 = vrot.slane %v4693_v46, 4  ;;  %v4707_v54 = vor.u32 %v4706_v47, %v4703_v24  ;;  %v6761_v56 = vcombine.low %v8511_v51, %v8512_v55  ;;  %v4730_v61 = vshll.u32 %v7042_v6, 16  ;;  %v7049_v24 = vld [vmem:[%s8618_s14 + $0x198] sm:$0xf] }
 0x168   : > { %v4717_v57 = vor.u32 %v4716_v8, %v4712_v7  ;;  %v4722_v58 = vrot.slane %v4720_v48, 5  ;;  %v4726_v60 = vrot.slane %v4724_v49, 4  ;;  %v4735_v0 = vshrl.u32 %v7043_v50, 16  ;;  %v7050_v48 = vld [vmem:[%s8618_s14 + $0x19c] sm:$0x1] }
 0x169   : > { %v4699_v62 = vsel %vm8651_vm2, %v4694_v53, %v4698_v40  ;;  %v4708_v63 = vrot.slane %v4707_v54, 4  ;;  %7767 = vmatprep.mubr.bf16.mxu1 %v6761_v56  ;;  %v4738_v3 = vshll.u32 %v7043_v50, 16  ;;  %v4732_v9 = vrot.slane %v4730_v61, 5  ;;  %v7051_v54 = vld [vmem:[%s8618_s14 + $0x1a0] sm:$0xf] }
 0x16a   : > { %v7127_v4 = vcombine.low %v4689_v52, %v4699_v62  ;;  %v4718_v5 = vrot.slane %v4717_v57, 4  ;;  %v4727_v1 = vor.u32 %v4726_v60, %v4722_v58  ;;  %v4737_v17 = vrot.slane %v4735_v0, 4  ;;  %v8517_v57 = vld [vmem:[%s8618_s14 + $0x188] sm:$0xf]  ;;  %v7052_v62 = vld [vmem:[%s8618_s14 + $0x1a4] sm:$0xf] }
 0x16b   : > { %v4713_v11 = vsel %vm8651_vm2, %v4708_v63, %v4712_v7  ;;  %v4740_v18 = vrot.slane %v4738_v3, 5  ;;  %v4744_v19 = vshll.u32 %v7044_v59, 16  ;;  %v4748_v28 = vshrl.u32 %v7044_v59, 16 }
 0x16c   : > { %7987 = vmatprep.mubr.bf16.mxu0 %v7127_v4  ;;  %v4723_v2 = vsel %vm8651_vm2, %v4718_v5, %v4722_v58  ;;  %v4728_v27 = vrot.slane %v4727_v1, 4  ;;  %v6762_v22 = vcombine.low %v8513_v20, %v8514_v21  ;;  %v4754_v16 = vshll.u32 %v7045_v10, 16  ;;  %v8518_v58 = vld [vmem:[%s8618_s14 + $0x190] sm:$0xf] }
 0x16d   : > { %v7128_v25 = vcombine.low %v4713_v11, %v4723_v2  ;;  %v4741_v12 = vor.u32 %v4740_v18, %v4737_v17  ;;  %v4746_v13 = vrot.slane %v4744_v19, 5  ;;  %v4750_v30 = vrot.slane %v4748_v28, 4  ;;  %v7053_v18 = vld [vmem:[%s8618_s14 + $0x1a8] sm:$0xf]  ;;  %v7054_v28 = vld [vmem:[%s8618_s14 + $0x1ac] sm:$0x1] }
 0x16e   : > { %v4733_v29 = vsel %vm8651_vm2, %v4728_v27, %v4732_v9  ;;  %7768 = vmatmul.mubr.bf16.gmra.mrb[68].mxu1 %v6762_v22  ;;  %v4758_v31 = vshrl.u32 %v7045_v10, 16  ;;  %v4764_v32 = vshll.u32 %v7046_v26, 16  ;;  %v4756_v36 = vrot.slane %v4754_v16, 5 }
 0x16f   : > { %7988 = vmatmul.mubr.bf16.gmra.mrb[64].mxu0 %v7128_v25  ;;  %v4742_v35 = vrot.slane %v4741_v12, 4  ;;  %v6763_v39 = vcombine.low %v8515_v37, %v8516_v38  ;;  %v4769_v40 = vshrl.u32 %v7047_v23, 16  ;;  %v4751_v34 = vor.u32 %v4750_v30, %v4746_v13  ;;  %v8520_v25 = vld [vmem:[%s8618_s14 + $0x198] sm:$0xf]  ;;  %v7056_v37 = vld [vmem:[%s8618_s14 + $0x1b4] sm:$0xf] }
 0x170   : > { %v4760_v14 = vrot.slane %v4758_v31, 4  ;;  %v4766_v15 = vrot.slane %v4764_v32, 5  ;;  %v4772_v42 = vshll.u32 %v7047_v23, 16  ;;  %v4778_v45 = vshll.u32 %v7048_v33, 16  ;;  %v8519_v23 = vld [vmem:[%s8618_s14 + $0x194] sm:$0xf] }
 0x171   : > { %v4747_v43 = vsel %vm8651_vm2, %v4742_v35, %v4746_v13  ;;  %7771 = vmatprep.mubr.bf16.mxu1 %v6763_v39  ;;  %v4771_v44 = vrot.slane %v4769_v40, 4  ;;  %v4782_v46 = vshrl.u32 %v7048_v33, 16  ;;  %v4752_v6 = vrot.slane %v4751_v34, 4  ;;  %v7055_v13 = vld [vmem:[%s8618_s14 + $0x1b0] sm:$0xf] }
 0x172   : > { %v7129_v47 = vcombine.low %v4733_v29, %v4747_v43  ;;  %v4761_v7 = vor.u32 %v4760_v14, %v4756_v36  ;;  %v4774_v8 = vrot.slane %v4772_v42, 5  ;;  %v4780_v49 = vrot.slane %v4778_v45, 5  ;;  %v8521_v40 = vld [vmem:[%s8618_s14 + $0x1a0] sm:$0xf]  ;;  %v8522_v34 = vld [vmem:[%s8618_s14 + $0x1a4] sm:$0xf] }
 0x173   : > { %v4784_v50 = vrot.slane %v4782_v46, 4  ;;  %v4788_v52 = vshll.u32 %v7049_v24, 16  ;;  %v4792_v53 = vshrl.u32 %v7049_v24, 16  ;;  %v4757_v51 = vsel %vm8651_vm2, %v4752_v6, %v4756_v36 }
 0x174   : > { %7991 = vmatprep.mubr.bf16.mxu0 %v7129_v47  ;;  %v4762_v55 = vrot.slane %v4761_v7, 4  ;;  %v4775_v56 = vor.u32 %v4774_v8, %v4771_v44  ;;  %v6764_v59 = vcombine.low %v8517_v57, %v8518_v58  ;;  %v4798_v0 = vshll.u32 %v7050_v48, 16  ;;  %v7057_v44 = vld [vmem:[%s8618_s14 + $0x1b8] sm:$0xf] }
 0x175   : > { %v4785_v60 = vor.u32 %v4784_v50, %v4780_v49  ;;  %v4790_v61 = vrot.slane %v4788_v52, 5  ;;  %v4794_v63 = vrot.slane %v4792_v53, 4  ;;  %v4803_v5 = vshrl.u32 %v7051_v54, 16  ;;  %v7058_v52 = vld [vmem:[%s8618_s14 + $0x1bc] sm:$0x1] }
 0x176   : > { %v4767_v3 = vsel %vm8651_vm2, %v4762_v55, %v4766_v15  ;;  %v4776_v4 = vrot.slane %v4775_v56, 4  ;;  %7772 = vmatmul.mubr.bf16.gmra.mrb[72].mxu1 %v6764_v59  ;;  %v4806_v1 = vshll.u32 %v7051_v54, 16  ;;  %v4800_v17 = vrot.slane %v4798_v0, 5  ;;  %v7059_v56 = vld [vmem:[%s8618_s14 + $0x1c0] sm:$0xf] }
 0x177   : > { %v7130_v9 = vcombine.low %v4757_v51, %v4767_v3  ;;  %v4786_v10 = vrot.slane %v4785_v60, 4  ;;  %v4795_v11 = vor.u32 %v4794_v63, %v4790_v61  ;;  %v4805_v26 = vrot.slane %v4803_v5, 4  ;;  %v8523_v60 = vld [vmem:[%s8618_s14 + $0x1a8] sm:$0xf]  ;;  %v7060_v3 = vld [vmem:[%s8618_s14 + $0x1c4] sm:$0xf] }
 0x178   : > { %v4781_v19 = vsel %vm8651_vm2, %v4776_v4, %v4780_v49  ;;  %v4808_v2 = vrot.slane %v4806_v1, 5  ;;  %v4812_v27 = vshll.u32 %v7052_v62, 16  ;;  %v4816_v22 = vshrl.u32 %v7052_v62, 16 }
 0x179   : > { %7992 = vmatmul.mubr.bf16.gmra.mrb[68].mxu0 %v7130_v9  ;;  %v4791_v20 = vsel %vm8651_vm2, %v4786_v10, %v4790_v61  ;;  %v4796_v21 = vrot.slane %v4795_v11, 4  ;;  %v6765_v12 = vcombine.low %v8519_v23, %v8520_v25  ;;  %v4822_v31 = vshll.u32 %v7053_v18, 16  ;;  %v8524_v61 = vld [vmem:[%s8618_s14 + $0x1b0] sm:$0xf] }
 0x17a   : > { %v7131_v16 = vcombine.low %v4781_v19, %v4791_v20  ;;  %v4809_v29 = vor.u32 %v4808_v2, %v4805_v26  ;;  %v4814_v30 = vrot.slane %v4812_v27, 5  ;;  %v4818_v33 = vrot.slane %v4816_v22, 4  ;;  %v7061_v2 = vld [vmem:[%s8618_s14 + $0x1c8] sm:$0xf]  ;;  %v7062_v22 = vld [vmem:[%s8618_s14 + $0x1cc] sm:$0x1] }
 0x17b   : > { %v4801_v32 = vsel %vm8651_vm2, %v4796_v21, %v4800_v17  ;;  %7775 = vmatprep.mubr.bf16.mxu1 %v6765_v12  ;;  %v4826_v35 = vshrl.u32 %v7053_v18, 16  ;;  %v4832_v36 = vshll.u32 %v7054_v28, 16  ;;  %v4824_v39 = vrot.slane %v4822_v31, 5 }
 0x17c   : > { %7995 = vmatprep.mubr.bf16.mxu0 %v7131_v16  ;;  %v4810_v38 = vrot.slane %v4809_v29, 4  ;;  %v6766_v14 = vcombine.low %v8521_v40, %v8522_v34  ;;  %v4837_v15 = vshrl.u32 %v7055_v13, 16  ;;  %v4819_v24 = vor.u32 %v4818_v33, %v4814_v30  ;;  %v8526_v16 = vld [vmem:[%s8618_s14 + $0x1b8] sm:$0xf]  ;;  %v7064_v40 = vld [vmem:[%s8618_s14 + $0x1d4] sm:$0xf] }
 0x17d   : > { %v4828_v42 = vrot.slane %v4826_v35, 4  ;;  %v4834_v43 = vrot.slane %v4832_v36, 5  ;;  %v4840_v45 = vshll.u32 %v7055_v13, 16  ;;  %v4846_v6 = vshll.u32 %v7056_v37, 16  ;;  %v8525_v13 = vld [vmem:[%s8618_s14 + $0x1b4] sm:$0xf] }
 0x17e   : > { %v4815_v46 = vsel %vm8651_vm2, %v4810_v38, %v4814_v30  ;;  %7776 = vmatmul.mubr.bf16.gmra.mrb[76].mxu1 %v6766_v14  ;;  %v4839_v47 = vrot.slane %v4837_v15, 4  ;;  %v4850_v7 = vshrl.u32 %v7056_v37, 16  ;;  %v4820_v48 = vrot.slane %v4819_v24, 4  ;;  %v7063_v30 = vld [vmem:[%s8618_s14 + $0x1d0] sm:$0xf] }
 0x17f   : > { %v7132_v8 = vcombine.low %v4801_v32, %v4815_v46  ;;  %v4829_v49 = vor.u32 %v4828_v42, %v4824_v39  ;;  %v4842_v50 = vrot.slane %v4840_v45, 5  ;;  %v4848_v53 = vrot.slane %v4846_v6, 5  ;;  %v8527_v15 = vld [vmem:[%s8618_s14 + $0x1c0] sm:$0xf]  ;;  %v8528_v24 = vld [vmem:[%s8618_s14 + $0x1c4] sm:$0xf] }
 0x180   : > { %v4852_v54 = vrot.slane %v4850_v7, 4  ;;  %v4856_v51 = vshll.u32 %v7057_v44, 16  ;;  %v4860_v55 = vshrl.u32 %v7057_v44, 16  ;;  %v4825_v57 = vsel %vm8651_vm2, %v4820_v48, %v4824_v39 }
 0x181   : > { %7996 = vmatmul.mubr.bf16.gmra.mrb[72].mxu0 %v7132_v8  ;;  %v4830_v58 = vrot.slane %v4829_v49, 4  ;;  %v4843_v59 = vor.u32 %v4842_v50, %v4839_v47  ;;  %v6767_v62 = vcombine.low %v8523_v60, %v8524_v61  ;;  %v4866_v5 = vshll.u32 %v7058_v52, 16  ;;  %v7065_v47 = vld [vmem:[%s8618_s14 + $0x1d8] sm:$0xf] }
 0x182   : > { %v4853_v63 = vor.u32 %v4852_v54, %v4848_v53  ;;  %v4858_v0 = vrot.slane %v4856_v51, 5  ;;  %v4862_v4 = vrot.slane %v4860_v55, 4  ;;  %v4871_v10 = vshrl.u32 %v7059_v56, 16  ;;  %v7066_v51 = vld [vmem:[%s8618_s14 + $0x1dc] sm:$0x1] }
 0x183   : > { %v4835_v1 = vsel %vm8651_vm2, %v4830_v58, %v4834_v43  ;;  %v4844_v9 = vrot.slane %v4843_v59, 4  ;;  %7779 = vmatprep.mubr.bf16.mxu1 %v6767_v62  ;;  %v4874_v11 = vshll.u32 %v7059_v56, 16  ;;  %v4868_v26 = vrot.slane %v4866_v5, 5  ;;  %v7067_v59 = vld [vmem:[%s8618_s14 + $0x1e0] sm:$0xf] }
 0x184   : > { %v7133_v17 = vcombine.low %v4825_v57, %v4835_v1  ;;  %v4854_v18 = vrot.slane %v4853_v63, 4  ;;  %v4863_v19 = vor.u32 %v4862_v4, %v4858_v0  ;;  %v4873_v28 = vrot.slane %v4871_v10, 4  ;;  %v8529_v63 = vld [vmem:[%s8618_s14 + $0x1c8] sm:$0xf]  ;;  %v7068_v1 = vld [vmem:[%s8618_s14 + $0x1e4] sm:$0xf] }
 0x185   : > { %v4849_v27 = vsel %vm8651_vm2, %v4844_v9, %v4848_v53  ;;  %v4876_v20 = vrot.slane %v4874_v11, 5  ;;  %v4880_v21 = vshll.u32 %v7060_v3, 16  ;;  %v4884_v12 = vshrl.u32 %v7060_v3, 16 }
 0x186   : > { %7999 = vmatprep.mubr.bf16.mxu0 %v7133_v17  ;;  %v4859_v23 = vsel %vm8651_vm2, %v4854_v18, %v4858_v0  ;;  %v4864_v25 = vrot.slane %v4863_v19, 4  ;;  %v6768_v29 = vcombine.low %v8525_v13, %v8526_v16  ;;  %v4890_v35 = vshll.u32 %v7061_v2, 16  ;;  %v8530_v0 = vld [vmem:[%s8618_s14 + $0x1d0] sm:$0xf] }
 0x187   : > { %v7134_v31 = vcombine.low %v4849_v27, %v4859_v23  ;;  %v4877_v32 = vor.u32 %v4876_v20, %v4873_v28  ;;  %v4882_v33 = vrot.slane %v4880_v21, 5  ;;  %v4886_v37 = vrot.slane %v4884_v12, 4  ;;  %v7069_v20 = vld [vmem:[%s8618_s14 + $0x1e8] sm:$0xf]  ;;  %v7070_v12 = vld [vmem:[%s8618_s14 + $0x1ec] sm:$0x1] }
 0x188   : > { %v4869_v36 = vsel %vm8651_vm2, %v4864_v25, %v4868_v26  ;;  %7780 = vmatmul.mubr.bf16.gmra.mrb[80].mxu1 %v6768_v29  ;;  %v4894_v38 = vshrl.u32 %v7061_v2, 16  ;;  %v4900_v39 = vshll.u32 %v7062_v22, 16  ;;  %v4892_v14 = vrot.slane %v4890_v35, 5 }
 0x189   : > { %8000 = vmatmul.mubr.bf16.gmra.mrb[76].mxu0 %v7134_v31  ;;  %v4878_v34 = vrot.slane %v4877_v32, 4  ;;  %v6769_v42 = vcombine.low %v8527_v15, %v8528_v24  ;;  %v4905_v43 = vshrl.u32 %v7063_v30, 16  ;;  %v4887_v44 = vor.u32 %v4886_v37, %v4882_v33  ;;  %v8532_v31 = vld [vmem:[%s8618_s14 + $0x1d8] sm:$0xf]  ;;  %v7072_v15 = vld [vmem:[%s8618_s14 + $0x1f4] sm:$0xf] }
 0x18a   : > { %v4896_v45 = vrot.slane %v4894_v38, 4  ;;  %v4902_v46 = vrot.slane %v4900_v39, 5  ;;  %v4908_v6 = vshll.u32 %v7063_v30, 16  ;;  %v4914_v48 = vshll.u32 %v7064_v40, 16  ;;  %v8531_v30 = vld [vmem:[%s8618_s14 + $0x1d4] sm:$0xf] }
 0x18b   : > { %v4883_v7 = vsel %vm8651_vm2, %v4878_v34, %v4882_v33  ;;  %7783 = vmatprep.mubr.bf16.mxu1 %v6769_v42  ;;  %v4907_v8 = vrot.slane %v4905_v43, 4  ;;  %v4918_v49 = vshrl.u32 %v7064_v40, 16  ;;  %v4888_v52 = vrot.slane %v4887_v44, 4  ;;  %v7071_v33 = vld [vmem:[%s8618_s14 + $0x1f0] sm:$0xf] }
 0x18c   : > { %v7135_v50 = vcombine.low %v4869_v36, %v4883_v7  ;;  %v4897_v53 = vor.u32 %v4896_v45, %v4892_v14  ;;  %v4910_v54 = vrot.slane %v4908_v6, 5  ;;  %v4916_v55 = vrot.slane %v4914_v48, 5  ;;  %v8533_v43 = vld [vmem:[%s8618_s14 + $0x1e0] sm:$0xf]  ;;  %v8534_v44 = vld [vmem:[%s8618_s14 + $0x1e4] sm:$0xf] }
 0x18d   : > { %v4920_v56 = vrot.slane %v4918_v49, 4  ;;  %v4924_v57 = vshll.u32 %v7065_v47, 16  ;;  %v4928_v58 = vshrl.u32 %v7065_v47, 16  ;;  %v4893_v60 = vsel %vm8651_vm2, %v4888_v52, %v4892_v14 }
 0x18e   : > { %8003 = vmatprep.mubr.bf16.mxu0 %v7135_v50  ;;  %v4898_v61 = vrot.slane %v4897_v53, 4  ;;  %v4911_v62 = vor.u32 %v4910_v54, %v4907_v8  ;;  %v6770_v3 = vcombine.low %v8529_v63, %v8530_v0  ;;  %v4934_v10 = vshll.u32 %v7066_v51, 16  ;;  %v7073_v8 = vld [vmem:[%s8618_s14 + $0x1f8] sm:$0xf] }
 0x18f   : > { %v4921_v4 = vor.u32 %v4920_v56, %v4916_v55  ;;  %v4926_v5 = vrot.slane %v4924_v57, 5  ;;  %v4930_v9 = vrot.slane %v4928_v58, 4  ;;  %v4939_v18 = vshrl.u32 %v7067_v59, 16  ;;  %v7074_v57 = vld [vmem:[%s8618_s14 + $0x1fc] sm:$0x1] }
 0x190   : > { %v4903_v11 = vsel %vm8651_vm2, %v4898_v61, %v4902_v46  ;;  %v4912_v17 = vrot.slane %v4911_v62, 4  ;;  %7784 = vmatmul.mubr.bf16.gmra.mrb[84].mxu1 %v6770_v3  ;;  %v4942_v19 = vshll.u32 %v7067_v59, 16  ;;  %v4936_v28 = vrot.slane %v4934_v10, 5  ;;  %v7075_v62 = vld [vmem:[%s8618_s14 + $0x200] sm:$0xf] }
 0x191   : > { %v7136_v26 = vcombine.low %v4893_v60, %v4903_v11  ;;  %v4922_v2 = vrot.slane %v4921_v4, 4  ;;  %v4931_v27 = vor.u32 %v4930_v9, %v4926_v5  ;;  %v4941_v22 = vrot.slane %v4939_v18, 4  ;;  %v8535_v4 = vld [vmem:[%s8618_s14 + $0x1e8] sm:$0xf]  ;;  %v7076_v11 = vld [vmem:[%s8618_s14 + $0x204] sm:$0xf] }
 0x192   : > { %v4917_v21 = vsel %vm8651_vm2, %v4912_v17, %v4916_v55  ;;  %v4944_v23 = vrot.slane %v4942_v19, 5  ;;  %v4948_v25 = vshll.u32 %v7068_v1, 16  ;;  %v4952_v29 = vshrl.u32 %v7068_v1, 16 }
 0x193   : > { %8004 = vmatmul.mubr.bf16.gmra.mrb[80].mxu0 %v7136_v26  ;;  %v4927_v13 = vsel %vm8651_vm2, %v4922_v2, %v4926_v5  ;;  %v4932_v16 = vrot.slane %v4931_v27, 4  ;;  %v6771_v32 = vcombine.low %v8531_v30, %v8532_v31  ;;  %v4958_v38 = vshll.u32 %v7069_v20, 16  ;;  %v8536_v5 = vld [vmem:[%s8618_s14 + $0x1f0] sm:$0xf] }
 0x194   : > { %v7137_v35 = vcombine.low %v4917_v21, %v4927_v13  ;;  %v4945_v36 = vor.u32 %v4944_v23, %v4941_v22  ;;  %v4950_v37 = vrot.slane %v4948_v25, 5  ;;  %v4954_v40 = vrot.slane %v4952_v29, 4  ;;  %v7077_v23 = vld [vmem:[%s8618_s14 + $0x208] sm:$0xf]  ;;  %v7078_v29 = vld [vmem:[%s8618_s14 + $0x20c] sm:$0x1] }
 0x195   : > { %v4937_v39 = vsel %vm8651_vm2, %v4932_v16, %v4936_v28  ;;  %7787 = vmatprep.mubr.bf16.mxu1 %v6771_v32  ;;  %v4962_v34 = vshrl.u32 %v7069_v20, 16  ;;  %v4968_v14 = vshll.u32 %v7070_v12, 16  ;;  %v4960_v42 = vrot.slane %v4958_v38, 5 }
 0x196   : > { %8007 = vmatprep.mubr.bf16.mxu0 %v7137_v35  ;;  %v4946_v24 = vrot.slane %v4945_v36, 4  ;;  %v6772_v45 = vcombine.low %v8533_v43, %v8534_v44  ;;  %v4973_v46 = vshrl.u32 %v7071_v33, 16  ;;  %v4955_v47 = vor.u32 %v4954_v40, %v4950_v37  ;;  %v8538_v35 = vld [vmem:[%s8618_s14 + $0x1f8] sm:$0xf] }
 0x197   : > { %v4964_v6 = vrot.slane %v4962_v34, 4  ;;  %v4970_v7 = vrot.slane %v4968_v14, 5  ;;  %v4976_v48 = vshll.u32 %v7071_v33, 16  ;;  %v4982_v52 = vshll.u32 %v7072_v15, 16  ;;  %v8537_v33 = vld [vmem:[%s8618_s14 + $0x1f4] sm:$0xf] }
 0x198   : > { %v4951_v49 = vsel %vm8651_vm2, %v4946_v24, %v4950_v37  ;;  %7788 = vmatmul.mubr.bf16.gmra.mrb[88].mxu1 %v6772_v45  ;;  %v4975_v50 = vrot.slane %v4973_v46, 4  ;;  %v4986_v53 = vshrl.u32 %v7072_v15, 16  ;;  %v4956_v51 = vrot.slane %v4955_v47, 4 }
 0x199   : > { %v7138_v54 = vcombine.low %v4937_v39, %v4951_v49  ;;  %v4965_v55 = vor.u32 %v4964_v6, %v4960_v42  ;;  %v4978_v56 = vrot.slane %v4976_v48, 5  ;;  %v4984_v58 = vrot.slane %v4982_v52, 5 }
 0x19a   : > { %v4988_v59 = vrot.slane %v4986_v53, 4  ;;  %v4992_v60 = vshll.u32 %v7073_v8, 16  ;;  %v4996_v61 = vshrl.u32 %v7073_v8, 16  ;;  %v4961_v63 = vsel %vm8651_vm2, %v4956_v51, %v4960_v42  ;;  %v9529_v51 = vld [vmem:[%s9941_s2] ss:$0 sm:$0xff] }
 0x19b   : > { %8008 = vmatmul.mubr.bf16.gmra.mrb[84].mxu0 %v7138_v54  ;;  %v4966_v0 = vrot.slane %v4965_v55, 4  ;;  %v4979_v3 = vor.u32 %v4978_v56, %v4975_v50  ;;  %v6773_v1 = vcombine.low %v8535_v4, %v8536_v5  ;;  %v5002_v18 = vshll.u32 %v7074_v57, 16 }
 0x19c   : > { %v4989_v9 = vor.u32 %v4988_v59, %v4984_v58  ;;  %v4994_v10 = vrot.slane %v4992_v60, 5  ;;  %v4998_v17 = vrot.slane %v4996_v61, 4  ;;  %v5007_v2 = vshrl.u32 %v7075_v62, 16  ;;  %v9534_v59 = vld [vmem:[%s9942_s3] ss:$0 sm:$0xff] }
 0x19d   : > { %v4971_v19 = vsel %vm8651_vm2, %v4966_v0, %v4970_v7  ;;  %v4980_v26 = vrot.slane %v4979_v3, 4  ;;  %7791 = vmatprep.mubr.bf16.mxu1 %v6773_v1  ;;  %v5010_v27 = vshll.u32 %v7075_v62, 16  ;;  %v5004_v22 = vrot.slane %v5002_v18, 5 }
 0x19e   : > { %v7139_v28 = vcombine.low %v4961_v63, %v4971_v19  ;;  %v4990_v20 = vrot.slane %v4989_v9, 4  ;;  %v4999_v21 = vor.u32 %v4998_v17, %v4994_v10  ;;  %v5009_v12 = vrot.slane %v5007_v2, 4 }
 0x19f   : > { %v4985_v25 = vsel %vm8651_vm2, %v4980_v26, %v4984_v58  ;;  %v5012_v13 = vrot.slane %v5010_v27, 5  ;;  %v5016_v16 = vshll.u32 %v7076_v11, 16  ;;  %v5020_v32 = vshrl.u32 %v7076_v11, 16 }
 0x1a0   : > { %8011 = vmatprep.mubr.bf16.mxu0 %v7139_v28  ;;  %v4995_v30 = vsel %vm8651_vm2, %v4990_v20, %v4994_v10  ;;  %v5000_v31 = vrot.slane %v4999_v21, 4  ;;  %v6774_v36 = vcombine.low %v8537_v33, %v8538_v35  ;;  %v5026_v40 = vshll.u32 %v7077_v23, 16 }
 0x1a1   : > { %v7140_v37 = vcombine.low %v4985_v25, %v4995_v30  ;;  %v5013_v38 = vor.u32 %v5012_v13, %v5009_v12  ;;  %v5018_v39 = vrot.slane %v5016_v16, 5  ;;  %v5022_v34 = vrot.slane %v5020_v32, 4 }
 0x1a2   : > { %7792 = vmatmul.mubr.bf16.gmra.mrb[92].mxu1 %v6774_v36  ;;  %v5030_v14 = vshrl.u32 %v7077_v23, 16  ;;  %v5036_v15 = vshll.u32 %v7078_v29, 16  ;;  %v5005_v24 = vsel %vm8651_vm2, %v5000_v31, %v5004_v22  ;;  %v5028_v43 = vrot.slane %v5026_v40, 5 }
 0x1a3   : > { %8012 = vmatmul.mubr.bf16.gmra.mrb[88].mxu0 %v7140_v37  ;;  %v5014_v42 = vrot.slane %v5013_v38, 4  ;;  %v5023_v44 = vor.u32 %v5022_v34, %v5018_v39 }
 0x1a4   : > { %v5032_v45 = vrot.slane %v5030_v14, 4  ;;  %v5038_v8 = vrot.slane %v5036_v15, 5 }
 0x1a5   : > { %v5019_v46 = vsel %vm8651_vm2, %v5014_v42, %v5018_v39  ;;  %v5024_v6 = vrot.slane %v5023_v44, 4 }
 0x1a6   : > { %v7141_v47 = vcombine.low %v5005_v24, %v5019_v46  ;;  %v5033_v7 = vor.u32 %v5032_v45, %v5028_v43 }
 0x1a7   : > { %v5029_v48 = vsel %vm8651_vm2, %v5024_v6, %v5028_v43 }
 0x1a8   : > { %8015 = vmatprep.mubr.bf16.mxu0 %v7141_v47  ;;  %v5034_v49 = vrot.slane %v5033_v7, 4 }
 0x1aa   : > { %v5039_v50 = vsel %vm8651_vm2, %v5034_v49, %v5038_v8 }
 0x1ab   : > { %v7142_v52 = vcombine.low %v5029_v48, %v5039_v50 }
 0x1ad   : > { %8016 = vmatmul.mubr.bf16.gmra.mrb[92].mxu0 %v7142_v52 }
 0x1b9   : > { %v7701_v53 = vpop.f32.mrb[0].mxu1 }
 0x1ba   : > { %v7925_v54 = vpop.f32.mrb[0].mxu0  ;;  %v2478_v55 = vpop.f32.mrb[1].mxu1 }
 0x1bb   : > { %v8019_v56 = vadd.f32 %v7925_v54, %v7701_v53  ;;  %v5331_v57 = vpop.f32.mrb[1].mxu0  ;;  %v7702_v58 = vpop.f32.mrb[2].mxu1 }
 0x1bc   : > { %v8020_v41 = vadd.f32 %v5331_v57, %v2478_v55  ;;  %v7926_v60 = vpop.f32.mrb[2].mxu0  ;;  %v2481_v61 = vpop.f32.mrb[3].mxu1 }
 0x1bd   : > { %v5819_v62 = vmul.f32 %v8019_v56, %v9529_v51  ;;  %v8021_v63 = vadd.f32 %v7926_v60, %v7702_v58  ;;  %v5334_v0 = vpop.f32.mrb[3].mxu0 }
 0x1be   : > { %v5817_v3 = vmul.f32 %v8020_v41, %v9529_v51  ;;  %v8022_v4 = vadd.f32 %v5334_v0, %v2481_v61 }
 0x1bf   : > { %v5922_v5 = vadd.f32 %v9534_v59, %v5819_v62  ;;  %v5820_v1 = vmul.f32 %v8021_v63, %v9529_v51 }
 0x1c0   : > { %v5920_v9 = vadd.f32 %v9534_v59, %v5817_v3  ;;  %v5818_v10 = vmul.f32 %v8022_v4, %v9529_v51 }
 0x1c1   : > { %v6018_v11 = vmax.f32 %v5922_v5, 0.0  ;;  %v5923_v17 = vadd.f32 %v9534_v59, %v5820_v1  ;;  %v7705_v18 = vpop.f32.mrb[4].mxu1 }
 0x1c2   : > { %v6016_v19 = vmax.f32 %v5920_v9, 0.0  ;;  %v5921_v26 = vadd.f32 %v9534_v59, %v5818_v10  ;;  %v7929_v2 = vpop.f32.mrb[4].mxu0  ;;  %v2494_v27 = vpop.f32.mrb[5].mxu1 }
 0x1c3   : > { %v7253_v28 = vpack.c.bf16 %v6018_v11, %v6018_v11  ;;  %v6019_v20 = vmax.f32 %v5923_v17, 0.0  ;;  %v8023_v21 = vadd.f32 %v7929_v2, %v7705_v18  ;;  %v5347_v22 = vpop.f32.mrb[5].mxu0  ;;  %v7706_v23 = vpop.f32.mrb[6].mxu1 }
 0x1c4   : > { %v7251_v25 = vpack.c.bf16 %v6016_v19, %v6016_v19  ;;  %v6017_v12 = vmax.f32 %v5921_v26, 0.0  ;;  %v8024_v13 = vadd.f32 %v5347_v22, %v2494_v27  ;;  %v7930_v16 = vpop.f32.mrb[6].mxu0  ;;  %v2497_v29 = vpop.f32.mrb[7].mxu1 }
 0x1c5   : > { %6499 = vst.msk [vmem:[%s9547_s21 + $0x8] sm:$0xf] %vm6496_vm3, %v7253_v28  ;;  %v7254_v30 = vpack.c.bf16 %v6019_v20, %v6019_v20  ;;  %v5823_v31 = vmul.f32 %v8023_v21, %v9529_v51  ;;  %v8025_v32 = vadd.f32 %v7930_v16, %v7706_v23  ;;  %v5350_v33 = vpop.f32.mrb[7].mxu0 }
 0x1c6   : > { %6497 = vst.msk [vmem:[%s9547_s21] sm:$0xf] %vm6496_vm3, %v7251_v25  ;;  %v7252_v35 = vpack.c.bf16 %v6017_v12, %v6017_v12  ;;  %v5821_v36 = vmul.f32 %v8024_v13, %v9529_v51  ;;  %v8026_v37 = vadd.f32 %v5350_v33, %v2497_v29 }
 0x1c7   : > { %6500 = vst.msk [vmem:[%s9547_s21 + $0xc] sm:$0xf] %vm6496_vm3, %v7254_v30  ;;  %v5926_v38 = vadd.f32 %v9534_v59, %v5823_v31  ;;  %v5824_v39 = vmul.f32 %v8025_v32, %v9529_v51 }
 0x1c8   : > { %6498 = vst.msk [vmem:[%s9547_s21 + $0x4] sm:$0xf] %vm6496_vm3, %v7252_v35  ;;  %v5924_v40 = vadd.f32 %v9534_v59, %v5821_v36  ;;  %v5822_v34 = vmul.f32 %v8026_v37, %v9529_v51 }
 0x1c9   : > { %v6022_v14 = vmax.f32 %v5926_v38, 0.0  ;;  %v5927_v15 = vadd.f32 %v9534_v59, %v5824_v39  ;;  %v7709_v24 = vpop.f32.mrb[8].mxu1 }
 0x1ca   : > { %v6020_v42 = vmax.f32 %v5924_v40, 0.0  ;;  %v5925_v43 = vadd.f32 %v9534_v59, %v5822_v34  ;;  %v7933_v44 = vpop.f32.mrb[8].mxu0  ;;  %v2510_v45 = vpop.f32.mrb[9].mxu1 }
 0x1cb   : > { %v7257_v46 = vpack.c.bf16 %v6022_v14, %v6022_v14  ;;  %v6023_v47 = vmax.f32 %v5927_v15, 0.0  ;;  %v8027_v6 = vadd.f32 %v7933_v44, %v7709_v24  ;;  %v5363_v7 = vpop.f32.mrb[9].mxu0  ;;  %v7710_v8 = vpop.f32.mrb[10].mxu1 }
 0x1cc   : > { %v7255_v48 = vpack.c.bf16 %v6020_v42, %v6020_v42  ;;  %v6021_v49 = vmax.f32 %v5925_v43, 0.0  ;;  %v8028_v50 = vadd.f32 %v5363_v7, %v2510_v45  ;;  %v7934_v52 = vpop.f32.mrb[10].mxu0  ;;  %v2513_v53 = vpop.f32.mrb[11].mxu1 }
 0x1cd   : > { %6503 = vst.msk [vmem:[%s9547_s21 + $0x18] sm:$0xf] %vm6496_vm3, %v7257_v46  ;;  %v7258_v54 = vpack.c.bf16 %v6023_v47, %v6023_v47  ;;  %v5827_v55 = vmul.f32 %v8027_v6, %v9529_v51  ;;  %v8029_v56 = vadd.f32 %v7934_v52, %v7710_v8  ;;  %v5366_v57 = vpop.f32.mrb[11].mxu0 }
 0x1ce   : > { %6501 = vst.msk [vmem:[%s9547_s21 + $0x10] sm:$0xf] %vm6496_vm3, %v7255_v48  ;;  %v7256_v58 = vpack.c.bf16 %v6021_v49, %v6021_v49  ;;  %v5825_v41 = vmul.f32 %v8028_v50, %v9529_v51  ;;  %v8030_v60 = vadd.f32 %v5366_v57, %v2513_v53 }
 0x1cf   : > { %6504 = vst.msk [vmem:[%s9547_s21 + $0x1c] sm:$0xf] %vm6496_vm3, %v7258_v54  ;;  %v5930_v61 = vadd.f32 %v9534_v59, %v5827_v55  ;;  %v5828_v62 = vmul.f32 %v8029_v56, %v9529_v51 }
 0x1d0   : > { %6502 = vst.msk [vmem:[%s9547_s21 + $0x14] sm:$0xf] %vm6496_vm3, %v7256_v58  ;;  %v5928_v63 = vadd.f32 %v9534_v59, %v5825_v41  ;;  %v5826_v0 = vmul.f32 %v8030_v60, %v9529_v51 }
 0x1d1   : > { %v6026_v3 = vmax.f32 %v5930_v61, 0.0  ;;  %v5931_v4 = vadd.f32 %v9534_v59, %v5828_v62  ;;  %v7713_v5 = vpop.f32.mrb[12].mxu1 }
 0x1d2   : > { %v6024_v1 = vmax.f32 %v5928_v63, 0.0  ;;  %v5929_v9 = vadd.f32 %v9534_v59, %v5826_v0  ;;  %v7937_v10 = vpop.f32.mrb[12].mxu0  ;;  %v2526_v11 = vpop.f32.mrb[13].mxu1 }
 0x1d3   : > { %v7261_v17 = vpack.c.bf16 %v6026_v3, %v6026_v3  ;;  %v6027_v18 = vmax.f32 %v5931_v4, 0.0  ;;  %v8031_v19 = vadd.f32 %v7937_v10, %v7713_v5  ;;  %v5379_v26 = vpop.f32.mrb[13].mxu0  ;;  %v7714_v2 = vpop.f32.mrb[14].mxu1 }
 0x1d4   : > { %v7259_v27 = vpack.c.bf16 %v6024_v1, %v6024_v1  ;;  %v6025_v28 = vmax.f32 %v5929_v9, 0.0  ;;  %v8032_v20 = vadd.f32 %v5379_v26, %v2526_v11  ;;  %v7938_v21 = vpop.f32.mrb[14].mxu0  ;;  %v2529_v22 = vpop.f32.mrb[15].mxu1 }
 0x1d5   : > { %6507 = vst.msk [vmem:[%s9547_s21 + $0x28] sm:$0xf] %vm6496_vm3, %v7261_v17  ;;  %v7262_v23 = vpack.c.bf16 %v6027_v18, %v6027_v18  ;;  %v5831_v25 = vmul.f32 %v8031_v19, %v9529_v51  ;;  %v8033_v12 = vadd.f32 %v7938_v21, %v7714_v2  ;;  %v5382_v13 = vpop.f32.mrb[15].mxu0 }
 0x1d6   : > { %6505 = vst.msk [vmem:[%s9547_s21 + $0x20] sm:$0xf] %vm6496_vm3, %v7259_v27  ;;  %v7260_v16 = vpack.c.bf16 %v6025_v28, %v6025_v28  ;;  %v5829_v29 = vmul.f32 %v8032_v20, %v9529_v51  ;;  %v8034_v30 = vadd.f32 %v5382_v13, %v2529_v22 }
 0x1d7   : > { %6508 = vst.msk [vmem:[%s9547_s21 + $0x2c] sm:$0xf] %vm6496_vm3, %v7262_v23  ;;  %v5934_v31 = vadd.f32 %v9534_v59, %v5831_v25  ;;  %v5832_v32 = vmul.f32 %v8033_v12, %v9529_v51 }
 0x1d8   : > { %6506 = vst.msk [vmem:[%s9547_s21 + $0x24] sm:$0xf] %vm6496_vm3, %v7260_v16  ;;  %v5932_v33 = vadd.f32 %v9534_v59, %v5829_v29  ;;  %v5830_v35 = vmul.f32 %v8034_v30, %v9529_v51 }
 0x1d9   : > { %v6030_v36 = vmax.f32 %v5934_v31, 0.0  ;;  %v5935_v37 = vadd.f32 %v9534_v59, %v5832_v32  ;;  %v7717_v38 = vpop.f32.mrb[16].mxu1 }
 0x1da   : > { %v6028_v39 = vmax.f32 %v5932_v33, 0.0  ;;  %v5933_v40 = vadd.f32 %v9534_v59, %v5830_v35  ;;  %v7941_v34 = vpop.f32.mrb[16].mxu0  ;;  %v2542_v14 = vpop.f32.mrb[17].mxu1 }
 0x1db   : > { %v7265_v15 = vpack.c.bf16 %v6030_v36, %v6030_v36  ;;  %v6031_v24 = vmax.f32 %v5935_v37, 0.0  ;;  %v8035_v42 = vadd.f32 %v7941_v34, %v7717_v38  ;;  %v5395_v43 = vpop.f32.mrb[17].mxu0  ;;  %v7718_v44 = vpop.f32.mrb[18].mxu1 }
 0x1dc   : > { %v7263_v45 = vpack.c.bf16 %v6028_v39, %v6028_v39  ;;  %v6029_v46 = vmax.f32 %v5933_v40, 0.0  ;;  %v8036_v47 = vadd.f32 %v5395_v43, %v2542_v14  ;;  %v7942_v6 = vpop.f32.mrb[18].mxu0  ;;  %v2545_v7 = vpop.f32.mrb[19].mxu1 }
 0x1dd   : > { %6511 = vst.msk [vmem:[%s9547_s21 + $0x38] sm:$0xf] %vm6496_vm3, %v7265_v15  ;;  %v7266_v8 = vpack.c.bf16 %v6031_v24, %v6031_v24  ;;  %v5835_v48 = vmul.f32 %v8035_v42, %v9529_v51  ;;  %v8037_v49 = vadd.f32 %v7942_v6, %v7718_v44  ;;  %v5398_v50 = vpop.f32.mrb[19].mxu0 }
 0x1de   : > { %6509 = vst.msk [vmem:[%s9547_s21 + $0x30] sm:$0xf] %vm6496_vm3, %v7263_v45  ;;  %v7264_v52 = vpack.c.bf16 %v6029_v46, %v6029_v46  ;;  %v5833_v53 = vmul.f32 %v8036_v47, %v9529_v51  ;;  %v8038_v54 = vadd.f32 %v5398_v50, %v2545_v7 }
 0x1df   : > { %6512 = vst.msk [vmem:[%s9547_s21 + $0x3c] sm:$0xf] %vm6496_vm3, %v7266_v8  ;;  %v5938_v55 = vadd.f32 %v9534_v59, %v5835_v48  ;;  %v5836_v56 = vmul.f32 %v8037_v49, %v9529_v51 }
 0x1e0   : > { %6510 = vst.msk [vmem:[%s9547_s21 + $0x34] sm:$0xf] %vm6496_vm3, %v7264_v52  ;;  %v5936_v57 = vadd.f32 %v9534_v59, %v5833_v53  ;;  %v5834_v58 = vmul.f32 %v8038_v54, %v9529_v51 }
 0x1e1   : > { %v6034_v41 = vmax.f32 %v5938_v55, 0.0  ;;  %v5939_v60 = vadd.f32 %v9534_v59, %v5836_v56  ;;  %v7721_v61 = vpop.f32.mrb[20].mxu1 }
 0x1e2   : > { %v6032_v62 = vmax.f32 %v5936_v57, 0.0  ;;  %v5937_v63 = vadd.f32 %v9534_v59, %v5834_v58  ;;  %v2558_v0 = vpop.f32.mrb[21].mxu1 }
 0x1e3   : > { %v7269_v3 = vpack.c.bf16 %v6034_v41, %v6034_v41  ;;  %v6035_v4 = vmax.f32 %v5939_v60, 0.0  ;;  %v7722_v5 = vpop.f32.mrb[22].mxu1 }
 0x1e4   : > { %v7267_v1 = vpack.c.bf16 %v6032_v62, %v6032_v62  ;;  %v6033_v9 = vmax.f32 %v5937_v63, 0.0  ;;  %v7945_v10 = vpop.f32.mrb[20].mxu0  ;;  %v2561_v11 = vpop.f32.mrb[23].mxu1 }
 0x1e5   : > { %6515 = vst.msk [vmem:[%s9547_s21 + $0x48] sm:$0xf] %vm6496_vm3, %v7269_v3  ;;  %v7270_v17 = vpack.c.bf16 %v6035_v4, %v6035_v4  ;;  %v8039_v18 = vadd.f32 %v7945_v10, %v7721_v61  ;;  %v5411_v19 = vpop.f32.mrb[21].mxu0 }
 0x1e6   : > { %6513 = vst.msk [vmem:[%s9547_s21 + $0x40] sm:$0xf] %vm6496_vm3, %v7267_v1  ;;  %v7268_v26 = vpack.c.bf16 %v6033_v9, %v6033_v9  ;;  %v8040_v2 = vadd.f32 %v5411_v19, %v2558_v0  ;;  %v7946_v27 = vpop.f32.mrb[22].mxu0 }
 0x1e7   : > { %6516 = vst.msk [vmem:[%s9547_s21 + $0x4c] sm:$0xf] %vm6496_vm3, %v7270_v17  ;;  %v5839_v28 = vmul.f32 %v8039_v18, %v9529_v51  ;;  %v8041_v20 = vadd.f32 %v7946_v27, %v7722_v5  ;;  %v5414_v21 = vpop.f32.mrb[23].mxu0 }
 0x1e8   : > { %6514 = vst.msk [vmem:[%s9547_s21 + $0x44] sm:$0xf] %vm6496_vm3, %v7268_v26  ;;  %v5837_v22 = vmul.f32 %v8040_v2, %v9529_v51  ;;  %v8042_v23 = vadd.f32 %v5414_v21, %v2561_v11 }
 0x1e9   : > { %v5942_v25 = vadd.f32 %v9534_v59, %v5839_v28  ;;  %v5840_v12 = vmul.f32 %v8041_v20, %v9529_v51  ;;  %v7725_v13 = vpop.f32.mrb[24].mxu1 }
 0x1ea   : > { %v5940_v16 = vadd.f32 %v9534_v59, %v5837_v22  ;;  %v5838_v29 = vmul.f32 %v8042_v23, %v9529_v51  ;;  %v2574_v30 = vpop.f32.mrb[25].mxu1 }
 0x1eb   : > { %v6038_v31 = vmax.f32 %v5942_v25, 0.0  ;;  %v5943_v32 = vadd.f32 %v9534_v59, %v5840_v12  ;;  %v7726_v33 = vpop.f32.mrb[26].mxu1 }
 0x1ec   : > { %v6036_v35 = vmax.f32 %v5940_v16, 0.0  ;;  %v5941_v36 = vadd.f32 %v9534_v59, %v5838_v29  ;;  %v7949_v37 = vpop.f32.mrb[24].mxu0  ;;  %v2577_v38 = vpop.f32.mrb[27].mxu1 }
 0x1ed   : > { %v7273_v39 = vpack.c.bf16 %v6038_v31, %v6038_v31  ;;  %v6039_v40 = vmax.f32 %v5943_v32, 0.0  ;;  %v8043_v34 = vadd.f32 %v7949_v37, %v7725_v13  ;;  %v5427_v14 = vpop.f32.mrb[25].mxu0 }
 0x1ee   : > { %v7271_v15 = vpack.c.bf16 %v6036_v35, %v6036_v35  ;;  %v6037_v24 = vmax.f32 %v5941_v36, 0.0  ;;  %v8044_v42 = vadd.f32 %v5427_v14, %v2574_v30  ;;  %v7950_v43 = vpop.f32.mrb[26].mxu0 }
 0x1ef   : > { %6519 = vst.msk [vmem:[%s9547_s21 + $0x58] sm:$0xf] %vm6496_vm3, %v7273_v39  ;;  %v7274_v44 = vpack.c.bf16 %v6039_v40, %v6039_v40  ;;  %v5843_v45 = vmul.f32 %v8043_v34, %v9529_v51  ;;  %v8045_v46 = vadd.f32 %v7950_v43, %v7726_v33  ;;  %v5430_v47 = vpop.f32.mrb[27].mxu0 }
 0x1f0   : > { %6517 = vst.msk [vmem:[%s9547_s21 + $0x50] sm:$0xf] %vm6496_vm3, %v7271_v15  ;;  %v7272_v6 = vpack.c.bf16 %v6037_v24, %v6037_v24  ;;  %v5841_v7 = vmul.f32 %v8044_v42, %v9529_v51  ;;  %v8046_v8 = vadd.f32 %v5430_v47, %v2577_v38 }
 0x1f1   : > { %6520 = vst.msk [vmem:[%s9547_s21 + $0x5c] sm:$0xf] %vm6496_vm3, %v7274_v44  ;;  %v5946_v48 = vadd.f32 %v9534_v59, %v5843_v45  ;;  %v5844_v49 = vmul.f32 %v8045_v46, %v9529_v51  ;;  %v7729_v50 = vpop.f32.mrb[28].mxu1 }
 0x1f2   : > { %6518 = vst.msk [vmem:[%s9547_s21 + $0x54] sm:$0xf] %vm6496_vm3, %v7272_v6  ;;  %v5944_v52 = vadd.f32 %v9534_v59, %v5841_v7  ;;  %v5842_v53 = vmul.f32 %v8046_v8, %v9529_v51  ;;  %v2590_v54 = vpop.f32.mrb[29].mxu1 }
 0x1f3   : > { %v6042_v55 = vmax.f32 %v5946_v48, 0.0  ;;  %v5947_v56 = vadd.f32 %v9534_v59, %v5844_v49  ;;  %v7730_v57 = vpop.f32.mrb[30].mxu1 }
 0x1f4   : > { %v6040_v58 = vmax.f32 %v5944_v52, 0.0  ;;  %v5945_v41 = vadd.f32 %v9534_v59, %v5842_v53  ;;  %v7953_v60 = vpop.f32.mrb[28].mxu0  ;;  %v2593_v61 = vpop.f32.mrb[31].mxu1 }
 0x1f5   : > { %v7277_v62 = vpack.c.bf16 %v6042_v55, %v6042_v55  ;;  %v6043_v63 = vmax.f32 %v5947_v56, 0.0  ;;  %v8047_v0 = vadd.f32 %v7953_v60, %v7729_v50  ;;  %v5443_v3 = vpop.f32.mrb[29].mxu0 }
 0x1f6   : > { %v7275_v4 = vpack.c.bf16 %v6040_v58, %v6040_v58  ;;  %v6041_v5 = vmax.f32 %v5945_v41, 0.0  ;;  %v8048_v1 = vadd.f32 %v5443_v3, %v2590_v54  ;;  %v7954_v9 = vpop.f32.mrb[30].mxu0 }
 0x1f7   : > { %6523 = vst.msk [vmem:[%s9547_s21 + $0x68] sm:$0xf] %vm6496_vm3, %v7277_v62  ;;  %v7278_v10 = vpack.c.bf16 %v6043_v63, %v6043_v63  ;;  %v5847_v11 = vmul.f32 %v8047_v0, %v9529_v51  ;;  %v8049_v17 = vadd.f32 %v7954_v9, %v7730_v57  ;;  %v5446_v18 = vpop.f32.mrb[31].mxu0 }
 0x1f8   : > { %6521 = vst.msk [vmem:[%s9547_s21 + $0x60] sm:$0xf] %vm6496_vm3, %v7275_v4  ;;  %v7276_v19 = vpack.c.bf16 %v6041_v5, %v6041_v5  ;;  %v5845_v26 = vmul.f32 %v8048_v1, %v9529_v51  ;;  %v8050_v2 = vadd.f32 %v5446_v18, %v2593_v61 }
 0x1f9   : > { %6524 = vst.msk [vmem:[%s9547_s21 + $0x6c] sm:$0xf] %vm6496_vm3, %v7278_v10  ;;  %v5950_v27 = vadd.f32 %v9534_v59, %v5847_v11  ;;  %v5848_v28 = vmul.f32 %v8049_v17, %v9529_v51  ;;  %v7733_v20 = vpop.f32.mrb[32].mxu1 }
 0x1fa   : > { %6522 = vst.msk [vmem:[%s9547_s21 + $0x64] sm:$0xf] %vm6496_vm3, %v7276_v19  ;;  %v5948_v21 = vadd.f32 %v9534_v59, %v5845_v26  ;;  %v5846_v22 = vmul.f32 %v8050_v2, %v9529_v51  ;;  %v2606_v23 = vpop.f32.mrb[33].mxu1 }
 0x1fb   : > { %v6046_v25 = vmax.f32 %v5950_v27, 0.0  ;;  %v5951_v12 = vadd.f32 %v9534_v59, %v5848_v28  ;;  %v7734_v13 = vpop.f32.mrb[34].mxu1 }
 0x1fc   : > { %v6044_v16 = vmax.f32 %v5948_v21, 0.0  ;;  %v5949_v29 = vadd.f32 %v9534_v59, %v5846_v22  ;;  %v2609_v30 = vpop.f32.mrb[35].mxu1 }
 0x1fd   : > { %v7281_v31 = vpack.c.bf16 %v6046_v25, %v6046_v25  ;;  %v6047_v32 = vmax.f32 %v5951_v12, 0.0 }
 0x1fe   : > { %v7279_v33 = vpack.c.bf16 %v6044_v16, %v6044_v16  ;;  %v6045_v35 = vmax.f32 %v5949_v29, 0.0  ;;  %v7957_v36 = vpop.f32.mrb[32].mxu0 }
 0x1ff   : > { %6527 = vst.msk [vmem:[%s9547_s21 + $0x78] sm:$0xf] %vm6496_vm3, %v7281_v31  ;;  %v7282_v37 = vpack.c.bf16 %v6047_v32, %v6047_v32  ;;  %v8051_v38 = vadd.f32 %v7957_v36, %v7733_v20  ;;  %v5459_v39 = vpop.f32.mrb[33].mxu0 }
 0x200   : > { %6525 = vst.msk [vmem:[%s9547_s21 + $0x70] sm:$0xf] %vm6496_vm3, %v7279_v33  ;;  %v7280_v40 = vpack.c.bf16 %v6045_v35, %v6045_v35  ;;  %v8052_v34 = vadd.f32 %v5459_v39, %v2606_v23  ;;  %v7958_v14 = vpop.f32.mrb[34].mxu0 }
 0x201   : > { %6528 = vst.msk [vmem:[%s9547_s21 + $0x7c] sm:$0xf] %vm6496_vm3, %v7282_v37  ;;  %v5851_v15 = vmul.f32 %v8051_v38, %v9529_v51  ;;  %v8053_v24 = vadd.f32 %v7958_v14, %v7734_v13  ;;  %v5462_v42 = vpop.f32.mrb[35].mxu0  ;;  %v7737_v43 = vpop.f32.mrb[36].mxu1 }
 0x202   : > { %6526 = vst.msk [vmem:[%s9547_s21 + $0x74] sm:$0xf] %vm6496_vm3, %v7280_v40  ;;  %v5849_v44 = vmul.f32 %v8052_v34, %v9529_v51  ;;  %v8054_v45 = vadd.f32 %v5462_v42, %v2609_v30  ;;  %v2622_v46 = vpop.f32.mrb[37].mxu1 }
 0x203   : > { %v5954_v47 = vadd.f32 %v9534_v59, %v5851_v15  ;;  %v5852_v6 = vmul.f32 %v8053_v24, %v9529_v51  ;;  %v7738_v7 = vpop.f32.mrb[38].mxu1 }
 0x204   : > { %v5952_v8 = vadd.f32 %v9534_v59, %v5849_v44  ;;  %v5850_v48 = vmul.f32 %v8054_v45, %v9529_v51  ;;  %v2625_v49 = vpop.f32.mrb[39].mxu1 }
 0x205   : > { %v6050_v50 = vmax.f32 %v5954_v47, 0.0  ;;  %v5955_v52 = vadd.f32 %v9534_v59, %v5852_v6 }
 0x206   : > { %v6048_v53 = vmax.f32 %v5952_v8, 0.0  ;;  %v5953_v54 = vadd.f32 %v9534_v59, %v5850_v48  ;;  %v7961_v55 = vpop.f32.mrb[36].mxu0 }
 0x207   : > { %v7285_v56 = vpack.c.bf16 %v6050_v50, %v6050_v50  ;;  %v6051_v57 = vmax.f32 %v5955_v52, 0.0  ;;  %v8055_v58 = vadd.f32 %v7961_v55, %v7737_v43  ;;  %v5475_v41 = vpop.f32.mrb[37].mxu0 }
 0x208   : > { %v7283_v60 = vpack.c.bf16 %v6048_v53, %v6048_v53  ;;  %v6049_v61 = vmax.f32 %v5953_v54, 0.0  ;;  %v8056_v62 = vadd.f32 %v5475_v41, %v2622_v46  ;;  %v7962_v63 = vpop.f32.mrb[38].mxu0 }
 0x209   : > { %6531 = vst.msk [vmem:[%s9547_s21 + $0x88] sm:$0xf] %vm6496_vm3, %v7285_v56  ;;  %v7286_v0 = vpack.c.bf16 %v6051_v57, %v6051_v57  ;;  %v5855_v3 = vmul.f32 %v8055_v58, %v9529_v51  ;;  %v8057_v4 = vadd.f32 %v7962_v63, %v7738_v7  ;;  %v5478_v5 = vpop.f32.mrb[39].mxu0  ;;  %v7741_v1 = vpop.f32.mrb[40].mxu1 }
 0x20a   : > { %6529 = vst.msk [vmem:[%s9547_s21 + $0x80] sm:$0xf] %vm6496_vm3, %v7283_v60  ;;  %v7284_v9 = vpack.c.bf16 %v6049_v61, %v6049_v61  ;;  %v5853_v10 = vmul.f32 %v8056_v62, %v9529_v51  ;;  %v8058_v11 = vadd.f32 %v5478_v5, %v2625_v49  ;;  %v2638_v17 = vpop.f32.mrb[41].mxu1 }
 0x20b   : > { %6532 = vst.msk [vmem:[%s9547_s21 + $0x8c] sm:$0xf] %vm6496_vm3, %v7286_v0  ;;  %v5958_v18 = vadd.f32 %v9534_v59, %v5855_v3  ;;  %v5856_v19 = vmul.f32 %v8057_v4, %v9529_v51  ;;  %v7742_v26 = vpop.f32.mrb[42].mxu1 }
 0x20c   : > { %6530 = vst.msk [vmem:[%s9547_s21 + $0x84] sm:$0xf] %vm6496_vm3, %v7284_v9  ;;  %v5956_v2 = vadd.f32 %v9534_v59, %v5853_v10  ;;  %v5854_v27 = vmul.f32 %v8058_v11, %v9529_v51  ;;  %v2641_v28 = vpop.f32.mrb[43].mxu1 }
 0x20d   : > { %v6054_v20 = vmax.f32 %v5958_v18, 0.0  ;;  %v5959_v21 = vadd.f32 %v9534_v59, %v5856_v19 }
 0x20e   : > { %v6052_v22 = vmax.f32 %v5956_v2, 0.0  ;;  %v5957_v23 = vadd.f32 %v9534_v59, %v5854_v27  ;;  %v7965_v25 = vpop.f32.mrb[40].mxu0 }
 0x20f   : > { %v7289_v12 = vpack.c.bf16 %v6054_v20, %v6054_v20  ;;  %v6055_v13 = vmax.f32 %v5959_v21, 0.0  ;;  %v8059_v16 = vadd.f32 %v7965_v25, %v7741_v1  ;;  %v5491_v29 = vpop.f32.mrb[41].mxu0 }
 0x210   : > { %v7287_v30 = vpack.c.bf16 %v6052_v22, %v6052_v22  ;;  %v6053_v31 = vmax.f32 %v5957_v23, 0.0  ;;  %v8060_v32 = vadd.f32 %v5491_v29, %v2638_v17  ;;  %v7966_v33 = vpop.f32.mrb[42].mxu0 }
 0x211   : > { %6535 = vst.msk [vmem:[%s9547_s21 + $0x98] sm:$0xf] %vm6496_vm3, %v7289_v12  ;;  %v7290_v35 = vpack.c.bf16 %v6055_v13, %v6055_v13  ;;  %v5859_v36 = vmul.f32 %v8059_v16, %v9529_v51  ;;  %v8061_v37 = vadd.f32 %v7966_v33, %v7742_v26  ;;  %v5494_v38 = vpop.f32.mrb[43].mxu0  ;;  %v7745_v39 = vpop.f32.mrb[44].mxu1 }
 0x212   : > { %6533 = vst.msk [vmem:[%s9547_s21 + $0x90] sm:$0xf] %vm6496_vm3, %v7287_v30  ;;  %v7288_v40 = vpack.c.bf16 %v6053_v31, %v6053_v31  ;;  %v5857_v34 = vmul.f32 %v8060_v32, %v9529_v51  ;;  %v8062_v14 = vadd.f32 %v5494_v38, %v2641_v28  ;;  %v2654_v15 = vpop.f32.mrb[45].mxu1 }
 0x213   : > { %6536 = vst.msk [vmem:[%s9547_s21 + $0x9c] sm:$0xf] %vm6496_vm3, %v7290_v35  ;;  %v5962_v24 = vadd.f32 %v9534_v59, %v5859_v36  ;;  %v5860_v42 = vmul.f32 %v8061_v37, %v9529_v51  ;;  %v7746_v43 = vpop.f32.mrb[46].mxu1 }
 0x214   : > { %6534 = vst.msk [vmem:[%s9547_s21 + $0x94] sm:$0xf] %vm6496_vm3, %v7288_v40  ;;  %v5960_v44 = vadd.f32 %v9534_v59, %v5857_v34  ;;  %v5858_v45 = vmul.f32 %v8062_v14, %v9529_v51  ;;  %v2657_v46 = vpop.f32.mrb[47].mxu1 }
 0x215   : > { %v6058_v47 = vmax.f32 %v5962_v24, 0.0  ;;  %v5963_v6 = vadd.f32 %v9534_v59, %v5860_v42 }
 0x216   : > { %v6056_v7 = vmax.f32 %v5960_v44, 0.0  ;;  %v5961_v8 = vadd.f32 %v9534_v59, %v5858_v45 }
 0x217   : > { %v7293_v48 = vpack.c.bf16 %v6058_v47, %v6058_v47  ;;  %v6059_v49 = vmax.f32 %v5963_v6, 0.0 }
 0x218   : > { %v7291_v50 = vpack.c.bf16 %v6056_v7, %v6056_v7  ;;  %v6057_v52 = vmax.f32 %v5961_v8, 0.0  ;;  %v7969_v53 = vpop.f32.mrb[44].mxu0 }
 0x219   : > { %6539 = vst.msk [vmem:[%s9547_s21 + $0xa8] sm:$0xf] %vm6496_vm3, %v7293_v48  ;;  %v7294_v54 = vpack.c.bf16 %v6059_v49, %v6059_v49  ;;  %v8063_v55 = vadd.f32 %v7969_v53, %v7745_v39  ;;  %v5507_v56 = vpop.f32.mrb[45].mxu0  ;;  %v7749_v57 = vpop.f32.mrb[48].mxu1 }
 0x21a   : > { %6537 = vst.msk [vmem:[%s9547_s21 + $0xa0] sm:$0xf] %vm6496_vm3, %v7291_v50  ;;  %v7292_v58 = vpack.c.bf16 %v6057_v52, %v6057_v52  ;;  %v8064_v41 = vadd.f32 %v5507_v56, %v2654_v15  ;;  %v7970_v60 = vpop.f32.mrb[46].mxu0  ;;  %v2670_v61 = vpop.f32.mrb[49].mxu1 }
 0x21b   : > { %6540 = vst.msk [vmem:[%s9547_s21 + $0xac] sm:$0xf] %vm6496_vm3, %v7294_v54  ;;  %v5863_v62 = vmul.f32 %v8063_v55, %v9529_v51  ;;  %v8065_v63 = vadd.f32 %v7970_v60, %v7746_v43  ;;  %v5510_v0 = vpop.f32.mrb[47].mxu0  ;;  %v7750_v3 = vpop.f32.mrb[50].mxu1 }
 0x21c   : > { %6538 = vst.msk [vmem:[%s9547_s21 + $0xa4] sm:$0xf] %vm6496_vm3, %v7292_v58  ;;  %v5861_v4 = vmul.f32 %v8064_v41, %v9529_v51  ;;  %v8066_v5 = vadd.f32 %v5510_v0, %v2657_v46  ;;  %v2673_v1 = vpop.f32.mrb[51].mxu1 }
 0x21d   : > { %v5966_v9 = vadd.f32 %v9534_v59, %v5863_v62  ;;  %v5864_v10 = vmul.f32 %v8065_v63, %v9529_v51 }
 0x21e   : > { %v5964_v11 = vadd.f32 %v9534_v59, %v5861_v4  ;;  %v5862_v17 = vmul.f32 %v8066_v5, %v9529_v51 }
 0x21f   : > { %v6062_v18 = vmax.f32 %v5966_v9, 0.0  ;;  %v5967_v19 = vadd.f32 %v9534_v59, %v5864_v10 }
 0x220   : > { %v6060_v26 = vmax.f32 %v5964_v11, 0.0  ;;  %v5965_v2 = vadd.f32 %v9534_v59, %v5862_v17  ;;  %v7973_v27 = vpop.f32.mrb[48].mxu0 }
 0x221   : > { %v7297_v28 = vpack.c.bf16 %v6062_v18, %v6062_v18  ;;  %v6063_v20 = vmax.f32 %v5967_v19, 0.0  ;;  %v8067_v21 = vadd.f32 %v7973_v27, %v7749_v57  ;;  %v5523_v22 = vpop.f32.mrb[49].mxu0  ;;  %v7753_v23 = vpop.f32.mrb[52].mxu1 }
 0x222   : > { %v7295_v25 = vpack.c.bf16 %v6060_v26, %v6060_v26  ;;  %v6061_v12 = vmax.f32 %v5965_v2, 0.0  ;;  %v8068_v13 = vadd.f32 %v5523_v22, %v2670_v61  ;;  %v7974_v16 = vpop.f32.mrb[50].mxu0  ;;  %v2686_v29 = vpop.f32.mrb[53].mxu1 }
 0x223   : > { %6543 = vst.msk [vmem:[%s9547_s21 + $0xb8] sm:$0xf] %vm6496_vm3, %v7297_v28  ;;  %v7298_v30 = vpack.c.bf16 %v6063_v20, %v6063_v20  ;;  %v5867_v31 = vmul.f32 %v8067_v21, %v9529_v51  ;;  %v8069_v32 = vadd.f32 %v7974_v16, %v7750_v3  ;;  %v5526_v33 = vpop.f32.mrb[51].mxu0  ;;  %v7754_v35 = vpop.f32.mrb[54].mxu1 }
 0x224   : > { %6541 = vst.msk [vmem:[%s9547_s21 + $0xb0] sm:$0xf] %vm6496_vm3, %v7295_v25  ;;  %v7296_v36 = vpack.c.bf16 %v6061_v12, %v6061_v12  ;;  %v5865_v37 = vmul.f32 %v8068_v13, %v9529_v51  ;;  %v8070_v38 = vadd.f32 %v5526_v33, %v2673_v1  ;;  %v2689_v39 = vpop.f32.mrb[55].mxu1 }
 0x225   : > { %6544 = vst.msk [vmem:[%s9547_s21 + $0xbc] sm:$0xf] %vm6496_vm3, %v7298_v30  ;;  %v5970_v40 = vadd.f32 %v9534_v59, %v5867_v31  ;;  %v5868_v34 = vmul.f32 %v8069_v32, %v9529_v51 }
 0x226   : > { %6542 = vst.msk [vmem:[%s9547_s21 + $0xb4] sm:$0xf] %vm6496_vm3, %v7296_v36  ;;  %v5968_v14 = vadd.f32 %v9534_v59, %v5865_v37  ;;  %v5866_v15 = vmul.f32 %v8070_v38, %v9529_v51 }
 0x227   : > { %v6066_v24 = vmax.f32 %v5970_v40, 0.0  ;;  %v5971_v42 = vadd.f32 %v9534_v59, %v5868_v34 }
 0x228   : > { %v6064_v43 = vmax.f32 %v5968_v14, 0.0  ;;  %v5969_v44 = vadd.f32 %v9534_v59, %v5866_v15  ;;  %v7977_v45 = vpop.f32.mrb[52].mxu0 }
 0x229   : > { %v7301_v46 = vpack.c.bf16 %v6066_v24, %v6066_v24  ;;  %v6067_v47 = vmax.f32 %v5971_v42, 0.0  ;;  %v8071_v6 = vadd.f32 %v7977_v45, %v7753_v23  ;;  %v5539_v7 = vpop.f32.mrb[53].mxu0  ;;  %v7757_v8 = vpop.f32.mrb[56].mxu1 }
 0x22a   : > { %v7299_v48 = vpack.c.bf16 %v6064_v43, %v6064_v43  ;;  %v6065_v49 = vmax.f32 %v5969_v44, 0.0  ;;  %v8072_v50 = vadd.f32 %v5539_v7, %v2686_v29  ;;  %v7978_v52 = vpop.f32.mrb[54].mxu0  ;;  %v2702_v53 = vpop.f32.mrb[57].mxu1 }
 0x22b   : > { %6547 = vst.msk [vmem:[%s9547_s21 + $0xc8] sm:$0xf] %vm6496_vm3, %v7301_v46  ;;  %v7302_v54 = vpack.c.bf16 %v6067_v47, %v6067_v47  ;;  %v5871_v55 = vmul.f32 %v8071_v6, %v9529_v51  ;;  %v8073_v56 = vadd.f32 %v7978_v52, %v7754_v35  ;;  %v5542_v57 = vpop.f32.mrb[55].mxu0  ;;  %v7758_v58 = vpop.f32.mrb[58].mxu1 }
 0x22c   : > { %6545 = vst.msk [vmem:[%s9547_s21 + $0xc0] sm:$0xf] %vm6496_vm3, %v7299_v48  ;;  %v7300_v41 = vpack.c.bf16 %v6065_v49, %v6065_v49  ;;  %v5869_v60 = vmul.f32 %v8072_v50, %v9529_v51  ;;  %v8074_v61 = vadd.f32 %v5542_v57, %v2689_v39  ;;  %v2705_v62 = vpop.f32.mrb[59].mxu1 }
 0x22d   : > { %6548 = vst.msk [vmem:[%s9547_s21 + $0xcc] sm:$0xf] %vm6496_vm3, %v7302_v54  ;;  %v5974_v63 = vadd.f32 %v9534_v59, %v5871_v55  ;;  %v5872_v0 = vmul.f32 %v8073_v56, %v9529_v51 }
 0x22e   : > { %6546 = vst.msk [vmem:[%s9547_s21 + $0xc4] sm:$0xf] %vm6496_vm3, %v7300_v41  ;;  %v5972_v3 = vadd.f32 %v9534_v59, %v5869_v60  ;;  %v5870_v4 = vmul.f32 %v8074_v61, %v9529_v51 }
 0x22f   : > { %v6070_v5 = vmax.f32 %v5974_v63, 0.0  ;;  %v5975_v1 = vadd.f32 %v9534_v59, %v5872_v0 }
 0x230   : > { %v6068_v9 = vmax.f32 %v5972_v3, 0.0  ;;  %v5973_v10 = vadd.f32 %v9534_v59, %v5870_v4 }
 0x231   : > { %v7305_v11 = vpack.c.bf16 %v6070_v5, %v6070_v5  ;;  %v6071_v17 = vmax.f32 %v5975_v1, 0.0  ;;  %v7761_v18 = vpop.f32.mrb[60].mxu1 }
 0x232   : > { %v7303_v19 = vpack.c.bf16 %v6068_v9, %v6068_v9  ;;  %v6069_v26 = vmax.f32 %v5973_v10, 0.0  ;;  %v7981_v2 = vpop.f32.mrb[56].mxu0  ;;  %v2718_v27 = vpop.f32.mrb[61].mxu1 }
 0x233   : > { %6551 = vst.msk [vmem:[%s9547_s21 + $0xd8] sm:$0xf] %vm6496_vm3, %v7305_v11  ;;  %v7306_v28 = vpack.c.bf16 %v6071_v17, %v6071_v17  ;;  %v8075_v20 = vadd.f32 %v7981_v2, %v7757_v8  ;;  %v5555_v21 = vpop.f32.mrb[57].mxu0  ;;  %v7762_v22 = vpop.f32.mrb[62].mxu1 }
 0x234   : > { %6549 = vst.msk [vmem:[%s9547_s21 + $0xd0] sm:$0xf] %vm6496_vm3, %v7303_v19  ;;  %v7304_v23 = vpack.c.bf16 %v6069_v26, %v6069_v26  ;;  %v8076_v25 = vadd.f32 %v5555_v21, %v2702_v53  ;;  %v7982_v12 = vpop.f32.mrb[58].mxu0  ;;  %v2721_v13 = vpop.f32.mrb[63].mxu1 }
 0x235   : > { %6552 = vst.msk [vmem:[%s9547_s21 + $0xdc] sm:$0xf] %vm6496_vm3, %v7306_v28  ;;  %v5875_v16 = vmul.f32 %v8075_v20, %v9529_v51  ;;  %v8077_v29 = vadd.f32 %v7982_v12, %v7758_v58  ;;  %v5558_v30 = vpop.f32.mrb[59].mxu0  ;;  %v9806_v12 = vld [vmem:[%s9942_s3] ss:$0 sm:$0xff] }
 0x236   : > { %6550 = vst.msk [vmem:[%s9547_s21 + $0xd4] sm:$0xf] %vm6496_vm3, %v7304_v23  ;;  %v5873_v31 = vmul.f32 %v8076_v25, %v9529_v51  ;;  %v8078_v32 = vadd.f32 %v5558_v30, %v2705_v62 }
 0x237   : > { %v5978_v33 = vadd.f32 %v9534_v59, %v5875_v16  ;;  %v5876_v35 = vmul.f32 %v8077_v29, %v9529_v51 }
 0x238   : > { %v5976_v36 = vadd.f32 %v9534_v59, %v5873_v31  ;;  %v5874_v37 = vmul.f32 %v8078_v32, %v9529_v51 }
 0x239   : > { %v6074_v38 = vmax.f32 %v5978_v33, 0.0  ;;  %v5979_v39 = vadd.f32 %v9534_v59, %v5876_v35  ;;  %v7765_v40 = vpop.f32.mrb[64].mxu1 }
 0x23a   : > { %v6072_v34 = vmax.f32 %v5976_v36, 0.0  ;;  %v5977_v14 = vadd.f32 %v9534_v59, %v5874_v37  ;;  %v7985_v15 = vpop.f32.mrb[60].mxu0  ;;  %v2734_v24 = vpop.f32.mrb[65].mxu1 }
 0x23b   : > { %v7309_v42 = vpack.c.bf16 %v6074_v38, %v6074_v38  ;;  %v6075_v43 = vmax.f32 %v5979_v39, 0.0  ;;  %v8079_v44 = vadd.f32 %v7985_v15, %v7761_v18  ;;  %v5571_v45 = vpop.f32.mrb[61].mxu0  ;;  %v7766_v46 = vpop.f32.mrb[66].mxu1 }
 0x23c   : > { %v7307_v47 = vpack.c.bf16 %v6072_v34, %v6072_v34  ;;  %v6073_v6 = vmax.f32 %v5977_v14, 0.0  ;;  %v8080_v7 = vadd.f32 %v5571_v45, %v2718_v27  ;;  %v7986_v8 = vpop.f32.mrb[62].mxu0  ;;  %v2737_v48 = vpop.f32.mrb[67].mxu1 }
 0x23d   : > { %6555 = vst.msk [vmem:[%s9547_s21 + $0xe8] sm:$0xf] %vm6496_vm3, %v7309_v42  ;;  %v7310_v49 = vpack.c.bf16 %v6075_v43, %v6075_v43  ;;  %v5879_v50 = vmul.f32 %v8079_v44, %v9529_v51  ;;  %v8081_v52 = vadd.f32 %v7986_v8, %v7762_v22  ;;  %v5574_v53 = vpop.f32.mrb[63].mxu0 }
 0x23e   : > { %6553 = vst.msk [vmem:[%s9547_s21 + $0xe0] sm:$0xf] %vm6496_vm3, %v7307_v47  ;;  %v7308_v54 = vpack.c.bf16 %v6073_v6, %v6073_v6  ;;  %v5877_v55 = vmul.f32 %v8080_v7, %v9529_v51  ;;  %v8082_v56 = vadd.f32 %v5574_v53, %v2721_v13 }
 0x23f   : > { %6556 = vst.msk [vmem:[%s9547_s21 + $0xec] sm:$0xf] %vm6496_vm3, %v7310_v49  ;;  %v5982_v57 = vadd.f32 %v9534_v59, %v5879_v50  ;;  %v5880_v58 = vmul.f32 %v8081_v52, %v9529_v51 }
 0x240   : > { %6554 = vst.msk [vmem:[%s9547_s21 + $0xe4] sm:$0xf] %vm6496_vm3, %v7308_v54  ;;  %v5980_v41 = vadd.f32 %v9534_v59, %v5877_v55  ;;  %v5878_v60 = vmul.f32 %v8082_v56, %v9529_v51 }
 0x241   : > { %v6078_v61 = vmax.f32 %v5982_v57, 0.0  ;;  %v5983_v62 = vadd.f32 %v9534_v59, %v5880_v58  ;;  %v7769_v63 = vpop.f32.mrb[68].mxu1 }
 0x242   : > { %v6076_v0 = vmax.f32 %v5980_v41, 0.0  ;;  %v5981_v3 = vadd.f32 %v9534_v59, %v5878_v60  ;;  %v7989_v4 = vpop.f32.mrb[64].mxu0  ;;  %v2750_v5 = vpop.f32.mrb[69].mxu1  ;;  %v9795_v59 = vld [vmem:[%s9941_s2] ss:$0 sm:$0xff] }
 0x243   : > { %v7313_v1 = vpack.c.bf16 %v6078_v61, %v6078_v61  ;;  %v6079_v9 = vmax.f32 %v5983_v62, 0.0  ;;  %v8083_v10 = vadd.f32 %v7989_v4, %v7765_v40  ;;  %v5587_v11 = vpop.f32.mrb[65].mxu0  ;;  %v7770_v17 = vpop.f32.mrb[70].mxu1 }
 0x244   : > { %v7311_v18 = vpack.c.bf16 %v6076_v0, %v6076_v0  ;;  %v6077_v19 = vmax.f32 %v5981_v3, 0.0  ;;  %v8084_v51 = vadd.f32 %v5587_v11, %v2734_v24  ;;  %v7990_v26 = vpop.f32.mrb[66].mxu0  ;;  %v2753_v2 = vpop.f32.mrb[71].mxu1 }
 0x245   : > { %6559 = vst.msk [vmem:[%s9547_s21 + $0xf8] sm:$0xf] %vm6496_vm3, %v7313_v1  ;;  %v7314_v27 = vpack.c.bf16 %v6079_v9, %v6079_v9  ;;  %v5883_v28 = vmul.f32 %v9795_v59, %v8083_v10  ;;  %v8085_v20 = vadd.f32 %v7990_v26, %v7766_v46  ;;  %v5590_v21 = vpop.f32.mrb[67].mxu0 }
 0x246   : > { %6557 = vst.msk [vmem:[%s9547_s21 + $0xf0] sm:$0xf] %vm6496_vm3, %v7311_v18  ;;  %v7312_v22 = vpack.c.bf16 %v6077_v19, %v6077_v19  ;;  %v5881_v23 = vmul.f32 %v9795_v59, %v8084_v51  ;;  %v8086_v25 = vadd.f32 %v5590_v21, %v2737_v48 }
 0x247   : > { %6560 = vst.msk [vmem:[%s9547_s21 + $0xfc] sm:$0xf] %vm6496_vm3, %v7314_v27  ;;  %v5986_v13 = vadd.f32 %v9806_v12, %v5883_v28  ;;  %v5884_v16 = vmul.f32 %v9795_v59, %v8085_v20 }
 0x248   : > { %6558 = vst.msk [vmem:[%s9547_s21 + $0xf4] sm:$0xf] %vm6496_vm3, %v7312_v22  ;;  %v5984_v29 = vadd.f32 %v9806_v12, %v5881_v23  ;;  %v5882_v30 = vmul.f32 %v9795_v59, %v8086_v25 }
 0x249   : > { %v6082_v31 = vmax.f32 %v5986_v13, 0.0  ;;  %v5987_v32 = vadd.f32 %v9806_v12, %v5884_v16  ;;  %v7773_v33 = vpop.f32.mrb[72].mxu1 }
 0x24a   : > { %v6080_v35 = vmax.f32 %v5984_v29, 0.0  ;;  %v5985_v36 = vadd.f32 %v9806_v12, %v5882_v30  ;;  %v2766_v37 = vpop.f32.mrb[73].mxu1 }
 0x24b   : > { %v7317_v38 = vpack.c.bf16 %v6082_v31, %v6082_v31  ;;  %v6083_v39 = vmax.f32 %v5987_v32, 0.0  ;;  %v7774_v40 = vpop.f32.mrb[74].mxu1 }
 0x24c   : > { %v7315_v34 = vpack.c.bf16 %v6080_v35, %v6080_v35  ;;  %v6081_v14 = vmax.f32 %v5985_v36, 0.0  ;;  %v7993_v15 = vpop.f32.mrb[68].mxu0  ;;  %v2769_v24 = vpop.f32.mrb[75].mxu1 }
 0x24d   : > { %6563 = vst.msk [vmem:[%s9547_s21 + $0x108] sm:$0xf] %vm6496_vm3, %v7317_v38  ;;  %v7318_v42 = vpack.c.bf16 %v6083_v39, %v6083_v39  ;;  %v8087_v43 = vadd.f32 %v7993_v15, %v7769_v63  ;;  %v5603_v44 = vpop.f32.mrb[69].mxu0 }
 0x24e   : > { %6561 = vst.msk [vmem:[%s9547_s21 + $0x100] sm:$0xf] %vm6496_vm3, %v7315_v34  ;;  %v7316_v45 = vpack.c.bf16 %v6081_v14, %v6081_v14  ;;  %v8088_v46 = vadd.f32 %v5603_v44, %v2750_v5  ;;  %v7994_v47 = vpop.f32.mrb[70].mxu0 }
 0x24f   : > { %6564 = vst.msk [vmem:[%s9547_s21 + $0x10c] sm:$0xf] %vm6496_vm3, %v7318_v42  ;;  %v5887_v6 = vmul.f32 %v9795_v59, %v8087_v43  ;;  %v8089_v7 = vadd.f32 %v7994_v47, %v7770_v17  ;;  %v5606_v8 = vpop.f32.mrb[71].mxu0 }
 0x250   : > { %6562 = vst.msk [vmem:[%s9547_s21 + $0x104] sm:$0xf] %vm6496_vm3, %v7316_v45  ;;  %v5885_v48 = vmul.f32 %v9795_v59, %v8088_v46  ;;  %v8090_v49 = vadd.f32 %v5606_v8, %v2753_v2 }
 0x251   : > { %v5990_v50 = vadd.f32 %v9806_v12, %v5887_v6  ;;  %v5888_v52 = vmul.f32 %v9795_v59, %v8089_v7  ;;  %v7777_v53 = vpop.f32.mrb[76].mxu1 }
 0x252   : > { %v5988_v54 = vadd.f32 %v9806_v12, %v5885_v48  ;;  %v5886_v55 = vmul.f32 %v9795_v59, %v8090_v49  ;;  %v2782_v56 = vpop.f32.mrb[77].mxu1 }
 0x253   : > { %v6086_v57 = vmax.f32 %v5990_v50, 0.0  ;;  %v5991_v58 = vadd.f32 %v9806_v12, %v5888_v52  ;;  %v7778_v41 = vpop.f32.mrb[78].mxu1 }
 0x254   : > { %v6084_v60 = vmax.f32 %v5988_v54, 0.0  ;;  %v5989_v61 = vadd.f32 %v9806_v12, %v5886_v55  ;;  %v7997_v62 = vpop.f32.mrb[72].mxu0  ;;  %v2785_v63 = vpop.f32.mrb[79].mxu1 }
 0x255   : > { %v7321_v0 = vpack.c.bf16 %v6086_v57, %v6086_v57  ;;  %v6087_v3 = vmax.f32 %v5991_v58, 0.0  ;;  %v8091_v4 = vadd.f32 %v7997_v62, %v7773_v33  ;;  %v5619_v5 = vpop.f32.mrb[73].mxu0 }
 0x256   : > { %v7319_v1 = vpack.c.bf16 %v6084_v60, %v6084_v60  ;;  %v6085_v9 = vmax.f32 %v5989_v61, 0.0  ;;  %v8092_v10 = vadd.f32 %v5619_v5, %v2766_v37  ;;  %v7998_v11 = vpop.f32.mrb[74].mxu0 }
 0x257   : > { %6567 = vst.msk [vmem:[%s9547_s21 + $0x118] sm:$0xf] %vm6496_vm3, %v7321_v0  ;;  %v7322_v17 = vpack.c.bf16 %v6087_v3, %v6087_v3  ;;  %v5891_v18 = vmul.f32 %v9795_v59, %v8091_v4  ;;  %v8093_v19 = vadd.f32 %v7998_v11, %v7774_v40  ;;  %v5622_v51 = vpop.f32.mrb[75].mxu0 }
 0x258   : > { %6565 = vst.msk [vmem:[%s9547_s21 + $0x110] sm:$0xf] %vm6496_vm3, %v7319_v1  ;;  %v7320_v26 = vpack.c.bf16 %v6085_v9, %v6085_v9  ;;  %v5889_v2 = vmul.f32 %v9795_v59, %v8092_v10  ;;  %v8094_v27 = vadd.f32 %v5622_v51, %v2769_v24 }
 0x259   : > { %6568 = vst.msk [vmem:[%s9547_s21 + $0x11c] sm:$0xf] %vm6496_vm3, %v7322_v17  ;;  %v5994_v28 = vadd.f32 %v9806_v12, %v5891_v18  ;;  %v5892_v20 = vmul.f32 %v9795_v59, %v8093_v19 }
 0x25a   : > { %6566 = vst.msk [vmem:[%s9547_s21 + $0x114] sm:$0xf] %vm6496_vm3, %v7320_v26  ;;  %v5992_v21 = vadd.f32 %v9806_v12, %v5889_v2  ;;  %v5890_v22 = vmul.f32 %v9795_v59, %v8094_v27 }
 0x25b   : > { %v6090_v23 = vmax.f32 %v5994_v28, 0.0  ;;  %v5995_v25 = vadd.f32 %v9806_v12, %v5892_v20  ;;  %v7781_v13 = vpop.f32.mrb[80].mxu1 }
 0x25c   : > { %v6088_v16 = vmax.f32 %v5992_v21, 0.0  ;;  %v5993_v29 = vadd.f32 %v9806_v12, %v5890_v22  ;;  %v8001_v30 = vpop.f32.mrb[76].mxu0  ;;  %v2798_v31 = vpop.f32.mrb[81].mxu1 }
 0x25d   : > { %v7325_v32 = vpack.c.bf16 %v6090_v23, %v6090_v23  ;;  %v6091_v33 = vmax.f32 %v5995_v25, 0.0  ;;  %v8095_v35 = vadd.f32 %v8001_v30, %v7777_v53  ;;  %v5635_v36 = vpop.f32.mrb[77].mxu0  ;;  %v7782_v37 = vpop.f32.mrb[82].mxu1 }
 0x25e   : > { %v7323_v38 = vpack.c.bf16 %v6088_v16, %v6088_v16  ;;  %v6089_v39 = vmax.f32 %v5993_v29, 0.0  ;;  %v8096_v40 = vadd.f32 %v5635_v36, %v2782_v56  ;;  %v8002_v34 = vpop.f32.mrb[78].mxu0  ;;  %v2801_v14 = vpop.f32.mrb[83].mxu1 }
 0x25f   : > { %6571 = vst.msk [vmem:[%s9547_s21 + $0x128] sm:$0xf] %vm6496_vm3, %v7325_v32  ;;  %v7326_v15 = vpack.c.bf16 %v6091_v33, %v6091_v33  ;;  %v5895_v24 = vmul.f32 %v9795_v59, %v8095_v35  ;;  %v8097_v42 = vadd.f32 %v8002_v34, %v7778_v41  ;;  %v5638_v43 = vpop.f32.mrb[79].mxu0 }
 0x260   : > { %6569 = vst.msk [vmem:[%s9547_s21 + $0x120] sm:$0xf] %vm6496_vm3, %v7323_v38  ;;  %v7324_v44 = vpack.c.bf16 %v6089_v39, %v6089_v39  ;;  %v5893_v45 = vmul.f32 %v9795_v59, %v8096_v40  ;;  %v8098_v46 = vadd.f32 %v5638_v43, %v2785_v63 }
 0x261   : > { %6572 = vst.msk [vmem:[%s9547_s21 + $0x12c] sm:$0xf] %vm6496_vm3, %v7326_v15  ;;  %v5998_v47 = vadd.f32 %v9806_v12, %v5895_v24  ;;  %v5896_v6 = vmul.f32 %v9795_v59, %v8097_v42 }
 0x262   : > { %6570 = vst.msk [vmem:[%s9547_s21 + $0x124] sm:$0xf] %vm6496_vm3, %v7324_v44  ;;  %v5996_v7 = vadd.f32 %v9806_v12, %v5893_v45  ;;  %v5894_v8 = vmul.f32 %v9795_v59, %v8098_v46 }
 0x263   : > { %v6094_v48 = vmax.f32 %v5998_v47, 0.0  ;;  %v5999_v49 = vadd.f32 %v9806_v12, %v5896_v6  ;;  %v7785_v50 = vpop.f32.mrb[84].mxu1 }
 0x264   : > { %v6092_v52 = vmax.f32 %v5996_v7, 0.0  ;;  %v5997_v53 = vadd.f32 %v9806_v12, %v5894_v8  ;;  %v2814_v54 = vpop.f32.mrb[85].mxu1 }
 0x265   : > { %v7329_v55 = vpack.c.bf16 %v6094_v48, %v6094_v48  ;;  %v6095_v56 = vmax.f32 %v5999_v49, 0.0  ;;  %v7786_v57 = vpop.f32.mrb[86].mxu1 }
 0x266   : > { %v7327_v58 = vpack.c.bf16 %v6092_v52, %v6092_v52  ;;  %v6093_v41 = vmax.f32 %v5997_v53, 0.0  ;;  %v8005_v60 = vpop.f32.mrb[80].mxu0  ;;  %v2817_v61 = vpop.f32.mrb[87].mxu1 }
 0x267   : > { %6575 = vst.msk [vmem:[%s9547_s21 + $0x138] sm:$0xf] %vm6496_vm3, %v7329_v55  ;;  %v7330_v62 = vpack.c.bf16 %v6095_v56, %v6095_v56  ;;  %v8099_v63 = vadd.f32 %v8005_v60, %v7781_v13  ;;  %v5651_v0 = vpop.f32.mrb[81].mxu0 }
 0x268   : > { %6573 = vst.msk [vmem:[%s9547_s21 + $0x130] sm:$0xf] %vm6496_vm3, %v7327_v58  ;;  %v7328_v3 = vpack.c.bf16 %v6093_v41, %v6093_v41  ;;  %v8100_v4 = vadd.f32 %v5651_v0, %v2798_v31  ;;  %v8006_v5 = vpop.f32.mrb[82].mxu0 }
 0x269   : > { %6576 = vst.msk [vmem:[%s9547_s21 + $0x13c] sm:$0xf] %vm6496_vm3, %v7330_v62  ;;  %v5899_v1 = vmul.f32 %v9795_v59, %v8099_v63  ;;  %v8101_v9 = vadd.f32 %v8006_v5, %v7782_v37  ;;  %v5654_v10 = vpop.f32.mrb[83].mxu0 }
 0x26a   : > { %6574 = vst.msk [vmem:[%s9547_s21 + $0x134] sm:$0xf] %vm6496_vm3, %v7328_v3  ;;  %v5897_v11 = vmul.f32 %v9795_v59, %v8100_v4  ;;  %v8102_v17 = vadd.f32 %v5654_v10, %v2801_v14 }
 0x26b   : > { %v6002_v18 = vadd.f32 %v9806_v12, %v5899_v1  ;;  %v5900_v19 = vmul.f32 %v9795_v59, %v8101_v9  ;;  %v7789_v51 = vpop.f32.mrb[88].mxu1 }
 0x26c   : > { %v6000_v26 = vadd.f32 %v9806_v12, %v5897_v11  ;;  %v5898_v2 = vmul.f32 %v9795_v59, %v8102_v17  ;;  %v2830_v27 = vpop.f32.mrb[89].mxu1 }
 0x26d   : > { %v6098_v28 = vmax.f32 %v6002_v18, 0.0  ;;  %v6003_v20 = vadd.f32 %v9806_v12, %v5900_v19  ;;  %v7790_v21 = vpop.f32.mrb[90].mxu1 }
 0x26e   : > { %v6096_v22 = vmax.f32 %v6000_v26, 0.0  ;;  %v6001_v23 = vadd.f32 %v9806_v12, %v5898_v2  ;;  %v8009_v25 = vpop.f32.mrb[84].mxu0  ;;  %v2833_v13 = vpop.f32.mrb[91].mxu1 }
 0x26f   : > { %v7333_v16 = vpack.c.bf16 %v6098_v28, %v6098_v28  ;;  %v6099_v29 = vmax.f32 %v6003_v20, 0.0  ;;  %v8103_v30 = vadd.f32 %v8009_v25, %v7785_v50  ;;  %v5667_v31 = vpop.f32.mrb[85].mxu0 }
 0x270   : > { %v7331_v32 = vpack.c.bf16 %v6096_v22, %v6096_v22  ;;  %v6097_v33 = vmax.f32 %v6001_v23, 0.0  ;;  %v8104_v35 = vadd.f32 %v5667_v31, %v2814_v54  ;;  %v8010_v36 = vpop.f32.mrb[86].mxu0 }
 0x271   : > { %6579 = vst.msk [vmem:[%s9547_s21 + $0x148] sm:$0xf] %vm6496_vm3, %v7333_v16  ;;  %v7334_v37 = vpack.c.bf16 %v6099_v29, %v6099_v29  ;;  %v5903_v38 = vmul.f32 %v9795_v59, %v8103_v30  ;;  %v8105_v39 = vadd.f32 %v8010_v36, %v7786_v57  ;;  %v5670_v40 = vpop.f32.mrb[87].mxu0 }
 0x272   : > { %6577 = vst.msk [vmem:[%s9547_s21 + $0x140] sm:$0xf] %vm6496_vm3, %v7331_v32  ;;  %v7332_v34 = vpack.c.bf16 %v6097_v33, %v6097_v33  ;;  %v5901_v14 = vmul.f32 %v9795_v59, %v8104_v35  ;;  %v8106_v15 = vadd.f32 %v5670_v40, %v2817_v61 }
 0x273   : > { %6580 = vst.msk [vmem:[%s9547_s21 + $0x14c] sm:$0xf] %vm6496_vm3, %v7334_v37  ;;  %v6006_v24 = vadd.f32 %v9806_v12, %v5903_v38  ;;  %v5904_v42 = vmul.f32 %v9795_v59, %v8105_v39 }
 0x274   : > { %6578 = vst.msk [vmem:[%s9547_s21 + $0x144] sm:$0xf] %vm6496_vm3, %v7332_v34  ;;  %v6004_v43 = vadd.f32 %v9806_v12, %v5901_v14  ;;  %v5902_v44 = vmul.f32 %v9795_v59, %v8106_v15 }
 0x275   : > { %v6102_v45 = vmax.f32 %v6006_v24, 0.0  ;;  %v6007_v46 = vadd.f32 %v9806_v12, %v5904_v42  ;;  %v7793_v47 = vpop.f32.mrb[92].mxu1 }
 0x276   : > { %v6100_v6 = vmax.f32 %v6004_v43, 0.0  ;;  %v6005_v7 = vadd.f32 %v9806_v12, %v5902_v44  ;;  %v8013_v8 = vpop.f32.mrb[88].mxu0  ;;  %v2846_v48 = vpop.f32.mrb[93].mxu1 }
 0x277   : > { %v7337_v49 = vpack.c.bf16 %v6102_v45, %v6102_v45  ;;  %v6103_v50 = vmax.f32 %v6007_v46, 0.0  ;;  %v8107_v52 = vadd.f32 %v8013_v8, %v7789_v51  ;;  %v5683_v53 = vpop.f32.mrb[89].mxu0  ;;  %v7794_v54 = vpop.f32.mrb[94].mxu1 }
 0x278   : > { %v7335_v55 = vpack.c.bf16 %v6100_v6, %v6100_v6  ;;  %v6101_v56 = vmax.f32 %v6005_v7, 0.0  ;;  %v8108_v57 = vadd.f32 %v5683_v53, %v2830_v27  ;;  %v8014_v58 = vpop.f32.mrb[90].mxu0  ;;  %v2849_v41 = vpop.f32.mrb[95].mxu1 }
 0x279   : > { %6583 = vst.msk [vmem:[%s9547_s21 + $0x158] sm:$0xf] %vm6496_vm3, %v7337_v49  ;;  %v7338_v60 = vpack.c.bf16 %v6103_v50, %v6103_v50  ;;  %v5907_v61 = vmul.f32 %v9795_v59, %v8107_v52  ;;  %v8109_v62 = vadd.f32 %v8014_v58, %v7790_v21  ;;  %v5686_v63 = vpop.f32.mrb[91].mxu0 }
 0x27a   : > { %6581 = vst.msk [vmem:[%s9547_s21 + $0x150] sm:$0xf] %vm6496_vm3, %v7335_v55  ;;  %v7336_v0 = vpack.c.bf16 %v6101_v56, %v6101_v56  ;;  %v5905_v3 = vmul.f32 %v9795_v59, %v8108_v57  ;;  %v8110_v4 = vadd.f32 %v5686_v63, %v2833_v13 }
 0x27b   : > { %6584 = vst.msk [vmem:[%s9547_s21 + $0x15c] sm:$0xf] %vm6496_vm3, %v7338_v60  ;;  %v6010_v5 = vadd.f32 %v9806_v12, %v5907_v61  ;;  %v5908_v1 = vmul.f32 %v9795_v59, %v8109_v62 }
 0x27c   : > { %6582 = vst.msk [vmem:[%s9547_s21 + $0x154] sm:$0xf] %vm6496_vm3, %v7336_v0  ;;  %v6008_v9 = vadd.f32 %v9806_v12, %v5905_v3  ;;  %v5906_v10 = vmul.f32 %v9795_v59, %v8110_v4 }
 0x27d   : > { %v6106_v11 = vmax.f32 %v6010_v5, 0.0  ;;  %v6011_v17 = vadd.f32 %v9806_v12, %v5908_v1 }
 0x27e   : > { %v6104_v18 = vmax.f32 %v6008_v9, 0.0  ;;  %v6009_v19 = vadd.f32 %v9806_v12, %v5906_v10 }
 0x27f   : > { %v7341_v51 = vpack.c.bf16 %v6106_v11, %v6106_v11  ;;  %v6107_v26 = vmax.f32 %v6011_v17, 0.0 }
 0x280   : > { %v7339_v2 = vpack.c.bf16 %v6104_v18, %v6104_v18  ;;  %v6105_v27 = vmax.f32 %v6009_v19, 0.0  ;;  %v8017_v28 = vpop.f32.mrb[92].mxu0 }
 0x281   : > { %6587 = vst.msk [vmem:[%s9547_s21 + $0x168] sm:$0xf] %vm6496_vm3, %v7341_v51  ;;  %v7342_v20 = vpack.c.bf16 %v6107_v26, %v6107_v26  ;;  %v8111_v21 = vadd.f32 %v8017_v28, %v7793_v47  ;;  %v5699_v22 = vpop.f32.mrb[93].mxu0 }
 0x282   : > { %6585 = vst.msk [vmem:[%s9547_s21 + $0x160] sm:$0xf] %vm6496_vm3, %v7339_v2  ;;  %v7340_v23 = vpack.c.bf16 %v6105_v27, %v6105_v27  ;;  %v8112_v25 = vadd.f32 %v5699_v22, %v2846_v48  ;;  %v8018_v13 = vpop.f32.mrb[94].mxu0 }
 0x283   : > { %6588 = vst.msk [vmem:[%s9547_s21 + $0x16c] sm:$0xf] %vm6496_vm3, %v7342_v20  ;;  %v5911_v16 = vmul.f32 %v9795_v59, %v8111_v21  ;;  %v8113_v29 = vadd.f32 %v8018_v13, %v7794_v54  ;;  %v5702_v30 = vpop.f32.mrb[95].mxu0 }
 0x284   : > { %6586 = vst.msk [vmem:[%s9547_s21 + $0x164] sm:$0xf] %vm6496_vm3, %v7340_v23  ;;  %v5909_v31 = vmul.f32 %v9795_v59, %v8112_v25  ;;  %v8114_v32 = vadd.f32 %v5702_v30, %v2849_v41 }
 0x285   : > { %v6014_v33 = vadd.f32 %v9806_v12, %v5911_v16  ;;  %v5912_v35 = vmul.f32 %v9795_v59, %v8113_v29 }
 0x286   : > { %v6012_v36 = vadd.f32 %v9806_v12, %v5909_v31  ;;  %v5910_v37 = vmul.f32 %v9795_v59, %v8114_v32 }
 0x287   : > { %v6110_v38 = vmax.f32 %v6014_v33, 0.0  ;;  %v6015_v39 = vadd.f32 %v9806_v12, %v5912_v35 }
 0x288   : > { %v6108_v40 = vmax.f32 %v6012_v36, 0.0  ;;  %v6013_v34 = vadd.f32 %v9806_v12, %v5910_v37 }
 0x289   : > { %v7345_v14 = vpack.c.bf16 %v6110_v38, %v6110_v38  ;;  %v6111_v15 = vmax.f32 %v6015_v39, 0.0 }
 0x28a   : > { %v7343_v24 = vpack.c.bf16 %v6108_v40, %v6108_v40  ;;  %v6109_v42 = vmax.f32 %v6013_v34, 0.0 }
 0x28b   : > { %6591 = vst.msk [vmem:[%s9547_s21 + $0x178] sm:$0xf] %vm6496_vm3, %v7345_v14  ;;  %v7346_v43 = vpack.c.bf16 %v6111_v15, %v6111_v15 }
 0x28c   : > { %6589 = vst.msk [vmem:[%s9547_s21 + $0x170] sm:$0xf] %vm6496_vm3, %v7343_v24  ;;  %v7344_v44 = vpack.c.bf16 %v6109_v42, %v6109_v42 }
 0x28d   : > { %6592 = vst.msk [vmem:[%s9547_s21 + $0x17c] sm:$0xf] %vm6496_vm3, %v7346_v43 }
 0x28e   : > { %6590 = vst.msk [vmem:[%s9547_s21 + $0x174] sm:$0xf] %vm6496_vm3, %v7344_v44 }
 0x28f PF: > { %s14_s15 = sadd.s32 1, %s8547_s15  }
 0x290   : > { %p11_p4 = scmp.ge.s32.totalorder %s14_s15, 4  }
 0x292   :  { %13 = sbr.rel (!%p11_p4) target bundleno = 1 (0x1), region = 70 }

// kernel: style_encoder_forward.11
= control target key start
LH: loop header
LB: loop body
LE: loop exit
PB: predicated region body
PF: predicated region fallthrough
CT: control target
= control target key end

     0   :  { %s3503_s15 = smov 0   ;;  %s4216_s0 = inlined_call_operand.vmem [shape: bf16[2,17,17,128], index: 0, kind: input, shape index: {}]   ;;  %s4217_s1 = inlined_call_operand.vmem [shape: bf16[4,128,64], index: 1, kind: input, shape index: {}]   ;;  %s4218_s2 = inlined_call_operand.vmem [shape: f32[1,64], index: 2, kind: input, shape index: {}]   ;;  %s4219_s3 = inlined_call_operand.vmem [shape: f32[1,64], index: 3, kind: input, shape index: {}]   ;;  %s4220_s4 = inlined_call_operand.vmem [shape: bf16[2,256,64], index: 4, kind: output, shape index: {}]  }
   0x1 LB: > { %s2712_s16 = sadd.s32 4294967295, %s3476_s15   ;;  %p2716_p0 = scmp.ge.s32.totalorder %s3476_s15, 1  ;;  %s3476_s15 = sphi %s3503_s15, %s14_s15  }
   0x2   : > { %p162_p1 = scmp.lt.s32.totalorder %s3476_s15, 3 }
   0x4   : > { %p163_p2 = pnand %p2716_p0, %p162_p1 }
   0x5   : > { %v3406_v0 = vld [vmem:[%s4217_s1 + $0x40] sm:$0xff] (!%p163_p2)   ;;  %p188_p3 = scmp.lt.s32.totalorder (!%p163_p2), %s2712_s16, 1  ;;  %v3408_v2 = vld [vmem:[%s4217_s1 + $0x48] sm:$0xff] (!%p163_p2)   ;;  %v3410_v4 = vld [vmem:[%s4217_s1 + $0x50] sm:$0xff] (!%p163_p2)   ;;  %vm263_vm0 = vsmask.f32 (!%p163_p2), 3328 }
   0x6   : > { %166 = sbr.rel (%p163_p2) target bundleno = 396 (0x18c), region = 36  ;;  %v3407_v1 = vld [vmem:[%s4217_s1 + $0x80] sm:$0xff] (!%p163_p2)   ;;  %3109 = vmatprep.subr.bf16.mxu1 (!%p163_p2), %v3406_v0  ;;  %v3409_v3 = vld [vmem:[%s4217_s1 + $0x88] sm:$0xff] (!%p163_p2)   ;;  %v3411_v5 = vld [vmem:[%s4217_s1 + $0x90] sm:$0xff] (!%p163_p2)   ;;  %vm264_vm1 = vsmask.f32 (!%p163_p2), 7440 }
   0x7   : > { %3205 = vmatprep.subr.bf16.mxu0 (!%p163_p2), %v3407_v1  ;;  %3110 = vmatpush3.bf16.msra.mxu1 (!%p163_p2), %v3406_v0  ;;  %v3412_v6 = vld [vmem:[%s4217_s1 + $0x58] sm:$0xff] (!%p163_p2)   ;;  %v3414_v8 = vld [vmem:[%s4217_s1 + $0x60] sm:$0xff] (!%p163_p2)   ;;  %v3416_v10 = vld [vmem:[%s4217_s1 + $0x68] sm:$0xff] (!%p163_p2)   ;;  %vm2624_vm3 = vcmask (!%p163_p2), 519168  }
   0x8   : > { %3206 = vmatpush3.bf16.msra.mxu0 (!%p163_p2), %v3407_v1  ;;  %3111 = vmatprep.subr.bf16.mxu1 (!%p163_p2), %v3408_v2  ;;  %v3413_v7 = vld [vmem:[%s4217_s1 + $0x98] sm:$0xff] (!%p163_p2)   ;;  %v3415_v9 = vld [vmem:[%s4217_s1 + $0xa0] sm:$0xff] (!%p163_p2)   ;;  %v3417_v11 = vld [vmem:[%s4217_s1 + $0xa8] sm:$0xff] (!%p163_p2)  }
   0x9   : > { %3207 = vmatprep.subr.bf16.mxu0 (!%p163_p2), %v3409_v3  ;;  %v3418_v17 = vld [vmem:[%s4217_s1 + $0x70] sm:$0xff] (!%p163_p2)   ;;  %vm3588_vm2 = vmor (!%p163_p2), %vm263_vm0, %vm264_vm1  ;;  %v3420_v46 = vld [vmem:[%s4217_s1 + $0x78] sm:$0xff] (!%p163_p2)  }
   0xa   : > { %v3419_v31 = vld [vmem:[%s4217_s1 + $0xb0] sm:$0xff] (!%p163_p2)   ;;  %v3421_v47 = vld [vmem:[%s4217_s1 + $0xb8] sm:$0xff] (!%p163_p2)   ;;  %v3423_v62 = vld [vmem:[%s4217_s1] sm:$0xff] (!%p163_p2)  }
   0xb   : > { %3112 = vmatpush3.bf16.msra.mxu1 (!%p163_p2), %v3408_v2 }
   0xc   : > { %3208 = vmatpush3.bf16.msra.mxu0 (!%p163_p2), %v3409_v3  ;;  %3113 = vmatprep.subr.bf16.mxu1 (!%p163_p2), %v3410_v4 }
   0xd   : > { %s4239_s16 = smov (!%p188_p3, %s2712_s16), 1  ;;  %3209 = vmatprep.subr.bf16.mxu0 %v3411_v5 }
   0xe   : > { %s3397_s7 = smul.u32 204, %s4239_s16  ;;  %s2980_s18 = sshll.u32 %s4239_s16, 7 }
   0xf   : > { %3114 = vmatpush3.bf16.msra.mxu1 %v3410_v4  ;;  %s4090_s21 = scalar_lea.vmem %s4220_s4, %s2980_s18 }
  0x10   : > { %3210 = vmatpush3.bf16.msra.mxu0 %v3411_v5  ;;  %3115 = vmatprep.subr.bf16.mxu1 %v3412_v6  ;;  %s3547_s14 = scalar_lea.vmem %s4216_s0, %s3397_s7 }
  0x11   : > { %3211 = vmatprep.subr.bf16.mxu0 %v3413_v7  ;;  %v3556_v12 = vld [vmem:[%s3547_s14] sm:$0xf]  ;;  %v3559_v13 = vld [vmem:[%s3547_s14 + $0x4] sm:$0xf]  ;;  %v247_v14 = vld [vmem:[%s3547_s14 + $0x8] sm:$0x1] }
  0x12   : > { %v267_v15 = vshrl.u32 %v3556_v12, 16  ;;  %v270_v16 = vshll.u32 %v3556_v12, 16  ;;  %v276_v18 = vshll.u32 %v3559_v13, 16  ;;  %v280_v19 = vshrl.u32 %v3559_v13, 16  ;;  %v3422_v21 = vld [vmem:[%s3547_s14 + $0xc] sm:$0xff]  }
  0x13   : > { %3116 = vmatpush3.bf16.msra.mxu1 %v3412_v6  ;;  %v286_v20 = vshll.u32 %v247_v14, 16  ;;  %v2760_v22 = vcombine.low %v3556_v12, %v3559_v13  ;;  %v3573_v25 = vld [vmem:[%s3547_s14 + $0xc] sm:$0xf]  ;;  %v3576_v29 = vld [vmem:[%s3547_s14 + $0x10] sm:$0xf]  ;;  %3221 = vmatprep.mubr.bf16.mxu0 %v3422_v21  ;;  %v3424_v6 = vld [vmem:[%s3547_s14 + $0x18] sm:$0xff]  }
  0x14   : > { %3212 = vmatpush3.bf16.msra.mxu0 %v3413_v7  ;;  %3117 = vmatprep.subr.bf16.mxu1 %v3414_v8  ;;  %v269_v23 = vrot.slane %v267_v15, 4  ;;  %v272_v24 = vrot.slane %v270_v16, 5  ;;  %v278_v26 = vrot.slane %v276_v18, 5  ;;  %v282_v27 = vrot.slane %v280_v19, 4  ;;  %v248_v33 = vld [vmem:[%s3547_s14 + $0x14] sm:$0x1] }
  0x15   : > { %3213 = vmatprep.subr.bf16.mxu0 %v3415_v9  ;;  %v288_v28 = vrot.slane %v286_v20, 5  ;;  %v291_v30 = vshrl.u32 %v3573_v25, 16  ;;  %v294_v34 = vshll.u32 %v3573_v25, 16  ;;  %v300_v35 = vshll.u32 %v3576_v29, 16  ;;  %v3603_v53 = vld [vmem:[%s3547_s14 + $0x18] sm:$0xf] }
  0x16   : > { %v273_v32 = vor.u32 %v272_v24, %v269_v23  ;;  %v304_v36 = vshrl.u32 %v3576_v29, 16  ;;  %v283_v38 = vor.u32 %v282_v27, %v278_v26  ;;  %v310_v40 = vshll.u32 %v248_v33, 16  ;;  %v3608_v55 = vld [vmem:[%s3547_s14 + $0x1c] sm:$0xf]  ;;  %v249_v56 = vld [vmem:[%s3547_s14 + $0x20] sm:$0x1] }
  0x17   : > { %3118 = vmatpush3.bf16.msra.mxu1 %v3414_v8  ;;  %v293_v39 = vrot.slane %v291_v30, 4  ;;  %v296_v43 = vrot.slane %v294_v34, 5  ;;  %v302_v44 = vrot.slane %v300_v35, 5  ;;  %v315_v57 = vshrl.u32 %v3603_v53, 16  ;;  %v3425_v7 = vld [vmem:[%s4217_s1 + $0xc0] sm:$0xff]   ;;  %v3427_v35 = vld [vmem:[%s4217_s1 + $0x8] sm:$0xff]  }
  0x18   : > { %3214 = vmatpush3.bf16.msra.mxu0 %v3415_v9  ;;  %3119 = vmatprep.subr.bf16.mxu1 %v3416_v10  ;;  %v274_v42 = vrot.slane %v273_v32, 4  ;;  %v306_v45 = vrot.slane %v304_v36, 4  ;;  %v284_v48 = vrot.slane %v283_v38, 4  ;;  %v312_v49 = vrot.slane %v310_v40, 5  ;;  %v3627_v9 = vld [vmem:[%s3547_s14 + $0x24] sm:$0xf] }
  0x19   : > { %3215 = vmatprep.subr.bf16.mxu0 %v3417_v11  ;;  %v297_v51 = vor.u32 %v296_v43, %v293_v39  ;;  %v318_v58 = vshll.u32 %v3603_v53, 16  ;;  %v324_v63 = vshll.u32 %v3608_v55, 16  ;;  %v317_v0 = vrot.slane %v315_v57, 4  ;;  %v3426_v18 = vld [vmem:[%s3547_s14 + $0x24] sm:$0xff]   ;;  %v250_v19 = vld [vmem:[%s3547_s14 + $0x2c] sm:$0x1] }
  0x1a   : > { %v279_v50 = vsel %vm3588_vm2, %v274_v42, %v278_v26  ;;  %v307_v52 = vor.u32 %v306_v45, %v302_v44  ;;  %v289_v54 = vsel %vm3588_vm2, %v284_v48, %v288_v28  ;;  %v328_v2 = vshrl.u32 %v3608_v55, 16  ;;  %v3429_v36 = vld [vmem:[%s4217_s1 + $0xc8] sm:$0xff]   ;;  %v3654_v45 = vld [vmem:[%s3547_s14 + $0x34] sm:$0xf] }
  0x1b   : > { %3120 = vmatpush3.bf16.msra.mxu1 %v3416_v10  ;;  %v2736_v59 = vcombine.low %v279_v50, %v289_v54  ;;  %v298_v60 = vrot.slane %v297_v51, 4  ;;  %v320_v1 = vrot.slane %v318_v58, 5  ;;  %v334_v3 = vshll.u32 %v249_v56, 16  ;;  %v3630_v10 = vld [vmem:[%s3547_s14 + $0x28] sm:$0xf]  ;;  %v3428_v56 = vld [vmem:[%s3547_s14 + $0x30] sm:$0xff]  }
  0x1c   : > { %3216 = vmatpush3.bf16.msra.mxu0 %v3417_v11  ;;  %3121 = vmatprep.subr.bf16.mxu1 %v3418_v17  ;;  %v308_v61 = vrot.slane %v307_v52, 4  ;;  %v326_v8 = vrot.slane %v324_v63, 5  ;;  %v330_v16 = vrot.slane %v328_v2, 4  ;;  %v339_v20 = vshrl.u32 %v3627_v9, 16  ;;  %v3431_v58 = vld [vmem:[%s4217_s1 + $0x10] sm:$0xff]   ;;  %v3430_v63 = vld [vmem:[%s3547_s14 + $0x3c] sm:$0xff]  }
  0x1d   : > { %3217 = vmatprep.subr.bf16.mxu0 %v3419_v31  ;;  %3125 = vmatprep.mubr.bf16.mxu1 %v2736_v59  ;;  %v303_v4 = vsel %vm3588_vm2, %v298_v60, %v302_v44  ;;  %v321_v15 = vor.u32 %v320_v1, %v317_v0  ;;  %v342_v21 = vshll.u32 %v3627_v9, 16  ;;  %v348_v23 = vshll.u32 %v3630_v10, 16  ;;  %v3651_v44 = vld [vmem:[%s3547_s14 + $0x30] sm:$0xf]  ;;  %v3669_v0 = vld [vmem:[%s3547_s14 + $0x3c] sm:$0xf] }
  0x1e   : > { %v313_v5 = vsel %vm3588_vm2, %v308_v61, %v312_v49  ;;  %v352_v24 = vshrl.u32 %v3630_v10, 16  ;;  %v331_v27 = vor.u32 %v330_v16, %v326_v8  ;;  %v358_v28 = vshll.u32 %v250_v19, 16  ;;  %v2864_v41 = vld [vmem:[%s3547_s14 + $0x2c] sm:$0x1]  ;;  %v2866_v13 = vld [vmem:[%s3547_s14 + $0x34] sm:$0xf] }
  0x1f   : > { %3122 = vmatpush3.bf16.msra.mxu1 %v3418_v17  ;;  %v2737_v14 = vcombine.low %v303_v4, %v313_v5  ;;  %v336_v17 = vrot.slane %v334_v3, 5  ;;  %v322_v26 = vrot.slane %v321_v15, 4  ;;  %v344_v32 = vrot.slane %v342_v21, 5  ;;  %v3676_v4 = vld [vmem:[%s3547_s14 + $0x40] sm:$0xf] }
  0x20   : > { %3218 = vmatpush3.bf16.msra.mxu0 %v3419_v31  ;;  %3123 = vmatprep.subr.bf16.mxu1 %v3420_v46  ;;  %v341_v31 = vrot.slane %v339_v20, 4  ;;  %v350_v33 = vrot.slane %v348_v23, 5  ;;  %v354_v34 = vrot.slane %v352_v24, 4  ;;  %v332_v39 = vrot.slane %v331_v27, 4  ;;  %v252_v5 = vld [vmem:[%s3547_s14 + $0x44] sm:$0x1] }
  0x21   : > { %3219 = vmatprep.subr.bf16.mxu0 %v3421_v47  ;;  %v327_v38 = vsel %vm3588_vm2, %v322_v26, %v326_v8  ;;  %v360_v40 = vrot.slane %v358_v28, 5  ;;  %v363_v48 = vshrl.u32 %v3651_v44, 16  ;;  %v366_v49 = vshll.u32 %v3651_v44, 16  ;;  %v3433_v24 = vld [vmem:[%s4217_s1 + $0xd0] sm:$0xff]  }
  0x22   : > { %v345_v42 = vor.u32 %v344_v32, %v341_v31  ;;  %v355_v43 = vor.u32 %v354_v34, %v350_v33  ;;  %v372_v50 = vshll.u32 %v3654_v45, 16  ;;  %v376_v57 = vshrl.u32 %v3654_v45, 16 }
  0x23   : > { %3124 = vmatpush3.bf16.msra.mxu1 %v3420_v46  ;;  %v251_v46 = vld [vmem:[%s3547_s14 + $0x38] sm:$0x1]  ;;  %v365_v59 = vrot.slane %v363_v48, 4  ;;  %v368_v60 = vrot.slane %v366_v49, 5  ;;  %v390_v15 = vshll.u32 %v3669_v0, 16  ;;  %v400_v19 = vshrl.u32 %v3676_v4, 16 }
  0x24   : > { %3220 = vmatpush3.bf16.msra.mxu0 %v3421_v47  ;;  %3157 = vmatprep.subr.bf16.mxu1 %v3423_v62  ;;  %v337_v47 = vsel %vm3588_vm2, %v332_v39, %v336_v17  ;;  %v346_v52 = vrot.slane %v345_v42, 4  ;;  %v356_v54 = vrot.slane %v355_v43, 4  ;;  %v374_v61 = vrot.slane %v372_v50, 5  ;;  %v3432_v42 = vld [vmem:[%s3547_s14 + $0x48] sm:$0xff]  }
  0x25   : > { %3253 = vmatprep.subr.bf16.mxu0 %v3425_v7  ;;  %v2738_v51 = vcombine.low %v327_v38, %v337_v47  ;;  %v378_v3 = vrot.slane %v376_v57, 4  ;;  %v369_v8 = vor.u32 %v368_v60, %v365_v59  ;;  %v392_v21 = vrot.slane %v390_v15, 5  ;;  %v3435_v38 = vld [vmem:[%s4217_s1 + $0x18] sm:$0xff]   ;;  %v3702_v43 = vld [vmem:[%s3547_s14 + $0x4c] sm:$0xf] }
  0x26   : > { %3126 = vmatmul.mubr.bf16.vlgmr.msra.gmra.mrb[0].mxu1 %v2737_v14  ;;  %v351_v1 = vsel %vm3588_vm2, %v346_v52, %v350_v33  ;;  %v361_v2 = vsel %vm3588_vm2, %v356_v54, %v360_v40  ;;  %v406_v23 = vshll.u32 %v252_v5, 16  ;;  %v402_v31 = vrot.slane %v400_v19, 4  ;;  %v3434_v54 = vld [vmem:[%s3547_s14 + $0x54] sm:$0xff]  }
  0x27   : > { %3222 = vmatmul.mubr.bf16.vlgmr.msra.gmra.mrb[0].mxu0 %v3424_v6  ;;  %3158 = vmatpush3.bf16.msra.mxu1 %v3423_v62  ;;  %v382_v62 = vshll.u32 %v251_v46, 16  ;;  %v387_v6 = vshrl.u32 %v3669_v0, 16  ;;  %v379_v16 = vor.u32 %v378_v3, %v374_v61  ;;  %v370_v20 = vrot.slane %v369_v8, 4  ;;  %v253_v46 = vld [vmem:[%s3547_s14 + $0x50] sm:$0x1] }
  0x28   : > { %3254 = vmatpush3.bf16.msra.mxu0 %v3425_v7  ;;  %3225 = vmatprep.mubr.bf16.mxu0 %v3426_v18  ;;  %v2739_v7 = vcombine.low %v351_v1, %v361_v2  ;;  %v396_v18 = vshll.u32 %v3676_v4, 16  ;;  %v424_v52 = vshrl.u32 %v3702_v43, 16  ;;  %v430_v59 = vshll.u32 %v253_v46, 16  ;;  %v3716_v1 = vld [vmem:[%s3547_s14 + $0x58] sm:$0xf] }
  0x29   : > { %3159 = vmatprep.subr.bf16.mxu1 %v3427_v35  ;;  %3255 = vmatprep.subr.bf16.mxu0 %v3429_v36  ;;  %v384_v14 = vrot.slane %v382_v62, 5  ;;  %v389_v17 = vrot.slane %v387_v6, 4  ;;  %v380_v27 = vrot.slane %v379_v16, 4  ;;  %v375_v33 = vsel %vm3588_vm2, %v370_v20, %v374_v61  ;;  %v3741_v46 = vld [vmem:[%s3547_s14 + $0x64] sm:$0xf] }
  0x2a   : > { %3129 = vmatprep.mubr.bf16.mxu1 %v2738_v51  ;;  %v398_v28 = vrot.slane %v396_v18, 5  ;;  %v420_v51 = vshll.u32 %v3702_v43, 16  ;;  %v426_v62 = vrot.slane %v424_v52, 4  ;;  %v432_v6 = vrot.slane %v430_v59, 5 }
  0x2b   : > { %3160 = vmatpush3.bf16.msra.mxu1 %v3427_v35  ;;  %v393_v34 = vor.u32 %v392_v21, %v389_v17  ;;  %v408_v35 = vrot.slane %v406_v23, 5  ;;  %v385_v39 = vsel %vm3588_vm2, %v380_v27, %v384_v14  ;;  %v444_v17 = vshll.u32 %v3716_v1, 16 }
  0x2c   : > { %3256 = vmatpush3.bf16.msra.mxu0 %v3429_v36  ;;  %3161 = vmatprep.subr.bf16.mxu1 %v3431_v58  ;;  %v3693_v36 = vld [vmem:[%s3547_s14 + $0x48] sm:$0xf]  ;;  %v403_v40 = vor.u32 %v402_v31, %v398_v28  ;;  %v2740_v49 = vcombine.low %v375_v33, %v385_v39  ;;  %v422_v61 = vrot.slane %v420_v51, 5  ;;  %v448_v20 = vshrl.u32 %v3716_v1, 16  ;;  %v3736_v39 = vld [vmem:[%s3547_s14 + $0x60] sm:$0xf] }
  0x2d   : > { %3257 = vmatprep.subr.bf16.mxu0 %v3433_v24  ;;  %v411_v47 = vshrl.u32 %v3693_v36, 16  ;;  %v414_v48 = vshll.u32 %v3693_v36, 16  ;;  %v394_v50 = vrot.slane %v393_v34, 4  ;;  %v446_v27 = vrot.slane %v444_v17, 5  ;;  %v256_v17 = vld [vmem:[%s3547_s14 + $0x74] sm:$0x1] }
  0x2e   : > { %3130 = vmatmul.mubr.bf16.gmra.mrb[4].mxu1 %v2739_v7  ;;  %v254_v7 = vld [vmem:[%s3547_s14 + $0x5c] sm:$0x1]  ;;  %v427_v15 = vor.u32 %v426_v62, %v422_v61  ;;  %v450_v34 = vrot.slane %v448_v20, 4  ;;  %v468_v52 = vshll.u32 %v3741_v46, 16  ;;  %v1748_v12 = vshll.u32 %v2864_v41, 16 }
  0x2f   : > { %3226 = vmatmul.mubr.bf16.gmra.mrb[4].mxu0 %v3428_v56  ;;  %3162 = vmatpush3.bf16.msra.mxu1 %v3431_v58  ;;  %v404_v56 = vrot.slane %v403_v40, 4  ;;  %v413_v57 = vrot.slane %v411_v47, 4  ;;  %v416_v58 = vrot.slane %v414_v48, 5  ;;  %v399_v60 = vsel %vm3588_vm2, %v394_v50, %v398_v28  ;;  %v3437_v28 = vld [vmem:[%s4217_s1 + $0xd8] sm:$0xff]   ;;  %v255_v47 = vld [vmem:[%s3547_s14 + $0x68] sm:$0x1] }
  0x30   : > { %3229 = vmatprep.mubr.bf16.mxu0 %v3430_v63  ;;  %3258 = vmatpush3.bf16.msra.mxu0 %v3433_v24  ;;  %v3713_v63 = vld [vmem:[%s3547_s14 + $0x54] sm:$0xf]  ;;  %v454_v21 = vshll.u32 %v254_v7, 16  ;;  %v428_v23 = vrot.slane %v427_v15, 4  ;;  %v459_v48 = vshrl.u32 %v3736_v39, 16  ;;  %v451_v51 = vor.u32 %v450_v34, %v446_v27  ;;  %v3441_v34 = vld [vmem:[%s4217_s1 + $0xe0] sm:$0xff]  }
  0x31   : > { %3163 = vmatprep.subr.bf16.mxu1 %v3435_v38  ;;  %3133 = vmatprep.mubr.bf16.mxu1 %v2740_v49  ;;  %v409_v3 = vsel %vm3588_vm2, %v404_v56, %v408_v35  ;;  %v417_v5 = vor.u32 %v416_v58, %v413_v57  ;;  %v435_v8 = vshrl.u32 %v3713_v63, 16  ;;  %v438_v16 = vshll.u32 %v3713_v63, 16 }
  0x32   : > { %v2741_v14 = vcombine.low %v399_v60, %v409_v3  ;;  %v456_v35 = vrot.slane %v454_v21, 5  ;;  %v433_v40 = vsel %vm3588_vm2, %v428_v23, %v432_v6  ;;  %3259 = vmatprep.subr.bf16.mxu0 %v3437_v28  ;;  %v462_v49 = vshll.u32 %v3736_v39, 16  ;;  %v3438_v60 = vld [vmem:[%s3547_s14 + $0x6c] sm:$0xff]  }
  0x33   : > { %3164 = vmatpush3.bf16.msra.mxu1 %v3435_v38  ;;  %v418_v18 = vrot.slane %v417_v5, 4  ;;  %v437_v19 = vrot.slane %v435_v8, 4  ;;  %v440_v24 = vrot.slane %v438_v16, 5  ;;  %v3436_v38 = vld [vmem:[%s3547_s14 + $0x60] sm:$0xff]   ;;  %v461_v57 = vrot.slane %v459_v48, 4 }
  0x34   : > { %3260 = vmatpush3.bf16.msra.mxu0 %v3437_v28  ;;  %v464_v58 = vrot.slane %v462_v49, 5  ;;  %v478_v59 = vshll.u32 %v255_v47, 16  ;;  %v452_v62 = vrot.slane %v451_v51, 4  ;;  %v470_v3 = vrot.slane %v468_v52, 5  ;;  %v3753_v6 = vld [vmem:[%s3547_s14 + $0x6c] sm:$0xf] }
  0x35   : > { %v423_v33 = vsel %vm3588_vm2, %v418_v18, %v422_v61  ;;  %v3439_v61 = vld [vmem:[%s4217_s1 + $0x20] sm:$0xff]   ;;  %v3760_v16 = vld [vmem:[%s3547_s14 + $0x70] sm:$0xf]  ;;  %v483_v18 = vshrl.u32 %v3753_v6, 16  ;;  %v486_v21 = vshll.u32 %v3753_v6, 16  ;;  %v3440_v47 = vld [vmem:[%s3547_s14 + $0x78] sm:$0xff]   ;;  %3261 = vmatprep.subr.bf16.mxu0 %v3441_v34 }
  0x36   : > { %3134 = vmatmul.mubr.bf16.gmra.mrb[8].mxu1 %v2741_v14  ;;  %v2742_v50 = vcombine.low %v423_v33, %v433_v40  ;;  %v465_v14 = vor.u32 %v464_v58, %v461_v57  ;;  %v480_v15 = vrot.slane %v478_v59, 5  ;;  %3165 = vmatprep.subr.bf16.mxu1 %v3439_v61  ;;  %v492_v23 = vshll.u32 %v3760_v16, 16  ;;  %v3781_v57 = vld [vmem:[%s3547_s14 + $0x78] sm:$0xf]  ;;  %v3784_v58 = vld [vmem:[%s3547_s14 + $0x7c] sm:$0xf] }
  0x37   : > { %3230 = vmatmul.mubr.bf16.gmra.mrb[8].mxu0 %v3432_v42  ;;  %v441_v42 = vor.u32 %v440_v24, %v437_v19  ;;  %v457_v19 = vsel %vm3588_vm2, %v452_v62, %v456_v35  ;;  %3166 = vmatpush3.bf16.msra.mxu1 %v3439_v61  ;;  %v485_v28 = vrot.slane %v483_v18, 4  ;;  %v496_v33 = vshrl.u32 %v3760_v16, 16  ;;  %v3443_v59 = vld [vmem:[%s4217_s1 + $0x28] sm:$0xff]   ;;  %v257_v62 = vld [vmem:[%s3547_s14 + $0x80] sm:$0x1] }
  0x38   : > { %3233 = vmatprep.mubr.bf16.mxu0 %v3434_v54  ;;  %v472_v54 = vshrl.u32 %v3741_v46, 16  ;;  %3137 = vmatprep.mubr.bf16.mxu1 %v2742_v50  ;;  %v494_v40 = vrot.slane %v492_v23, 5  ;;  %v3442_v50 = vld [vmem:[%s3547_s14 + $0x84] sm:$0xff]   ;;  %v262_v23 = vld [vmem:[%s3547_s14 + $0xbc] sm:$0x1] }
  0x39   : > { %v442_v56 = vrot.slane %v441_v42, 4  ;;  %v502_v42 = vshll.u32 %v256_v17, 16  ;;  %v498_v49 = vrot.slane %v496_v33, 4  ;;  %3262 = vmatpush3.bf16.msra.mxu0 %v3441_v34  ;;  %v526_v17 = vshll.u32 %v257_v62, 16  ;;  %3167 = vmatprep.subr.bf16.mxu1 %v3443_v59  ;;  %v3802_v34 = vld [vmem:[%s3547_s14 + $0x88] sm:$0xf] }
  0x3a   : > { %v474_v5 = vrot.slane %v472_v54, 4 }
  0x3b   : > { %v447_v8 = vsel %vm3588_vm2, %v442_v56, %v446_v27  ;;  %v466_v27 = vrot.slane %v465_v14, 4  ;;  %v504_v56 = vrot.slane %v502_v42, 5  ;;  %v499_v61 = vor.u32 %v498_v49, %v494_v40  ;;  %3168 = vmatpush3.bf16.msra.mxu1 %v3443_v59 }
  0x3c   : > { %v475_v20 = vor.u32 %v474_v5, %v470_v3  ;;  %v2743_v24 = vcombine.low %v447_v8, %v457_v19  ;;  %v510_v5 = vshll.u32 %v3781_v57, 16  ;;  %v516_v14 = vshll.u32 %v3784_v58, 16 }
  0x3d   : > { %v471_v48 = vsel %vm3588_vm2, %v466_v27, %v470_v3  ;;  %v507_v3 = vshrl.u32 %v3781_v57, 16  ;;  %v500_v18 = vrot.slane %v499_v61, 4  ;;  %v528_v33 = vrot.slane %v526_v17, 5 }
  0x3e   : > { %v476_v35 = vrot.slane %v475_v20, 4  ;;  %3138 = vmatmul.mubr.bf16.gmra.mrb[12].mxu1 %v2743_v24  ;;  %v512_v20 = vrot.slane %v510_v5, 5  ;;  %v518_v27 = vrot.slane %v516_v14, 5  ;;  %v544_v59 = vshrl.u32 %v3802_v34, 16  ;;  %v3446_v14 = vld [vmem:[%s3547_s14 + $0x9c] sm:$0xff]  }
  0x3f   : > { %3234 = vmatmul.mubr.bf16.gmra.mrb[12].mxu0 %v3436_v38  ;;  %v488_v38 = vrot.slane %v486_v21, 5  ;;  %v509_v19 = vrot.slane %v507_v3, 4  ;;  %v3795_v21 = vld [vmem:[%s3547_s14 + $0x84] sm:$0xf] }
  0x40   : > { %3237 = vmatprep.mubr.bf16.mxu0 %v3438_v60  ;;  %v481_v52 = vsel %vm3588_vm2, %v476_v35, %v480_v15  ;;  %v520_v15 = vshrl.u32 %v3784_v58, 16  ;;  %v3445_v35 = vld [vmem:[%s4217_s1 + $0xe8] sm:$0xff]   ;;  %v531_v49 = vshrl.u32 %v3795_v21, 16 }
  0x41   : > { %v489_v54 = vor.u32 %v488_v38, %v485_v28  ;;  %v2744_v60 = vcombine.low %v471_v48, %v481_v52  ;;  %v505_v38 = vsel %vm3588_vm2, %v500_v18, %v504_v56  ;;  %v513_v42 = vor.u32 %v512_v20, %v509_v19  ;;  %v258_v48 = vld [vmem:[%s3547_s14 + $0x8c] sm:$0x1]  ;;  %3263 = vmatprep.subr.bf16.mxu0 %v3445_v35  ;;  %v3821_v20 = vld [vmem:[%s3547_s14 + $0x90] sm:$0xf] }
  0x42   : > { %v522_v28 = vrot.slane %v520_v15, 4  ;;  %v533_v62 = vrot.slane %v531_v49, 4  ;;  %3264 = vmatpush3.bf16.msra.mxu0 %v3445_v35  ;;  %v558_v49 = vshll.u32 %v3821_v20, 16  ;;  %v3452_v15 = vld [vmem:[%s3547_s14 + $0xc0] sm:$0xff]  }
  0x43   : > { %v490_v8 = vrot.slane %v489_v54, 4  ;;  %3141 = vmatprep.mubr.bf16.mxu1 %v2744_v60  ;;  %v540_v54 = vshll.u32 %v3802_v34, 16  ;;  %v3444_v60 = vld [vmem:[%s3547_s14 + $0x90] sm:$0xff]   ;;  %v514_v61 = vrot.slane %v513_v42, 4  ;;  %v259_v42 = vld [vmem:[%s3547_s14 + $0x98] sm:$0x1] }
  0x44   : > { %v523_v52 = vor.u32 %v522_v28, %v518_v27 }
  0x45   : > { %v495_v24 = vsel %vm3588_vm2, %v490_v8, %v494_v40  ;;  %v534_v40 = vshll.u32 %v3795_v21, 16  ;;  %v542_v5 = vrot.slane %v540_v54, 5  ;;  %v546_v8 = vrot.slane %v544_v59, 4 }
  0x46   : > { %v524_v3 = vrot.slane %v523_v52, 4  ;;  %v519_v17 = vsel %vm3588_vm2, %v514_v61, %v518_v27  ;;  %v560_v59 = vrot.slane %v558_v49, 5  ;;  %v574_v61 = vshll.u32 %v259_v42, 16  ;;  %v3448_v42 = vld [vmem:[%s3547_s14 + $0xa8] sm:$0xff]  }
  0x47   : > { %3238 = vmatmul.mubr.bf16.gmra.mrb[16].mxu0 %v3440_v47  ;;  %v2745_v47 = vcombine.low %v495_v24, %v505_v38  ;;  %v536_v56 = vrot.slane %v534_v40, 5  ;;  %v3447_v24 = vld [vmem:[%s4217_s1 + $0x30] sm:$0xff]   ;;  %v547_v35 = vor.u32 %v546_v8, %v542_v5  ;;  %v3842_v8 = vld [vmem:[%s3547_s14 + $0xa0] sm:$0xf] }
  0x48   : > { %3241 = vmatprep.mubr.bf16.mxu0 %v3442_v50  ;;  %v550_v50 = vshll.u32 %v258_v48, 16  ;;  %v529_v28 = vsel %vm3588_vm2, %v524_v3, %v528_v33  ;;  %v3829_v38 = vld [vmem:[%s3547_s14 + $0x94] sm:$0xf]  ;;  %v555_v48 = vshrl.u32 %v3821_v20, 16  ;;  %3169 = vmatprep.subr.bf16.mxu1 %v3447_v24  ;;  %v3839_v3 = vld [vmem:[%s3547_s14 + $0x9c] sm:$0xf] }
  0x49   : > { %3142 = vmatmul.mubr.bf16.gmra.mrb[16].mxu1 %v2745_v47  ;;  %v537_v18 = vor.u32 %v536_v56, %v533_v62  ;;  %v2746_v27 = vcombine.low %v519_v17, %v529_v28  ;;  %v564_v47 = vshll.u32 %v3829_v38, 16  ;;  %v568_v52 = vshrl.u32 %v3829_v38, 16 }
  0x4a   : > { %v552_v19 = vrot.slane %v550_v50, 5  ;;  %v548_v54 = vrot.slane %v547_v35, 4  ;;  %v557_v33 = vrot.slane %v555_v48, 4  ;;  %3170 = vmatpush3.bf16.msra.mxu1 %v3447_v24  ;;  %v576_v28 = vrot.slane %v574_v61, 5  ;;  %v260_v24 = vld [vmem:[%s3547_s14 + $0xa4] sm:$0x1] }
  0x4b   : > { %v538_v40 = vrot.slane %v537_v18, 4  ;;  %3145 = vmatprep.mubr.bf16.mxu1 %v2746_v27  ;;  %v566_v56 = vrot.slane %v564_v47, 5  ;;  %v570_v50 = vrot.slane %v568_v52, 4  ;;  %v579_v35 = vshrl.u32 %v3839_v3, 16 }
  0x4c   : > { %v553_v17 = vsel %vm3588_vm2, %v548_v54, %v552_v19  ;;  %v561_v18 = vor.u32 %v560_v59, %v557_v33  ;;  %v588_v49 = vshll.u32 %v3842_v8, 16  ;;  %v592_v47 = vshrl.u32 %v3842_v8, 16  ;;  %v3449_v59 = vld [vmem:[%s4217_s1 + $0xf0] sm:$0xff]  }
  0x4d   : > { %v543_v62 = vsel %vm3588_vm2, %v538_v40, %v542_v5  ;;  %v571_v48 = vor.u32 %v570_v50, %v566_v56  ;;  %v581_v40 = vrot.slane %v579_v35, 4  ;;  %v598_v19 = vshll.u32 %v260_v24, 16  ;;  %3265 = vmatprep.subr.bf16.mxu0 %v3449_v59 }
  0x4e   : > { %v2747_v5 = vcombine.low %v543_v62, %v553_v17  ;;  %v562_v27 = vrot.slane %v561_v18, 4  ;;  %v590_v33 = vrot.slane %v588_v49, 5  ;;  %v594_v50 = vrot.slane %v592_v47, 4  ;;  %v3862_v18 = vld [vmem:[%s3547_s14 + $0xa8] sm:$0xf]  ;;  %3266 = vmatpush3.bf16.msra.mxu0 %v3449_v59 }
  0x4f   : > { %3242 = vmatmul.mubr.bf16.gmra.mrb[20].mxu0 %v3444_v60  ;;  %v572_v52 = vrot.slane %v571_v48, 4  ;;  %v600_v17 = vrot.slane %v598_v19, 5  ;;  %v261_v48 = vld [vmem:[%s3547_s14 + $0xb0] sm:$0x1]  ;;  %v606_v49 = vshll.u32 %v3862_v18, 16 }
  0x50   : > { %3245 = vmatprep.mubr.bf16.mxu0 %v3446_v14  ;;  %v582_v14 = vshll.u32 %v3839_v3, 16  ;;  %v567_v62 = vsel %vm3588_vm2, %v562_v27, %v566_v56  ;;  %v595_v56 = vor.u32 %v594_v50, %v590_v33  ;;  %v3879_v60 = vld [vmem:[%s3547_s14 + $0xb4] sm:$0xf] }
  0x51   : > { %3146 = vmatmul.mubr.bf16.gmra.mrb[20].mxu1 %v2747_v5  ;;  %v577_v24 = vsel %vm3588_vm2, %v572_v52, %v576_v28  ;;  %v3867_v5 = vld [vmem:[%s3547_s14 + $0xac] sm:$0xf]  ;;  %v608_v19 = vrot.slane %v606_v49, 5  ;;  %v622_v52 = vshll.u32 %v261_v48, 16  ;;  %v3887_v49 = vld [vmem:[%s3547_s14 + $0xb8] sm:$0xf] }
  0x52   : > { %v584_v54 = vrot.slane %v582_v14, 5  ;;  %v603_v14 = vshrl.u32 %v3862_v18, 16  ;;  %v2748_v61 = vcombine.low %v567_v62, %v577_v24  ;;  %v612_v27 = vshll.u32 %v3867_v5, 16  ;;  %v3451_v62 = vld [vmem:[%s4217_s1 + $0x38] sm:$0xff]  }
  0x53   : > { %v616_v47 = vshrl.u32 %v3867_v5, 16  ;;  %v596_v50 = vrot.slane %v595_v56, 4  ;;  %v624_v48 = vrot.slane %v622_v52, 5  ;;  %3171 = vmatprep.subr.bf16.mxu1 %v3451_v62  ;;  %v636_v59 = vshll.u32 %v3887_v49, 16 }
  0x54   : > { %v585_v35 = vor.u32 %v584_v54, %v581_v40  ;;  %v605_v40 = vrot.slane %v603_v14, 4  ;;  %v3450_v54 = vld [vmem:[%s3547_s14 + $0xb4] sm:$0xff]   ;;  %3149 = vmatprep.mubr.bf16.mxu1 %v2748_v61  ;;  %v614_v24 = vrot.slane %v612_v27, 5  ;;  %v627_v61 = vshrl.u32 %v3879_v60, 16  ;;  %3172 = vmatpush3.bf16.msra.mxu1 %v3451_v62 }
  0x55   : > { %v601_v56 = vsel %vm3588_vm2, %v596_v50, %v600_v17  ;;  %v638_v17 = vrot.slane %v636_v59, 5  ;;  %v646_v50 = vshll.u32 %v262_v23, 16  ;;  %v2856_v59 = vld [vmem:[%s3547_s14 + $0xc] sm:$0xf] }
  0x56   : > { %v586_v28 = vrot.slane %v585_v35, 4  ;;  %v609_v14 = vor.u32 %v608_v19, %v605_v40  ;;  %v640_v40 = vshrl.u32 %v3887_v49, 16  ;;  %v3453_v19 = vld [vmem:[%s4217_s1 + $0xf8] sm:$0xff]  }
  0x57   : > { %3246 = vmatmul.mubr.bf16.gmra.mrb[24].mxu0 %v3448_v42  ;;  %v618_v42 = vrot.slane %v616_v47, 4  ;;  %v630_v47 = vshll.u32 %v3879_v60, 16  ;;  %3267 = vmatprep.subr.bf16.mxu0 %v3453_v19 }
  0x58   : > { %v591_v35 = vsel %vm3588_vm2, %v586_v28, %v590_v33  ;;  %3249 = vmatprep.mubr.bf16.mxu0 %v3450_v54  ;;  %v610_v33 = vrot.slane %v609_v14, 4  ;;  %v629_v28 = vrot.slane %v627_v61, 4  ;;  %3268 = vmatpush3.bf16.msra.mxu0 %v3453_v19 }
  0x59   : > { %v619_v27 = vor.u32 %v618_v42, %v614_v24  ;;  %v2749_v51 = vcombine.low %v591_v35, %v601_v56  ;;  %v632_v54 = vrot.slane %v630_v47, 5  ;;  %v642_v42 = vrot.slane %v640_v40, 4  ;;  %v2859_v40 = vld [vmem:[%s3547_s14 + $0x18] sm:$0xf] }
  0x5a   : > { %v615_v62 = vsel %vm3588_vm2, %v610_v33, %v614_v24  ;;  %v648_v56 = vrot.slane %v646_v50, 5  ;;  %v2858_v24 = vld [vmem:[%s3547_s14 + $0x14] sm:$0x1]  ;;  %v1681_v47 = vshrl.u32 %v2856_v59, 16  ;;  %v1684_v33 = vshll.u32 %v2856_v59, 16 }
  0x5b   : > { %v620_v52 = vrot.slane %v619_v27, 4  ;;  %3150 = vmatmul.mubr.bf16.gmra.mrb[24].mxu1 %v2749_v51  ;;  %v633_v61 = vor.u32 %v632_v54, %v629_v28  ;;  %v2857_v27 = vld [vmem:[%s3547_s14 + $0x10] sm:$0xf]  ;;  %v643_v51 = vor.u32 %v642_v42, %v638_v17  ;;  %v1700_v2 = vshll.u32 %v2858_v24, 16  ;;  %v2861_v54 = vld [vmem:[%s3547_s14 + $0x20] sm:$0x1] }
  0x5c   : > { %v1690_v35 = vshll.u32 %v2857_v27, 16  ;;  %v1694_v31 = vshrl.u32 %v2857_v27, 16  ;;  %v1705_v50 = vshrl.u32 %v2859_v40, 16  ;;  %v2862_v59 = vld [vmem:[%s3547_s14 + $0x24] sm:$0xf] }
  0x5d   : > { %v625_v14 = vsel %vm3588_vm2, %v620_v52, %v624_v48  ;;  %v634_v7 = vrot.slane %v633_v61, 4  ;;  %v2860_v48 = vld [vmem:[%s3547_s14 + $0x1c] sm:$0xf]  ;;  %v644_v28 = vrot.slane %v643_v51, 4  ;;  %v1683_v52 = vrot.slane %v1681_v47, 4 }
  0x5e   : > { %v2750_v23 = vcombine.low %v615_v62, %v625_v14  ;;  %v1692_v19 = vrot.slane %v1690_v35, 5  ;;  %v1696_v42 = vrot.slane %v1694_v31, 4  ;;  %v1702_v14 = vrot.slane %v1700_v2, 5 }
  0x5f   : > { %3250 = vmatmul.mubr.bf16.gmra.mrb[28].mxu0 %v3452_v15  ;;  %v1686_v15 = vrot.slane %v1684_v33, 5  ;;  %v639_v62 = vsel %vm3588_vm2, %v634_v7, %v638_v17  ;;  %v649_v61 = vsel %vm3588_vm2, %v644_v28, %v648_v56  ;;  %v1707_v24 = vrot.slane %v1705_v50, 4  ;;  %v2863_v17 = vld [vmem:[%s3547_s14 + $0x28] sm:$0xf] }
  0x60   : > { %3153 = vmatprep.mubr.bf16.mxu1 %v2750_v23  ;;  %v1708_v23 = vshll.u32 %v2859_v40, 16  ;;  %v2751_v51 = vcombine.low %v639_v62, %v649_v61  ;;  %v1697_v47 = vor.u32 %v1696_v42, %v1692_v19  ;;  %v1714_v33 = vshll.u32 %v2860_v48, 16 }
  0x61   : > { %v1687_v27 = vor.u32 %v1686_v15, %v1683_v52  ;;  %v1718_v32 = vshrl.u32 %v2860_v48, 16  ;;  %v1724_v7 = vshll.u32 %v2861_v54, 16  ;;  %v1729_v35 = vshrl.u32 %v2862_v59, 16  ;;  %v2865_v15 = vld [vmem:[%s3547_s14 + $0x30] sm:$0xf] }
  0x62   : > { %v1710_v30 = vrot.slane %v1708_v23, 5  ;;  %v1698_v2 = vrot.slane %v1697_v47, 4  ;;  %v1716_v31 = vrot.slane %v1714_v33, 5  ;;  %v1732_v56 = vshll.u32 %v2862_v59, 16 }
  0x63   : > { %v1688_v26 = vrot.slane %v1687_v27, 4  ;;  %3154 = vmatmul.mubr.bf16.gmra.mrb[28].mxu1 %v2751_v51  ;;  %v1720_v11 = vrot.slane %v1718_v32, 4  ;;  %v1726_v28 = vrot.slane %v1724_v7, 5  ;;  %v1731_v52 = vrot.slane %v1729_v35, 4  ;;  %v2868_v51 = vld [vmem:[%s3547_s14 + $0x3c] sm:$0xf] }
  0x64   : > { %3173 = vmatprep.mubr.bf16.mxu1 %v2760_v22  ;;  %v1711_v48 = vor.u32 %v1710_v30, %v1707_v24  ;;  %v1703_v54 = vsel %vm3588_vm2, %v1698_v2, %v1702_v14  ;;  %v1734_v32 = vrot.slane %v1732_v56, 5  ;;  %v1738_v62 = vshll.u32 %v2863_v17, 16  ;;  %v2867_v30 = vld [vmem:[%s3547_s14 + $0x38] sm:$0x1] }
  0x65   : > { %v1693_v40 = vsel %vm3588_vm2, %v1688_v26, %v1692_v19  ;;  %v1721_v50 = vor.u32 %v1720_v11, %v1716_v31  ;;  %v1742_v61 = vshrl.u32 %v2863_v17, 16  ;;  %v1753_v19 = vshrl.u32 %v2865_v15, 16 }
  0x66   : > { %v2920_v42 = vcombine.low %v1693_v40, %v1703_v54  ;;  %v1712_v59 = vrot.slane %v1711_v48, 4  ;;  %v1735_v27 = vor.u32 %v1734_v32, %v1731_v52  ;;  %v1740_v26 = vrot.slane %v1738_v62, 5  ;;  %v2869_v40 = vld [vmem:[%s3547_s14 + $0x40] sm:$0xf] }
  0x67   : > { %v1722_v22 = vrot.slane %v1721_v50, 4  ;;  %v1744_v14 = vrot.slane %v1742_v61, 4  ;;  %v1750_v11 = vrot.slane %v1748_v12, 5  ;;  %v1756_v23 = vshll.u32 %v2865_v15, 16 }
  0x68   : > { %3269 = vmatprep.mubr.bf16.mxu0 %v2920_v42  ;;  %v1717_v24 = vsel %vm3588_vm2, %v1712_v59, %v1716_v31  ;;  %v1736_v33 = vrot.slane %v1735_v27, 4  ;;  %v1755_v41 = vrot.slane %v1753_v19, 4  ;;  %v1762_v7 = vshll.u32 %v2866_v13, 16  ;;  %v2870_v42 = vld [vmem:[%s3547_s14 + $0x44] sm:$0x1] }
  0x69   : > { %v1727_v47 = vsel %vm3588_vm2, %v1722_v22, %v1726_v28  ;;  %v1745_v35 = vor.u32 %v1744_v14, %v1740_v26  ;;  %v1758_v2 = vrot.slane %v1756_v23, 5  ;;  %v1766_v56 = vshrl.u32 %v2866_v13, 16  ;;  %v2871_v13 = vld [vmem:[%s3547_s14 + $0x48] sm:$0xf] }
  0x6a   : > { %v2921_v17 = vcombine.low %v1717_v24, %v1727_v47  ;;  %v4223_v48 = vcombine.low %v3573_v25, %v3576_v29  ;;  %v1741_v31 = vsel %vm3588_vm2, %v1736_v33, %v1740_v26  ;;  %v1764_v52 = vrot.slane %v1762_v7, 5  ;;  %v2873_v33 = vld [vmem:[%s3547_s14 + $0x50] sm:$0x1] }
  0x6b   : > { %v1772_v15 = vshll.u32 %v2867_v30, 16  ;;  %v1777_v28 = vshrl.u32 %v2868_v51, 16  ;;  %v4224_v54 = vcombine.low %v3603_v53, %v3608_v55  ;;  %v1746_v50 = vrot.slane %v1745_v35, 4  ;;  %v2872_v53 = vld [vmem:[%s3547_s14 + $0x4c] sm:$0xf] }
  0x6c   : > { %3174 = vmatmul.mubr.bf16.vlgmr.msra.gmra.mrb[0].mxu1 %v4223_v48  ;;  %3270 = vmatmul.mubr.bf16.vlgmr.msra.gmra.mrb[0].mxu0 %v2921_v17  ;;  %v1759_v32 = vor.u32 %v1758_v2, %v1755_v41  ;;  %v1768_v62 = vrot.slane %v1766_v56, 4  ;;  %v1780_v59 = vshll.u32 %v2868_v51, 16  ;;  %v1786_v61 = vshll.u32 %v2869_v40, 16  ;;  %v2874_v2 = vld [vmem:[%s3547_s14 + $0x54] sm:$0xf] }
  0x6d   : > { %3177 = vmatprep.mubr.bf16.mxu1 %v4224_v54  ;;  %v1774_v25 = vrot.slane %v1772_v15, 5  ;;  %v1779_v29 = vrot.slane %v1777_v28, 4  ;;  %v1790_v12 = vshrl.u32 %v2869_v40, 16  ;;  %v1751_v22 = vsel %vm3588_vm2, %v1746_v50, %v1750_v11  ;;  %v2875_v15 = vld [vmem:[%s3547_s14 + $0x58] sm:$0xf] }
  0x6e   : > { %v1760_v27 = vrot.slane %v1759_v32, 4  ;;  %v1769_v26 = vor.u32 %v1768_v62, %v1764_v52  ;;  %v1782_v30 = vrot.slane %v1780_v59, 5  ;;  %v2922_v55 = vcombine.low %v1741_v31, %v1751_v22  ;;  %v2877_v22 = vld [vmem:[%s3547_s14 + $0x60] sm:$0xf] }
  0x6f   : > { %v1788_v19 = vrot.slane %v1786_v61, 5  ;;  %v1792_v24 = vrot.slane %v1790_v12, 4  ;;  %v1796_v14 = vshll.u32 %v2870_v42, 16  ;;  %v1801_v41 = vshrl.u32 %v2871_v13, 16  ;;  %v2876_v61 = vld [vmem:[%s3547_s14 + $0x5c] sm:$0x1] }
  0x70   : > { %v1765_v23 = vsel %vm3588_vm2, %v1760_v27, %v1764_v52  ;;  %v1770_v51 = vrot.slane %v1769_v26, 4  ;;  %v1783_v47 = vor.u32 %v1782_v30, %v1779_v29  ;;  %3273 = vmatprep.mubr.bf16.mxu0 %v2922_v55  ;;  %v1804_v17 = vshll.u32 %v2871_v13, 16  ;;  %v2878_v30 = vld [vmem:[%s3547_s14 + $0x64] sm:$0xf] }
  0x71   : > { %v1793_v7 = vor.u32 %v1792_v24, %v1788_v19  ;;  %v1798_v11 = vrot.slane %v1796_v14, 5  ;;  %v1810_v35 = vshll.u32 %v2872_v53, 16  ;;  %v1803_v48 = vrot.slane %v1801_v41, 4 }
  0x72   : > { %v1775_v56 = vsel %vm3588_vm2, %v1770_v51, %v1774_v25  ;;  %v1784_v40 = vrot.slane %v1783_v47, 4  ;;  %v1814_v31 = vshrl.u32 %v2872_v53, 16  ;;  %v4225_v52 = vcombine.low %v3627_v9, %v3630_v10 }
  0x73   : > { %v2923_v28 = vcombine.low %v1765_v23, %v1775_v56  ;;  %v1794_v54 = vrot.slane %v1793_v7, 4  ;;  %v1806_v50 = vrot.slane %v1804_v17, 5  ;;  %v1812_v32 = vrot.slane %v1810_v35, 5  ;;  %v2880_v35 = vld [vmem:[%s3547_s14 + $0x6c] sm:$0xf] }
  0x74   : > { %3178 = vmatmul.mubr.bf16.gmra.mrb[4].mxu1 %v4225_v52  ;;  %v4226_v62 = vcombine.low %v3651_v44, %v3654_v45  ;;  %v1789_v42 = vsel %vm3588_vm2, %v1784_v40, %v1788_v19  ;;  %v1816_v59 = vrot.slane %v1814_v31, 4  ;;  %v1820_v25 = vshll.u32 %v2873_v33, 16  ;;  %v2881_v31 = vld [vmem:[%s3547_s14 + $0x70] sm:$0xf] }
  0x75   : > { %v1825_v29 = vshrl.u32 %v2874_v2, 16  ;;  %3274 = vmatmul.mubr.bf16.gmra.mrb[4].mxu0 %v2923_v28  ;;  %v1799_v9 = vsel %vm3588_vm2, %v1794_v54, %v1798_v11  ;;  %v1807_v10 = vor.u32 %v1806_v50, %v1803_v48  ;;  %v1828_v12 = vshll.u32 %v2874_v2, 16  ;;  %v2879_v11 = vld [vmem:[%s3547_s14 + $0x68] sm:$0x1] }
  0x76   : > { %3181 = vmatprep.mubr.bf16.mxu1 %v4226_v62  ;;  %v1834_v13 = vshll.u32 %v2875_v15, 16  ;;  %v2924_v27 = vcombine.low %v1789_v42, %v1799_v9  ;;  %v1817_v26 = vor.u32 %v1816_v59, %v1812_v32  ;;  %v1822_v44 = vrot.slane %v1820_v25, 5 }
  0x77   : > { %v1827_v45 = vrot.slane %v1825_v29, 4  ;;  %v1808_v53 = vrot.slane %v1807_v10, 4  ;;  %v1830_v55 = vrot.slane %v1828_v12, 5  ;;  %v1838_v24 = vshrl.u32 %v2875_v15, 16 }
  0x78   : > { %v1836_v19 = vrot.slane %v1834_v13, 5  ;;  %3277 = vmatprep.mubr.bf16.mxu0 %v2924_v27  ;;  %v1818_v14 = vrot.slane %v1817_v26, 4  ;;  %v1844_v23 = vshll.u32 %v2876_v61, 16  ;;  %v1849_v51 = vshrl.u32 %v2877_v22, 16 }
  0x79   : > { %v1852_v47 = vshll.u32 %v2877_v22, 16  ;;  %v1813_v33 = vsel %vm3588_vm2, %v1808_v53, %v1812_v32  ;;  %v1831_v41 = vor.u32 %v1830_v55, %v1827_v45  ;;  %v1840_v7 = vrot.slane %v1838_v24, 4  ;;  %v2884_v45 = vld [vmem:[%s3547_s14 + $0x7c] sm:$0xf] }
  0x7a   : > { %v1858_v17 = vshll.u32 %v2878_v30, 16  ;;  %v1823_v2 = vsel %vm3588_vm2, %v1818_v14, %v1822_v44  ;;  %v1846_v56 = vrot.slane %v1844_v23, 5  ;;  %v1851_v40 = vrot.slane %v1849_v51, 4  ;;  %v2885_v23 = vld [vmem:[%s3547_s14 + $0x80] sm:$0x1] }
  0x7b   : > { %v1854_v48 = vrot.slane %v1852_v47, 5  ;;  %v4227_v15 = vcombine.low %v3669_v0, %v3676_v4  ;;  %v2925_v52 = vcombine.low %v1813_v33, %v1823_v2  ;;  %v1832_v28 = vrot.slane %v1831_v41, 4  ;;  %v2882_v4 = vld [vmem:[%s3547_s14 + $0x74] sm:$0x1] }
  0x7c   : > { %v1841_v54 = vor.u32 %v1840_v7, %v1836_v19  ;;  %v1860_v50 = vrot.slane %v1858_v17, 5  ;;  %v4228_v32 = vcombine.low %v3693_v36, %v3702_v43  ;;  %v1862_v42 = vshrl.u32 %v2878_v30, 16  ;;  %v2883_v43 = vld [vmem:[%s3547_s14 + $0x78] sm:$0xf] }
  0x7d   : > { %3182 = vmatmul.mubr.bf16.gmra.mrb[8].mxu1 %v4227_v15  ;;  %v1855_v62 = vor.u32 %v1854_v48, %v1851_v40  ;;  %v1868_v59 = vshll.u32 %v2879_v11, 16  ;;  %v1873_v25 = vshrl.u32 %v2880_v35, 16  ;;  %3278 = vmatmul.mubr.bf16.gmra.mrb[8].mxu0 %v2925_v52  ;;  %v1837_v29 = vsel %vm3588_vm2, %v1832_v28, %v1836_v19  ;;  %v2886_v48 = vld [vmem:[%s3547_s14 + $0x84] sm:$0xf] }
  0x7e   : > { %3185 = vmatprep.mubr.bf16.mxu1 %v4228_v32  ;;  %v1842_v0 = vrot.slane %v1841_v54, 4  ;;  %v1876_v9 = vshll.u32 %v2880_v35, 16  ;;  %v1882_v10 = vshll.u32 %v2881_v31, 16  ;;  %v1864_v12 = vrot.slane %v1862_v42, 4 }
  0x7f   : > { %v1856_v61 = vrot.slane %v1855_v62, 4  ;;  %v1870_v13 = vrot.slane %v1868_v59, 5  ;;  %v1875_v36 = vrot.slane %v1873_v25, 4  ;;  %v1886_v44 = vshrl.u32 %v2881_v31, 16  ;;  %v2888_v25 = vld [vmem:[%s3547_s14 + $0x8c] sm:$0x1] }
  0x80   : > { %v1847_v22 = vsel %vm3588_vm2, %v1842_v0, %v1846_v56  ;;  %v1878_v27 = vrot.slane %v1876_v9, 5  ;;  %v1884_v26 = vrot.slane %v1882_v10, 5  ;;  %v1865_v55 = vor.u32 %v1864_v12, %v1860_v50  ;;  %v2889_v10 = vld [vmem:[%s3547_s14 + $0x90] sm:$0xf] }
  0x81   : > { %v2926_v30 = vcombine.low %v1837_v29, %v1847_v22  ;;  %v1861_v53 = vsel %vm3588_vm2, %v1856_v61, %v1860_v50  ;;  %v1892_v19 = vshll.u32 %v2882_v4, 16  ;;  %v1888_v14 = vrot.slane %v1886_v44, 4  ;;  %v2887_v50 = vld [vmem:[%s3547_s14 + $0x88] sm:$0xf] }
  0x82   : > { %v1879_v24 = vor.u32 %v1878_v27, %v1875_v36  ;;  %v1897_v51 = vshrl.u32 %v2883_v43, 16  ;;  %v1900_v47 = vshll.u32 %v2883_v43, 16  ;;  %v1866_v33 = vrot.slane %v1865_v55, 4  ;;  %v2890_v43 = vld [vmem:[%s3547_s14 + $0x94] sm:$0xf] }
  0x83   : > { %3281 = vmatprep.mubr.bf16.mxu0 %v2926_v30  ;;  %v1894_v41 = vrot.slane %v1892_v19, 5  ;;  %v1906_v7 = vshll.u32 %v2884_v45, 16  ;;  %v1910_v11 = vshrl.u32 %v2884_v45, 16  ;;  %v4229_v17 = vcombine.low %v3713_v63, %v3716_v1 }
  0x84   : > { %v1880_v35 = vrot.slane %v1879_v24, 4  ;;  %v1889_v2 = vor.u32 %v1888_v14, %v1884_v26  ;;  %v1899_v56 = vrot.slane %v1897_v51, 4  ;;  %v1902_v40 = vrot.slane %v1900_v47, 5  ;;  %v2892_v24 = vld [vmem:[%s3547_s14 + $0x9c] sm:$0xf] }
  0x85   : > { %3186 = vmatmul.mubr.bf16.gmra.mrb[12].mxu1 %v4229_v17  ;;  %v1871_v31 = vsel %vm3588_vm2, %v1866_v33, %v1870_v13  ;;  %v4230_v15 = vcombine.low %v3736_v39, %v3741_v46  ;;  %v1908_v52 = vrot.slane %v1906_v7, 5  ;;  %v1912_v28 = vrot.slane %v1910_v11, 4 }
  0x86   : > { %v1916_v54 = vshll.u32 %v2885_v23, 16  ;;  %v2927_v63 = vcombine.low %v1861_v53, %v1871_v31  ;;  %v1885_v1 = vsel %vm3588_vm2, %v1880_v35, %v1884_v26  ;;  %v1890_v32 = vrot.slane %v1889_v2, 4  ;;  %v2891_v53 = vld [vmem:[%s3547_s14 + $0x98] sm:$0x1]  ;;  %v2893_v2 = vld [vmem:[%s3547_s14 + $0xa0] sm:$0xf] }
  0x87   : > { %3189 = vmatprep.mubr.bf16.mxu1 %v4230_v15  ;;  %v1903_v62 = vor.u32 %v1902_v40, %v1899_v56  ;;  %v1913_v42 = vor.u32 %v1912_v28, %v1908_v52  ;;  %v1921_v29 = vshrl.u32 %v2886_v48, 16  ;;  %v1924_v0 = vshll.u32 %v2886_v48, 16 }
  0x88   : > { %v1918_v59 = vrot.slane %v1916_v54, 5  ;;  %3282 = vmatmul.mubr.bf16.gmra.mrb[12].mxu0 %v2927_v63  ;;  %v1895_v39 = vsel %vm3588_vm2, %v1890_v32, %v1894_v41  ;;  %v1930_v4 = vshll.u32 %v2887_v50, 16  ;;  %v1934_v9 = vshrl.u32 %v2887_v50, 16 }
  0x89   : > { %v1904_v46 = vrot.slane %v1903_v62, 4  ;;  %v2928_v61 = vcombine.low %v1885_v1, %v1895_v39  ;;  %v1914_v12 = vrot.slane %v1913_v42, 4  ;;  %v1923_v13 = vrot.slane %v1921_v29, 4 }
  0x8a   : > { %v1926_v36 = vrot.slane %v1924_v0, 5  ;;  %v1932_v27 = vrot.slane %v1930_v4, 5  ;;  %v1936_v26 = vrot.slane %v1934_v9, 4  ;;  %v1940_v44 = vshll.u32 %v2888_v25, 16 }
  0x8b   : > { %v1909_v22 = vsel %vm3588_vm2, %v1904_v46, %v1908_v52  ;;  %3285 = vmatprep.mubr.bf16.mxu0 %v2928_v61  ;;  %v1919_v45 = vsel %vm3588_vm2, %v1914_v12, %v1918_v59  ;;  %v1945_v55 = vshrl.u32 %v2889_v10, 16  ;;  %v1948_v19 = vshll.u32 %v2889_v10, 16  ;;  %v2894_v52 = vld [vmem:[%s3547_s14 + $0xa4] sm:$0x1]  ;;  %v2896_v59 = vld [vmem:[%s3547_s14 + $0xac] sm:$0xf] }
  0x8c   : > { %v1927_v30 = vor.u32 %v1926_v36, %v1923_v13  ;;  %v4231_v14 = vcombine.low %v3753_v6, %v3760_v16  ;;  %v2929_v23 = vcombine.low %v1909_v22, %v1919_v45  ;;  %v1937_v51 = vor.u32 %v1936_v26, %v1932_v27  ;;  %v2897_v10 = vld [vmem:[%s3547_s14 + $0xb0] sm:$0x1] }
  0x8d   : > { %v1942_v47 = vrot.slane %v1940_v44, 5  ;;  %v1954_v33 = vshll.u32 %v2890_v43, 16  ;;  %v4232_v41 = vcombine.low %v3781_v57, %v3784_v58  ;;  %v1947_v11 = vrot.slane %v1945_v55, 4  ;;  %v2895_v57 = vld [vmem:[%s3547_s14 + $0xa8] sm:$0xf] }
  0x8e   : > { %3190 = vmatmul.mubr.bf16.gmra.mrb[16].mxu1 %v4231_v14  ;;  %v1928_v7 = vrot.slane %v1927_v30, 4  ;;  %v1950_v17 = vrot.slane %v1948_v19, 5  ;;  %v1958_v35 = vshrl.u32 %v2890_v43, 16  ;;  %v1938_v56 = vrot.slane %v1937_v51, 4  ;;  %v2899_v55 = vld [vmem:[%s3547_s14 + $0xb8] sm:$0xf] }
  0x8f   : > { %3193 = vmatprep.mubr.bf16.mxu1 %v4232_v41  ;;  %v1956_v40 = vrot.slane %v1954_v33, 5  ;;  %v1964_v48 = vshll.u32 %v2891_v53, 16  ;;  %v1969_v6 = vshrl.u32 %v2892_v24, 16  ;;  %v1972_v28 = vshll.u32 %v2892_v24, 16 }
  0x90   : > { %v1933_v16 = vsel %vm3588_vm2, %v1928_v7, %v1932_v27  ;;  %v1951_v31 = vor.u32 %v1950_v17, %v1947_v11  ;;  %v1960_v15 = vrot.slane %v1958_v35, 4  ;;  %3286 = vmatmul.mubr.bf16.gmra.mrb[16].mxu0 %v2929_v23  ;;  %v1943_v58 = vsel %vm3588_vm2, %v1938_v56, %v1942_v47  ;;  %v2898_v27 = vld [vmem:[%s3547_s14 + $0xb4] sm:$0xf]  ;;  %v2900_v47 = vld [vmem:[%s3547_s14 + $0xbc] sm:$0x1] }
  0x91   : > { %v1966_v54 = vrot.slane %v1964_v48, 5  ;;  %v1971_v50 = vrot.slane %v1969_v6, 4  ;;  %v1978_v63 = vshll.u32 %v2893_v2, 16  ;;  %v2930_v1 = vcombine.low %v1933_v16, %v1943_v58  ;;  %v2901_v56 = vld [vmem:[%s3547_s14 + $0xc0] sm:$0xf] }
  0x92   : > { %v1952_v32 = vrot.slane %v1951_v31, 4  ;;  %v1961_v62 = vor.u32 %v1960_v15, %v1956_v40  ;;  %v1974_v42 = vrot.slane %v1972_v28, 5  ;;  %v1982_v29 = vshrl.u32 %v2893_v2, 16  ;;  %v2902_v31 = vld [vmem:[%s3547_s14 + $0xc4] sm:$0xf] }
  0x93   : > { %v1980_v25 = vrot.slane %v1978_v63, 5  ;;  %v1988_v0 = vshll.u32 %v2894_v52, 16  ;;  %v1993_v39 = vshrl.u32 %v2895_v57, 16  ;;  %3289 = vmatprep.mubr.bf16.mxu0 %v2930_v1  ;;  %v1996_v61 = vshll.u32 %v2895_v57, 16  ;;  %v2903_v63 = vld [vmem:[%s3547_s14 + $0xc8] sm:$0x1] }
  0x94   : > { %v1957_v46 = vsel %vm3588_vm2, %v1952_v32, %v1956_v40  ;;  %v1962_v4 = vrot.slane %v1961_v62, 4  ;;  %v1975_v9 = vor.u32 %v1974_v42, %v1971_v50  ;;  %v4233_v12 = vcombine.low %v3795_v21, %v3802_v34 }
  0x95   : > { %v1984_v13 = vrot.slane %v1982_v29, 4  ;;  %v1990_v36 = vrot.slane %v1988_v0, 5  ;;  %v1995_v43 = vrot.slane %v1993_v39, 4  ;;  %v2002_v22 = vshll.u32 %v2896_v59, 16 }
  0x96   : > { %3194 = vmatmul.mubr.bf16.gmra.mrb[20].mxu1 %v4233_v12  ;;  %v1967_v26 = vsel %vm3588_vm2, %v1962_v4, %v1966_v54  ;;  %v4234_v44 = vcombine.low %v3821_v20, %v3829_v38  ;;  %v1976_v45 = vrot.slane %v1975_v9, 4  ;;  %v1998_v30 = vrot.slane %v1996_v61, 5 }
  0x97   : > { %v2006_v53 = vshrl.u32 %v2896_v59, 16  ;;  %v2931_v19 = vcombine.low %v1957_v46, %v1967_v26  ;;  %v1985_v21 = vor.u32 %v1984_v13, %v1980_v25  ;;  %v2004_v34 = vrot.slane %v2002_v22, 5 }
  0x98   : > { %3197 = vmatprep.mubr.bf16.mxu1 %v4234_v44  ;;  %v2012_v24 = vshll.u32 %v2897_v10, 16  ;;  %v1981_v14 = vsel %vm3588_vm2, %v1976_v45, %v1980_v25  ;;  %v1999_v23 = vor.u32 %v1998_v30, %v1995_v43  ;;  %v2017_v33 = vshrl.u32 %v2898_v27, 16 }
  0x99   : > { %v2008_v51 = vrot.slane %v2006_v53, 4  ;;  %3290 = vmatmul.mubr.bf16.gmra.mrb[20].mxu0 %v2931_v19  ;;  %v1986_v20 = vrot.slane %v1985_v21, 4  ;;  %v2020_v41 = vshll.u32 %v2898_v27, 16  ;;  %v2026_v7 = vshll.u32 %v2899_v55, 16 }
  0x9a   : > { %v2014_v38 = vrot.slane %v2012_v24, 5  ;;  %v2000_v11 = vrot.slane %v1999_v23, 4  ;;  %v2019_v35 = vrot.slane %v2017_v33, 4  ;;  %v2030_v2 = vshrl.u32 %v2899_v55, 16  ;;  %v4072_v55 = vld [vmem:[%s4218_s2] ss:$0 sm:$0xff] }
  0x9b   : > { %v2009_v17 = vor.u32 %v2008_v51, %v2004_v34  ;;  %v1991_v40 = vsel %vm3588_vm2, %v1986_v20, %v1990_v36  ;;  %v2022_v48 = vrot.slane %v2020_v41, 5  ;;  %v2028_v6 = vrot.slane %v2026_v7, 5 }
  0x9c   : > { %v2036_v16 = vshll.u32 %v2900_v47, 16  ;;  %v2932_v15 = vcombine.low %v1981_v14, %v1991_v40  ;;  %v2005_v52 = vsel %vm3588_vm2, %v2000_v11, %v2004_v34  ;;  %v2032_v57 = vrot.slane %v2030_v2, 4  ;;  %v4077_v34 = vld [vmem:[%s4219_s3] ss:$0 sm:$0xff] }
  0x9d   : > { %v2010_v28 = vrot.slane %v2009_v17, 4  ;;  %v4235_v58 = vcombine.low %v3839_v3, %v3842_v8  ;;  %v2023_v54 = vor.u32 %v2022_v48, %v2019_v35  ;;  %v2041_v1 = vshrl.u32 %v2901_v56, 16 }
  0x9e   : > { %v2038_v50 = vrot.slane %v2036_v16, 5  ;;  %v2044_v32 = vshll.u32 %v2901_v56, 16  ;;  %3293 = vmatprep.mubr.bf16.mxu0 %v2932_v15  ;;  %v4236_v42 = vcombine.low %v3862_v18, %v3867_v5  ;;  %v2033_v59 = vor.u32 %v2032_v57, %v2028_v6 }
  0x9f   : > { %3198 = vmatmul.mubr.bf16.gmra.mrb[24].mxu1 %v4235_v58  ;;  %v2015_v62 = vsel %vm3588_vm2, %v2010_v28, %v2014_v38  ;;  %v2050_v25 = vshll.u32 %v2902_v31, 16  ;;  %v2054_v29 = vshrl.u32 %v2902_v31, 16  ;;  %v2024_v39 = vrot.slane %v2023_v54, 4 }
  0xa0   : > { %3201 = vmatprep.mubr.bf16.mxu1 %v4236_v42  ;;  %v2933_v0 = vcombine.low %v2005_v52, %v2015_v62  ;;  %v2043_v3 = vrot.slane %v2041_v1, 4  ;;  %v2046_v8 = vrot.slane %v2044_v32, 5  ;;  %v2034_v46 = vrot.slane %v2033_v59, 4 }
  0xa1   : > { %v2052_v4 = vrot.slane %v2050_v25, 5  ;;  %v2056_v9 = vrot.slane %v2054_v29, 4  ;;  %v2060_v10 = vshll.u32 %v2903_v63, 16  ;;  %v2029_v61 = vsel %vm3588_vm2, %v2024_v39, %v2028_v6 }
  0xa2   : > { %3294 = vmatmul.mubr.bf16.gmra.mrb[24].mxu0 %v2933_v0  ;;  %v2047_v12 = vor.u32 %v2046_v8, %v2043_v3  ;;  %v2039_v18 = vsel %vm3588_vm2, %v2034_v46, %v2038_v50  ;;  %v4237_v27 = vcombine.low %v3879_v60, %v3887_v49 }
  0xa3   : > { %v2057_v5 = vor.u32 %v2056_v9, %v2052_v4  ;;  %v2062_v13 = vrot.slane %v2060_v10, 5  ;;  %v2934_v36 = vcombine.low %v2029_v61, %v2039_v18 }
  0xa4   : > { %v2048_v43 = vrot.slane %v2047_v12, 4 }
  0xa5   : > { %v2058_v22 = vrot.slane %v2057_v5, 4  ;;  %3297 = vmatprep.mubr.bf16.mxu0 %v2934_v36 }
  0xa6   : > { %v2053_v26 = vsel %vm3588_vm2, %v2048_v43, %v2052_v4 }
  0xa7   : > { %3202 = vmatmul.mubr.bf16.gmra.mrb[28].mxu1 %v4237_v27  ;;  %v2063_v44 = vsel %vm3588_vm2, %v2058_v22, %v2062_v13 }
  0xa8   : > { %v2935_v45 = vcombine.low %v2053_v26, %v2063_v44 }
  0xaa   : > { %3298 = vmatmul.mubr.bf16.gmra.mrb[28].mxu0 %v2935_v45 }
 0x13f   : > { %v3175_v30 = vpop.f32.mrb[0].mxu1  ;;  %v3271_v53 = vpop.f32.mrb[0].mxu0 }
 0x140   : > { %v1118_v19 = vpop.f32.mrb[1].mxu1  ;;  %v3301_v21 = vadd.f32 %v3271_v53, %v3175_v30  ;;  %v2227_v60 = vpop.f32.mrb[1].mxu0 }
 0x141   : > { %v3176_v49 = vpop.f32.mrb[2].mxu1  ;;  %v3302_v37 = vadd.f32 %v2227_v60, %v1118_v19  ;;  %v3272_v24 = vpop.f32.mrb[2].mxu0 }
 0x142   : > { %v1121_v14 = vpop.f32.mrb[3].mxu1  ;;  %v2395_v23 = vmul.f32 %v3301_v21, %v4072_v55  ;;  %v3303_v51 = vadd.f32 %v3272_v24, %v3176_v49  ;;  %v2230_v47 = vpop.f32.mrb[3].mxu0 }
 0x143   : > { %v2393_v33 = vmul.f32 %v3302_v37, %v4072_v55  ;;  %v3304_v20 = vadd.f32 %v2230_v47, %v1121_v14 }
 0x144   : > { %v2434_v38 = vadd.f32 %v4077_v34, %v2395_v23  ;;  %v2396_v41 = vmul.f32 %v3303_v51, %v4072_v55 }
 0x145   : > { %v2432_v7 = vadd.f32 %v4077_v34, %v2393_v33  ;;  %v2394_v11 = vmul.f32 %v3304_v20, %v4072_v55 }
 0x146   : > { %v2466_v17 = vmax.f32 %v2434_v38, 0.0  ;;  %v2435_v35 = vadd.f32 %v4077_v34, %v2396_v41 }
 0x147   : > { %v3179_v2 = vpop.f32.mrb[4].mxu1  ;;  %v2464_v56 = vmax.f32 %v2432_v7, 0.0  ;;  %v2433_v40 = vadd.f32 %v4077_v34, %v2394_v11 }
 0x148   : > { %v1134_v48 = vpop.f32.mrb[5].mxu1  ;;  %v2983_v6 = vpack.c.bf16 %v2466_v17, %v2466_v17  ;;  %v2467_v16 = vmax.f32 %v2435_v35, 0.0  ;;  %v3275_v31 = vpop.f32.mrb[4].mxu0 }
 0x149   : > { %v3180_v15 = vpop.f32.mrb[6].mxu1  ;;  %v2981_v52 = vpack.c.bf16 %v2464_v56, %v2464_v56  ;;  %v2465_v28 = vmax.f32 %v2433_v40, 0.0  ;;  %v3305_v57 = vadd.f32 %v3275_v31, %v3179_v2  ;;  %v2243_v58 = vpop.f32.mrb[5].mxu0 }
 0x14a   : > { %v1137_v54 = vpop.f32.mrb[7].mxu1  ;;  %2627 = vst.msk [vmem:[%s4090_s21 + $0x8] sm:$0xf] %vm2624_vm3, %v2983_v6  ;;  %v2984_v50 = vpack.c.bf16 %v2467_v16, %v2467_v16  ;;  %v3306_v63 = vadd.f32 %v2243_v58, %v1134_v48  ;;  %v3276_v1 = vpop.f32.mrb[6].mxu0 }
 0x14b   : > { %2625 = vst.msk [vmem:[%s4090_s21] sm:$0xf] %vm2624_vm3, %v2981_v52  ;;  %v2982_v32 = vpack.c.bf16 %v2465_v28, %v2465_v28  ;;  %v2399_v62 = vmul.f32 %v3305_v57, %v4072_v55  ;;  %v3307_v42 = vadd.f32 %v3276_v1, %v3180_v15  ;;  %v2246_v59 = vpop.f32.mrb[7].mxu0 }
 0x14c   : > { %2628 = vst.msk [vmem:[%s4090_s21 + $0xc] sm:$0xf] %vm2624_vm3, %v2984_v50  ;;  %v2397_v25 = vmul.f32 %v3306_v63, %v4072_v55  ;;  %v3308_v29 = vadd.f32 %v2246_v59, %v1137_v54 }
 0x14d   : > { %2626 = vst.msk [vmem:[%s4090_s21 + $0x4] sm:$0xf] %vm2624_vm3, %v2982_v32  ;;  %v2438_v0 = vadd.f32 %v4077_v34, %v2399_v62  ;;  %v2400_v39 = vmul.f32 %v3307_v42, %v4072_v55 }
 0x14e   : > { %v2436_v3 = vadd.f32 %v4077_v34, %v2397_v25  ;;  %v2398_v8 = vmul.f32 %v3308_v29, %v4072_v55 }
 0x14f   : > { %v2470_v4 = vmax.f32 %v2438_v0, 0.0  ;;  %v2439_v9 = vadd.f32 %v4077_v34, %v2400_v39 }
 0x150   : > { %v3183_v46 = vpop.f32.mrb[8].mxu1  ;;  %v2468_v61 = vmax.f32 %v2436_v3, 0.0  ;;  %v2437_v12 = vadd.f32 %v4077_v34, %v2398_v8  ;;  %v3279_v18 = vpop.f32.mrb[8].mxu0 }
 0x151   : > { %v1150_v10 = vpop.f32.mrb[9].mxu1  ;;  %v2987_v13 = vpack.c.bf16 %v2470_v4, %v2470_v4  ;;  %v2471_v36 = vmax.f32 %v2439_v9, 0.0  ;;  %v3309_v43 = vadd.f32 %v3279_v18, %v3183_v46  ;;  %v2259_v22 = vpop.f32.mrb[9].mxu0 }
 0x152   : > { %v3184_v5 = vpop.f32.mrb[10].mxu1  ;;  %v2985_v26 = vpack.c.bf16 %v2468_v61, %v2468_v61  ;;  %v2469_v44 = vmax.f32 %v2437_v12, 0.0  ;;  %v3310_v45 = vadd.f32 %v2259_v22, %v1150_v10  ;;  %v3280_v30 = vpop.f32.mrb[10].mxu0 }
 0x153   : > { %v1153_v27 = vpop.f32.mrb[11].mxu1  ;;  %2631 = vst.msk [vmem:[%s4090_s21 + $0x18] sm:$0xf] %vm2624_vm3, %v2987_v13  ;;  %v2988_v53 = vpack.c.bf16 %v2471_v36, %v2471_v36  ;;  %v2403_v19 = vmul.f32 %v3309_v43, %v4072_v55  ;;  %v3311_v21 = vadd.f32 %v3280_v30, %v3184_v5  ;;  %v2262_v60 = vpop.f32.mrb[11].mxu0 }
 0x154   : > { %2629 = vst.msk [vmem:[%s4090_s21 + $0x10] sm:$0xf] %vm2624_vm3, %v2985_v26  ;;  %v2986_v49 = vpack.c.bf16 %v2469_v44, %v2469_v44  ;;  %v2401_v37 = vmul.f32 %v3310_v45, %v4072_v55  ;;  %v3312_v24 = vadd.f32 %v2262_v60, %v1153_v27 }
 0x155   : > { %2632 = vst.msk [vmem:[%s4090_s21 + $0x1c] sm:$0xf] %vm2624_vm3, %v2988_v53  ;;  %v2442_v14 = vadd.f32 %v4077_v34, %v2403_v19  ;;  %v2404_v23 = vmul.f32 %v3311_v21, %v4072_v55 }
 0x156   : > { %2630 = vst.msk [vmem:[%s4090_s21 + $0x14] sm:$0xf] %vm2624_vm3, %v2986_v49  ;;  %v2440_v51 = vadd.f32 %v4077_v34, %v2401_v37  ;;  %v2402_v47 = vmul.f32 %v3312_v24, %v4072_v55 }
 0x157   : > { %v2474_v20 = vmax.f32 %v2442_v14, 0.0  ;;  %v2443_v38 = vadd.f32 %v4077_v34, %v2404_v23 }
 0x158   : > { %v3187_v33 = vpop.f32.mrb[12].mxu1  ;;  %v2472_v7 = vmax.f32 %v2440_v51, 0.0  ;;  %v2441_v11 = vadd.f32 %v4077_v34, %v2402_v47 }
 0x159   : > { %v1166_v41 = vpop.f32.mrb[13].mxu1  ;;  %v2991_v35 = vpack.c.bf16 %v2474_v20, %v2474_v20  ;;  %v2475_v2 = vmax.f32 %v2443_v38, 0.0 }
 0x15a   : > { %v3188_v17 = vpop.f32.mrb[14].mxu1  ;;  %v2989_v40 = vpack.c.bf16 %v2472_v7, %v2472_v7  ;;  %v2473_v48 = vmax.f32 %v2441_v11, 0.0 }
 0x15b   : > { %v1169_v56 = vpop.f32.mrb[15].mxu1  ;;  %v3283_v6 = vpop.f32.mrb[12].mxu0  ;;  %2635 = vst.msk [vmem:[%s4090_s21 + $0x28] sm:$0xf] %vm2624_vm3, %v2991_v35  ;;  %v2992_v16 = vpack.c.bf16 %v2475_v2, %v2475_v2 }
 0x15c   : > { %v3313_v31 = vadd.f32 %v3283_v6, %v3187_v33  ;;  %v2275_v15 = vpop.f32.mrb[13].mxu0  ;;  %2633 = vst.msk [vmem:[%s4090_s21 + $0x20] sm:$0xf] %vm2624_vm3, %v2989_v40  ;;  %v2990_v52 = vpack.c.bf16 %v2473_v48, %v2473_v48 }
 0x15d   : > { %v3314_v28 = vadd.f32 %v2275_v15, %v1166_v41  ;;  %v3284_v57 = vpop.f32.mrb[14].mxu0  ;;  %2636 = vst.msk [vmem:[%s4090_s21 + $0x2c] sm:$0xf] %vm2624_vm3, %v2992_v16 }
 0x15e   : > { %v2407_v58 = vmul.f32 %v3313_v31, %v4072_v55  ;;  %v3315_v54 = vadd.f32 %v3284_v57, %v3188_v17  ;;  %v2278_v50 = vpop.f32.mrb[15].mxu0  ;;  %2634 = vst.msk [vmem:[%s4090_s21 + $0x24] sm:$0xf] %vm2624_vm3, %v2990_v52 }
 0x15f   : > { %v2405_v63 = vmul.f32 %v3314_v28, %v4072_v55  ;;  %v3316_v1 = vadd.f32 %v2278_v50, %v1169_v56 }
 0x160   : > { %v2446_v62 = vadd.f32 %v4077_v34, %v2407_v58  ;;  %v2408_v42 = vmul.f32 %v3315_v54, %v4072_v55 }
 0x161   : > { %v3191_v32 = vpop.f32.mrb[16].mxu1  ;;  %v2444_v25 = vadd.f32 %v4077_v34, %v2405_v63  ;;  %v2406_v29 = vmul.f32 %v3316_v1, %v4072_v55 }
 0x162   : > { %v1182_v59 = vpop.f32.mrb[17].mxu1  ;;  %v2478_v39 = vmax.f32 %v2446_v62, 0.0  ;;  %v2447_v3 = vadd.f32 %v4077_v34, %v2408_v42 }
 0x163   : > { %v3192_v0 = vpop.f32.mrb[18].mxu1  ;;  %v2476_v46 = vmax.f32 %v2444_v25, 0.0  ;;  %v2445_v4 = vadd.f32 %v4077_v34, %v2406_v29  ;;  %v3287_v9 = vpop.f32.mrb[16].mxu0 }
 0x164   : > { %v1185_v8 = vpop.f32.mrb[19].mxu1  ;;  %v2995_v10 = vpack.c.bf16 %v2478_v39, %v2478_v39  ;;  %v2479_v61 = vmax.f32 %v2447_v3, 0.0  ;;  %v3317_v12 = vadd.f32 %v3287_v9, %v3191_v32  ;;  %v2291_v18 = vpop.f32.mrb[17].mxu0 }
 0x165   : > { %v2993_v5 = vpack.c.bf16 %v2476_v46, %v2476_v46  ;;  %v2477_v13 = vmax.f32 %v2445_v4, 0.0  ;;  %v3318_v36 = vadd.f32 %v2291_v18, %v1182_v59  ;;  %v3288_v43 = vpop.f32.mrb[18].mxu0 }
 0x166   : > { %2639 = vst.msk [vmem:[%s4090_s21 + $0x38] sm:$0xf] %vm2624_vm3, %v2995_v10  ;;  %v2996_v22 = vpack.c.bf16 %v2479_v61, %v2479_v61  ;;  %v2411_v27 = vmul.f32 %v3317_v12, %v4072_v55  ;;  %v3319_v26 = vadd.f32 %v3288_v43, %v3192_v0  ;;  %v2294_v44 = vpop.f32.mrb[19].mxu0 }
 0x167   : > { %2637 = vst.msk [vmem:[%s4090_s21 + $0x30] sm:$0xf] %vm2624_vm3, %v2993_v5  ;;  %v2994_v45 = vpack.c.bf16 %v2477_v13, %v2477_v13  ;;  %v2409_v30 = vmul.f32 %v3318_v36, %v4072_v55  ;;  %v3320_v53 = vadd.f32 %v2294_v44, %v1185_v8 }
 0x168   : > { %2640 = vst.msk [vmem:[%s4090_s21 + $0x3c] sm:$0xf] %vm2624_vm3, %v2996_v22  ;;  %v2450_v21 = vadd.f32 %v4077_v34, %v2411_v27  ;;  %v2412_v60 = vmul.f32 %v3319_v26, %v4072_v55 }
 0x169   : > { %v3195_v19 = vpop.f32.mrb[20].mxu1  ;;  %2638 = vst.msk [vmem:[%s4090_s21 + $0x34] sm:$0xf] %vm2624_vm3, %v2994_v45  ;;  %v2448_v37 = vadd.f32 %v4077_v34, %v2409_v30  ;;  %v2410_v24 = vmul.f32 %v3320_v53, %v4072_v55 }
 0x16a   : > { %v1198_v49 = vpop.f32.mrb[21].mxu1  ;;  %v2482_v23 = vmax.f32 %v2450_v21, 0.0  ;;  %v2451_v51 = vadd.f32 %v4077_v34, %v2412_v60 }
 0x16b   : > { %v3196_v14 = vpop.f32.mrb[22].mxu1  ;;  %v2480_v33 = vmax.f32 %v2448_v37, 0.0  ;;  %v2449_v20 = vadd.f32 %v4077_v34, %v2410_v24 }
 0x16c   : > { %v1201_v47 = vpop.f32.mrb[23].mxu1  ;;  %v3291_v38 = vpop.f32.mrb[20].mxu0  ;;  %v2999_v41 = vpack.c.bf16 %v2482_v23, %v2482_v23  ;;  %v2483_v7 = vmax.f32 %v2451_v51, 0.0 }
 0x16d   : > { %v3321_v11 = vadd.f32 %v3291_v38, %v3195_v19  ;;  %v2307_v17 = vpop.f32.mrb[21].mxu0  ;;  %v2997_v35 = vpack.c.bf16 %v2480_v33, %v2480_v33  ;;  %v2481_v2 = vmax.f32 %v2449_v20, 0.0 }
 0x16e   : > { %v3322_v56 = vadd.f32 %v2307_v17, %v1198_v49  ;;  %v3292_v40 = vpop.f32.mrb[22].mxu0  ;;  %2643 = vst.msk [vmem:[%s4090_s21 + $0x48] sm:$0xf] %vm2624_vm3, %v2999_v41  ;;  %v3000_v48 = vpack.c.bf16 %v2483_v7, %v2483_v7 }
 0x16f   : > { %v2415_v6 = vmul.f32 %v3321_v11, %v4072_v55  ;;  %v3323_v16 = vadd.f32 %v3292_v40, %v3196_v14  ;;  %v2310_v31 = vpop.f32.mrb[23].mxu0  ;;  %2641 = vst.msk [vmem:[%s4090_s21 + $0x40] sm:$0xf] %vm2624_vm3, %v2997_v35  ;;  %v2998_v15 = vpack.c.bf16 %v2481_v2, %v2481_v2 }
 0x170   : > { %v2413_v52 = vmul.f32 %v3322_v56, %v4072_v55  ;;  %v3324_v28 = vadd.f32 %v2310_v31, %v1201_v47  ;;  %2644 = vst.msk [vmem:[%s4090_s21 + $0x4c] sm:$0xf] %vm2624_vm3, %v3000_v48 }
 0x171   : > { %v2454_v58 = vadd.f32 %v4077_v34, %v2415_v6  ;;  %v2416_v54 = vmul.f32 %v3323_v16, %v4072_v55  ;;  %2642 = vst.msk [vmem:[%s4090_s21 + $0x44] sm:$0xf] %vm2624_vm3, %v2998_v15 }
 0x172   : > { %v3199_v57 = vpop.f32.mrb[24].mxu1  ;;  %v2452_v63 = vadd.f32 %v4077_v34, %v2413_v52  ;;  %v2414_v1 = vmul.f32 %v3324_v28, %v4072_v55 }
 0x173   : > { %v1214_v50 = vpop.f32.mrb[25].mxu1  ;;  %v2486_v62 = vmax.f32 %v2454_v58, 0.0  ;;  %v2455_v42 = vadd.f32 %v4077_v34, %v2416_v54 }
 0x174   : > { %v3200_v32 = vpop.f32.mrb[26].mxu1  ;;  %v2484_v25 = vmax.f32 %v2452_v63, 0.0  ;;  %v2453_v29 = vadd.f32 %v4077_v34, %v2414_v1 }
 0x175   : > { %v1217_v59 = vpop.f32.mrb[27].mxu1  ;;  %v3295_v0 = vpop.f32.mrb[24].mxu0  ;;  %v3003_v39 = vpack.c.bf16 %v2486_v62, %v2486_v62  ;;  %v2487_v3 = vmax.f32 %v2455_v42, 0.0 }
 0x176   : > { %v3325_v8 = vadd.f32 %v3295_v0, %v3199_v57  ;;  %v2323_v46 = vpop.f32.mrb[25].mxu0  ;;  %v3001_v4 = vpack.c.bf16 %v2484_v25, %v2484_v25  ;;  %v2485_v9 = vmax.f32 %v2453_v29, 0.0 }
 0x177   : > { %v3326_v10 = vadd.f32 %v2323_v46, %v1214_v50  ;;  %v3296_v61 = vpop.f32.mrb[26].mxu0  ;;  %2647 = vst.msk [vmem:[%s4090_s21 + $0x58] sm:$0xf] %vm2624_vm3, %v3003_v39  ;;  %v3004_v12 = vpack.c.bf16 %v2487_v3, %v2487_v3 }
 0x178   : > { %v2419_v18 = vmul.f32 %v3325_v8, %v4072_v55  ;;  %v3327_v5 = vadd.f32 %v3296_v61, %v3200_v32  ;;  %v2326_v13 = vpop.f32.mrb[27].mxu0  ;;  %2645 = vst.msk [vmem:[%s4090_s21 + $0x50] sm:$0xf] %vm2624_vm3, %v3001_v4  ;;  %v3002_v36 = vpack.c.bf16 %v2485_v9, %v2485_v9 }
 0x179   : > { %v2417_v43 = vmul.f32 %v3326_v10, %v4072_v55  ;;  %v3328_v22 = vadd.f32 %v2326_v13, %v1217_v59  ;;  %2648 = vst.msk [vmem:[%s4090_s21 + $0x5c] sm:$0xf] %vm2624_vm3, %v3004_v12 }
 0x17a   : > { %v3203_v27 = vpop.f32.mrb[28].mxu1  ;;  %v2458_v26 = vadd.f32 %v4077_v34, %v2419_v18  ;;  %v2420_v44 = vmul.f32 %v3327_v5, %v4072_v55  ;;  %2646 = vst.msk [vmem:[%s4090_s21 + $0x54] sm:$0xf] %vm2624_vm3, %v3002_v36 }
 0x17b   : > { %v1230_v45 = vpop.f32.mrb[29].mxu1  ;;  %v2456_v30 = vadd.f32 %v4077_v34, %v2417_v43  ;;  %v2418_v53 = vmul.f32 %v3328_v22, %v4072_v55 }
 0x17c   : > { %v3204_v19 = vpop.f32.mrb[30].mxu1  ;;  %v2490_v21 = vmax.f32 %v2458_v26, 0.0  ;;  %v2459_v60 = vadd.f32 %v4077_v34, %v2420_v44 }
 0x17d   : > { %v1233_v49 = vpop.f32.mrb[31].mxu1  ;;  %v2488_v37 = vmax.f32 %v2456_v30, 0.0  ;;  %v2457_v24 = vadd.f32 %v4077_v34, %v2418_v53  ;;  %v3299_v14 = vpop.f32.mrb[28].mxu0 }
 0x17e   : > { %v3007_v23 = vpack.c.bf16 %v2490_v21, %v2490_v21  ;;  %v2491_v51 = vmax.f32 %v2459_v60, 0.0  ;;  %v3329_v47 = vadd.f32 %v3299_v14, %v3203_v27  ;;  %v2339_v33 = vpop.f32.mrb[29].mxu0 }
 0x17f   : > { %v3005_v20 = vpack.c.bf16 %v2488_v37, %v2488_v37  ;;  %v2489_v38 = vmax.f32 %v2457_v24, 0.0  ;;  %v3330_v41 = vadd.f32 %v2339_v33, %v1230_v45  ;;  %v3300_v7 = vpop.f32.mrb[30].mxu0 }
 0x180   : > { %2651 = vst.msk [vmem:[%s4090_s21 + $0x68] sm:$0xf] %vm2624_vm3, %v3007_v23  ;;  %v3008_v11 = vpack.c.bf16 %v2491_v51, %v2491_v51  ;;  %v2423_v17 = vmul.f32 %v3329_v47, %v4072_v55  ;;  %v3331_v35 = vadd.f32 %v3300_v7, %v3204_v19  ;;  %v2342_v2 = vpop.f32.mrb[31].mxu0 }
 0x181   : > { %2649 = vst.msk [vmem:[%s4090_s21 + $0x60] sm:$0xf] %vm2624_vm3, %v3005_v20  ;;  %v3006_v56 = vpack.c.bf16 %v2489_v38, %v2489_v38  ;;  %v2421_v40 = vmul.f32 %v3330_v41, %v4072_v55  ;;  %v3332_v48 = vadd.f32 %v2342_v2, %v1233_v49 }
 0x182   : > { %2652 = vst.msk [vmem:[%s4090_s21 + $0x6c] sm:$0xf] %vm2624_vm3, %v3008_v11  ;;  %v2462_v6 = vadd.f32 %v4077_v34, %v2423_v17  ;;  %v2424_v16 = vmul.f32 %v3331_v35, %v4072_v55 }
 0x183   : > { %2650 = vst.msk [vmem:[%s4090_s21 + $0x64] sm:$0xf] %vm2624_vm3, %v3006_v56  ;;  %v2460_v31 = vadd.f32 %v4077_v34, %v2421_v40  ;;  %v2422_v15 = vmul.f32 %v3332_v48, %v4072_v55 }
 0x184   : > { %v2494_v52 = vmax.f32 %v2462_v6, 0.0  ;;  %v2463_v28 = vadd.f32 %v4077_v34, %v2424_v16 }
 0x185   : > { %v2492_v57 = vmax.f32 %v2460_v31, 0.0  ;;  %v2461_v58 = vadd.f32 %v4077_v34, %v2422_v15 }
 0x186   : > { %v3011_v54 = vpack.c.bf16 %v2494_v52, %v2494_v52  ;;  %v2495_v50 = vmax.f32 %v2463_v28, 0.0 }
 0x187   : > { %v3009_v63 = vpack.c.bf16 %v2492_v57, %v2492_v57  ;;  %v2493_v1 = vmax.f32 %v2461_v58, 0.0 }
 0x188   : > { %2655 = vst.msk [vmem:[%s4090_s21 + $0x78] sm:$0xf] %vm2624_vm3, %v3011_v54  ;;  %v3012_v32 = vpack.c.bf16 %v2495_v50, %v2495_v50 }
 0x189   : > { %2653 = vst.msk [vmem:[%s4090_s21 + $0x70] sm:$0xf] %vm2624_vm3, %v3009_v63  ;;  %v3010_v62 = vpack.c.bf16 %v2493_v1, %v2493_v1 }
 0x18a   : > { %2656 = vst.msk [vmem:[%s4090_s21 + $0x7c] sm:$0xf] %vm2624_vm3, %v3012_v32 }
 0x18b   : > { %2654 = vst.msk [vmem:[%s4090_s21 + $0x74] sm:$0xf] %vm2624_vm3, %v3010_v62 }
 0x18c PF: > { %s14_s15 = sadd.s32 1, %s3476_s15  }
 0x18d   : > { %p11_p4 = scmp.ge.s32.totalorder %s14_s15, 4  }
 0x18f   :  { %13 = sbr.rel (!%p11_p4) target bundleno = 1 (0x1), region = 70 }

// kernel: style_encoder_forward.12
= control target key start
LH: loop header
LB: loop body
LE: loop exit
PB: predicated region body
PF: predicated region fallthrough
CT: control target
= control target key end

     0   :  { %s2063_s15 = smov 0   ;;  %s2487_s0 = inlined_call_operand.vmem [shape: bf16[2,9,9,256], index: 0, kind: input, shape index: {}]   ;;  %s2488_s1 = inlined_call_operand.vmem [shape: bf16[4,256,64], index: 1, kind: input, shape index: {}]   ;;  %s2489_s2 = inlined_call_operand.vmem [shape: f32[1,64], index: 2, kind: input, shape index: {}]   ;;  %s2490_s3 = inlined_call_operand.vmem [shape: f32[1,64], index: 3, kind: input, shape index: {}]   ;;  %s2491_s4 = inlined_call_operand.vmem [shape: bf16[2,64,64], index: 4, kind: output, shape index: {}]  }
   0x1 LB: > { %s1536_s16 = sadd.s32 4294967295, %s2036_s15   ;;  %p1540_p0 = scmp.ge.s32.totalorder %s2036_s15, 1  ;;  %s2036_s15 = sphi %s2063_s15, %s14_s15  }
   0x2   : > { %p162_p1 = scmp.lt.s32.totalorder %s2036_s15, 3 }
   0x4   : > { %p163_p2 = pnand %p1540_p0, %p162_p1 }
   0x5   : > { %v1950_v0 = vld [vmem:[%s2488_s1 + $0xc0] sm:$0xff] (!%p163_p2)   ;;  %v1954_v4 = vld [vmem:[%s2488_s1 + $0xc8] sm:$0xff] (!%p163_p2)   ;;  %v1958_v8 = vld [vmem:[%s2488_s1 + $0xd0] sm:$0xff] (!%p163_p2)   ;;  %p188_p3 = scmp.lt.s32.totalorder (!%p163_p2), %s1536_s16, 1  ;;  %vm247_vm0 = vsmask.f32 (!%p163_p2), 3328 }
   0x6   : > { %166 = sbr.rel (%p163_p2) target bundleno = 325 (0x145), region = 36  ;;  %v1951_v1 = vld [vmem:[%s2488_s1 + $0x40] sm:$0xff] (!%p163_p2)   ;;  %1781 = vmatprep.subr.bf16.mxu0 (!%p163_p2), %v1950_v0  ;;  %v1955_v5 = vld [vmem:[%s2488_s1 + $0x48] sm:$0xff] (!%p163_p2)   ;;  %v1959_v9 = vld [vmem:[%s2488_s1 + $0x50] sm:$0xff] (!%p163_p2)   ;;  %vm248_vm1 = vsmask.f32 (!%p163_p2), 7440 }
   0x7   : > { %v1952_v2 = vld [vmem:[%s2488_s1 + $0x80] sm:$0xff] (!%p163_p2)   ;;  %1821 = vmatprep.subr.bf16.mxu1 (!%p163_p2), %v1951_v1  ;;  %v1956_v6 = vld [vmem:[%s2488_s1 + $0x88] sm:$0xff] (!%p163_p2)   ;;  %v1960_v10 = vld [vmem:[%s2488_s1 + $0x90] sm:$0xff] (!%p163_p2)   ;;  %vm1472_vm3 = vcmask (!%p163_p2), 519168  }
   0x8   : > { %v1953_v3 = vld [vmem:[%s2488_s1] sm:$0xff] (!%p163_p2)   ;;  %1782 = vmatpush3.bf16.msra.mxu0 (!%p163_p2), %v1952_v2  ;;  %v1957_v7 = vld [vmem:[%s2488_s1 + $0x8] sm:$0xff] (!%p163_p2)   ;;  %v1961_v11 = vld [vmem:[%s2488_s1 + $0x10] sm:$0xff] (!%p163_p2)  }
   0x9   : > { %1822 = vmatpush3.bf16.msra.mxu1 (!%p163_p2), %v1953_v3  ;;  %1783 = vmatprep.subr.bf16.mxu0 (!%p163_p2), %v1954_v4  ;;  %v1962_v12 = vld [vmem:[%s2488_s1 + $0xd8] sm:$0xff] (!%p163_p2)   ;;  %v1966_v16 = vld [vmem:[%s2488_s1 + $0xe0] sm:$0xff] (!%p163_p2)   ;;  %v1970_v20 = vld [vmem:[%s2488_s1 + $0xe8] sm:$0xff] (!%p163_p2)  }
   0xa   : > { %1823 = vmatprep.subr.bf16.mxu1 (!%p163_p2), %v1955_v5  ;;  %v1963_v13 = vld [vmem:[%s2488_s1 + $0x58] sm:$0xff] (!%p163_p2)   ;;  %v1967_v17 = vld [vmem:[%s2488_s1 + $0x60] sm:$0xff] (!%p163_p2)   ;;  %v1971_v21 = vld [vmem:[%s2488_s1 + $0x68] sm:$0xff] (!%p163_p2)  }
   0xb   : > { %v1964_v14 = vld [vmem:[%s2488_s1 + $0x98] sm:$0xff] (!%p163_p2)   ;;  %v1968_v18 = vld [vmem:[%s2488_s1 + $0xa0] sm:$0xff] (!%p163_p2)   ;;  %v1972_v22 = vld [vmem:[%s2488_s1 + $0xa8] sm:$0xff] (!%p163_p2)  }
   0xc   : > { %1784 = vmatpush3.bf16.msra.mxu0 (!%p163_p2), %v1956_v6  ;;  %v1965_v15 = vld [vmem:[%s2488_s1 + $0x18] sm:$0xff] (!%p163_p2)   ;;  %v1969_v19 = vld [vmem:[%s2488_s1 + $0x20] sm:$0xff] (!%p163_p2)   ;;  %v1973_v23 = vld [vmem:[%s2488_s1 + $0x28] sm:$0xff] (!%p163_p2)  }
   0xd   : > { %1824 = vmatpush3.bf16.msra.mxu1 %v1957_v7  ;;  %1785 = vmatprep.subr.bf16.mxu0 %v1958_v8  ;;  %s2495_s16 = smov (!%p188_p3, %s1536_s16), 1  ;;  %v1974_v24 = vld [vmem:[%s2488_s1 + $0xf0] sm:$0xff]   ;;  %v1978_v28 = vld [vmem:[%s2488_s1 + $0xf8] sm:$0xff]   ;;  %v1984_v46 = vld [vmem:[%s2488_s1 + $0x140] sm:$0xff]  }
   0xe   : > { %1825 = vmatprep.subr.bf16.mxu1 %v1959_v9  ;;  %v1975_v25 = vld [vmem:[%s2488_s1 + $0x70] sm:$0xff]   ;;  %s1941_s21 = smul.u32 144, %s2495_s16  ;;  %v1979_v29 = vld [vmem:[%s2488_s1 + $0x78] sm:$0xff]   ;;  %v1985_v47 = vld [vmem:[%s2488_s1 + $0x1c0] sm:$0xff]   ;;  %s1772_s9 = sshll.u32 %s2495_s16, 5 }
   0xf   : > { %v1976_v26 = vld [vmem:[%s2488_s1 + $0xb0] sm:$0xff]   ;;  %v1980_v30 = vld [vmem:[%s2488_s1 + $0xb8] sm:$0xff]   ;;  %vm2197_vm2 = vmor %vm247_vm0, %vm248_vm1  ;;  %s2449_s12 = scalar_lea.vmem %s2491_s4, %s1772_s9 }
  0x10   : > { %1786 = vmatpush3.bf16.msra.mxu0 %v1960_v10  ;;  %v1977_v27 = vld [vmem:[%s2488_s1 + $0x30] sm:$0xff]   ;;  %s2171_s6 = scalar_lea.vmem %s2487_s0, %s1941_s21  ;;  %v1981_v31 = vld [vmem:[%s2488_s1 + $0x38] sm:$0xff]   ;;  %v1987_v56 = vld [vmem:[%s2488_s1 + $0x180] sm:$0xff]  }
  0x11   : > { %1826 = vmatpush3.bf16.msra.mxu1 %v1961_v11  ;;  %1787 = vmatprep.subr.bf16.mxu0 %v1962_v12  ;;  %v199_v32 = vld [vmem:[%s2171_s6] sm:$0xff]  ;;  %v2181_v33 = vld [vmem:[%s2171_s6 + $0x10] sm:$0xff]  ;;  %v239_v34 = vld [vmem:[%s2171_s6 + $0x8] sm:$0x11] }
  0x12   : > { %1827 = vmatprep.subr.bf16.mxu1 %v1963_v13  ;;  %v240_v35 = vld [vmem:[%s2171_s6 + $0x18] sm:$0x11]  ;;  %v251_v36 = vshrl.u32 %v199_v32, 16  ;;  %v254_v37 = vshll.u32 %v199_v32, 16  ;;  %v1601_v38 = vcombine.high %v199_v32, %v2181_v33  ;;  %v260_v39 = vshll.u32 %v239_v34, 16  ;;  %v1986_v59 = vld [vmem:[%s2488_s1 + $0x100] sm:$0xff]  }
  0x13   : > { %v265_v40 = vshrl.u32 %v2181_v33, 16  ;;  %v268_v41 = vshll.u32 %v2181_v33, 16  ;;  %v274_v42 = vshll.u32 %v240_v35, 16  ;;  %v1600_v45 = vcombine.low %v199_v32, %v2181_v33  ;;  %v1989_v60 = vld [vmem:[%s2488_s1 + $0x1c8] sm:$0xff]   ;;  %v2224_v2 = vld [vmem:[%s2171_s6 + $0x20] sm:$0xff]  ;;  %v2227_v3 = vld [vmem:[%s2171_s6 + $0x30] sm:$0xff] }
  0x14   : > { %1788 = vmatpush3.bf16.msra.mxu0 %v1964_v14  ;;  %v253_v43 = vrot.slane %v251_v36, 4  ;;  %v256_v44 = vrot.slane %v254_v37, 5  ;;  %756 = vmatprep.mubr.bf16.mxu1 %v1601_v38  ;;  %v262_v48 = vrot.slane %v260_v39, 5  ;;  %v1988_v62 = vld [vmem:[%s2488_s1 + $0x148] sm:$0xff]   ;;  %v242_v5 = vld [vmem:[%s2171_s6 + $0x38] sm:$0x11]  ;;  %v1603_v8 = vcombine.high %v2224_v2, %v2227_v3 }
  0x15   : > { %1828 = vmatpush3.bf16.msra.mxu1 %v1965_v15  ;;  %1789 = vmatprep.subr.bf16.mxu0 %v1966_v16  ;;  %v267_v49 = vrot.slane %v265_v40, 4  ;;  %v270_v50 = vrot.slane %v268_v41, 5  ;;  %v276_v54 = vrot.slane %v274_v42, 5  ;;  %v1991_v1 = vld [vmem:[%s2488_s1 + $0x188] sm:$0xff]   ;;  %v279_v6 = vshrl.u32 %v2224_v2, 16  ;;  %v2000_v34 = vld [vmem:[%s2488_s1 + $0x118] sm:$0xff]  }
  0x16   : > { %1829 = vmatprep.subr.bf16.mxu1 %v1967_v17  ;;  %v257_v51 = vor.u32 %v256_v44, %v253_v43  ;;  %v241_v4 = vld [vmem:[%s2171_s6 + $0x28] sm:$0x11]  ;;  %v282_v7 = vshll.u32 %v2224_v2, 16  ;;  %v1602_v9 = vcombine.low %v2224_v2, %v2227_v3  ;;  %v293_v11 = vshrl.u32 %v2227_v3, 16  ;;  %v1995_v17 = vld [vmem:[%s2488_s1 + $0x1d0] sm:$0xff]   ;;  %v2001_v37 = vld [vmem:[%s2488_s1 + $0x198] sm:$0xff]  }
  0x17   : > { %v271_v53 = vor.u32 %v270_v50, %v267_v49  ;;  %v288_v10 = vshll.u32 %v241_v4, 16  ;;  %v296_v12 = vshll.u32 %v2227_v3, 16  ;;  %v302_v13 = vshll.u32 %v242_v5, 16  ;;  %v1990_v14 = vld [vmem:[%s2488_s1 + $0x108] sm:$0xff]   ;;  %v2277_v38 = vld [vmem:[%s2171_s6 + $0x40] sm:$0xff]  ;;  %v2280_v39 = vld [vmem:[%s2171_s6 + $0x50] sm:$0xff] }
  0x18   : > { %1790 = vmatpush3.bf16.msra.mxu0 %v1968_v18  ;;  %v258_v55 = vrot.slane %v257_v51, 4  ;;  %v281_v15 = vrot.slane %v279_v6, 4  ;;  %v284_v16 = vrot.slane %v282_v7, 5  ;;  %v243_v40 = vld [vmem:[%s2171_s6 + $0x48] sm:$0x11]  ;;  %v307_v42 = vshrl.u32 %v2277_v38, 16 }
  0x19   : > { %1830 = vmatpush3.bf16.msra.mxu1 %v1969_v19  ;;  %1791 = vmatprep.subr.bf16.mxu0 %v1970_v20  ;;  %v2204_v57 = vrot.slane %v271_v53, 4  ;;  %v290_v18 = vrot.slane %v288_v10, 5  ;;  %v295_v19 = vrot.slane %v293_v11, 4  ;;  %v298_v20 = vrot.slane %v296_v12, 5  ;;  %v244_v41 = vld [vmem:[%s2171_s6 + $0x58] sm:$0x11] }
  0x1a   : > { %1831 = vmatprep.subr.bf16.mxu1 %v1971_v21  ;;  %v263_v58 = vsel %vm2197_vm2, %v258_v55, %v262_v48  ;;  %v1994_v21 = vld [vmem:[%s2488_s1 + $0x150] sm:$0xff]   ;;  %v310_v43 = vshll.u32 %v2277_v38, 16  ;;  %v1605_v44 = vcombine.high %v2277_v38, %v2280_v39  ;;  %v324_v48 = vshll.u32 %v2280_v39, 16  ;;  %v2004_v53 = vld [vmem:[%s2488_s1 + $0x160] sm:$0xff]   ;;  %v2008_v4 = vld [vmem:[%s2488_s1 + $0x168] sm:$0xff]  }
  0x1b   : > { %v277_v61 = vsel %vm2197_vm2, %v2204_v57, %v276_v54  ;;  %v330_v49 = vshll.u32 %v244_v41, 16  ;;  %v309_v50 = vrot.slane %v307_v42, 4  ;;  %v2005_v54 = vld [vmem:[%s2488_s1 + $0x1e0] sm:$0xff]   ;;  %v2009_v6 = vld [vmem:[%s2488_s1 + $0x1e8] sm:$0xff]   ;;  %v2017_v41 = vld [vmem:[%s2488_s1 + $0x1b0] sm:$0xff]  }
  0x1c   : > { %1792 = vmatpush3.bf16.msra.mxu0 %v1972_v22  ;;  %v1576_v63 = vcombine.low %v263_v58, %v277_v61  ;;  %v1577_v0 = vcombine.high %v263_v58, %v277_v61  ;;  %v285_v22 = vor.u32 %v284_v16, %v281_v15  ;;  %v312_v51 = vrot.slane %v310_v43, 5  ;;  %v2011_v11 = vld [vmem:[%s2488_s1 + $0x1a8] sm:$0xff]   ;;  %v2327_v12 = vld [vmem:[%s2171_s6 + $0x60] sm:$0xff]  ;;  %v246_v15 = vld [vmem:[%s2171_s6 + $0x78] sm:$0x11] }
  0x1d   : > { %1832 = vmatpush3.bf16.msra.mxu1 %v1973_v23  ;;  %1793 = vmatprep.subr.bf16.mxu0 %v1974_v24  ;;  %v299_v23 = vor.u32 %v298_v20, %v295_v19  ;;  %v304_v24 = vrot.slane %v302_v13, 5  ;;  %v326_v58 = vrot.slane %v324_v48, 5  ;;  %v332_v61 = vrot.slane %v330_v49, 5  ;;  %v2330_v13 = vld [vmem:[%s2171_s6 + $0x70] sm:$0xff]  ;;  %v2018_v43 = vld [vmem:[%s2488_s1 + $0x178] sm:$0xff]  }
  0x1e   : > { %1833 = vmatprep.subr.bf16.mxu1 %v1975_v25  ;;  %555 = vmatprep.mubr.bf16.mxu0 %v1577_v0  ;;  %v1996_v25 = vld [vmem:[%s2488_s1 + $0x110] sm:$0xff]   ;;  %v2007_v0 = vld [vmem:[%s2488_s1 + $0x1a0] sm:$0xff]   ;;  %v335_v16 = vshrl.u32 %v2327_v12, 16  ;;  %v1606_v19 = vcombine.low %v2327_v12, %v2330_v13 }
  0x20   : > { %1794 = vmatpush3.bf16.msra.mxu0 %v1976_v26  ;;  %v2251_v26 = vrot.slane %v285_v22, 4  ;;  %v352_v22 = vshll.u32 %v2330_v13, 16 }
  0x21   : > { %1834 = vmatpush3.bf16.msra.mxu1 %v1977_v27  ;;  %1795 = vmatprep.subr.bf16.mxu0 %v1978_v28  ;;  %v1997_v27 = vld [vmem:[%s2488_s1 + $0x190] sm:$0xff]   ;;  %v2256_v28 = vrot.slane %v299_v23, 4  ;;  %v358_v23 = vshll.u32 %v246_v15, 16  ;;  %v1631_v15 = vld [vmem:[%s2171_s6 + $0x80] sm:$0xff] }
  0x22   : > { %1835 = vmatprep.subr.bf16.mxu1 %v1979_v29  ;;  %v1998_v29 = vld [vmem:[%s2488_s1 + $0x158] sm:$0xff]  }
  0x23   : > { %v305_v32 = vsel %vm2197_vm2, %v2256_v28, %v304_v24  ;;  %v337_v24 = vrot.slane %v335_v16, 4 }
  0x24   : > { %1796 = vmatpush3.bf16.msra.mxu0 %v1980_v30  ;;  %v291_v30 = vsel %vm2197_vm2, %v2251_v26, %v290_v18  ;;  %v1607_v18 = vcombine.high %v2327_v12, %v2330_v13 }
  0x25   : > { %1836 = vmatpush3.bf16.msra.mxu1 %v1981_v31  ;;  %1861 = vmatprep.subr.bf16.mxu0 %v1984_v46  ;;  %v1999_v31 = vld [vmem:[%s2488_s1 + $0x1d8] sm:$0xff]   ;;  %v1579_v35 = vcombine.high %v291_v30, %v305_v32  ;;  %v1578_v36 = vcombine.low %v291_v30, %v305_v32  ;;  %v316_v46 = vshll.u32 %v243_v40, 16  ;;  %v354_v32 = vrot.slane %v352_v22, 5 }
  0x26   : > { %1901 = vmatprep.subr.bf16.mxu1 %v1985_v47  ;;  %v321_v47 = vshrl.u32 %v2280_v39, 16  ;;  %v1701_v22 = vld [vmem:[%s2171_s6 + $0x78] sm:$0x11] }
  0x27   : > { %556 = vmatmul.mubr.bf16.vlgmr.msra.gmra.mrb[0].mxu0 %v1576_v63  ;;  %v318_v55 = vrot.slane %v316_v46, 5 }
  0x28   : > { %757 = vmatmul.mubr.bf16.vlgmr.msra.gmra.mrb[0].mxu1 %v1600_v45  ;;  %1862 = vmatpush3.bf16.msra.mxu0 %v1986_v59  ;;  %v1604_v45 = vcombine.low %v2277_v38, %v2280_v39  ;;  %v313_v59 = vor.u32 %v312_v51, %v309_v50  ;;  %v2021_v50 = vld [vmem:[%s2488_s1 + $0x1b8] sm:$0xff]   ;;  %v1665_v51 = vcombine.high %v2181_v33, %v2224_v2 }
  0x29   : > { %1902 = vmatpush3.bf16.msra.mxu1 %v1987_v56  ;;  %764 = vmatprep.mubr.bf16.mxu1 %v1603_v8  ;;  %v323_v56 = vrot.slane %v321_v47, 4  ;;  %v2010_v8 = vld [vmem:[%s2488_s1 + $0x128] sm:$0xff]   ;;  %v2020_v47 = vld [vmem:[%s2488_s1 + $0x138] sm:$0xff]  }
  0x2a   : > { %1903 = vmatprep.subr.bf16.mxu1 %v1989_v60  ;;  %1863 = vmatprep.subr.bf16.mxu0 %v1988_v62  ;;  %v2006_v62 = vld [vmem:[%s2488_s1 + $0x120] sm:$0xff]   ;;  %v2301_v63 = vrot.slane %v313_v59, 4  ;;  %v1695_v59 = vld [vmem:[%s2171_s6 + $0x48] sm:$0x11] }
  0x2b   : > { %563 = vmatprep.mubr.bf16.mxu0 %v1579_v35  ;;  %v327_v60 = vor.u32 %v326_v58, %v323_v56  ;;  %v1693_v58 = vld [vmem:[%s2171_s6 + $0x38] sm:$0x11] }
  0x2c   : > { %1864 = vmatpush3.bf16.msra.mxu0 %v1990_v14  ;;  %v319_v5 = vsel %vm2197_vm2, %v2301_v63, %v318_v55  ;;  %v245_v14 = vld [vmem:[%s2171_s6 + $0x68] sm:$0x11] }
  0x2d   : > { %1904 = vmatpush3.bf16.msra.mxu1 %v1991_v1  ;;  %1865 = vmatprep.subr.bf16.mxu0 %v1994_v21  ;;  %v2306_v1 = vrot.slane %v327_v60, 4  ;;  %v344_v20 = vshll.u32 %v245_v14, 16  ;;  %v349_v21 = vshrl.u32 %v2330_v13, 16  ;;  %v1094_v60 = vshll.u32 %v1693_v58, 16 }
  0x2e   : > { %1905 = vmatprep.subr.bf16.mxu1 %v1995_v17  ;;  %v338_v17 = vshll.u32 %v2327_v12, 16 }
  0x2f   : > { %564 = vmatmul.mubr.bf16.gmra.mrb[4].mxu0 %v1578_v36  ;;  %v333_v7 = vsel %vm2197_vm2, %v2306_v1, %v332_v61  ;;  %v346_v30 = vrot.slane %v344_v20, 5  ;;  %v360_v36 = vrot.slane %v358_v23, 5  ;;  %v1108_v61 = vshll.u32 %v1695_v59, 16  ;;  %v1703_v23 = vld [vmem:[%s2171_s6 + $0x88] sm:$0x11] }
  0x30   : > { %765 = vmatmul.mubr.bf16.gmra.mrb[4].mxu1 %v1602_v9  ;;  %1866 = vmatpush3.bf16.msra.mxu0 %v1996_v25  ;;  %v1581_v9 = vcombine.high %v319_v5, %v333_v7  ;;  %v1580_v10 = vcombine.low %v319_v5, %v333_v7  ;;  %v340_v25 = vrot.slane %v338_v17, 5  ;;  %v1664_v20 = vcombine.low %v2181_v33, %v2224_v2 }
  0x31   : > { %1906 = vmatpush3.bf16.msra.mxu1 %v1997_v27  ;;  %1867 = vmatprep.subr.bf16.mxu0 %v1998_v29  ;;  %v2014_v27 = vld [vmem:[%s2488_s1 + $0x170] sm:$0xff]   ;;  %v1150_v2 = vshll.u32 %v1701_v22, 16 }
  0x32   : > { %1907 = vmatprep.subr.bf16.mxu1 %v1999_v31  ;;  %772 = vmatprep.mubr.bf16.mxu1 %v1605_v44  ;;  %v2015_v29 = vld [vmem:[%s2488_s1 + $0x1f0] sm:$0xff]   ;;  %v351_v31 = vrot.slane %v349_v21, 4 }
  0x33   : > { %571 = vmatprep.mubr.bf16.mxu0 %v1581_v9  ;;  %v1110_v9 = vrot.slane %v1108_v61, 5 }
  0x34   : > { %1868 = vmatpush3.bf16.msra.mxu0 %v2000_v34  ;;  %v341_v34 = vor.u32 %v340_v25, %v337_v24  ;;  %v355_v35 = vor.u32 %v354_v32, %v351_v31  ;;  %v1155_v24 = vshrl.u32 %v1631_v15, 16  ;;  %v1158_v25 = vshll.u32 %v1631_v15, 16 }
  0x35   : > { %1908 = vmatpush3.bf16.msra.mxu1 %v2001_v37  ;;  %1869 = vmatprep.subr.bf16.mxu0 %v2004_v53  ;;  %v2016_v37 = vld [vmem:[%s2488_s1 + $0x130] sm:$0xff]   ;;  %v1689_v53 = vld [vmem:[%s2171_s6 + $0x18] sm:$0x11] }
  0x36   : > { %1909 = vmatprep.subr.bf16.mxu1 %v2005_v54  ;;  %v342_v40 = vrot.slane %v341_v34, 4  ;;  %v2354_v42 = vrot.slane %v355_v35, 4  ;;  %v1691_v54 = vld [vmem:[%s2171_s6 + $0x28] sm:$0x11]  ;;  %v1066_v55 = vshll.u32 %v1689_v53, 16  ;;  %v1666_v34 = vcombine.low %v2227_v3, %v2277_v38 }
  0x37   : > { %572 = vmatmul.mubr.bf16.gmra.mrb[8].mxu0 %v1580_v10  ;;  %v1080_v56 = vshll.u32 %v1691_v54, 16  ;;  %v1152_v35 = vrot.slane %v1150_v2, 5 }
  0x38   : > { %773 = vmatmul.mubr.bf16.gmra.mrb[8].mxu1 %v1604_v45  ;;  %1870 = vmatpush3.bf16.msra.mxu0 %v2006_v62  ;;  %v347_v44 = vsel %vm2197_vm2, %v342_v40, %v346_v30  ;;  %v2019_v45 = vld [vmem:[%s2488_s1 + $0x1f8] sm:$0xff]   ;;  %v361_v46 = vsel %vm2197_vm2, %v2354_v42, %v360_v36 }
  0x39   : > { %1910 = vmatpush3.bf16.msra.mxu1 %v2007_v0  ;;  %1871 = vmatprep.subr.bf16.mxu0 %v2008_v4  ;;  %v1583_v48 = vcombine.high %v347_v44, %v361_v46  ;;  %v1582_v49 = vcombine.low %v347_v44, %v361_v46  ;;  %v1697_v62 = vld [vmem:[%s2171_s6 + $0x58] sm:$0x11]  ;;  %v1699_v0 = vld [vmem:[%s2171_s6 + $0x68] sm:$0x11]  ;;  %v1068_v4 = vrot.slane %v1066_v55, 5  ;;  %v1082_v5 = vrot.slane %v1080_v56, 5 }
  0x3a   : > { %1911 = vmatprep.subr.bf16.mxu1 %v2009_v6  ;;  %780 = vmatprep.mubr.bf16.mxu1 %v1607_v18  ;;  %v1122_v6 = vshll.u32 %v1697_v62, 16  ;;  %v1136_v7 = vshll.u32 %v1699_v0, 16  ;;  %v1670_v46 = vcombine.low %v2330_v13, %v1631_v15 }
  0x3b   : > { %579 = vmatprep.mubr.bf16.mxu0 %v1583_v48  ;;  %v1069_v10 = vsel %vm2197_vm2, %v2204_v57, %v1068_v4 }
  0x3c   : > { %1872 = vmatpush3.bf16.msra.mxu0 %v2010_v8  ;;  %v1096_v8 = vrot.slane %v1094_v60, 5  ;;  %v1124_v14 = vrot.slane %v1122_v6, 5  ;;  %v1138_v21 = vrot.slane %v1136_v7, 5 }
  0x3d   : > { %1912 = vmatpush3.bf16.msra.mxu1 %v2011_v11  ;;  %1873 = vmatprep.subr.bf16.mxu0 %v2014_v27  ;;  %v1083_v11 = vsel %vm2197_vm2, %v2251_v26, %v1082_v5  ;;  %v1667_v26 = vcombine.high %v2227_v3, %v2277_v38  ;;  %v1160_v27 = vrot.slane %v1158_v25, 5  ;;  %v1668_v3 = vcombine.low %v2280_v39, %v2327_v12 }
  0x3e   : > { %1913 = vmatprep.subr.bf16.mxu1 %v2015_v29  ;;  %v1736_v16 = vcombine.low %v1069_v10, %v1083_v11  ;;  %v1737_v17 = vcombine.high %v1069_v10, %v1083_v11  ;;  %v1097_v18 = vsel %vm2197_vm2, %v2256_v28, %v1096_v8  ;;  %v1125_v28 = vsel %vm2197_vm2, %v2306_v1, %v1124_v14 }
  0x3f   : > { %580 = vmatmul.mubr.bf16.gmra.mrb[12].mxu0 %v1582_v49  ;;  %v1139_v33 = vsel %vm2197_vm2, %v342_v40, %v1138_v21  ;;  %v1164_v29 = vshll.u32 %v1703_v23, 16  ;;  %v1669_v1 = vcombine.high %v2280_v39, %v2327_v12  ;;  %v1153_v40 = vsel %vm2197_vm2, %v2354_v42, %v1152_v35 }
  0x40   : > { %781 = vmatmul.mubr.bf16.gmra.mrb[12].mxu1 %v1606_v19  ;;  %1874 = vmatpush3.bf16.msra.mxu0 %v2016_v37  ;;  %v1111_v19 = vsel %vm2197_vm2, %v2301_v63, %v1110_v9  ;;  %v1157_v63 = vrot.slane %v1155_v24, 4  ;;  %v1741_v32 = vcombine.high %v1125_v28, %v1139_v33  ;;  %v1671_v38 = vcombine.high %v2330_v13, %v1631_v15 }
  0x41   : > { %1914 = vmatpush3.bf16.msra.mxu1 %v2017_v41  ;;  %1875 = vmatprep.subr.bf16.mxu0 %v2018_v43  ;;  %v1739_v57 = vcombine.high %v1097_v18, %v1111_v19  ;;  %v1738_v30 = vcombine.low %v1097_v18, %v1111_v19  ;;  %v1166_v37 = vrot.slane %v1164_v29, 5  ;;  %v1740_v43 = vcombine.low %v1125_v28, %v1139_v33 }
  0x42   : > { %1915 = vmatprep.subr.bf16.mxu1 %v2019_v45  ;;  %999 = vmatprep.mubr.bf16.mxu0 %v1665_v51  ;;  %v1161_v31 = vor.u32 %v1160_v27, %v1157_v63 }
  0x43   : > { %1361 = vmatprep.mubr.bf16.mxu1 %v1737_v17 }
  0x44   : > { %1876 = vmatpush3.bf16.msra.mxu0 %v2020_v47  ;;  %v1162_v36 = vrot.slane %v1161_v31, 4 }
  0x45   : > { %1916 = vmatpush3.bf16.msra.mxu1 %v2021_v50 }
  0x46   : > { %v1167_v41 = vsel %vm2197_vm2, %v1162_v36, %v1166_v37 }
  0x47   : > { %1000 = vmatmul.mubr.bf16.vlgmr.msra.gmra.mrb[16].mxu0 %v1664_v20  ;;  %v1743_v44 = vcombine.high %v1153_v40, %v1167_v41  ;;  %v1742_v45 = vcombine.low %v1153_v40, %v1167_v41 }
  0x48   : > { %1362 = vmatmul.mubr.bf16.vlgmr.msra.gmra.mrb[16].mxu1 %v1736_v16  ;;  %1007 = vmatprep.mubr.bf16.mxu0 %v1667_v26 }
  0x49   : > { %1369 = vmatprep.mubr.bf16.mxu1 %v1739_v57 }
  0x4f   : > { %1008 = vmatmul.mubr.bf16.gmra.mrb[20].mxu0 %v1666_v34 }
  0x50   : > { %1370 = vmatmul.mubr.bf16.gmra.mrb[20].mxu1 %v1738_v30  ;;  %1015 = vmatprep.mubr.bf16.mxu0 %v1669_v1 }
  0x51   : > { %1377 = vmatprep.mubr.bf16.mxu1 %v1741_v32 }
  0x57   : > { %1016 = vmatmul.mubr.bf16.gmra.mrb[24].mxu0 %v1668_v3 }
  0x58   : > { %1378 = vmatmul.mubr.bf16.gmra.mrb[24].mxu1 %v1740_v43  ;;  %1023 = vmatprep.mubr.bf16.mxu0 %v1671_v38 }
  0x59   : > { %1385 = vmatprep.mubr.bf16.mxu1 %v1743_v44 }
  0x5f   : > { %1024 = vmatmul.mubr.bf16.gmra.mrb[28].mxu0 %v1670_v46 }
  0x60   : > { %1386 = vmatmul.mubr.bf16.gmra.mrb[28].mxu1 %v1742_v45 }
  0xfa   : > { %v1797_v51 = vpop.f32.mrb[0].mxu0 }
  0xfb   : > { %v1837_v42 = vpop.f32.mrb[0].mxu1  ;;  %v1798_v53 = vpop.f32.mrb[1].mxu0 }
  0xfc   : > { %v1838_v52 = vpop.f32.mrb[1].mxu1  ;;  %v1799_v12 = vadd.f32 %v1798_v53, %v1797_v51  ;;  %v1800_v54 = vpop.f32.mrb[2].mxu0 }
  0xfd   : > { %v1839_v47 = vadd.f32 %v1838_v52, %v1837_v42  ;;  %v1840_v48 = vpop.f32.mrb[2].mxu1  ;;  %v1801_v56 = vpop.f32.mrb[3].mxu0 }
  0xfe   : > { %v1841_v49 = vpop.f32.mrb[3].mxu1  ;;  %v1802_v61 = vadd.f32 %v1801_v56, %v1800_v54 }
  0xff   : > { %v1842_v50 = vadd.f32 %v1841_v49, %v1840_v48  ;;  %v759_v60 = vadd.f32 %v1839_v47, %v1799_v12  ;;  %v2438_v12 = vld [vmem:[%s2490_s3] ss:$0 sm:$0xff] }
 0x101   : > { %v762_v0 = vadd.f32 %v1842_v50, %v1802_v61  ;;  %v2433_v50 = vld [vmem:[%s2489_s2] ss:$0 sm:$0xff] }
 0x102   : > { %v1803_v4 = vpop.f32.mrb[4].mxu0 }
 0x103   : > { %v1843_v39 = vpop.f32.mrb[4].mxu1  ;;  %v1804_v5 = vpop.f32.mrb[5].mxu0 }
 0x104   : > { %v1844_v55 = vpop.f32.mrb[5].mxu1  ;;  %v1805_v6 = vadd.f32 %v1804_v5, %v1803_v4  ;;  %v1806_v7 = vpop.f32.mrb[6].mxu0 }
 0x105   : > { %v1845_v58 = vadd.f32 %v1844_v55, %v1843_v39  ;;  %v1846_v59 = vpop.f32.mrb[6].mxu1  ;;  %v1807_v9 = vpop.f32.mrb[7].mxu0 }
 0x106   : > { %v1847_v13 = vpop.f32.mrb[7].mxu1  ;;  %v1808_v14 = vadd.f32 %v1807_v9, %v1806_v7 }
 0x107   : > { %v1848_v62 = vadd.f32 %v1847_v13, %v1846_v59  ;;  %v2418_v11 = vadd.f32 %v1845_v58, %v1805_v6 }
 0x109   : > { %v2420_v18 = vadd.f32 %v1848_v62, %v1808_v14 }
 0x10a   : > { %v1809_v20 = vpop.f32.mrb[8].mxu0 }
 0x10b   : > { %v1849_v8 = vpop.f32.mrb[8].mxu1  ;;  %v1810_v57 = vpop.f32.mrb[9].mxu0 }
 0x10c   : > { %v1850_v10 = vpop.f32.mrb[9].mxu1  ;;  %v1811_v21 = vadd.f32 %v1810_v57, %v1809_v20  ;;  %v1812_v26 = vpop.f32.mrb[10].mxu0 }
 0x10d   : > { %v1851_v15 = vadd.f32 %v1850_v10, %v1849_v8  ;;  %v1852_v16 = vpop.f32.mrb[10].mxu1  ;;  %v1813_v23 = vpop.f32.mrb[11].mxu0 }
 0x10e   : > { %v1853_v17 = vpop.f32.mrb[11].mxu1  ;;  %v1814_v28 = vadd.f32 %v1813_v23, %v1812_v26 }
 0x10f   : > { %v1854_v19 = vadd.f32 %v1853_v17, %v1852_v16  ;;  %v2422_v25 = vadd.f32 %v1851_v15, %v1811_v21 }
 0x111   : > { %v2424_v27 = vadd.f32 %v1854_v19, %v1814_v28 }
 0x112   : > { %v1815_v30 = vpop.f32.mrb[12].mxu0 }
 0x113   : > { %v1855_v22 = vpop.f32.mrb[12].mxu1  ;;  %v1816_v31 = vpop.f32.mrb[13].mxu0 }
 0x114   : > { %v1856_v24 = vpop.f32.mrb[13].mxu1  ;;  %v1817_v32 = vadd.f32 %v1816_v31, %v1815_v30  ;;  %v1818_v34 = vpop.f32.mrb[14].mxu0 }
 0x115   : > { %v1857_v63 = vadd.f32 %v1856_v24, %v1855_v22  ;;  %v1858_v33 = vpop.f32.mrb[14].mxu1  ;;  %v1819_v35 = vpop.f32.mrb[15].mxu0 }
 0x116   : > { %v1859_v2 = vpop.f32.mrb[15].mxu1  ;;  %v1820_v37 = vadd.f32 %v1819_v35, %v1818_v34 }
 0x117   : > { %v1860_v29 = vadd.f32 %v1859_v2, %v1858_v33  ;;  %v2426_v36 = vadd.f32 %v1857_v63, %v1817_v32 }
 0x119   : > { %v2428_v1 = vadd.f32 %v1860_v29, %v1820_v37 }
 0x11a   : > { %v1877_v43 = vpop.f32.mrb[16].mxu0 }
 0x11b   : > { %v1917_v40 = vpop.f32.mrb[16].mxu1  ;;  %v1878_v38 = vpop.f32.mrb[17].mxu0 }
 0x11c   : > { %v1918_v41 = vpop.f32.mrb[17].mxu1  ;;  %v1879_v46 = vadd.f32 %v1878_v38, %v1877_v43  ;;  %v1880_v42 = vpop.f32.mrb[18].mxu0 }
 0x11d   : > { %v1919_v44 = vadd.f32 %v1918_v41, %v1917_v40  ;;  %v1920_v3 = vpop.f32.mrb[18].mxu1  ;;  %v1881_v47 = vpop.f32.mrb[19].mxu0 }
 0x11e   : > { %v1921_v45 = vpop.f32.mrb[19].mxu1  ;;  %v1032_v48 = vadd.f32 %v1879_v46, %v759_v60  ;;  %v1882_v49 = vadd.f32 %v1881_v47, %v1880_v42 }
 0x11f   : > { %v1922_v52 = vadd.f32 %v1921_v45, %v1920_v3 }
 0x120   : > { %v1394_v51 = vadd.f32 %v1919_v44, %v1032_v48  ;;  %v1033_v53 = vadd.f32 %v1882_v49, %v762_v0 }
 0x122   : > { %v1409_v55 = vmul.f32 %v2433_v50, %v1394_v51  ;;  %v1395_v56 = vadd.f32 %v1922_v52, %v1033_v53  ;;  %v1883_v58 = vpop.f32.mrb[20].mxu0 }
 0x123   : > { %v1923_v39 = vpop.f32.mrb[20].mxu1  ;;  %v1884_v61 = vpop.f32.mrb[21].mxu0 }
 0x124   : > { %v1924_v54 = vpop.f32.mrb[21].mxu1  ;;  %v1424_v62 = vadd.f32 %v2438_v12, %v1409_v55  ;;  %v1410_v0 = vmul.f32 %v2433_v50, %v1395_v56  ;;  %v1885_v4 = vadd.f32 %v1884_v61, %v1883_v58  ;;  %v1886_v5 = vpop.f32.mrb[22].mxu0 }
 0x125   : > { %v1925_v59 = vadd.f32 %v1924_v54, %v1923_v39  ;;  %v1926_v60 = vpop.f32.mrb[22].mxu1  ;;  %v1887_v7 = vpop.f32.mrb[23].mxu0 }
 0x126   : > { %v1927_v13 = vpop.f32.mrb[23].mxu1  ;;  %v1432_v8 = vmax.f32 %v1424_v62, 0.0  ;;  %v1425_v9 = vadd.f32 %v2438_v12, %v1410_v0  ;;  %v1034_v10 = vadd.f32 %v1885_v4, %v2418_v11  ;;  %v1888_v14 = vadd.f32 %v1887_v7, %v1886_v5 }
 0x127   : > { %v1928_v6 = vadd.f32 %v1927_v13, %v1926_v60 }
 0x128   : > { %v1773_v15 = vpack.c.bf16 %v1432_v8, %v1432_v8  ;;  %v1433_v16 = vmax.f32 %v1425_v9, 0.0  ;;  %v1396_v17 = vadd.f32 %v1925_v59, %v1034_v10  ;;  %v1035_v19 = vadd.f32 %v1888_v14, %v2420_v18 }
 0x12a   : > { %1473 = vst.msk [vmem:[%s2449_s12] sm:$0xf] %vm1472_vm3, %v1773_v15  ;;  %v1774_v21 = vpack.c.bf16 %v1433_v16, %v1433_v16  ;;  %v1411_v11 = vmul.f32 %v2433_v50, %v1396_v17  ;;  %v1397_v26 = vadd.f32 %v1928_v6, %v1035_v19  ;;  %v1889_v22 = vpop.f32.mrb[24].mxu0 }
 0x12b   : > { %v1929_v20 = vpop.f32.mrb[24].mxu1  ;;  %v1890_v28 = vpop.f32.mrb[25].mxu0 }
 0x12c   : > { %v1930_v57 = vpop.f32.mrb[25].mxu1  ;;  %1474 = vst.msk [vmem:[%s2449_s12 + $0x4] sm:$0xf] %vm1472_vm3, %v1774_v21  ;;  %v1426_v33 = vadd.f32 %v2438_v12, %v1411_v11  ;;  %v1412_v18 = vmul.f32 %v2433_v50, %v1397_v26  ;;  %v1891_v2 = vadd.f32 %v1890_v28, %v1889_v22  ;;  %v1892_v29 = vpop.f32.mrb[26].mxu0 }
 0x12d   : > { %v1931_v23 = vadd.f32 %v1930_v57, %v1929_v20  ;;  %v1932_v24 = vpop.f32.mrb[26].mxu1  ;;  %v1893_v31 = vpop.f32.mrb[27].mxu0 }
 0x12e   : > { %v1933_v63 = vpop.f32.mrb[27].mxu1  ;;  %v1434_v32 = vmax.f32 %v1426_v33, 0.0  ;;  %v1427_v34 = vadd.f32 %v2438_v12, %v1412_v18  ;;  %v1036_v35 = vadd.f32 %v1891_v2, %v2422_v25  ;;  %v1894_v37 = vadd.f32 %v1893_v31, %v1892_v29 }
 0x12f   : > { %v1934_v30 = vadd.f32 %v1933_v63, %v1932_v24 }
 0x130   : > { %v1775_v40 = vpack.c.bf16 %v1434_v32, %v1434_v32  ;;  %v1435_v41 = vmax.f32 %v1427_v34, 0.0  ;;  %v1398_v43 = vadd.f32 %v1931_v23, %v1036_v35  ;;  %v1037_v44 = vadd.f32 %v1894_v37, %v2424_v27 }
 0x132   : > { %1475 = vst.msk [vmem:[%s2449_s12 + $0x8] sm:$0xf] %vm1472_vm3, %v1775_v40  ;;  %v1776_v45 = vpack.c.bf16 %v1435_v41, %v1435_v41  ;;  %v1413_v46 = vmul.f32 %v2433_v50, %v1398_v43  ;;  %v1399_v42 = vadd.f32 %v1934_v30, %v1037_v44  ;;  %v1895_v52 = vpop.f32.mrb[28].mxu0 }
 0x133   : > { %v1935_v3 = vpop.f32.mrb[28].mxu1  ;;  %v1896_v49 = vpop.f32.mrb[29].mxu0 }
 0x134   : > { %v1936_v38 = vpop.f32.mrb[29].mxu1  ;;  %1476 = vst.msk [vmem:[%s2449_s12 + $0xc] sm:$0xf] %vm1472_vm3, %v1776_v45  ;;  %v1428_v51 = vadd.f32 %v2438_v12, %v1413_v46  ;;  %v1414_v27 = vmul.f32 %v2433_v50, %v1399_v42  ;;  %v1897_v53 = vadd.f32 %v1896_v49, %v1895_v52  ;;  %v1898_v39 = vpop.f32.mrb[30].mxu0 }
 0x135   : > { %v1937_v47 = vadd.f32 %v1936_v38, %v1935_v3  ;;  %v1938_v48 = vpop.f32.mrb[30].mxu1  ;;  %v1899_v55 = vpop.f32.mrb[31].mxu0 }
 0x136   : > { %v1939_v25 = vpop.f32.mrb[31].mxu1  ;;  %v1436_v56 = vmax.f32 %v1428_v51, 0.0  ;;  %v1429_v58 = vadd.f32 %v2438_v12, %v1414_v27  ;;  %v1038_v59 = vadd.f32 %v1897_v53, %v2426_v36  ;;  %v1900_v60 = vadd.f32 %v1899_v55, %v1898_v39 }
 0x137   : > { %v1940_v54 = vadd.f32 %v1939_v25, %v1938_v48 }
 0x138   : > { %v1777_v61 = vpack.c.bf16 %v1436_v56, %v1436_v56  ;;  %v1437_v13 = vmax.f32 %v1429_v58, 0.0  ;;  %v1400_v62 = vadd.f32 %v1937_v47, %v1038_v59  ;;  %v1039_v0 = vadd.f32 %v1900_v60, %v2428_v1 }
 0x13a   : > { %1477 = vst.msk [vmem:[%s2449_s12 + $0x10] sm:$0xf] %vm1472_vm3, %v1777_v61  ;;  %v1778_v4 = vpack.c.bf16 %v1437_v13, %v1437_v13  ;;  %v1415_v5 = vmul.f32 %v2433_v50, %v1400_v62  ;;  %v1401_v6 = vadd.f32 %v1940_v54, %v1039_v0 }
 0x13c   : > { %1478 = vst.msk [vmem:[%s2449_s12 + $0x14] sm:$0xf] %vm1472_vm3, %v1778_v4  ;;  %v1430_v7 = vadd.f32 %v2438_v12, %v1415_v5  ;;  %v1416_v36 = vmul.f32 %v2433_v50, %v1401_v6 }
 0x13e   : > { %v1438_v8 = vmax.f32 %v1430_v7, 0.0  ;;  %v1431_v9 = vadd.f32 %v2438_v12, %v1416_v36 }
 0x140   : > { %v1779_v10 = vpack.c.bf16 %v1438_v8, %v1438_v8  ;;  %v1439_v14 = vmax.f32 %v1431_v9, 0.0 }
 0x142   : > { %1479 = vst.msk [vmem:[%s2449_s12 + $0x18] sm:$0xf] %vm1472_vm3, %v1779_v10  ;;  %v1780_v1 = vpack.c.bf16 %v1439_v14, %v1439_v14 }
 0x144   : > { %1480 = vst.msk [vmem:[%s2449_s12 + $0x1c] sm:$0xf] %vm1472_vm3, %v1780_v1 }
 0x145 PF: > { %s14_s15 = sadd.s32 1, %s2036_s15  }
 0x146   : > { %p11_p4 = scmp.ge.s32.totalorder %s14_s15, 4  }
 0x148   :  { %13 = sbr.rel (!%p11_p4) target bundleno = 1 (0x1), region = 70 }

// kernel: style_encoder_forward.13
= control target key start
LH: loop header
LB: loop body
LE: loop exit
PB: predicated region body
PF: predicated region fallthrough
CT: control target
= control target key end

     0   :  { %s1673_s15 = smov 0   ;;  %s1961_s0 = inlined_call_operand.vmem [shape: bf16[2,5,9,256], index: 0, kind: input, shape index: {}]   ;;  %s1962_s1 = inlined_call_operand.vmem [shape: bf16[4,256,128], index: 1, kind: input, shape index: {}]   ;;  %s1963_s2 = inlined_call_operand.vmem [shape: f32[1,128], index: 2, kind: input, shape index: {}]   ;;  %s1964_s3 = inlined_call_operand.vmem [shape: f32[1,128], index: 3, kind: input, shape index: {}]   ;;  %s1965_s4 = inlined_call_operand.vmem [shape: bf16[2,32,128], index: 4, kind: output, shape index: {}]  }
   0x1 LB: > { %s1227_s16 = sadd.s32 4294967295, %s1646_s15   ;;  %p1231_p0 = scmp.ge.s32.totalorder %s1646_s15, 1  ;;  %s1646_s15 = sphi %s1673_s15, %s14_s15  }
   0x2   : > { %p162_p1 = scmp.lt.s32.totalorder %s1646_s15, 3 }
   0x4   : > { %p163_p2 = pnand %p1231_p0, %p162_p1 }
   0x5   : > { %v1568_v0 = vld [vmem:[%s1962_s1 + $0xc0] sm:$0xff] (!%p163_p2)   ;;  %v1572_v4 = vld [vmem:[%s1962_s1 + $0xc8] sm:$0xff] (!%p163_p2)   ;;  %v1576_v8 = vld [vmem:[%s1962_s1 + $0xd0] sm:$0xff] (!%p163_p2)   ;;  %p188_p3 = scmp.lt.s32.totalorder (!%p163_p2), %s1227_s16, 1  ;;  %vm239_vm0 = vsmask.f32 (!%p163_p2), 3328 }
   0x6   : > { %166 = sbr.rel (%p163_p2) target bundleno = 309 (0x135), region = 36  ;;  %v1569_v1 = vld [vmem:[%s1962_s1 + $0x40] sm:$0xff] (!%p163_p2)   ;;  %1447 = vmatprep.subr.bf16.mxu0 (!%p163_p2), %v1568_v0  ;;  %v1573_v5 = vld [vmem:[%s1962_s1 + $0x48] sm:$0xff] (!%p163_p2)   ;;  %v1577_v9 = vld [vmem:[%s1962_s1 + $0x50] sm:$0xff] (!%p163_p2)   ;;  %vm240_vm1 = vsmask.f32 (!%p163_p2), 7440 }
   0x7   : > { %v1570_v2 = vld [vmem:[%s1962_s1 + $0x80] sm:$0xff] (!%p163_p2)   ;;  %1475 = vmatprep.subr.bf16.mxu1 (!%p163_p2), %v1569_v1  ;;  %v1574_v6 = vld [vmem:[%s1962_s1 + $0x88] sm:$0xff] (!%p163_p2)   ;;  %v1578_v10 = vld [vmem:[%s1962_s1 + $0x90] sm:$0xff] (!%p163_p2)  }
   0x8   : > { %v1571_v3 = vld [vmem:[%s1962_s1] sm:$0xff] (!%p163_p2)   ;;  %1448 = vmatpush3.bf16.msra.mxu0 (!%p163_p2), %v1570_v2  ;;  %v1575_v7 = vld [vmem:[%s1962_s1 + $0x8] sm:$0xff] (!%p163_p2)   ;;  %v1579_v11 = vld [vmem:[%s1962_s1 + $0x10] sm:$0xff] (!%p163_p2)  }
   0x9   : > { %1476 = vmatpush3.bf16.msra.mxu1 (!%p163_p2), %v1571_v3  ;;  %1449 = vmatprep.subr.bf16.mxu0 (!%p163_p2), %v1572_v4  ;;  %v1580_v12 = vld [vmem:[%s1962_s1 + $0xd8] sm:$0xff] (!%p163_p2)   ;;  %v1584_v16 = vld [vmem:[%s1962_s1 + $0xe0] sm:$0xff] (!%p163_p2)   ;;  %v1588_v20 = vld [vmem:[%s1962_s1 + $0xe8] sm:$0xff] (!%p163_p2)  }
   0xa   : > { %1477 = vmatprep.subr.bf16.mxu1 (!%p163_p2), %v1573_v5  ;;  %v1581_v13 = vld [vmem:[%s1962_s1 + $0x58] sm:$0xff] (!%p163_p2)   ;;  %v1585_v17 = vld [vmem:[%s1962_s1 + $0x60] sm:$0xff] (!%p163_p2)   ;;  %v1589_v21 = vld [vmem:[%s1962_s1 + $0x68] sm:$0xff] (!%p163_p2)  }
   0xb   : > { %v1582_v14 = vld [vmem:[%s1962_s1 + $0x98] sm:$0xff] (!%p163_p2)   ;;  %v1586_v18 = vld [vmem:[%s1962_s1 + $0xa0] sm:$0xff] (!%p163_p2)   ;;  %v1590_v22 = vld [vmem:[%s1962_s1 + $0xa8] sm:$0xff] (!%p163_p2)  }
   0xc   : > { %1450 = vmatpush3.bf16.msra.mxu0 (!%p163_p2), %v1574_v6  ;;  %v1583_v15 = vld [vmem:[%s1962_s1 + $0x18] sm:$0xff] (!%p163_p2)   ;;  %v1587_v19 = vld [vmem:[%s1962_s1 + $0x20] sm:$0xff] (!%p163_p2)   ;;  %v1591_v23 = vld [vmem:[%s1962_s1 + $0x28] sm:$0xff] (!%p163_p2)  }
   0xd   : > { %1478 = vmatpush3.bf16.msra.mxu1 %v1575_v7  ;;  %1451 = vmatprep.subr.bf16.mxu0 %v1576_v8  ;;  %s1969_s16 = smov (!%p188_p3, %s1227_s16), 1  ;;  %v1592_v24 = vld [vmem:[%s1962_s1 + $0xf0] sm:$0xff]   ;;  %v1596_v28 = vld [vmem:[%s1962_s1 + $0xf8] sm:$0xff]   ;;  %v1602_v46 = vld [vmem:[%s1962_s1 + $0x140] sm:$0xff]  }
   0xe   : > { %1479 = vmatprep.subr.bf16.mxu1 %v1577_v9  ;;  %v1593_v25 = vld [vmem:[%s1962_s1 + $0x70] sm:$0xff]   ;;  %s1559_s21 = smul.u32 80, %s1969_s16  ;;  %v1597_v29 = vld [vmem:[%s1962_s1 + $0x78] sm:$0xff]   ;;  %v1603_v47 = vld [vmem:[%s1962_s1 + $0x1c0] sm:$0xff]   ;;  %s1431_s9 = sshll.u32 %s1969_s16, 4 }
   0xf   : > { %v1594_v26 = vld [vmem:[%s1962_s1 + $0xb0] sm:$0xff]   ;;  %v1598_v30 = vld [vmem:[%s1962_s1 + $0xb8] sm:$0xff]   ;;  %vm1807_vm2 = vmor %vm239_vm0, %vm240_vm1  ;;  %s197_s12 = scalar_lea.vmem %s1965_s4, %s1431_s9 }
  0x10   : > { %1452 = vmatpush3.bf16.msra.mxu0 %v1578_v10  ;;  %v1595_v27 = vld [vmem:[%s1962_s1 + $0x30] sm:$0xff]   ;;  %s1781_s6 = scalar_lea.vmem %s1961_s0, %s1559_s21  ;;  %v1599_v31 = vld [vmem:[%s1962_s1 + $0x38] sm:$0xff]   ;;  %v1605_v56 = vld [vmem:[%s1962_s1 + $0x180] sm:$0xff]  }
  0x11   : > { %1480 = vmatpush3.bf16.msra.mxu1 %v1579_v11  ;;  %1453 = vmatprep.subr.bf16.mxu0 %v1580_v12  ;;  %v199_v32 = vld [vmem:[%s1781_s6] sm:$0xff]  ;;  %v1791_v33 = vld [vmem:[%s1781_s6 + $0x10] sm:$0xff]  ;;  %v235_v34 = vld [vmem:[%s1781_s6 + $0x8] sm:$0x11] }
  0x12   : > { %1481 = vmatprep.subr.bf16.mxu1 %v1581_v13  ;;  %v236_v35 = vld [vmem:[%s1781_s6 + $0x18] sm:$0x11]  ;;  %v243_v36 = vshrl.u32 %v199_v32, 16  ;;  %v246_v37 = vshll.u32 %v199_v32, 16  ;;  %v1288_v38 = vcombine.high %v199_v32, %v1791_v33  ;;  %v252_v39 = vshll.u32 %v235_v34, 16  ;;  %v1607_v59 = vld [vmem:[%s1962_s1 + $0x1c8] sm:$0xff]  }
  0x13   : > { %v257_v40 = vshrl.u32 %v1791_v33, 16  ;;  %v260_v41 = vshll.u32 %v1791_v33, 16  ;;  %v266_v42 = vshll.u32 %v236_v35, 16  ;;  %v1287_v45 = vcombine.low %v199_v32, %v1791_v33  ;;  %v1604_v61 = vld [vmem:[%s1962_s1 + $0x100] sm:$0xff]   ;;  %v1609_v0 = vld [vmem:[%s1962_s1 + $0x188] sm:$0xff]   ;;  %v1611_v2 = vld [vmem:[%s1962_s1 + $0x1d0] sm:$0xff]  }
  0x14   : > { %1454 = vmatpush3.bf16.msra.mxu0 %v1582_v14  ;;  %v245_v43 = vrot.slane %v243_v36, 4  ;;  %v248_v44 = vrot.slane %v246_v37, 5  ;;  %640 = vmatprep.mubr.bf16.mxu1 %v1288_v38  ;;  %v254_v48 = vrot.slane %v252_v39, 5  ;;  %v1606_v1 = vld [vmem:[%s1962_s1 + $0x148] sm:$0xff]   ;;  %v1613_v4 = vld [vmem:[%s1962_s1 + $0x190] sm:$0xff]   ;;  %v1615_v6 = vld [vmem:[%s1962_s1 + $0x1d8] sm:$0xff]  }
  0x15   : > { %1482 = vmatpush3.bf16.msra.mxu1 %v1583_v15  ;;  %1455 = vmatprep.subr.bf16.mxu0 %v1584_v16  ;;  %v259_v49 = vrot.slane %v257_v40, 4  ;;  %v262_v50 = vrot.slane %v260_v41, 5  ;;  %v268_v54 = vrot.slane %v266_v42, 5  ;;  %v1608_v3 = vld [vmem:[%s1962_s1 + $0x108] sm:$0xff]   ;;  %v1610_v5 = vld [vmem:[%s1962_s1 + $0x150] sm:$0xff]   ;;  %v1617_v8 = vld [vmem:[%s1962_s1 + $0x198] sm:$0xff]  }
  0x16   : > { %1483 = vmatprep.subr.bf16.mxu1 %v1585_v17  ;;  %v249_v51 = vor.u32 %v248_v44, %v245_v43  ;;  %v1612_v7 = vld [vmem:[%s1962_s1 + $0x110] sm:$0xff]   ;;  %v1614_v9 = vld [vmem:[%s1962_s1 + $0x158] sm:$0xff]   ;;  %v1619_v11 = vld [vmem:[%s1962_s1 + $0x1e0] sm:$0xff]  }
  0x17   : > { %v263_v53 = vor.u32 %v262_v50, %v259_v49  ;;  %v1616_v10 = vld [vmem:[%s1962_s1 + $0x118] sm:$0xff]   ;;  %v1618_v12 = vld [vmem:[%s1962_s1 + $0x160] sm:$0xff]   ;;  %v1873_v15 = vld [vmem:[%s1781_s6 + $0x30] sm:$0xff] }
  0x18   : > { %1456 = vmatpush3.bf16.msra.mxu0 %v1586_v18  ;;  %v250_v55 = vrot.slane %v249_v51, 4  ;;  %v1621_v13 = vld [vmem:[%s1962_s1 + $0x1a0] sm:$0xff]   ;;  %v237_v16 = vld [vmem:[%s1781_s6 + $0x28] sm:$0x11]  ;;  %v238_v17 = vld [vmem:[%s1781_s6 + $0x38] sm:$0x11] }
  0x19   : > { %1484 = vmatpush3.bf16.msra.mxu1 %v1587_v19  ;;  %1457 = vmatprep.subr.bf16.mxu0 %v1588_v20  ;;  %v1814_v57 = vrot.slane %v263_v53, 4  ;;  %v1870_v14 = vld [vmem:[%s1781_s6 + $0x20] sm:$0xff]  ;;  %v1623_v34 = vld [vmem:[%s1962_s1 + $0x168] sm:$0xff]   ;;  %v1628_v42 = vld [vmem:[%s1962_s1 + $0x170] sm:$0xff]  }
  0x1a   : > { %1485 = vmatprep.subr.bf16.mxu1 %v1589_v21  ;;  %v255_v58 = vsel %vm1807_vm2, %v250_v55, %v254_v48  ;;  %v271_v18 = vshrl.u32 %v1870_v14, 16  ;;  %v274_v19 = vshll.u32 %v1870_v14, 16  ;;  %v1290_v20 = vcombine.high %v1870_v14, %v1873_v15  ;;  %v1626_v38 = vld [vmem:[%s1962_s1 + $0x128] sm:$0xff]   ;;  %v1629_v44 = vld [vmem:[%s1962_s1 + $0x1f0] sm:$0xff]   ;;  %v1632_v51 = vld [vmem:[%s1962_s1 + $0x178] sm:$0xff]  }
  0x1b   : > { %v269_v60 = vsel %vm1807_vm2, %v1814_v57, %v268_v54  ;;  %v1289_v21 = vcombine.low %v1870_v14, %v1873_v15  ;;  %v1627_v40 = vld [vmem:[%s1962_s1 + $0x1a8] sm:$0xff]   ;;  %v1631_v49 = vld [vmem:[%s1962_s1 + $0x1b0] sm:$0xff]   ;;  %v1344_v50 = vcombine.high %v1791_v33, %v1870_v14  ;;  %v1633_v53 = vld [vmem:[%s1962_s1 + $0x1f8] sm:$0xff]  }
  0x1c   : > { %1458 = vmatpush3.bf16.msra.mxu0 %v1590_v22  ;;  %v1267_v62 = vcombine.low %v255_v58, %v269_v60  ;;  %v1268_v63 = vcombine.high %v255_v58, %v269_v60  ;;  %v280_v22 = vshll.u32 %v237_v16, 16  ;;  %v1635_v54 = vld [vmem:[%s1962_s1 + $0x1b8] sm:$0xff]  }
  0x1d   : > { %1486 = vmatpush3.bf16.msra.mxu1 %v1591_v23  ;;  %1459 = vmatprep.subr.bf16.mxu0 %v1592_v24  ;;  %v285_v23 = vshrl.u32 %v1873_v15, 16  ;;  %v288_v24 = vshll.u32 %v1873_v15, 16  ;;  %v1364_v55 = vld [vmem:[%s1781_s6 + $0x18] sm:$0x11] }
  0x1e   : > { %1487 = vmatprep.subr.bf16.mxu1 %v1593_v25  ;;  %475 = vmatprep.mubr.bf16.mxu0 %v1268_v63  ;;  %v294_v25 = vshll.u32 %v238_v17, 16  ;;  %v1634_v58 = vld [vmem:[%s1962_s1 + $0x138] sm:$0xff]   ;;  %v1370_v63 = vld [vmem:[%s1781_s6 + $0x48] sm:$0x11] }
  0x1f   : > { %v290_v32 = vrot.slane %v288_v24, 5 }
  0x20   : > { %1460 = vmatpush3.bf16.msra.mxu0 %v1594_v26  ;;  %v1620_v26 = vld [vmem:[%s1962_s1 + $0x120] sm:$0xff]   ;;  %v296_v37 = vrot.slane %v294_v25, 5 }
  0x21   : > { %1488 = vmatpush3.bf16.msra.mxu1 %v1595_v27  ;;  %1461 = vmatprep.subr.bf16.mxu0 %v1596_v28  ;;  %v273_v27 = vrot.slane %v271_v18, 4  ;;  %v276_v28 = vrot.slane %v274_v19, 5 }
  0x22   : > { %1489 = vmatprep.subr.bf16.mxu1 %v1597_v29  ;;  %v1624_v29 = vld [vmem:[%s1962_s1 + $0x1e8] sm:$0xff]  }
  0x23   : > { %v277_v35 = vor.u32 %v276_v28, %v273_v27 }
  0x24   : > { %1462 = vmatpush3.bf16.msra.mxu0 %v1598_v30  ;;  %v282_v30 = vrot.slane %v280_v22, 5 }
  0x25   : > { %1490 = vmatpush3.bf16.msra.mxu1 %v1599_v31  ;;  %1503 = vmatprep.subr.bf16.mxu0 %v1602_v46  ;;  %v287_v31 = vrot.slane %v285_v23, 4  ;;  %v278_v39 = vrot.slane %v277_v35, 4  ;;  %v1630_v46 = vld [vmem:[%s1962_s1 + $0x130] sm:$0xff]  }
  0x26   : > { %1531 = vmatprep.subr.bf16.mxu1 %v1603_v47 }
  0x27   : > { %476 = vmatmul.mubr.bf16.vlgmr.msra.gmra.mrb[0].mxu0 %v1267_v62  ;;  %v291_v36 = vor.u32 %v290_v32, %v287_v31  ;;  %v283_v43 = vsel %vm1807_vm2, %v278_v39, %v282_v30  ;;  %v1368_v62 = vld [vmem:[%s1781_s6 + $0x38] sm:$0x11] }
  0x28   : > { %641 = vmatmul.mubr.bf16.vlgmr.msra.gmra.mrb[0].mxu1 %v1287_v45  ;;  %1504 = vmatpush3.bf16.msra.mxu0 %v1604_v61  ;;  %v1310_v61 = vld [vmem:[%s1781_s6 + $0x40] sm:$0xff] }
  0x29   : > { %1532 = vmatpush3.bf16.msra.mxu1 %v1605_v56  ;;  %1505 = vmatprep.subr.bf16.mxu0 %v1606_v1  ;;  %v292_v41 = vrot.slane %v291_v36, 4  ;;  %v1366_v56 = vld [vmem:[%s1781_s6 + $0x28] sm:$0x11]  ;;  %v915_v1 = vshrl.u32 %v1310_v61, 16 }
  0x2a   : > { %1533 = vmatprep.subr.bf16.mxu1 %v1607_v59  ;;  %648 = vmatprep.mubr.bf16.mxu1 %v1290_v20  ;;  %v882_v59 = vshll.u32 %v1364_v55, 16  ;;  %v896_v60 = vshll.u32 %v1366_v56, 16  ;;  %v1345_v20 = vcombine.low %v1873_v15, %v1310_v61 }
  0x2b   : > { %v297_v45 = vsel %vm1807_vm2, %v292_v41, %v296_v37 }
  0x2c   : > { %1506 = vmatpush3.bf16.msra.mxu0 %v1608_v3  ;;  %v1270_v47 = vcombine.high %v283_v43, %v297_v45  ;;  %v1269_v48 = vcombine.low %v283_v43, %v297_v45  ;;  %v884_v3 = vrot.slane %v882_v59, 5 }
  0x2d   : > { %1534 = vmatpush3.bf16.msra.mxu1 %v1609_v0  ;;  %1507 = vmatprep.subr.bf16.mxu0 %v1610_v5  ;;  %v910_v0 = vshll.u32 %v1368_v62, 16  ;;  %v924_v5 = vshll.u32 %v1370_v63, 16  ;;  %v1423_v63 = vld [vmem:[%s1963_s2] ss:$0 sm:$0xff] }
  0x2e   : > { %1535 = vmatprep.subr.bf16.mxu1 %v1611_v2  ;;  %483 = vmatprep.mubr.bf16.mxu0 %v1270_v47  ;;  %v918_v2 = vshll.u32 %v1310_v61, 16 }
  0x2f   : > { %484 = vmatmul.mubr.bf16.gmra.mrb[4].mxu0 %v1269_v48  ;;  %v926_v18 = vrot.slane %v924_v5, 5 }
  0x30   : > { %1508 = vmatpush3.bf16.msra.mxu0 %v1612_v7  ;;  %649 = vmatmul.mubr.bf16.gmra.mrb[4].mxu1 %v1289_v21  ;;  %v912_v7 = vrot.slane %v910_v0, 5 }
  0x31   : > { %1536 = vmatpush3.bf16.msra.mxu1 %v1613_v4  ;;  %1509 = vmatprep.subr.bf16.mxu0 %v1614_v9  ;;  %v898_v4 = vrot.slane %v896_v60, 5  ;;  %v920_v9 = vrot.slane %v918_v2, 5 }
  0x32   : > { %1537 = vmatprep.subr.bf16.mxu1 %v1615_v6  ;;  %843 = vmatprep.mubr.bf16.mxu0 %v1344_v50  ;;  %v1343_v6 = vcombine.low %v1791_v33, %v1870_v14  ;;  %v913_v33 = vsel %vm1807_vm2, %v292_v41, %v912_v7 }
  0x34   : > { %1510 = vmatpush3.bf16.msra.mxu0 %v1616_v10  ;;  %v885_v10 = vsel %vm1807_vm2, %v1814_v57, %v884_v3  ;;  %v1424_v3 = vld [vmem:[%s1964_s3] ss:$0 sm:$0xff] }
  0x35   : > { %1538 = vmatpush3.bf16.msra.mxu1 %v1617_v8  ;;  %1511 = vmatprep.subr.bf16.mxu0 %v1618_v12  ;;  %v917_v8 = vrot.slane %v915_v1, 4  ;;  %v1346_v12 = vcombine.high %v1873_v15, %v1310_v61 }
  0x36   : > { %1539 = vmatprep.subr.bf16.mxu1 %v1619_v11  ;;  %v899_v11 = vsel %vm1807_vm2, %v278_v39, %v898_v4 }
  0x37   : > { %v1404_v16 = vcombine.high %v885_v10, %v899_v11  ;;  %v921_v17 = vor.u32 %v920_v9, %v917_v8 }
  0x38   : > { %1512 = vmatpush3.bf16.msra.mxu0 %v1620_v26 }
  0x39   : > { %1540 = vmatpush3.bf16.msra.mxu1 %v1621_v13  ;;  %1513 = vmatprep.subr.bf16.mxu0 %v1623_v34  ;;  %v1403_v13 = vcombine.low %v885_v10, %v899_v11  ;;  %v922_v14 = vrot.slane %v921_v17, 4 }
  0x3a   : > { %1541 = vmatprep.subr.bf16.mxu1 %v1624_v29  ;;  %1105 = vmatprep.mubr.bf16.mxu1 %v1404_v16 }
  0x3b   : > { %v927_v57 = vsel %vm1807_vm2, %v922_v14, %v926_v18 }
  0x3c   : > { %1514 = vmatpush3.bf16.msra.mxu0 %v1626_v38  ;;  %v1406_v19 = vcombine.high %v913_v33, %v927_v57  ;;  %v1405_v21 = vcombine.low %v913_v33, %v927_v57 }
  0x3d   : > { %1542 = vmatpush3.bf16.msra.mxu1 %v1627_v40  ;;  %1515 = vmatprep.subr.bf16.mxu0 %v1628_v42 }
  0x3e   : > { %1543 = vmatprep.subr.bf16.mxu1 %v1629_v44 }
  0x40   : > { %1516 = vmatpush3.bf16.msra.mxu0 %v1630_v46 }
  0x41   : > { %1544 = vmatpush3.bf16.msra.mxu1 %v1631_v49  ;;  %1517 = vmatprep.subr.bf16.mxu0 %v1632_v51 }
  0x42   : > { %1545 = vmatprep.subr.bf16.mxu1 %v1633_v53 }
  0x44   : > { %1518 = vmatpush3.bf16.msra.mxu0 %v1634_v58 }
  0x45   : > { %1546 = vmatpush3.bf16.msra.mxu1 %v1635_v54 }
  0x47   : > { %844 = vmatmul.mubr.bf16.vlgmr.msra.gmra.mrb[8].mxu0 %v1343_v6 }
  0x48   : > { %1106 = vmatmul.mubr.bf16.vlgmr.msra.gmra.mrb[8].mxu1 %v1403_v13  ;;  %851 = vmatprep.mubr.bf16.mxu0 %v1346_v12 }
  0x49   : > { %1113 = vmatprep.mubr.bf16.mxu1 %v1406_v19 }
  0x4f   : > { %852 = vmatmul.mubr.bf16.gmra.mrb[12].mxu0 %v1345_v20 }
  0x50   : > { %1114 = vmatmul.mubr.bf16.gmra.mrb[12].mxu1 %v1405_v21 }
  0xfa   : > { %v1463_v28 = vpop.f32.mrb[0].mxu0 }
  0xfb   : > { %v1491_v22 = vpop.f32.mrb[0].mxu1  ;;  %v1464_v29 = vpop.f32.mrb[1].mxu0 }
  0xfc   : > { %v1492_v23 = vpop.f32.mrb[1].mxu1  ;;  %v1465_v30 = vadd.f32 %v1464_v29, %v1463_v28  ;;  %v1466_v31 = vpop.f32.mrb[2].mxu0 }
  0xfd   : > { %v1493_v24 = vadd.f32 %v1492_v23, %v1491_v22  ;;  %v1494_v25 = vpop.f32.mrb[2].mxu1  ;;  %v1467_v32 = vpop.f32.mrb[3].mxu0 }
  0xfe   : > { %v1495_v26 = vpop.f32.mrb[3].mxu1  ;;  %v1468_v34 = vadd.f32 %v1467_v32, %v1466_v31 }
  0xff   : > { %v1496_v27 = vadd.f32 %v1495_v26, %v1494_v25  ;;  %v643_v52 = vadd.f32 %v1493_v24, %v1465_v30 }
 0x101   : > { %v646_v35 = vadd.f32 %v1496_v27, %v1468_v34 }
 0x102   : > { %v1469_v41 = vpop.f32.mrb[4].mxu0 }
 0x103   : > { %v1497_v36 = vpop.f32.mrb[4].mxu1  ;;  %v1470_v42 = vpop.f32.mrb[5].mxu0 }
 0x104   : > { %v1498_v15 = vpop.f32.mrb[5].mxu1  ;;  %v1471_v43 = vadd.f32 %v1470_v42, %v1469_v41  ;;  %v1472_v44 = vpop.f32.mrb[6].mxu0 }
 0x105   : > { %v1499_v37 = vadd.f32 %v1498_v15, %v1497_v36  ;;  %v1500_v38 = vpop.f32.mrb[6].mxu1  ;;  %v1473_v45 = vpop.f32.mrb[7].mxu0 }
 0x106   : > { %v1501_v39 = vpop.f32.mrb[7].mxu1  ;;  %v1474_v47 = vadd.f32 %v1473_v45, %v1472_v44 }
 0x107   : > { %v1502_v40 = vadd.f32 %v1501_v39, %v1500_v38  ;;  %v651_v46 = vadd.f32 %v1499_v37, %v1471_v43 }
 0x109   : > { %v654_v48 = vadd.f32 %v1502_v40, %v1474_v47 }
 0x11a   : > { %v1519_v49 = vpop.f32.mrb[8].mxu0 }
 0x11b   : > { %v1547_v50 = vpop.f32.mrb[8].mxu1  ;;  %v1520_v51 = vpop.f32.mrb[9].mxu0 }
 0x11c   : > { %v1521_v53 = vadd.f32 %v1520_v51, %v1519_v49  ;;  %v1548_v54 = vpop.f32.mrb[9].mxu1  ;;  %v1522_v55 = vpop.f32.mrb[10].mxu0 }
 0x11d   : > { %v1549_v56 = vadd.f32 %v1548_v54, %v1547_v50  ;;  %v1550_v58 = vpop.f32.mrb[10].mxu1  ;;  %v1523_v59 = vpop.f32.mrb[11].mxu0 }
 0x11e   : > { %v860_v60 = vadd.f32 %v1521_v53, %v643_v52  ;;  %v1524_v61 = vadd.f32 %v1523_v59, %v1522_v55  ;;  %v1551_v62 = vpop.f32.mrb[11].mxu1 }
 0x11f   : > { %v1552_v0 = vadd.f32 %v1551_v62, %v1550_v58 }
 0x120   : > { %v1122_v1 = vadd.f32 %v1549_v56, %v860_v60  ;;  %v861_v2 = vadd.f32 %v1524_v61, %v646_v35 }
 0x122   : > { %v1133_v4 = vmul.f32 %v1423_v63, %v1122_v1  ;;  %v1123_v5 = vadd.f32 %v1552_v0, %v861_v2  ;;  %v1525_v6 = vpop.f32.mrb[12].mxu0 }
 0x123   : > { %v1553_v7 = vpop.f32.mrb[12].mxu1  ;;  %v1526_v8 = vpop.f32.mrb[13].mxu0 }
 0x124   : > { %v1144_v9 = vadd.f32 %v1424_v3, %v1133_v4  ;;  %v1134_v10 = vmul.f32 %v1423_v63, %v1123_v5  ;;  %v1527_v11 = vadd.f32 %v1526_v8, %v1525_v6  ;;  %v1554_v12 = vpop.f32.mrb[13].mxu1  ;;  %v1528_v13 = vpop.f32.mrb[14].mxu0 }
 0x125   : > { %v1555_v16 = vadd.f32 %v1554_v12, %v1553_v7  ;;  %v1556_v17 = vpop.f32.mrb[14].mxu1  ;;  %v1529_v18 = vpop.f32.mrb[15].mxu0 }
 0x126   : > { %v1145_v33 = vadd.f32 %v1424_v3, %v1134_v10  ;;  %v862_v14 = vadd.f32 %v1527_v11, %v651_v46  ;;  %v1530_v57 = vadd.f32 %v1529_v18, %v1528_v13  ;;  %v1557_v19 = vpop.f32.mrb[15].mxu1  ;;  %v1148_v21 = vmax.f32 %v1144_v9, 0.0 }
 0x127   : > { %v1558_v20 = vadd.f32 %v1557_v19, %v1556_v17 }
 0x128   : > { %v1149_v22 = vmax.f32 %v1145_v33, 0.0  ;;  %v1124_v23 = vadd.f32 %v1555_v16, %v862_v14  ;;  %v863_v24 = vadd.f32 %v1530_v57, %v654_v48 }
 0x12a   : > { %v1439_v25 = vpack.c.bf16 %v1149_v22, %v1148_v21  ;;  %v1135_v26 = vmul.f32 %v1423_v63, %v1124_v23  ;;  %v1125_v27 = vadd.f32 %v1558_v20, %v863_v24 }
 0x12c   : > { %1440 = vst [vmem:[%s197_s12] sm:$0xff] %v1439_v25   ;;  %v1146_v28 = vadd.f32 %v1424_v3, %v1135_v26  ;;  %v1136_v29 = vmul.f32 %v1423_v63, %v1125_v27 }
 0x12e   : > { %v1147_v30 = vadd.f32 %v1424_v3, %v1136_v29  ;;  %v1150_v31 = vmax.f32 %v1146_v28, 0.0 }
 0x130   : > { %v1151_v32 = vmax.f32 %v1147_v30, 0.0 }
 0x132   : > { %v1444_v52 = vpack.c.bf16 %v1151_v32, %v1150_v31 }
 0x134   : > { %1446 = vst [vmem:[%s197_s12 + $0x8] sm:$0xff] %v1444_v52  }
 0x135 PF: > { %s14_s15 = sadd.s32 1, %s1646_s15  }
 0x136   : > { %p11_p4 = scmp.ge.s32.totalorder %s14_s15, 4  }
 0x138   :  { %13 = sbr.rel (!%p11_p4) target bundleno = 1 (0x1), region = 70 }

// kernel: style_encoder_forward.16
= control target key start
LH: loop header
LB: loop body
LE: loop exit
PB: predicated region body
PF: predicated region fallthrough
CT: control target
= control target key end

     0   :  { %s597_s12 = smov 0   ;;  %s778_s0 = inlined_call_operand.vmem [shape: f32[2,2,384], index: 0, kind: input, shape index: {}]   ;;  %s779_s1 = inlined_call_operand.vmem [shape: f32[128,384], index: 1, kind: input, shape index: {}]   ;;  %s780_s2 = inlined_call_operand.vmem [shape: f32[1,384], index: 2, kind: input, shape index: {}]   ;;  %s781_s3 = inlined_call_operand.vmem [shape: f32[2,128], index: 3, kind: output, shape index: {}]  }
   0x1 LB: > { %s424_s13 = sadd.s32 4294967295, %s571_s12   ;;  %p427_p0 = scmp.ge.s32.totalorder %s571_s12, 1  ;;  %s571_s12 = sphi %s597_s12, %s13_s12  }
   0x2   : > { %p132_p1 = scmp.lt.s32.totalorder %s571_s12, 3 }
   0x4   : > { %p133_p2 = pnand %p427_p0, %p132_p1 }
   0x5   : > { %p151_p3 = scmp.lt.s32.totalorder (!%p133_p2), %s424_s13, 1  ;;  %p429_p4 = scmp.ne.s32.totalorder (!%p133_p2), %s424_s13, 0 }
   0x6   : > { %136 = sbr.rel (%p133_p2) target bundleno = 318 (0x13e), region = 32 }
   0xd   : > { %s152_s14 = scalar_select %p151_p3, %s424_s13, 1 }
   0xe   : > { %159 = sbr.rel (%p429_p4) target bundleno = 21 (0x15), region = 36  ;;  %v573_v0 = vmov (!%p429_p4), 0.0  }
   0xf   : > { %s542_s15 = smul.u32 6, %s152_s14  ;;  %160 = vst [vmem:[%s781_s3] sm:$0x3] (!%p429_p4), %v573_v0 }
  0x11   : > { %s608_s18 = scalar_lea.vmem %s778_s0, %s542_s15 }
  0x15 PF: > { %v164_v1 = vld [vmem:[%s779_s1 + $0x8] sm:$0xff]  ;;  %v167_v2 = vld [vmem:[%s779_s1 + $0x20] sm:$0xff]  ;;  %v166_v5 = vld [vmem:[%s779_s1 + $0x18] sm:$0xff]  ;;  %v574_v8 = vmov 0.0|0.0   ;;  %v575_v9 = vmov 0.0   ;;  %vm576_vm0 = vmmov 0  }
  0x16   : > { %v163_v3 = vld [vmem:[%s779_s1] sm:$0xff]  ;;  %v486_v4 = vpack.c.bf16 %v167_v2, %v164_v1  ;;  %v170_v6 = vld [vmem:[%s779_s1 + $0x38] sm:$0xff]  ;;  %v173_v7 = vld [vmem:[%s779_s1 + $0x50] sm:$0xff]  ;;  %518 = vmatprep.subr.bf16.mxu1 %v574_v8  ;;  %292 = vmatprep.mubr.f32.mxu0 %v575_v9 }
  0x17   : > { %v488_v10 = vpack.c.bf16 %v166_v5, %v163_v3  ;;  %v490_v11 = vpack.c.bf16 %v173_v7, %v170_v6  ;;  %v169_v12 = vld [vmem:[%s779_s1 + $0x30] sm:$0xff]  ;;  %v172_v13 = vld [vmem:[%s779_s1 + $0x48] sm:$0xff]  ;;  %483 = vmatprep.mubr.msk.f32.mxu1 %vm576_vm0, %v575_v9  ;;  %v179_v15 = vld [vmem:[%s779_s1 + $0x80] sm:$0xff] }
  0x18   : > { %v176_v14 = vld [vmem:[%s779_s1 + $0x68] sm:$0xff]  ;;  %487 = vmatprep.subr.bf16.mxu0 %v486_v4  ;;  %v492_v16 = vpack.c.bf16 %v172_v13, %v169_v12  ;;  %v175_v18 = vld [vmem:[%s779_s1 + $0x60] sm:$0xff]  ;;  %v178_v19 = vld [vmem:[%s779_s1 + $0x78] sm:$0xff]  ;;  %v213_v13 = vlaneseq }
  0x19   : > { %489 = vmatpush1.bf16.msra.mxu0 %v488_v10  ;;  %v494_v17 = vpack.c.bf16 %v179_v15, %v176_v14  ;;  %v182_v20 = vld [vmem:[%s779_s1 + $0x98] sm:$0xff]  ;;  %v185_v21 = vld [vmem:[%s779_s1 + $0xb0] sm:$0xff]  ;;  %v496_v22 = vpack.c.bf16 %v178_v19, %v175_v18  ;;  %v184_v25 = vld [vmem:[%s779_s1 + $0xa8] sm:$0xff] }
  0x1a   : > { %491 = vmatprep.subr.bf16.mxu0 %v490_v11  ;;  %v498_v23 = vpack.c.bf16 %v185_v21, %v182_v20  ;;  %v181_v24 = vld [vmem:[%s779_s1 + $0x90] sm:$0xff]  ;;  %v188_v26 = vld [vmem:[%s779_s1 + $0xc8] sm:$0xff]  ;;  %v191_v27 = vld [vmem:[%s779_s1 + $0xe0] sm:$0xff]  ;;  %v214_v14 = vshrl.u32 %v213_v13, 7 }
  0x1b   : > { %v165_v28 = vld [vmem:[%s779_s1 + $0x10] sm:$0xff]  ;;  %v168_v29 = vld [vmem:[%s779_s1 + $0x28] sm:$0xff]  ;;  %v171_v31 = vld [vmem:[%s779_s1 + $0x40] sm:$0xff]  ;;  %v500_v32 = vpack.c.bf16 %v184_v25, %v181_v24  ;;  %v502_v34 = vpack.c.bf16 %v191_v27, %v188_v26 }
  0x1c   : > { %v519_v30 = vpack.c.bf16 %v168_v29, %v165_v28  ;;  %v174_v33 = vld [vmem:[%s779_s1 + $0x58] sm:$0xff]  ;;  %v187_v35 = vld [vmem:[%s779_s1 + $0xc0] sm:$0xff]  ;;  %v197_v39 = vld [vmem:[%s779_s1 + $0x110] sm:$0xff]  ;;  %v215_v15 = vsub.s32 0, %v214_v14 }
  0x1d   : > { %493 = vmatpush1.bf16.msra.mxu0 %v492_v16  ;;  %v190_v36 = vld [vmem:[%s779_s1 + $0xd8] sm:$0xff]  ;;  %v522_v38 = vpack.c.bf16 %v174_v33, %v171_v31  ;;  %v177_v40 = vld [vmem:[%s779_s1 + $0x70] sm:$0xff]  ;;  %v180_v41 = vld [vmem:[%s779_s1 + $0x88] sm:$0xff]  ;;  %v223_v33 = vsub.s32 2, %v214_v14 }
  0x1e   : > { %495 = vmatprep.subr.bf16.mxu0 %v494_v17  ;;  %v194_v37 = vld [vmem:[%s779_s1 + $0xf8] sm:$0xff]  ;;  %520 = vmatpush3.bf16.msra.mxu1 %v519_v30  ;;  %v504_v42 = vpack.c.bf16 %v190_v36, %v187_v35  ;;  %v193_v44 = vld [vmem:[%s779_s1 + $0xf0] sm:$0xff]  ;;  %v196_v45 = vld [vmem:[%s779_s1 + $0x108] sm:$0xff]  ;;  %v525_v47 = vpack.c.bf16 %v180_v41, %v177_v40  ;;  %v219_v17 = vsub.s32 1, %v214_v14 }
  0x1f   : > { %521 = vmatprep.subr.bf16.mxu1 %v574_v8  ;;  %v506_v43 = vpack.c.bf16 %v197_v39, %v194_v37  ;;  %v200_v46 = vld [vmem:[%s779_s1 + $0x128] sm:$0xff]  ;;  %v203_v48 = vld [vmem:[%s779_s1 + $0x140] sm:$0xff]  ;;  %v186_v50 = vld [vmem:[%s779_s1 + $0xb8] sm:$0xff]  ;;  %v508_v51 = vpack.c.bf16 %v196_v45, %v193_v44 }
  0x20   : > { %v183_v49 = vld [vmem:[%s779_s1 + $0xa0] sm:$0xff]  ;;  %v510_v52 = vpack.c.bf16 %v203_v48, %v200_v46  ;;  %v202_v54 = vld [vmem:[%s779_s1 + $0x138] sm:$0xff]  ;;  %v209_v57 = vld [vmem:[%s779_s1 + $0x170] sm:$0xff] }
  0x21   : > { %497 = vmatpush1.bf16.msra.mxu0 %v496_v22  ;;  %v199_v53 = vld [vmem:[%s779_s1 + $0x120] sm:$0xff]  ;;  %v206_v55 = vld [vmem:[%s779_s1 + $0x158] sm:$0xff]  ;;  %v528_v56 = vpack.c.bf16 %v186_v50, %v183_v49  ;;  %v189_v58 = vld [vmem:[%s779_s1 + $0xd0] sm:$0xff] }
  0x22   : > { %499 = vmatprep.subr.bf16.mxu0 %v498_v23  ;;  %523 = vmatpush3.bf16.msra.mxu1 %v522_v38  ;;  %v192_v59 = vld [vmem:[%s779_s1 + $0xe8] sm:$0xff]  ;;  %v512_v60 = vpack.c.bf16 %v202_v54, %v199_v53  ;;  %v514_v61 = vpack.c.bf16 %v209_v57, %v206_v55  ;;  %v205_v62 = vld [vmem:[%s779_s1 + $0x150] sm:$0xff]  ;;  %v195_v1 = vld [vmem:[%s779_s1 + $0x100] sm:$0xff] }
  0x23   : > { %524 = vmatprep.subr.bf16.mxu1 %v574_v8  ;;  %v208_v63 = vld [vmem:[%s779_s1 + $0x168] sm:$0xff]  ;;  %v531_v0 = vpack.c.bf16 %v192_v59, %v189_v58  ;;  %v198_v2 = vld [vmem:[%s779_s1 + $0x118] sm:$0xff]  ;;  %v201_v5 = vld [vmem:[%s779_s1 + $0x130] sm:$0xff] }
  0x24   : > { %v516_v3 = vpack.c.bf16 %v208_v63, %v205_v62  ;;  %v534_v4 = vpack.c.bf16 %v198_v2, %v195_v1  ;;  %v204_v6 = vld [vmem:[%s779_s1 + $0x148] sm:$0xff]  ;;  %v161_v7 = vld [vmem:[%s781_s3] sm:$0x3]  ;;  %v210_v11 = vld [vmem:[%s779_s1 + $0x178] sm:$0xff] }
  0x25   : > { %501 = vmatpush1.bf16.msra.mxu0 %v500_v32  ;;  %v537_v9 = vpack.c.bf16 %v204_v6, %v201_v5  ;;  %v207_v10 = vld [vmem:[%s779_s1 + $0x160] sm:$0xff] }
  0x26   : > { %503 = vmatprep.subr.bf16.mxu0 %v502_v34  ;;  %526 = vmatpush3.bf16.msra.mxu1 %v525_v47  ;;  %v540_v12 = vpack.c.bf16 %v210_v11, %v207_v10  ;;  %v211_v16 = vld [vmem:[%s780_s2] sm:$0x7] }
  0x27   : > { %527 = vmatprep.subr.bf16.mxu1 %v574_v8  ;;  %v216_v18 = vrot.slane %v211_v16, %v215_v15  ;;  %v220_v19 = vrot.slane %v211_v16, %v219_v17  ;;  %v162_v20 = vld [vmem:[%s608_s18] sm:$0x3f]  ;;  %v224_v34 = vrot.slane %v211_v16, %v223_v33 }
  0x28   : > { %v377_v25 = vrot.slane %v162_v20, 2  ;;  %v387_v38 = vrot.slane %v162_v20, 4 }
  0x29   : > { %505 = vmatpush1.bf16.msra.mxu0 %v504_v42 }
  0x2a   : > { %507 = vmatprep.subr.bf16.mxu0 %v506_v43  ;;  %529 = vmatpush3.bf16.msra.mxu1 %v528_v56 }
  0x2b   : > { %530 = vmatprep.subr.bf16.mxu1 %v574_v8 }
  0x2d   : > { %509 = vmatpush1.bf16.msra.mxu0 %v508_v51 }
  0x2e   : > { %511 = vmatprep.subr.bf16.mxu0 %v510_v52  ;;  %532 = vmatpush3.bf16.msra.mxu1 %v531_v0 }
  0x2f   : > { %533 = vmatprep.subr.bf16.mxu1 %v574_v8 }
  0x31   : > { %513 = vmatpush1.bf16.msra.mxu0 %v512_v60 }
  0x32   : > { %515 = vmatprep.subr.bf16.mxu0 %v514_v61  ;;  %535 = vmatpush3.bf16.msra.mxu1 %v534_v4 }
  0x33   : > { %536 = vmatprep.subr.bf16.mxu1 %v574_v8 }
  0x35   : > { %517 = vmatpush1.bf16.msra.mxu0 %v516_v3 }
  0x36   : > { %538 = vmatpush3.bf16.msra.mxu1 %v537_v9 }
  0x37   : > { %539 = vmatprep.subr.bf16.mxu1 %v574_v8 }
  0x38   : > { %293 = vmatmul.mubr.f32.vlgmr.msra.gmra.mrb[0].mxu0 %v161_v7 }
  0x3a   : > { %541 = vmatpush3.bf16.msra.mxu1 %v540_v12 }
  0x3d   : > { %484 = vmatmul.mubr.f32.vlgmr.msra.gmra.mrb[0].mxu1 %v161_v7 }
 0x10b   : > { %v294_v21 = vpop.f32.mrb[0].mxu0 }
 0x10c   : > { %v295_v22 = vadd.f32 %v294_v21, %v216_v18  ;;  %v296_v23 = vpop.f32.mrb[1].mxu0 }
 0x10d   : > { %v297_v24 = vadd.f32 %v296_v23, %v220_v19 }
 0x10e   : > { %v369_v26 = vadd.f32 %v295_v22, %v162_v20 }
 0x10f   : > { %v379_v27 = vadd.f32 %v377_v25, %v297_v24 }
 0x110   : > { %v430_v8 = vmul.f32 -1.442695, %v369_v26  ;;  %v365_v28 = vpop.f32.mrb[0].mxu1 }
 0x111   : > { %v431_v29 = vmul.f32 -1.442695, %v379_v27  ;;  %v485_v30 = vpop.f32.mrb[1].mxu1  ;;  %v366_v37 = vadd.f32 %v365_v28, %v224_v34 }
 0x112   : > { %555 = vpow2.f32 %v430_v8 }
 0x113   : > { %557 = vpow2.f32 %v431_v29 }
 0x11c   : > { %v556_v31 = vpop.eup %555 }
 0x11d   : > { %v373_v32 = vadd.f32 1.0, %v556_v31  ;;  %v558_v35 = vpop.eup %557 }
 0x11e   : > { %v383_v36 = vadd.f32 1.0, %v558_v35 }
 0x11f   : > { %559 = vrcp.f32 %v373_v32 }
 0x120   : > { %561 = vrcp.f32 %v383_v36 }
 0x129   : > { %v560_v39 = vpop.eup %559 }
 0x12a   : > { %v386_v40 = vmul.f32 %v560_v39, %v366_v37  ;;  %v562_v42 = vpop.eup %561 }
 0x12b   : > { %v391_v43 = vsub.f32 1.0, %v562_v42  ;;  %v393_v45 = vmul.f32 %v562_v42, %v161_v7 }
 0x12c   : > { %v389_v41 = vadd.f32 %v387_v38, %v386_v40 }
 0x12e   : > { %563 = vtanh.f32 %v389_v41 }
 0x138   : > { %v564_v44 = vpop.eup %563 }
 0x139   : > { %v392_v46 = vmul.f32 %v564_v44, %v391_v43 }
 0x13b   : > { %v394_v47 = vadd.f32 %v393_v45, %v392_v46 }
 0x13d   : > { %395 = vst [vmem:[%s781_s3] sm:$0x3] %v394_v47 }
 0x13e PF: > { %s13_s12 = sadd.s32 1, %s571_s12  }
 0x13f   : > { %p10_p5 = scmp.ge.s32.totalorder %s13_s12, 4  }
 0x141   :  { %12 = sbr.rel (!%p10_p5) target bundleno = 1 (0x1), region = 62 }

// kernel: style_encoder_forward.15
= control target key start
LH: loop header
LB: loop body
LE: loop exit
PB: predicated region body
PF: predicated region fallthrough
CT: control target
= control target key end

     0   :  { %v433_v50 = vlaneseq  ;;  %s800_s1 = inlined_call_operand.vmem [shape: bf16[256,384], index: 1, kind: input, shape index: {}]   ;;  %s801_s0 = inlined_call_operand.vmem [shape: bf16[4,256], index: 0, kind: input, shape index: {}]   ;;  %s802_s2 = inlined_call_operand.vmem [shape: f32[1,384], index: 2, kind: input, shape index: {}]   ;;  %s803_s3 = inlined_call_operand.vmem [shape: f32[1,384], index: 3, kind: input, shape index: {}]   ;;  %s804_s4 = inlined_call_operand.vmem [shape: f32[4,384], index: 4, kind: output, shape index: {}]  }
   0x1   :  { %v552_v0 = vld [vmem:[%s800_s1 + $0x4] ss:$12 sps:$4 sm:$0xff]   ;;  %v554_v1 = vld [vmem:[%s800_s1] ss:$12 sps:$4 sm:$0xff]   ;;  %v555_v2 = vld [vmem:[%s800_s1 + $0x1c] ss:$12 sps:$4 sm:$0xff]  }
   0x2   :  { %350 = vmatprep.subr.bf16.mxu0 %v552_v0  ;;  %v557_v3 = vld [vmem:[%s800_s1 + $0x18] ss:$12 sps:$4 sm:$0xff]   ;;  %v558_v4 = vld [vmem:[%s800_s1 + $0x34] ss:$12 sps:$4 sm:$0xff]   ;;  %v560_v5 = vld [vmem:[%s800_s1 + $0x30] ss:$12 sps:$4 sm:$0xff]  }
   0x3   :  { %351 = vmatpush1.bf16.msra.mxu0 %v554_v1  ;;  %v561_v6 = vld [vmem:[%s800_s1 + $0x4c] ss:$12 sps:$4 sm:$0xff]   ;;  %v563_v7 = vld [vmem:[%s800_s1 + $0x48] ss:$12 sps:$4 sm:$0xff]   ;;  %v564_v8 = vld [vmem:[%s800_s1 + $0x64] ss:$12 sps:$4 sm:$0xff]  }
   0x4   :  { %352 = vmatprep.subr.bf16.mxu0 %v555_v2  ;;  %v576_v9 = vld [vmem:[%s800_s1 + $0xc8] ss:$12 sps:$4 sm:$0xff]   ;;  %v566_v11 = vld [vmem:[%s800_s1 + $0x60] ss:$12 sps:$4 sm:$0xff]   ;;  %v569_v15 = vld [vmem:[%s800_s1 + $0x78] ss:$12 sps:$4 sm:$0xff]  }
   0x5   :  { %v577_v10 = vld [vmem:[%s800_s1 + $0x8] ss:$12 sps:$4 sm:$0xff]   ;;  %530 = vmatprep.subr.bf16.mxu1 %v576_v9  ;;  %v581_v12 = vld [vmem:[%s800_s1 + $0xe0] ss:$12 sps:$4 sm:$0xff]   ;;  %v586_v16 = vld [vmem:[%s800_s1 + $0xf8] ss:$12 sps:$4 sm:$0xff]  }
   0x6   :  { %531 = vmatpush3.bf16.msra.mxu1 %v577_v10  ;;  %v582_v13 = vld [vmem:[%s800_s1 + $0x20] ss:$12 sps:$4 sm:$0xff]   ;;  %v567_v14 = vld [vmem:[%s800_s1 + $0x7c] ss:$12 sps:$4 sm:$0xff]   ;;  %v587_v17 = vld [vmem:[%s800_s1 + $0x38] ss:$12 sps:$4 sm:$0xff]  }
   0x7   :  { %353 = vmatpush1.bf16.msra.mxu0 %v557_v3  ;;  %532 = vmatprep.subr.bf16.mxu1 %v581_v12  ;;  %v570_v18 = vld [vmem:[%s800_s1 + $0x94] ss:$12 sps:$4 sm:$0xff]   ;;  %v591_v19 = vld [vmem:[%s800_s1 + $0x110] ss:$12 sps:$4 sm:$0xff]   ;;  %v573_v22 = vld [vmem:[%s800_s1 + $0xac] ss:$12 sps:$4 sm:$0xff]  }
   0x8   :  { %354 = vmatprep.subr.bf16.mxu0 %v558_v4  ;;  %v592_v20 = vld [vmem:[%s800_s1 + $0x50] ss:$12 sps:$4 sm:$0xff]   ;;  %v596_v23 = vld [vmem:[%s800_s1 + $0x128] ss:$12 sps:$4 sm:$0xff]   ;;  %v601_v27 = vld [vmem:[%s800_s1 + $0x140] ss:$12 sps:$4 sm:$0xff]  }
   0x9   :  { %v572_v21 = vld [vmem:[%s800_s1 + $0x90] ss:$12 sps:$4 sm:$0xff]   ;;  %v575_v24 = vld [vmem:[%s800_s1 + $0xa8] ss:$12 sps:$4 sm:$0xff]   ;;  %v580_v28 = vld [vmem:[%s800_s1 + $0xc0] ss:$12 sps:$4 sm:$0xff]  }
   0xa   :  { %533 = vmatpush3.bf16.msra.mxu1 %v582_v13  ;;  %v597_v25 = vld [vmem:[%s800_s1 + $0x68] ss:$12 sps:$4 sm:$0xff]   ;;  %v578_v26 = vld [vmem:[%s800_s1 + $0xc4] ss:$12 sps:$4 sm:$0xff]   ;;  %v602_v29 = vld [vmem:[%s800_s1 + $0x80] ss:$12 sps:$4 sm:$0xff]  }
   0xb   :  { %355 = vmatpush1.bf16.msra.mxu0 %v560_v5  ;;  %534 = vmatprep.subr.bf16.mxu1 %v586_v16  ;;  %v606_v30 = vld [vmem:[%s800_s1 + $0x158] ss:$12 sps:$4 sm:$0xff]   ;;  %v583_v31 = vld [vmem:[%s800_s1 + $0xdc] ss:$12 sps:$4 sm:$0xff]   ;;  %v588_v35 = vld [vmem:[%s800_s1 + $0xf4] ss:$12 sps:$4 sm:$0xff]  }
   0xc   :  { %356 = vmatprep.subr.bf16.mxu0 %v561_v6  ;;  %v585_v32 = vld [vmem:[%s800_s1 + $0xd8] ss:$12 sps:$4 sm:$0xff]   ;;  %v611_v34 = vld [vmem:[%s800_s1 + $0x170] ss:$12 sps:$4 sm:$0xff]   ;;  %v595_v41 = vld [vmem:[%s800_s1 + $0x108] ss:$12 sps:$4 sm:$0xff]  }
   0xd   :  { %v607_v33 = vld [vmem:[%s800_s1 + $0x98] ss:$12 sps:$4 sm:$0xff]   ;;  %v481_v36 = vld.sshfl [vmem:[%s801_s0] sm:$0x33 pattern:$0x76325410] }
   0xe   :  { %535 = vmatpush3.bf16.msra.mxu1 %v587_v17  ;;  %v612_v37 = vld [vmem:[%s800_s1 + $0xb0] ss:$12 sps:$4 sm:$0xff]   ;;  %v91_v38 = vcombine.high %v481_v36, %v481_v36  ;;  %v593_v40 = vld [vmem:[%s800_s1 + $0x10c] ss:$12 sps:$4 sm:$0xff]   ;;  %v608_v46 = vld [vmem:[%s800_s1 + $0x154] ss:$12 sps:$4 sm:$0xff]  }
   0xf   :  { %357 = vmatpush1.bf16.msra.mxu0 %v563_v7  ;;  %536 = vmatprep.subr.bf16.mxu1 %v591_v19  ;;  %v590_v39 = vld [vmem:[%s800_s1 + $0xf0] ss:$12 sps:$4 sm:$0xff]   ;;  %v600_v43 = vld [vmem:[%s800_s1 + $0x120] ss:$12 sps:$4 sm:$0xff]   ;;  %v605_v45 = vld [vmem:[%s800_s1 + $0x138] ss:$12 sps:$4 sm:$0xff]  }
  0x10   :  { %358 = vmatprep.subr.bf16.mxu0 %v564_v8  ;;  %423 = vmatprep.mubr.bf16.mxu1 %v91_v38  ;;  %v598_v42 = vld [vmem:[%s800_s1 + $0x124] ss:$12 sps:$4 sm:$0xff]   ;;  %v603_v44 = vld [vmem:[%s800_s1 + $0x13c] ss:$12 sps:$4 sm:$0xff]   ;;  %v613_v48 = vld [vmem:[%s800_s1 + $0x16c] ss:$12 sps:$4 sm:$0xff]  }
  0x11   :  { %382 = vmatprep.mubr.bf16.mxu0 %v91_v38  ;;  %v610_v47 = vld [vmem:[%s800_s1 + $0x150] ss:$12 sps:$4 sm:$0xff]   ;;  %v615_v49 = vld [vmem:[%s800_s1 + $0x168] ss:$12 sps:$4 sm:$0xff]   ;;  %v434_v51 = vshrl.u32 %v433_v50, 7 }
  0x12   :  { %537 = vmatpush3.bf16.msra.mxu1 %v592_v20  ;;  %v431_v53 = vld [vmem:[%s802_s2] sm:$0x7] }
  0x13   :  { %359 = vmatpush1.bf16.msra.mxu0 %v566_v11  ;;  %538 = vmatprep.subr.bf16.mxu1 %v596_v23  ;;  %v443_v52 = vsub.s32 2, %v434_v51  ;;  %v451_v57 = vld [vmem:[%s803_s3] sm:$0x7]  ;;  %v435_v0 = vsub.s32 0, %v434_v51  ;;  %v439_v1 = vsub.s32 1, %v434_v51 }
  0x14   :  { %360 = vmatprep.subr.bf16.mxu0 %v567_v14 }
  0x15   :  { %v444_v55 = vrot.slane %v431_v53, %v443_v52  ;;  %v464_v59 = vrot.slane %v451_v57, %v443_v52  ;;  %v436_v2 = vrot.slane %v431_v53, %v435_v0  ;;  %v440_v3 = vrot.slane %v431_v53, %v439_v1 }
  0x16   :  { %539 = vmatpush3.bf16.msra.mxu1 %v597_v25  ;;  %v456_v4 = vrot.slane %v451_v57, %v435_v0  ;;  %v460_v6 = vrot.slane %v451_v57, %v439_v1 }
  0x17   :  { %361 = vmatpush1.bf16.msra.mxu0 %v569_v15  ;;  %540 = vmatprep.subr.bf16.mxu1 %v601_v27 }
  0x18   :  { %362 = vmatprep.subr.bf16.mxu0 %v570_v18 }
  0x1a   :  { %541 = vmatpush3.bf16.msra.mxu1 %v602_v29 }
  0x1b   :  { %363 = vmatpush1.bf16.msra.mxu0 %v572_v21  ;;  %542 = vmatprep.subr.bf16.mxu1 %v606_v30 }
  0x1c   :  { %364 = vmatprep.subr.bf16.mxu0 %v573_v22 }
  0x1e   :  { %543 = vmatpush3.bf16.msra.mxu1 %v607_v33 }
  0x1f   :  { %365 = vmatpush1.bf16.msra.mxu0 %v575_v24  ;;  %544 = vmatprep.subr.bf16.mxu1 %v611_v34 }
  0x20   :  { %366 = vmatprep.subr.bf16.mxu0 %v578_v26 }
  0x22   :  { %545 = vmatpush3.bf16.msra.mxu1 %v612_v37 }
  0x23   :  { %367 = vmatpush1.bf16.msra.mxu0 %v580_v28 }
  0x24   :  { %368 = vmatprep.subr.bf16.mxu0 %v583_v31 }
  0x25   :  { %424 = vmatmul.mubr.bf16.vlgmr.msra.gmra.mrb[0].mxu1 %v481_v36 }
  0x27   :  { %369 = vmatpush1.bf16.msra.mxu0 %v585_v32 }
  0x28   :  { %370 = vmatprep.subr.bf16.mxu0 %v588_v35 }
  0x2b   :  { %371 = vmatpush1.bf16.msra.mxu0 %v590_v39 }
  0x2c   :  { %372 = vmatprep.subr.bf16.mxu0 %v593_v40 }
  0x2f   :  { %373 = vmatpush1.bf16.msra.mxu0 %v595_v41 }
  0x30   :  { %374 = vmatprep.subr.bf16.mxu0 %v598_v42 }
  0x33   :  { %375 = vmatpush1.bf16.msra.mxu0 %v600_v43 }
  0x34   :  { %376 = vmatprep.subr.bf16.mxu0 %v603_v44 }
  0x37   :  { %377 = vmatpush1.bf16.msra.mxu0 %v605_v45 }
  0x38   :  { %378 = vmatprep.subr.bf16.mxu0 %v608_v46 }
  0x3b   :  { %379 = vmatpush1.bf16.msra.mxu0 %v610_v47 }
  0x3c   :  { %380 = vmatprep.subr.bf16.mxu0 %v613_v48 }
  0x3f   :  { %381 = vmatpush1.bf16.msra.mxu0 %v615_v49 }
  0x42   :  { %383 = vmatmul.mubr.bf16.vlgmr.msra.gmra.mrb[0].mxu0 %v481_v36 }
  0xf8   :  { %v546_v54 = vpop.f32.mrb[0].mxu1 }
  0xf9   :  { %v547_v56 = vpop.f32.mrb[1].mxu1 }
  0xfa   :  { %v548_v58 = vadd.f32 %v547_v56, %v546_v54  ;;  %v549_v60 = vpop.f32.mrb[2].mxu1 }
  0xfb   :  { %v550_v61 = vpop.f32.mrb[3].mxu1 }
  0xfc   :  { %v450_v62 = vmul.f32 %v548_v58, %v444_v55 }
  0xfe   :  { %v470_v63 = vadd.f32 %v464_v59, %v450_v62 }
 0x100   :  { %476 = vst [vmem:[%s804_s4 + $0x8] sm:$0xf] %v470_v63 }
 0x115   :  { %v384_v5 = vpop.f32.mrb[0].mxu0 }
 0x116   :  { %v448_v7 = vmul.f32 %v436_v2, %v384_v5  ;;  %v386_v8 = vpop.f32.mrb[1].mxu0 }
 0x117   :  { %v449_v9 = vmul.f32 %v440_v3, %v386_v8  ;;  %v388_v10 = vpop.f32.mrb[2].mxu0 }
 0x118   :  { %v468_v11 = vadd.f32 %v456_v4, %v448_v7  ;;  %v389_v12 = vpop.f32.mrb[3].mxu0 }
 0x119   :  { %v469_v13 = vadd.f32 %v460_v6, %v449_v9 }
 0x11b   :  { %v473_v14 = vcombine.low %v468_v11, %v469_v13 }
 0x11d   :  { %475 = vst [vmem:[%s804_s4] sm:$0xff] %v473_v14 }

// kernel: style_encoder_forward.14
= control target key start
LH: loop header
LB: loop body
LE: loop exit
PB: predicated region body
PF: predicated region fallthrough
CT: control target
= control target key end

     0   :  { %s2567_s15 = smov 0   ;;  %s3068_s0 = inlined_call_operand.vmem [shape: bf16[2,3,9,512], index: 0, kind: input, shape index: {}]   ;;  %s3069_s1 = inlined_call_operand.vmem [shape: bf16[4,512,128], index: 1, kind: input, shape index: {}]   ;;  %s3070_s2 = inlined_call_operand.vmem [shape: f32[1,128], index: 2, kind: input, shape index: {}]   ;;  %s3071_s3 = inlined_call_operand.vmem [shape: f32[1,128], index: 3, kind: input, shape index: {}]   ;;  %s3072_s4 = inlined_call_operand.vmem [shape: bf16[2,16,128], index: 4, kind: output, shape index: {}]  }
   0x1 LB: > { %s1851_s16 = sadd.s32 4294967295, %s2540_s15   ;;  %p1855_p0 = scmp.ge.s32.totalorder %s2540_s15, 1  ;;  %s2540_s15 = sphi %s2567_s15, %s14_s15  }
   0x2   : > { %p162_p1 = scmp.lt.s32.totalorder %s2540_s15, 3 }
   0x4   : > { %p163_p2 = pnand %p1855_p0, %p162_p1 }
   0x5   : > { %v2406_v0 = vld [vmem:[%s3069_s1 + $0x140] sm:$0xff] (!%p163_p2)   ;;  %v2410_v4 = vld [vmem:[%s3069_s1 + $0x148] sm:$0xff] (!%p163_p2)   ;;  %v2414_v8 = vld [vmem:[%s3069_s1 + $0x150] sm:$0xff] (!%p163_p2)   ;;  %p188_p3 = scmp.lt.s32.totalorder (!%p163_p2), %s1851_s16, 1  ;;  %vm271_vm0 = vsmask.f32 (!%p163_p2), 3328 }
   0x6   : > { %166 = sbr.rel (%p163_p2) target bundleno = 367 (0x16f), region = 36  ;;  %v2407_v1 = vld [vmem:[%s3069_s1 + $0x1c0] sm:$0xff] (!%p163_p2)   ;;  %2221 = vmatprep.subr.bf16.mxu0 (!%p163_p2), %v2406_v0  ;;  %v2411_v5 = vld [vmem:[%s3069_s1 + $0x1c8] sm:$0xff] (!%p163_p2)   ;;  %v2415_v9 = vld [vmem:[%s3069_s1 + $0x1d0] sm:$0xff] (!%p163_p2)   ;;  %vm272_vm1 = vsmask.f32 (!%p163_p2), 7440 }
   0x7   : > { %v2408_v2 = vld [vmem:[%s3069_s1 + $0x100] sm:$0xff] (!%p163_p2)   ;;  %2243 = vmatprep.subr.bf16.mxu1 (!%p163_p2), %v2407_v1  ;;  %v2412_v6 = vld [vmem:[%s3069_s1 + $0x108] sm:$0xff] (!%p163_p2)   ;;  %v2416_v10 = vld [vmem:[%s3069_s1 + $0x110] sm:$0xff] (!%p163_p2)  }
   0x8   : > { %v2409_v3 = vld [vmem:[%s3069_s1 + $0x180] sm:$0xff] (!%p163_p2)   ;;  %2222 = vmatpush3.bf16.msra.mxu0 (!%p163_p2), %v2408_v2  ;;  %v2413_v7 = vld [vmem:[%s3069_s1 + $0x188] sm:$0xff] (!%p163_p2)   ;;  %v2417_v11 = vld [vmem:[%s3069_s1 + $0x190] sm:$0xff] (!%p163_p2)  }
   0x9   : > { %2244 = vmatpush3.bf16.msra.mxu1 (!%p163_p2), %v2409_v3  ;;  %2223 = vmatprep.subr.bf16.mxu0 (!%p163_p2), %v2410_v4  ;;  %v2418_v12 = vld [vmem:[%s3069_s1 + $0x158] sm:$0xff] (!%p163_p2)   ;;  %v2422_v16 = vld [vmem:[%s3069_s1 + $0x160] sm:$0xff] (!%p163_p2)   ;;  %v2426_v20 = vld [vmem:[%s3069_s1 + $0x168] sm:$0xff] (!%p163_p2)  }
   0xa   : > { %2245 = vmatprep.subr.bf16.mxu1 (!%p163_p2), %v2411_v5  ;;  %v2419_v13 = vld [vmem:[%s3069_s1 + $0x1d8] sm:$0xff] (!%p163_p2)   ;;  %v2423_v17 = vld [vmem:[%s3069_s1 + $0x1e0] sm:$0xff] (!%p163_p2)   ;;  %v2427_v21 = vld [vmem:[%s3069_s1 + $0x1e8] sm:$0xff] (!%p163_p2)  }
   0xb   : > { %v2420_v14 = vld [vmem:[%s3069_s1 + $0x118] sm:$0xff] (!%p163_p2)   ;;  %v2424_v18 = vld [vmem:[%s3069_s1 + $0x120] sm:$0xff] (!%p163_p2)   ;;  %v2428_v22 = vld [vmem:[%s3069_s1 + $0x128] sm:$0xff] (!%p163_p2)  }
   0xc   : > { %2224 = vmatpush3.bf16.msra.mxu0 (!%p163_p2), %v2412_v6  ;;  %v2421_v15 = vld [vmem:[%s3069_s1 + $0x198] sm:$0xff] (!%p163_p2)   ;;  %v2425_v19 = vld [vmem:[%s3069_s1 + $0x1a0] sm:$0xff] (!%p163_p2)   ;;  %v2429_v23 = vld [vmem:[%s3069_s1 + $0x1a8] sm:$0xff] (!%p163_p2)  }
   0xd   : > { %2246 = vmatpush3.bf16.msra.mxu1 %v2413_v7  ;;  %2225 = vmatprep.subr.bf16.mxu0 %v2414_v8  ;;  %s3076_s16 = smov (!%p188_p3, %s1851_s16), 1  ;;  %v2430_v24 = vld [vmem:[%s3069_s1 + $0x170] sm:$0xff]   ;;  %v2434_v28 = vld [vmem:[%s3069_s1 + $0x178] sm:$0xff]   ;;  %v2438_v56 = vld [vmem:[%s3069_s1 + $0x40] sm:$0xff]  }
   0xe   : > { %2247 = vmatprep.subr.bf16.mxu1 %v2415_v9  ;;  %v2431_v25 = vld [vmem:[%s3069_s1 + $0x1f0] sm:$0xff]   ;;  %s2397_s21 = smul.u32 96, %s3076_s16  ;;  %v2435_v29 = vld [vmem:[%s3069_s1 + $0x1f8] sm:$0xff]   ;;  %vm2710_vm2 = vmor %vm271_vm0, %vm272_vm1  ;;  %s2213_s24 = sshll.u32 %s3076_s16, 3 }
   0xf   : > { %v2432_v26 = vld [vmem:[%s3069_s1 + $0x130] sm:$0xff]   ;;  %v2436_v30 = vld [vmem:[%s3069_s1 + $0x138] sm:$0xff]   ;;  %v2439_v62 = vld [vmem:[%s3069_s1 + $0xc0] sm:$0xff]   ;;  %s197_s27 = scalar_lea.vmem %s3072_s4, %s2213_s24 }
  0x10   : > { %2226 = vmatpush3.bf16.msra.mxu0 %v2416_v10  ;;  %v2433_v27 = vld [vmem:[%s3069_s1 + $0x1b0] sm:$0xff]   ;;  %s2675_s6 = scalar_lea.vmem %s3068_s0, %s2397_s21  ;;  %v2437_v31 = vld [vmem:[%s3069_s1 + $0x1b8] sm:$0xff]  }
  0x11   : > { %2248 = vmatpush3.bf16.msra.mxu1 %v2417_v11  ;;  %2227 = vmatprep.subr.bf16.mxu0 %v2418_v12  ;;  %v2684_v32 = vld [vmem:[%s2675_s6] sm:$0xff]  ;;  %v267_v34 = vld [vmem:[%s2675_s6 + $0x10] sm:$0x11]  ;;  %v2696_v42 = vld [vmem:[%s2675_s6 + $0x8] sm:$0xff] }
  0x12   : > { %2249 = vmatprep.subr.bf16.mxu1 %v2419_v13  ;;  %v2687_v33 = vld [vmem:[%s2675_s6 + $0x20] sm:$0xff]  ;;  %v269_v35 = vld [vmem:[%s2675_s6 + $0x30] sm:$0x11]  ;;  %v275_v36 = vshrl.u32 %v2684_v32, 16  ;;  %v278_v37 = vshll.u32 %v2684_v32, 16  ;;  %v284_v38 = vshll.u32 %v267_v34, 16 }
  0x13   : > { %v303_v39 = vshrl.u32 %v2687_v33, 16  ;;  %v306_v40 = vshll.u32 %v2687_v33, 16  ;;  %v312_v41 = vshll.u32 %v269_v35, 16  ;;  %v2699_v43 = vld [vmem:[%s2675_s6 + $0x28] sm:$0xff]  ;;  %v268_v46 = vld [vmem:[%s2675_s6 + $0x18] sm:$0x11] }
  0x14   : > { %2228 = vmatpush3.bf16.msra.mxu0 %v2420_v14  ;;  %v277_v44 = vrot.slane %v275_v36, 4  ;;  %v280_v45 = vrot.slane %v278_v37, 5  ;;  %v270_v47 = vld [vmem:[%s2675_s6 + $0x38] sm:$0x11]  ;;  %v286_v48 = vrot.slane %v284_v38, 5  ;;  %v289_v53 = vshrl.u32 %v2696_v42, 16 }
  0x15   : > { %2250 = vmatpush3.bf16.msra.mxu1 %v2421_v15  ;;  %2229 = vmatprep.subr.bf16.mxu0 %v2422_v16  ;;  %v305_v49 = vrot.slane %v303_v39, 4  ;;  %v308_v50 = vrot.slane %v306_v40, 5  ;;  %v314_v51 = vrot.slane %v312_v41, 5  ;;  %v292_v54 = vshll.u32 %v2696_v42, 16  ;;  %v2440_v14 = vld [vmem:[%s3069_s1] sm:$0xff]   ;;  %v2451_v34 = vld [vmem:[%s3069_s1 + $0xd8] sm:$0xff]  }
  0x16   : > { %2251 = vmatprep.subr.bf16.mxu1 %v2423_v17  ;;  %v281_v52 = vor.u32 %v280_v45, %v277_v44  ;;  %v298_v55 = vshll.u32 %v268_v46, 16  ;;  %v317_v59 = vshrl.u32 %v2699_v43, 16  ;;  %v320_v60 = vshll.u32 %v2699_v43, 16  ;;  %v2442_v17 = vld [vmem:[%s3069_s1 + $0x48] sm:$0xff]   ;;  %v2452_v35 = vld [vmem:[%s3069_s1 + $0x18] sm:$0xff]   ;;  %v2454_v36 = vld [vmem:[%s3069_s1 + $0x60] sm:$0xff]  }
  0x17   : > { %v309_v58 = vor.u32 %v308_v50, %v305_v49  ;;  %v326_v61 = vshll.u32 %v270_v47, 16  ;;  %v291_v0 = vrot.slane %v289_v53, 4  ;;  %v294_v1 = vrot.slane %v292_v54, 5  ;;  %v2453_v37 = vld [vmem:[%s3069_s1 + $0x98] sm:$0xff]   ;;  %v2455_v38 = vld [vmem:[%s3069_s1 + $0xe0] sm:$0xff]   ;;  %v2458_v40 = vld [vmem:[%s3069_s1 + $0x68] sm:$0xff]  }
  0x18   : > { %2230 = vmatpush3.bf16.msra.mxu0 %v2424_v18  ;;  %v282_v63 = vrot.slane %v281_v52, 4  ;;  %v319_v3 = vrot.slane %v317_v59, 4  ;;  %v322_v4 = vrot.slane %v320_v60, 5  ;;  %v300_v7 = vrot.slane %v298_v55, 5  ;;  %v2456_v39 = vld [vmem:[%s3069_s1 + $0x20] sm:$0xff]   ;;  %v2459_v44 = vld [vmem:[%s3069_s1 + $0xe8] sm:$0xff]  }
  0x19   : > { %2252 = vmatpush3.bf16.msra.mxu1 %v2425_v19  ;;  %2231 = vmatprep.subr.bf16.mxu0 %v2426_v20  ;;  %v2719_v2 = vrot.slane %v309_v58, 4  ;;  %v295_v6 = vor.u32 %v294_v1, %v291_v0  ;;  %v328_v10 = vrot.slane %v326_v61, 5  ;;  %v1960_v15 = vcombine.high %v2684_v32, %v2687_v33  ;;  %v2441_v19 = vld [vmem:[%s3069_s1 + $0x80] sm:$0xff]   ;;  %v2460_v45 = vld [vmem:[%s3069_s1 + $0x28] sm:$0xff]   ;;  %v2462_v46 = vld [vmem:[%s3069_s1 + $0x70] sm:$0xff]  }
  0x1a   : > { %2253 = vmatprep.subr.bf16.mxu1 %v2427_v21  ;;  %v287_v5 = vsel %vm2710_vm2, %v282_v63, %v286_v48  ;;  %v323_v9 = vor.u32 %v322_v4, %v319_v3  ;;  %v2443_v21 = vld [vmem:[%s3069_s1 + $0xc8] sm:$0xff]   ;;  %v2457_v41 = vld [vmem:[%s3069_s1 + $0xa0] sm:$0xff]   ;;  %v2463_v48 = vld [vmem:[%s3069_s1 + $0xf0] sm:$0xff]   ;;  %v1961_v61 = vcombine.low %v2696_v42, %v2699_v43 }
  0x1b   : > { %v315_v8 = vsel %vm2710_vm2, %v2719_v2, %v314_v51  ;;  %v296_v13 = vrot.slane %v295_v6, 4  ;;  %v2461_v47 = vld [vmem:[%s3069_s1 + $0xa8] sm:$0xff]   ;;  %v2464_v49 = vld [vmem:[%s3069_s1 + $0x30] sm:$0xff]   ;;  %v2466_v50 = vld [vmem:[%s3069_s1 + $0x78] sm:$0xff]  }
  0x1c   : > { %2232 = vmatpush3.bf16.msra.mxu0 %v2428_v22  ;;  %v1923_v11 = vcombine.low %v287_v5, %v315_v8  ;;  %v1924_v12 = vcombine.high %v287_v5, %v315_v8  ;;  %v2731_v16 = vrot.slane %v323_v9, 4  ;;  %v2465_v51 = vld [vmem:[%s3069_s1 + $0xb0] sm:$0xff]   ;;  %v2467_v52 = vld [vmem:[%s3069_s1 + $0xf8] sm:$0xff]   ;;  %v2470_v54 = vld [vmem:[%s3069_s1 + $0x240] sm:$0xff]  }
  0x1d   : > { %2254 = vmatpush3.bf16.msra.mxu1 %v2429_v23  ;;  %2233 = vmatprep.subr.bf16.mxu0 %v2430_v24  ;;  %v301_v18 = vsel %vm2710_vm2, %v296_v13, %v300_v7  ;;  %v2444_v24 = vld [vmem:[%s3069_s1 + $0x8] sm:$0xff]   ;;  %v2468_v53 = vld [vmem:[%s3069_s1 + $0x38] sm:$0xff]   ;;  %v2471_v58 = vld [vmem:[%s3069_s1 + $0x2c0] sm:$0xff]  }
  0x1e   : > { %2255 = vmatprep.subr.bf16.mxu1 %v2431_v25  ;;  %635 = vmatprep.mubr.bf16.mxu0 %v1924_v12  ;;  %v329_v20 = vsel %vm2710_vm2, %v2731_v16, %v328_v10  ;;  %v2446_v25 = vld [vmem:[%s3069_s1 + $0x50] sm:$0xff]   ;;  %v2469_v55 = vld [vmem:[%s3069_s1 + $0xb8] sm:$0xff]   ;;  %v2472_v59 = vld [vmem:[%s3069_s1 + $0x200] sm:$0xff]  }
  0x1f   : > { %v1925_v22 = vcombine.low %v301_v18, %v329_v20  ;;  %v1926_v23 = vcombine.high %v301_v18, %v329_v20  ;;  %v2474_v60 = vld [vmem:[%s3069_s1 + $0x248] sm:$0xff]   ;;  %v2478_v0 = vld [vmem:[%s3069_s1 + $0x250] sm:$0xff]   ;;  %v2482_v4 = vld [vmem:[%s3069_s1 + $0x258] sm:$0xff]  }
  0x20   : > { %2234 = vmatpush3.bf16.msra.mxu0 %v2432_v26  ;;  %v2445_v26 = vld [vmem:[%s3069_s1 + $0x88] sm:$0xff]   ;;  %v2479_v1 = vld [vmem:[%s3069_s1 + $0x2d0] sm:$0xff]   ;;  %v2483_v6 = vld [vmem:[%s3069_s1 + $0x2d8] sm:$0xff]  }
  0x21   : > { %2256 = vmatpush3.bf16.msra.mxu1 %v2433_v27  ;;  %2235 = vmatprep.subr.bf16.mxu0 %v2434_v28  ;;  %v1962_v27 = vcombine.high %v2696_v42, %v2699_v43  ;;  %v2447_v28 = vld [vmem:[%s3069_s1 + $0xd0] sm:$0xff]   ;;  %v2476_v63 = vld [vmem:[%s3069_s1 + $0x208] sm:$0xff]   ;;  %v2484_v7 = vld [vmem:[%s3069_s1 + $0x218] sm:$0xff]  }
  0x22   : > { %2257 = vmatprep.subr.bf16.mxu1 %v2435_v29  ;;  %676 = vmatprep.mubr.bf16.mxu1 %v1926_v23  ;;  %v2448_v29 = vld [vmem:[%s3069_s1 + $0x10] sm:$0xff]   ;;  %v2477_v42 = vld [vmem:[%s3069_s1 + $0x288] sm:$0xff]   ;;  %v2486_v8 = vld [vmem:[%s3069_s1 + $0x260] sm:$0xff]  }
  0x23   : > { %v2480_v3 = vld [vmem:[%s3069_s1 + $0x210] sm:$0xff]   ;;  %v2485_v9 = vld [vmem:[%s3069_s1 + $0x298] sm:$0xff]   ;;  %v2487_v10 = vld [vmem:[%s3069_s1 + $0x2e0] sm:$0xff]  }
  0x24   : > { %2236 = vmatpush3.bf16.msra.mxu0 %v2436_v30  ;;  %v2450_v30 = vld [vmem:[%s3069_s1 + $0x58] sm:$0xff]   ;;  %v2481_v5 = vld [vmem:[%s3069_s1 + $0x290] sm:$0xff]   ;;  %v2490_v12 = vld [vmem:[%s3069_s1 + $0x268] sm:$0xff]  }
  0x25   : > { %2258 = vmatpush3.bf16.msra.mxu1 %v2437_v31  ;;  %2265 = vmatprep.subr.bf16.mxu0 %v2438_v56  ;;  %v2449_v31 = vld [vmem:[%s3069_s1 + $0x90] sm:$0xff]   ;;  %v1959_v56 = vcombine.low %v2684_v32, %v2687_v33  ;;  %v2473_v32 = vld [vmem:[%s3069_s1 + $0x280] sm:$0xff]   ;;  %v2493_v18 = vld [vmem:[%s3069_s1 + $0x2a8] sm:$0xff]  }
  0x26   : > { %2287 = vmatprep.subr.bf16.mxu1 %v2439_v62  ;;  %v2475_v62 = vld [vmem:[%s3069_s1 + $0x2c8] sm:$0xff]   ;;  %v2489_v13 = vld [vmem:[%s3069_s1 + $0x2a0] sm:$0xff]   ;;  %v2496_v20 = vld [vmem:[%s3069_s1 + $0x230] sm:$0xff]  }
  0x27   : > { %636 = vmatmul.mubr.bf16.vlgmr.msra.gmra.mrb[0].mxu0 %v1923_v11  ;;  %v2488_v11 = vld [vmem:[%s3069_s1 + $0x220] sm:$0xff]   ;;  %v2499_v23 = vld [vmem:[%s3069_s1 + $0x2f8] sm:$0xff]  }
  0x28   : > { %2266 = vmatpush3.bf16.msra.mxu0 %v2440_v14  ;;  %929 = vmatprep.mubr.bf16.mxu0 %v1960_v15  ;;  %v2491_v14 = vld [vmem:[%s3069_s1 + $0x2e8] sm:$0xff]  }
  0x29   : > { %2267 = vmatprep.subr.bf16.mxu0 %v2442_v17  ;;  %677 = vmatmul.mubr.bf16.vlgmr.msra.gmra.mrb[0].mxu1 %v1925_v22  ;;  %v2492_v15 = vld [vmem:[%s3069_s1 + $0x228] sm:$0xff]   ;;  %v2494_v17 = vld [vmem:[%s3069_s1 + $0x270] sm:$0xff]  }
  0x2a   : > { %2288 = vmatpush3.bf16.msra.mxu1 %v2441_v19  ;;  %970 = vmatprep.mubr.bf16.mxu1 %v1962_v27  ;;  %v2495_v19 = vld [vmem:[%s3069_s1 + $0x2f0] sm:$0xff]   ;;  %v2930_v27 = vld [vmem:[%s2675_s6 + $0x48] sm:$0xff] }
  0x2b   : > { %2289 = vmatprep.subr.bf16.mxu1 %v2443_v21  ;;  %v2498_v21 = vld [vmem:[%s3069_s1 + $0x278] sm:$0xff]   ;;  %v2497_v22 = vld [vmem:[%s3069_s1 + $0x2b0] sm:$0xff]  }
  0x2c   : > { %2268 = vmatpush3.bf16.msra.mxu0 %v2444_v24  ;;  %v2500_v24 = vld [vmem:[%s3069_s1 + $0x238] sm:$0xff]  }
  0x2d   : > { %2269 = vmatprep.subr.bf16.mxu0 %v2446_v25  ;;  %v2925_v25 = vld [vmem:[%s2675_s6 + $0x40] sm:$0xff] }
  0x2e   : > { %2290 = vmatpush3.bf16.msra.mxu1 %v2445_v26  ;;  %v2064_v26 = vcombine.high %v2687_v33, %v2925_v25 }
  0x2f   : > { %2291 = vmatprep.subr.bf16.mxu1 %v2447_v28  ;;  %v2066_v28 = vcombine.high %v2699_v43, %v2930_v27 }
  0x30   : > { %2270 = vmatpush3.bf16.msra.mxu0 %v2448_v29  ;;  %v2502_v29 = vld [vmem:[%s3069_s1 + $0x340] sm:$0xff]  }
  0x31   : > { %2271 = vmatprep.subr.bf16.mxu0 %v2450_v30  ;;  %v2501_v30 = vld [vmem:[%s3069_s1 + $0x2b8] sm:$0xff]  }
  0x32   : > { %2292 = vmatpush3.bf16.msra.mxu1 %v2449_v31  ;;  %v2063_v31 = vcombine.low %v2687_v33, %v2925_v25  ;;  %v2505_v33 = vld [vmem:[%s3069_s1 + $0x380] sm:$0xff]  }
  0x33   : > { %2293 = vmatprep.subr.bf16.mxu1 %v2451_v34  ;;  %v2503_v34 = vld [vmem:[%s3069_s1 + $0x3c0] sm:$0xff]  }
  0x34   : > { %2272 = vmatpush3.bf16.msra.mxu0 %v2452_v35  ;;  %v2504_v35 = vld [vmem:[%s3069_s1 + $0x300] sm:$0xff]  }
  0x35   : > { %2273 = vmatprep.subr.bf16.mxu0 %v2454_v36  ;;  %v2506_v36 = vld [vmem:[%s3069_s1 + $0x348] sm:$0xff]  }
  0x36   : > { %2294 = vmatpush3.bf16.msra.mxu1 %v2453_v37  ;;  %v2065_v37 = vcombine.low %v2699_v43, %v2930_v27  ;;  %v2509_v43 = vld [vmem:[%s3069_s1 + $0x388] sm:$0xff]  }
  0x37   : > { %2295 = vmatprep.subr.bf16.mxu1 %v2455_v38  ;;  %v2507_v38 = vld [vmem:[%s3069_s1 + $0x3c8] sm:$0xff]  }
  0x38   : > { %2274 = vmatpush3.bf16.msra.mxu0 %v2456_v39  ;;  %v2508_v39 = vld [vmem:[%s3069_s1 + $0x308] sm:$0xff]  }
  0x39   : > { %2275 = vmatprep.subr.bf16.mxu0 %v2458_v40  ;;  %v2510_v40 = vld [vmem:[%s3069_s1 + $0x350] sm:$0xff]  }
  0x3a   : > { %2296 = vmatpush3.bf16.msra.mxu1 %v2457_v41  ;;  %v2511_v41 = vld [vmem:[%s3069_s1 + $0x3d0] sm:$0xff]  }
  0x3b   : > { %2297 = vmatprep.subr.bf16.mxu1 %v2459_v44  ;;  %v2512_v44 = vld [vmem:[%s3069_s1 + $0x310] sm:$0xff]  }
  0x3c   : > { %2276 = vmatpush3.bf16.msra.mxu0 %v2460_v45  ;;  %v2514_v45 = vld [vmem:[%s3069_s1 + $0x358] sm:$0xff]  }
  0x3d   : > { %2277 = vmatprep.subr.bf16.mxu0 %v2462_v46  ;;  %v2513_v46 = vld [vmem:[%s3069_s1 + $0x390] sm:$0xff]  }
  0x3e   : > { %2298 = vmatpush3.bf16.msra.mxu1 %v2461_v47  ;;  %v2515_v47 = vld [vmem:[%s3069_s1 + $0x3d8] sm:$0xff]  }
  0x3f   : > { %2299 = vmatprep.subr.bf16.mxu1 %v2463_v48  ;;  %v2516_v48 = vld [vmem:[%s3069_s1 + $0x318] sm:$0xff]  }
  0x40   : > { %2278 = vmatpush3.bf16.msra.mxu0 %v2464_v49  ;;  %v2518_v49 = vld [vmem:[%s3069_s1 + $0x360] sm:$0xff]  }
  0x41   : > { %2279 = vmatprep.subr.bf16.mxu0 %v2466_v50  ;;  %v2517_v50 = vld [vmem:[%s3069_s1 + $0x398] sm:$0xff]  }
  0x42   : > { %2300 = vmatpush3.bf16.msra.mxu1 %v2465_v51  ;;  %v2519_v51 = vld [vmem:[%s3069_s1 + $0x3e0] sm:$0xff]  }
  0x43   : > { %2301 = vmatprep.subr.bf16.mxu1 %v2467_v52  ;;  %v1382_v52 = vshrl.u32 %v2925_v25, 16 }
  0x44   : > { %2280 = vmatpush3.bf16.msra.mxu0 %v2468_v53  ;;  %v2520_v53 = vld [vmem:[%s3069_s1 + $0x320] sm:$0xff]  }
  0x45   : > { %2309 = vmatprep.subr.bf16.mxu0 %v2470_v54  ;;  %v1385_v54 = vshll.u32 %v2925_v25, 16 }
  0x46   : > { %2302 = vmatpush3.bf16.msra.mxu1 %v2469_v55  ;;  %v2522_v55 = vld [vmem:[%s3069_s1 + $0x368] sm:$0xff]  }
  0x47   : > { %930 = vmatmul.mubr.bf16.vlgmr.msra.gmra.mrb[4].mxu0 %v1959_v56  ;;  %2331 = vmatprep.subr.bf16.mxu1 %v2471_v58  ;;  %v1396_v56 = vshrl.u32 %v2930_v27, 16  ;;  %v2521_v58 = vld [vmem:[%s3069_s1 + $0x3a0] sm:$0xff]  }
  0x48   : > { %2310 = vmatpush3.bf16.msra.mxu0 %v2472_v59  ;;  %1293 = vmatprep.mubr.bf16.mxu0 %v2064_v26  ;;  %v1399_v59 = vshll.u32 %v2930_v27, 16 }
  0x49   : > { %2311 = vmatprep.subr.bf16.mxu0 %v2474_v60  ;;  %971 = vmatmul.mubr.bf16.vlgmr.msra.gmra.mrb[4].mxu1 %v1961_v61  ;;  %v2523_v60 = vld [vmem:[%s3069_s1 + $0x3e8] sm:$0xff]  }
  0x4a   : > { %2332 = vmatpush3.bf16.msra.mxu1 %v2473_v32  ;;  %1334 = vmatprep.mubr.bf16.mxu1 %v2066_v28  ;;  %v1384_v32 = vrot.slane %v1382_v52, 4  ;;  %v2524_v61 = vld [vmem:[%s3069_s1 + $0x328] sm:$0xff]  }
  0x4b   : > { %2333 = vmatprep.subr.bf16.mxu1 %v2475_v62  ;;  %v1387_v62 = vrot.slane %v1385_v54, 5 }
  0x4c   : > { %2312 = vmatpush3.bf16.msra.mxu0 %v2476_v63  ;;  %v2526_v63 = vld [vmem:[%s3069_s1 + $0x370] sm:$0xff]  }
  0x4d   : > { %2313 = vmatprep.subr.bf16.mxu0 %v2478_v0  ;;  %v1398_v0 = vrot.slane %v1396_v56, 4 }
  0x4e   : > { %2334 = vmatpush3.bf16.msra.mxu1 %v2477_v42  ;;  %v2525_v42 = vld [vmem:[%s3069_s1 + $0x3a8] sm:$0xff]  }
  0x4f   : > { %2335 = vmatprep.subr.bf16.mxu1 %v2479_v1  ;;  %v1401_v1 = vrot.slane %v1399_v59, 5 }
  0x50   : > { %2314 = vmatpush3.bf16.msra.mxu0 %v2480_v3  ;;  %v2527_v3 = vld [vmem:[%s3069_s1 + $0x3f0] sm:$0xff]  }
  0x51   : > { %2315 = vmatprep.subr.bf16.mxu0 %v2482_v4  ;;  %v2528_v4 = vld [vmem:[%s3069_s1 + $0x330] sm:$0xff]  }
  0x52   : > { %2336 = vmatpush3.bf16.msra.mxu1 %v2481_v5  ;;  %v1388_v5 = vor.u32 %v1387_v62, %v1384_v32 }
  0x53   : > { %2337 = vmatprep.subr.bf16.mxu1 %v2483_v6  ;;  %v2530_v6 = vld [vmem:[%s3069_s1 + $0x378] sm:$0xff]  }
  0x54   : > { %2316 = vmatpush3.bf16.msra.mxu0 %v2484_v7  ;;  %v2529_v7 = vld [vmem:[%s3069_s1 + $0x3b0] sm:$0xff]  }
  0x55   : > { %2317 = vmatprep.subr.bf16.mxu0 %v2486_v8  ;;  %v1402_v8 = vor.u32 %v1401_v1, %v1398_v0 }
  0x56   : > { %2338 = vmatpush3.bf16.msra.mxu1 %v2485_v9  ;;  %v2531_v9 = vld [vmem:[%s3069_s1 + $0x3f8] sm:$0xff]  }
  0x57   : > { %2339 = vmatprep.subr.bf16.mxu1 %v2487_v10  ;;  %v2532_v10 = vld [vmem:[%s3069_s1 + $0x338] sm:$0xff]  }
  0x58   : > { %2318 = vmatpush3.bf16.msra.mxu0 %v2488_v11  ;;  %v2101_v11 = vld [vmem:[%s2675_s6 + $0x30] sm:$0x11] }
  0x59   : > { %2319 = vmatprep.subr.bf16.mxu0 %v2490_v12  ;;  %v2105_v12 = vld [vmem:[%s2675_s6 + $0x50] sm:$0x11] }
  0x5a   : > { %2340 = vmatpush3.bf16.msra.mxu1 %v2489_v13  ;;  %v1389_v13 = vrot.slane %v1388_v5, 4 }
  0x5b   : > { %2341 = vmatprep.subr.bf16.mxu1 %v2491_v14  ;;  %v1363_v14 = vshll.u32 %v2101_v11, 16 }
  0x5c   : > { %2320 = vmatpush3.bf16.msra.mxu0 %v2492_v15  ;;  %v1391_v15 = vshll.u32 %v2105_v12, 16 }
  0x5d   : > { %2321 = vmatprep.subr.bf16.mxu0 %v2494_v17  ;;  %v2102_v17 = vld [vmem:[%s2675_s6 + $0x38] sm:$0x11] }
  0x5e   : > { %2342 = vmatpush3.bf16.msra.mxu1 %v2493_v18  ;;  %v2106_v18 = vld [vmem:[%s2675_s6 + $0x58] sm:$0x11] }
  0x5f   : > { %2343 = vmatprep.subr.bf16.mxu1 %v2495_v19  ;;  %v1377_v19 = vshll.u32 %v2102_v17, 16 }
  0x60   : > { %2322 = vmatpush3.bf16.msra.mxu0 %v2496_v20  ;;  %v1403_v20 = vrot.slane %v1402_v8, 4 }
  0x61   : > { %2323 = vmatprep.subr.bf16.mxu0 %v2498_v21  ;;  %v1405_v21 = vshll.u32 %v2106_v18, 16  ;;  %v1379_v25 = vrot.slane %v1377_v19, 5 }
  0x62   : > { %2344 = vmatpush3.bf16.msra.mxu1 %v2497_v22  ;;  %v1365_v22 = vrot.slane %v1363_v14, 5 }
  0x63   : > { %2345 = vmatprep.subr.bf16.mxu1 %v2499_v23  ;;  %v1393_v23 = vrot.slane %v1391_v15, 5  ;;  %v1407_v26 = vrot.slane %v1405_v21, 5 }
  0x64   : > { %2324 = vmatpush3.bf16.msra.mxu0 %v2500_v24  ;;  %v2533_v24 = vld [vmem:[%s3069_s1 + $0x3b8] sm:$0xff]   ;;  %v1366_v27 = vsel %vm2710_vm2, %v2719_v2, %v1365_v22 }
  0x65   : > { %2353 = vmatprep.subr.bf16.mxu0 %v2502_v29  ;;  %v1394_v28 = vsel %vm2710_vm2, %v1389_v13, %v1393_v23 }
  0x66   : > { %2346 = vmatpush3.bf16.msra.mxu1 %v2501_v30  ;;  %v2171_v29 = vcombine.low %v1366_v27, %v1394_v28  ;;  %v2172_v30 = vcombine.high %v1366_v27, %v1394_v28 }
  0x67   : > { %1294 = vmatmul.mubr.bf16.vlgmr.msra.gmra.mrb[8].mxu0 %v2063_v31  ;;  %2375 = vmatprep.subr.bf16.mxu1 %v2503_v34  ;;  %v1380_v31 = vsel %vm2710_vm2, %v2731_v16, %v1379_v25  ;;  %v1408_v34 = vsel %vm2710_vm2, %v1403_v20, %v1407_v26 }
  0x68   : > { %2354 = vmatpush3.bf16.msra.mxu0 %v2504_v35  ;;  %v2173_v35 = vcombine.low %v1380_v31, %v1408_v34  ;;  %1714 = vmatprep.mubr.bf16.mxu0 %v2172_v30  ;;  %v2207_v30 = vld [vmem:[%s3070_s2] ss:$0 sm:$0xff] }
  0x69   : > { %2355 = vmatprep.subr.bf16.mxu0 %v2506_v36  ;;  %1335 = vmatmul.mubr.bf16.vlgmr.msra.gmra.mrb[8].mxu1 %v2065_v37  ;;  %v2174_v36 = vcombine.high %v1380_v31, %v1408_v34 }
  0x6a   : > { %2376 = vmatpush3.bf16.msra.mxu1 %v2505_v33 }
  0x6b   : > { %2377 = vmatprep.subr.bf16.mxu1 %v2507_v38  ;;  %1755 = vmatprep.mubr.bf16.mxu1 %v2174_v36 }
  0x6c   : > { %2356 = vmatpush3.bf16.msra.mxu0 %v2508_v39 }
  0x6d   : > { %2357 = vmatprep.subr.bf16.mxu0 %v2510_v40 }
  0x6e   : > { %2378 = vmatpush3.bf16.msra.mxu1 %v2509_v43 }
  0x6f   : > { %2379 = vmatprep.subr.bf16.mxu1 %v2511_v41 }
  0x70   : > { %2358 = vmatpush3.bf16.msra.mxu0 %v2512_v44 }
  0x71   : > { %2359 = vmatprep.subr.bf16.mxu0 %v2514_v45 }
  0x72   : > { %2380 = vmatpush3.bf16.msra.mxu1 %v2513_v46 }
  0x73   : > { %2381 = vmatprep.subr.bf16.mxu1 %v2515_v47 }
  0x74   : > { %2360 = vmatpush3.bf16.msra.mxu0 %v2516_v48 }
  0x75   : > { %2361 = vmatprep.subr.bf16.mxu0 %v2518_v49 }
  0x76   : > { %2382 = vmatpush3.bf16.msra.mxu1 %v2517_v50 }
  0x77   : > { %2383 = vmatprep.subr.bf16.mxu1 %v2519_v51 }
  0x78   : > { %2362 = vmatpush3.bf16.msra.mxu0 %v2520_v53 }
  0x79   : > { %2363 = vmatprep.subr.bf16.mxu0 %v2522_v55 }
  0x7a   : > { %2384 = vmatpush3.bf16.msra.mxu1 %v2521_v58 }
  0x7b   : > { %2385 = vmatprep.subr.bf16.mxu1 %v2523_v60 }
  0x7c   : > { %2364 = vmatpush3.bf16.msra.mxu0 %v2524_v61 }
  0x7d   : > { %2365 = vmatprep.subr.bf16.mxu0 %v2526_v63 }
  0x7e   : > { %2386 = vmatpush3.bf16.msra.mxu1 %v2525_v42 }
  0x7f   : > { %2387 = vmatprep.subr.bf16.mxu1 %v2527_v3 }
  0x80   : > { %2366 = vmatpush3.bf16.msra.mxu0 %v2528_v4 }
  0x81   : > { %2367 = vmatprep.subr.bf16.mxu0 %v2530_v6 }
  0x82   : > { %2388 = vmatpush3.bf16.msra.mxu1 %v2529_v7 }
  0x83   : > { %2389 = vmatprep.subr.bf16.mxu1 %v2531_v9 }
  0x84   : > { %2368 = vmatpush3.bf16.msra.mxu0 %v2532_v10 }
  0x86   : > { %2390 = vmatpush3.bf16.msra.mxu1 %v2533_v24 }
  0x87   : > { %1715 = vmatmul.mubr.bf16.vlgmr.msra.gmra.mrb[12].mxu0 %v2171_v29 }
  0x89   : > { %1756 = vmatmul.mubr.bf16.vlgmr.msra.gmra.mrb[12].mxu1 %v2173_v35  ;;  %v2208_v35 = vld [vmem:[%s3071_s3] ss:$0 sm:$0xff] }
  0xfa   : > { %v2237_v2 = vpop.f32.mrb[0].mxu0 }
  0xfb   : > { %v2238_v33 = vpop.f32.mrb[1].mxu0 }
  0xfc   : > { %v2239_v37 = vadd.f32 %v2238_v33, %v2237_v2  ;;  %v2240_v38 = vpop.f32.mrb[2].mxu0  ;;  %v2259_v40 = vpop.f32.mrb[0].mxu1 }
  0xfd   : > { %v2241_v39 = vpop.f32.mrb[3].mxu0  ;;  %v2260_v41 = vpop.f32.mrb[1].mxu1 }
  0xfe   : > { %v2242_v43 = vadd.f32 %v2241_v39, %v2240_v38  ;;  %v2261_v44 = vadd.f32 %v2260_v41, %v2259_v40  ;;  %v2262_v16 = vpop.f32.mrb[2].mxu1 }
  0xff   : > { %v2263_v45 = vpop.f32.mrb[3].mxu1 }
 0x100   : > { %v679_v57 = vadd.f32 %v2261_v44, %v2239_v37  ;;  %v2264_v46 = vadd.f32 %v2263_v45, %v2262_v16 }
 0x102   : > { %v682_v47 = vadd.f32 %v2264_v46, %v2242_v43 }
 0x11a   : > { %v2281_v48 = vpop.f32.mrb[4].mxu0 }
 0x11b   : > { %v2282_v49 = vpop.f32.mrb[5].mxu0 }
 0x11c   : > { %v2283_v50 = vadd.f32 %v2282_v49, %v2281_v48  ;;  %v2284_v51 = vpop.f32.mrb[6].mxu0  ;;  %v2303_v53 = vpop.f32.mrb[4].mxu1 }
 0x11d   : > { %v2285_v52 = vpop.f32.mrb[7].mxu0  ;;  %v2304_v56 = vpop.f32.mrb[5].mxu1 }
 0x11e   : > { %v932_v54 = vadd.f32 %v2283_v50, %v679_v57  ;;  %v2286_v55 = vadd.f32 %v2285_v52, %v2284_v51  ;;  %v2305_v58 = vadd.f32 %v2304_v56, %v2303_v53  ;;  %v2306_v59 = vpop.f32.mrb[6].mxu1 }
 0x11f   : > { %v2307_v32 = vpop.f32.mrb[7].mxu1 }
 0x120   : > { %v935_v60 = vadd.f32 %v2286_v55, %v682_v47  ;;  %v973_v61 = vadd.f32 %v2305_v58, %v932_v54  ;;  %v2308_v62 = vadd.f32 %v2307_v32, %v2306_v59 }
 0x122   : > { %v976_v63 = vadd.f32 %v2308_v62, %v935_v60 }
 0x13a   : > { %v2325_v0 = vpop.f32.mrb[8].mxu0 }
 0x13b   : > { %v2326_v42 = vpop.f32.mrb[9].mxu0 }
 0x13c   : > { %v2327_v1 = vadd.f32 %v2326_v42, %v2325_v0  ;;  %v2328_v3 = vpop.f32.mrb[10].mxu0  ;;  %v2347_v5 = vpop.f32.mrb[8].mxu1 }
 0x13d   : > { %v2329_v4 = vpop.f32.mrb[11].mxu0  ;;  %v2348_v7 = vpop.f32.mrb[9].mxu1 }
 0x13e   : > { %v2330_v6 = vadd.f32 %v2329_v4, %v2328_v3  ;;  %v2349_v8 = vadd.f32 %v2348_v7, %v2347_v5  ;;  %v2350_v9 = vpop.f32.mrb[10].mxu1 }
 0x13f   : > { %v2351_v10 = vpop.f32.mrb[11].mxu1 }
 0x140   : > { %v1337_v11 = vadd.f32 %v2349_v8, %v2327_v1  ;;  %v2352_v12 = vadd.f32 %v2351_v10, %v2350_v9 }
 0x142   : > { %v1343_v13 = vadd.f32 %v1337_v11, %v973_v61  ;;  %v1340_v14 = vadd.f32 %v2352_v12, %v2330_v6 }
 0x144   : > { %v1344_v15 = vadd.f32 %v1340_v14, %v976_v63 }
 0x15a   : > { %v2369_v17 = vpop.f32.mrb[12].mxu0 }
 0x15b   : > { %v2370_v18 = vpop.f32.mrb[13].mxu0 }
 0x15c   : > { %v2391_v19 = vpop.f32.mrb[12].mxu1  ;;  %v2371_v20 = vadd.f32 %v2370_v18, %v2369_v17  ;;  %v2372_v21 = vpop.f32.mrb[14].mxu0 }
 0x15d   : > { %v2392_v22 = vpop.f32.mrb[13].mxu1  ;;  %v2373_v23 = vpop.f32.mrb[15].mxu0 }
 0x15e   : > { %v2393_v24 = vadd.f32 %v2392_v22, %v2391_v19  ;;  %v2394_v25 = vpop.f32.mrb[14].mxu1  ;;  %v2374_v26 = vadd.f32 %v2373_v23, %v2372_v21 }
 0x15f   : > { %v2395_v27 = vpop.f32.mrb[15].mxu1 }
 0x160   : > { %v1758_v28 = vadd.f32 %v2393_v24, %v2371_v20  ;;  %v2396_v29 = vadd.f32 %v2395_v27, %v2394_v25 }
 0x162   : > { %v1764_v31 = vadd.f32 %v1758_v28, %v1343_v13  ;;  %v1761_v34 = vadd.f32 %v2396_v29, %v2374_v26 }
 0x164   : > { %v1773_v36 = vmul.f32 %v2207_v30, %v1764_v31  ;;  %v1765_v2 = vadd.f32 %v1761_v34, %v1344_v15 }
 0x166   : > { %v1782_v33 = vadd.f32 %v2208_v35, %v1773_v36  ;;  %v1774_v37 = vmul.f32 %v2207_v30, %v1765_v2 }
 0x168   : > { %v1783_v38 = vadd.f32 %v2208_v35, %v1774_v37  ;;  %v1784_v39 = vmax.f32 %v1782_v33, 0.0 }
 0x16a   : > { %v1785_v40 = vmax.f32 %v1783_v38, 0.0 }
 0x16c   : > { %v2219_v43 = vpack.c.bf16 %v1785_v40, %v1784_v39 }
 0x16e   : > { %2220 = vst [vmem:[%s197_s27] sm:$0xff] %v2219_v43  }
 0x16f PF: > { %s14_s15 = sadd.s32 1, %s2540_s15  }
 0x170   : > { %p11_p4 = scmp.ge.s32.totalorder %s14_s15, 4  }
 0x172   :  { %13 = sbr.rel (!%p11_p4) target bundleno = 1 (0x1), region = 70 }

// kernel: style_encoder_forward.17
= control target key start
LH: loop header
LB: loop body
LE: loop exit
PB: predicated region body
PF: predicated region fallthrough
CT: control target
= control target key end

     0   :  { %v2093_v7 = vmov 0.0   ;;  %s2782_s0 = inlined_call_operand.vmem [shape: f32[2,128], index: 0, kind: input, shape index: {}]   ;;  %s2783_s1 = inlined_call_operand.vmem [shape: f32[10,64], index: 1, kind: input, shape index: {}]   ;;  %s2784_s2 = inlined_call_operand.vmem [shape: f32[128,256], index: 2, kind: input, shape index: {}]   ;;  %s2785_s3 = inlined_call_operand.vmem [shape: f32[1,256], index: 3, kind: input, shape index: {}]   ;;  %s2786_s4 = inlined_call_operand.vmem [shape: f32[64,256], index: 4, kind: input, shape index: {}]   ;;  %s2787_s5 = inlined_call_operand.vmem [shape: f32[1,256], index: 5, kind: input, shape index: {}]   ;;  %s2788_s6 = inlined_call_operand.vmem [shape: f32[64,256], index: 6, kind: input, shape index: {}]   ;;  %s2789_s7 = inlined_call_operand.vmem [shape: f32[1,256], index: 7, kind: input, shape index: {}]   ;;  %s2790_s8 = inlined_call_operand.vmem [shape: f32[256,256], index: 8, kind: input, shape index: {}]   ;;  %s2791_s9 = inlined_call_operand.vmem [shape: f32[1,256], index: 9, kind: input, shape index: {}]   ;;  %s2792_s10 = inlined_call_operand.hbm [shape: f32[2,256], index: 10, kind: output, shape index: {}]  }
   0x1   :  { %v42_v0 = vld [vmem:[%s2784_s2 + $0x8] sm:$0xff]  ;;  %v44_v1 = vld [vmem:[%s2784_s2 + $0x18] sm:$0xff]  ;;  %v41_v2 = vld [vmem:[%s2784_s2] sm:$0xff]  ;;  %149 = vmatprep.mubr.f32.mxu1 %v2093_v7 }
   0x2   :  { %v1876_v3 = vpack.c.bf16 %v44_v1, %v42_v0  ;;  %v43_v4 = vld [vmem:[%s2784_s2 + $0x10] sm:$0xff]  ;;  %v46_v5 = vld [vmem:[%s2784_s2 + $0x28] sm:$0xff]  ;;  %v48_v6 = vld [vmem:[%s2784_s2 + $0x38] sm:$0xff] }
   0x3   :  { %v1878_v8 = vpack.c.bf16 %v43_v4, %v41_v2  ;;  %v1880_v9 = vpack.c.bf16 %v48_v6, %v46_v5  ;;  %v45_v10 = vld [vmem:[%s2784_s2 + $0x20] sm:$0xff]  ;;  %v47_v11 = vld [vmem:[%s2784_s2 + $0x30] sm:$0xff]  ;;  %v50_v12 = vld [vmem:[%s2784_s2 + $0x48] sm:$0xff] }
   0x4   :  { %1877 = vmatprep.subr.bf16.mxu1 %v1876_v3  ;;  %v52_v13 = vld [vmem:[%s2784_s2 + $0x58] sm:$0xff]  ;;  %v1882_v14 = vpack.c.bf16 %v47_v11, %v45_v10  ;;  %v49_v16 = vld [vmem:[%s2784_s2 + $0x40] sm:$0xff]  ;;  %v51_v17 = vld [vmem:[%s2784_s2 + $0x50] sm:$0xff] }
   0x5   :  { %1879 = vmatpush1.bf16.msra.mxu1 %v1878_v8  ;;  %v1884_v15 = vpack.c.bf16 %v52_v13, %v50_v12  ;;  %v54_v18 = vld [vmem:[%s2784_s2 + $0x68] sm:$0xff]  ;;  %v56_v19 = vld [vmem:[%s2784_s2 + $0x78] sm:$0xff]  ;;  %v1886_v20 = vpack.c.bf16 %v51_v17, %v49_v16  ;;  %v53_v22 = vld [vmem:[%s2784_s2 + $0x60] sm:$0xff] }
   0x6   :  { %1881 = vmatprep.subr.bf16.mxu1 %v1880_v9  ;;  %v1888_v21 = vpack.c.bf16 %v56_v19, %v54_v18  ;;  %v55_v23 = vld [vmem:[%s2784_s2 + $0x70] sm:$0xff]  ;;  %v58_v24 = vld [vmem:[%s2784_s2 + $0x88] sm:$0xff]  ;;  %v60_v25 = vld [vmem:[%s2784_s2 + $0x98] sm:$0xff] }
   0x7   :  { %v1890_v26 = vpack.c.bf16 %v55_v23, %v53_v22  ;;  %v1892_v27 = vpack.c.bf16 %v60_v25, %v58_v24  ;;  %v57_v28 = vld [vmem:[%s2784_s2 + $0x80] sm:$0xff]  ;;  %v59_v29 = vld [vmem:[%s2784_s2 + $0x90] sm:$0xff]  ;;  %v62_v30 = vld [vmem:[%s2784_s2 + $0xa8] sm:$0xff] }
   0x8   :  { %v64_v31 = vld [vmem:[%s2784_s2 + $0xb8] sm:$0xff]  ;;  %v1894_v32 = vpack.c.bf16 %v59_v29, %v57_v28  ;;  %v61_v34 = vld [vmem:[%s2784_s2 + $0xa0] sm:$0xff]  ;;  %v63_v35 = vld [vmem:[%s2784_s2 + $0xb0] sm:$0xff] }
   0x9   :  { %1883 = vmatpush1.bf16.msra.mxu1 %v1882_v14  ;;  %v1896_v33 = vpack.c.bf16 %v64_v31, %v62_v30 }
   0xa   :  { %1885 = vmatprep.subr.bf16.mxu1 %v1884_v15 }
   0xd   :  { %1887 = vmatpush1.bf16.msra.mxu1 %v1886_v20 }
   0xe   :  { %1889 = vmatprep.subr.bf16.mxu1 %v1888_v21 }
  0x11   :  { %1891 = vmatpush1.bf16.msra.mxu1 %v1890_v26 }
  0x12   :  { %1893 = vmatprep.subr.bf16.mxu1 %v1892_v27 }
  0x13   :  { %15 = vsyncpa [#allocation3], 0  ;;  %v66_v36 = vld [vmem:[%s2784_s2 + $0xc8] sm:$0xff]  ;;  %v68_v37 = vld [vmem:[%s2784_s2 + $0xd8] sm:$0xff]  ;;  %v1898_v38 = vpack.c.bf16 %v63_v35, %v61_v34  ;;  %vm184_vm0 = vcmask 523264   ;;  %v75_v15 = vlaneseq  ;;  %s2094_s12 = smov 64  }
  0x14   :  { %v1900_v39 = vpack.c.bf16 %v68_v37, %v66_v36  ;;  %v65_v40 = vld [vmem:[%s2784_s2 + $0xc0] sm:$0xff]  ;;  %v67_v41 = vld [vmem:[%s2784_s2 + $0xd0] sm:$0xff]  ;;  %v70_v42 = vld [vmem:[%s2784_s2 + $0xe8] sm:$0xff]  ;;  %vm2096_vm1 = vmmov 0   ;;  %vm1176_vm3 = vcmask 74752   ;;  %vm1225_vm4 = vcmask 1041408  }
  0x15   :  { %1895 = vmatpush1.bf16.msra.mxu1 %v1894_v32  ;;  %v72_v43 = vld [vmem:[%s2784_s2 + $0xf8] sm:$0xff]  ;;  %v1902_v44 = vpack.c.bf16 %v67_v41, %v65_v40  ;;  %v69_v46 = vld [vmem:[%s2784_s2 + $0xe0] sm:$0xff]  ;;  %v71_v47 = vld [vmem:[%s2784_s2 + $0xf0] sm:$0xff]  ;;  %v2321_v16 = vshrl.u32 %v75_v15, 7  ;;  %1824 = vmatprep.mubr.msk.f32.mxu0 %vm2096_vm1, %v2093_v7  ;;  %vm2099_vm5 = vmmov 1   ;;  %vm1221_vm7 = vcmask 80896  }
  0x16   :  { %1897 = vmatprep.subr.bf16.mxu1 %v1896_v33  ;;  %v1904_v45 = vpack.c.bf16 %v72_v43, %v70_v42  ;;  %v157_v48 = vld [vmem:[%s2786_s4 + $0x8] sm:$0xff]  ;;  %v159_v49 = vld [vmem:[%s2786_s4 + $0x18] sm:$0xff]  ;;  %v1906_v50 = vpack.c.bf16 %v71_v47, %v69_v46  ;;  %v156_v52 = vld [vmem:[%s2786_s4] sm:$0xff] }
  0x17   :  { %v1908_v51 = vpack.c.bf16 %v159_v49, %v157_v48  ;;  %v158_v53 = vld [vmem:[%s2786_s4 + $0x10] sm:$0xff]  ;;  %v161_v54 = vld [vmem:[%s2786_s4 + $0x28] sm:$0xff]  ;;  %v163_v55 = vld [vmem:[%s2786_s4 + $0x38] sm:$0xff]  ;;  %v2324_v17 = vsub.s32 0, %v2321_v16  ;;  %v2330_v19 = vsub.s32 1, %v2321_v16 }
  0x18   :  { %v36_v56 = vld [vmem:[%s2782_s0] sm:$0x3]  ;;  %v1910_v57 = vpack.c.bf16 %v158_v53, %v156_v52  ;;  %v1912_v58 = vpack.c.bf16 %v163_v55, %v161_v54  ;;  %v162_v60 = vld [vmem:[%s2786_s4 + $0x30] sm:$0xff]  ;;  %v165_v61 = vld [vmem:[%s2786_s4 + $0x48] sm:$0xff] }
  0x19   :  { %1899 = vmatpush1.bf16.msra.mxu1 %v1898_v38  ;;  %v160_v59 = vld [vmem:[%s2786_s4 + $0x20] sm:$0xff]  ;;  %v167_v62 = vld [vmem:[%s2786_s4 + $0x58] sm:$0xff]  ;;  %v166_v3 = vld [vmem:[%s2786_s4 + $0x50] sm:$0xff] }
  0x1a   :  { %1901 = vmatprep.subr.bf16.mxu1 %v1900_v39  ;;  %v37_v63 = vld [vmem:[%s2783_s1] sm:$0xff]  ;;  %v1914_v0 = vpack.c.bf16 %v162_v60, %v160_v59  ;;  %v1916_v1 = vpack.c.bf16 %v167_v62, %v165_v61  ;;  %v169_v4 = vld [vmem:[%s2786_s4 + $0x68] sm:$0xff]  ;;  %v171_v5 = vld [vmem:[%s2786_s4 + $0x78] sm:$0xff] }
  0x1b   :  { %v164_v2 = vld [vmem:[%s2786_s4 + $0x40] sm:$0xff]  ;;  %2049 = vtanh.f32 %v37_v63  ;;  %v38_v6 = vld [vmem:[%s2783_s1 + $0x8] sm:$0x3]  ;;  %v1920_v9 = vpack.c.bf16 %v171_v5, %v169_v4  ;;  %v170_v11 = vld [vmem:[%s2786_s4 + $0x70] sm:$0xff]  ;;  %v2098_v4 = vmov 1934713408  }
  0x1c   :  { %v1918_v8 = vpack.c.bf16 %v166_v3, %v164_v2  ;;  %v168_v10 = vld [vmem:[%s2786_s4 + $0x60] sm:$0xff]  ;;  %2051 = vtanh.f32 %v38_v6  ;;  %v269_v27 = vld [vmem:[%s2788_s6 + $0x8] sm:$0xff]  ;;  %v271_v28 = vld [vmem:[%s2788_s6 + $0x18] sm:$0xff]  ;;  %v2097_v2 = vmov 1983009808   ;;  %v399_v5 = vunpack.c.l.s4 %v2098_v4 }
  0x1d   :  { %1903 = vmatpush1.bf16.msra.mxu1 %v1902_v44  ;;  %v1922_v12 = vpack.c.bf16 %v170_v11, %v168_v10  ;;  %v73_v18 = vld [vmem:[%s2785_s3] sm:$0x3]  ;;  %v1924_v29 = vpack.c.bf16 %v271_v28, %v269_v27  ;;  %v270_v31 = vld [vmem:[%s2788_s6 + $0x10] sm:$0xff]  ;;  %v273_v34 = vld [vmem:[%s2788_s6 + $0x28] sm:$0xff]  ;;  %v383_v3 = vunpack.c.l.s4 %v2097_v2 }
  0x1e   :  { %1905 = vmatprep.subr.bf16.mxu1 %v1904_v45  ;;  %v78_v20 = vrot.slane %v73_v18, %v2324_v17  ;;  %v82_v21 = vrot.slane %v73_v18, %v2330_v19  ;;  %v268_v30 = vld [vmem:[%s2788_s6] sm:$0xff]  ;;  %v275_v35 = vld [vmem:[%s2788_s6 + $0x38] sm:$0xff]  ;;  %v274_v38 = vld [vmem:[%s2788_s6 + $0x30] sm:$0xff] }
  0x1f   :  { %v1926_v32 = vpack.c.bf16 %v270_v31, %v268_v30  ;;  %v172_v33 = vld [vmem:[%s2787_s5] sm:$0x3]  ;;  %v1928_v36 = vpack.c.bf16 %v275_v35, %v273_v34  ;;  %v277_v42 = vld [vmem:[%s2788_s6 + $0x48] sm:$0xff]  ;;  %v279_v43 = vld [vmem:[%s2788_s6 + $0x58] sm:$0xff]  ;;  %v384_v6 = vunpack.c.0.s8 %v383_v3 }
  0x20   :  { %v272_v37 = vld [vmem:[%s2788_s6 + $0x20] sm:$0xff]  ;;  %v177_v39 = vrot.slane %v172_v33, %v2324_v17  ;;  %v181_v41 = vrot.slane %v172_v33, %v2330_v19  ;;  %v1932_v45 = vpack.c.bf16 %v279_v43, %v277_v42  ;;  %v278_v47 = vld [vmem:[%s2788_s6 + $0x50] sm:$0xff]  ;;  %v281_v52 = vld [vmem:[%s2788_s6 + $0x68] sm:$0xff] }
  0x21   :  { %1907 = vmatpush1.bf16.msra.mxu1 %v1906_v50  ;;  %v1930_v40 = vpack.c.bf16 %v274_v38, %v272_v37  ;;  %v276_v46 = vld [vmem:[%s2788_s6 + $0x40] sm:$0xff]  ;;  %v283_v53 = vld [vmem:[%s2788_s6 + $0x78] sm:$0xff]  ;;  %v282_v59 = vld [vmem:[%s2788_s6 + $0x70] sm:$0xff]  ;;  %v2413_v11 = vsub.s32 %v384_v6, %v2321_v16 }
  0x22   :  { %1909 = vmatprep.subr.bf16.mxu1 %v1908_v51  ;;  %v1934_v50 = vpack.c.bf16 %v278_v47, %v276_v46  ;;  %vm2453_vm2 = vmpackc.low %vm184_vm0, %vm184_vm0 }
  0x23   :  { %vm2534_vm6 = vmpackc.low %vm1225_vm4, %vm2099_vm5 }
  0x24   :  { %150 = vmatmul.mubr.f32.vlgmr.msra.gmra.mrb[0].mxu1 %v36_v56 }
  0x25   :  { %1911 = vmatpush1.bf16.msra.mxu1 %v1910_v57  ;;  %255 = vmatprep.mubr.f32.mxu1 %v2093_v7  ;;  %v2311_v13 = vpop.eup %2049  ;;  %v1936_v57 = vpack.c.bf16 %v283_v53, %v281_v52 }
  0x26   :  { %1913 = vmatprep.subr.bf16.mxu1 %v1912_v58  ;;  %v2315_v14 = vpop.eup %2051  ;;  %v280_v58 = vld [vmem:[%s2788_s6 + $0x60] sm:$0xff] }
  0x27   :  { %v1938_v62 = vpack.c.bf16 %v282_v59, %v280_v58 }
  0x29   :  { %1915 = vmatpush1.bf16.msra.mxu1 %v1914_v0 }
  0x2a   :  { %1917 = vmatprep.subr.bf16.mxu1 %v1916_v1  ;;  %v2095_v1 = vmov 0.0|0.0  }
  0x2b   :  { %1940 = vmatprep.subr.bf16.mxu0 %v2095_v1 }
  0x2d   :  { %1919 = vmatpush1.bf16.msra.mxu1 %v1918_v8  ;;  %v400_v8 = vunpack.c.0.s8 %v399_v5 }
  0x2e   :  { %1921 = vmatprep.subr.bf16.mxu1 %v1920_v9 }
  0x31   :  { %1923 = vmatpush1.bf16.msra.mxu1 %v1922_v12 }
  0x32   :  { %1925 = vmatprep.subr.bf16.mxu1 %v1924_v29 }
  0x34   :  { %1767 = vmatmul.mubr.msk.f32.vlgmr.msra.gmra.mrb[2].mxu1 %vm184_vm0, %v2311_v13 }
  0x35   :  { %261 = vmatprep.mubr.f32.mxu1 %v2093_v7  ;;  %1927 = vmatpush1.bf16.msra.mxu1 %v1926_v32 }
  0x36   :  { %1929 = vmatprep.subr.bf16.mxu1 %v1928_v36 }
  0x38   :  { %1768 = vmatmul.mubr.msk.f32.gmra.mrb[4].mxu1 %vm184_vm0, %v2315_v14 }
  0x39   :  { %360 = vmatprep.mubr.f32.mxu1 %v2093_v7  ;;  %1931 = vmatpush1.bf16.msra.mxu1 %v1930_v40 }
  0x3a   :  { %1933 = vmatprep.subr.bf16.mxu1 %v1932_v45 }
  0x3d   :  { %1935 = vmatpush1.bf16.msra.mxu1 %v1934_v50 }
  0x3e   :  { %1937 = vmatprep.subr.bf16.mxu1 %v1936_v57 }
  0x41   :  { %1939 = vmatpush1.bf16.msra.mxu1 %v1938_v62 }
  0x42   :  { %1944 = vmatprep.subr.bf16.mxu1 %v2095_v1 }
  0x44   :  { %1769 = vmatmul.mubr.msk.f32.vlgmr.msra.gmra.mrb[6].mxu1 %vm184_vm0, %v2311_v13 }
  0x45   :  { %366 = vmatprep.mubr.f32.mxu1 %v2093_v7 }
  0x48   :  { %1770 = vmatmul.mubr.msk.f32.gmra.mrb[8].mxu1 %vm184_vm0, %v2315_v14  ;;  %v2416_v14 = vsub.s32 %v400_v8, %v2321_v16 }
  0x49   :  { %1831 = vmatprep.mubr.msk.f32.mxu1 %vm2096_vm1, %v2093_v7 }
  0xf7   :  { %v151_v22 = vpop.f32.mrb[0].mxu1 }
  0xf8   :  { %v2334_v23 = vadd.f32 %v151_v22, %v78_v20  ;;  %v153_v24 = vpop.f32.mrb[1].mxu1 }
  0xf9   :  { %v2336_v25 = vadd.f32 %v153_v24, %v82_v21 }
  0xfb   :  { %v381_v26 = vcombine.low %v2334_v23, %v2336_v25 }
 0x107   :  { %v257_v44 = vpop.f32.mrb[2].mxu1 }
 0x108   :  { %v258_v48 = vadd.f32 %v257_v44, %v177_v39  ;;  %v259_v49 = vpop.f32.mrb[3].mxu1 }
 0x109   :  { %v260_v51 = vadd.f32 %v259_v49, %v181_v41  ;;  %v388_v49 = vrot.slane %v381_v26, %v2413_v11 }
 0x10a   :  { %440 = vrot.lane.b32.xlu0 %v258_v48, %s2094_s12 }
 0x10b   :  { %v454_v54 = vcombine.low %v258_v48, %v260_v51  ;;  %v455_v55 = vcombine.high %v258_v48, %v260_v51  ;;  %v263_v56 = vpop.f32.mrb[4].mxu1  ;;  %448 = vrot.lane.b32.xlu1 %v260_v51, %s2094_s12 }
 0x10c   :  { %v264_v60 = vadd.f32 %v263_v56, %v177_v39  ;;  %v265_v61 = vpop.f32.mrb[5].mxu1 }
 0x10d   :  { %v266_v63 = vadd.f32 %v265_v61, %v181_v41  ;;  %v462_v15 = vrot.slane %v454_v54, %v2413_v11  ;;  %v469_v18 = vrot.slane %v455_v55, %v2413_v11 }
 0x10e   :  { %442 = vrot.lane.b32.xlu0 %v264_v60, %s2094_s12 }
 0x10f   :  { %v522_v0 = vcombine.low %v264_v60, %v266_v63  ;;  %450 = vrot.lane.b32.xlu1 %v266_v63, %s2094_s12 }
 0x111   :  { %v529_v36 = vrot.slane %v522_v0, %v2413_v11 }
 0x112   :  { %374 = vrot.lane.b32.xlu0 %v2334_v23, %s2094_s12 }
 0x113   :  { %378 = vrot.lane.b32.xlu1 %v2336_v25, %s2094_s12 }
 0x17c   :  { %v441_v9 = vpop.permute.xlu0 %440 }
 0x17d   :  { %v449_v10 = vpop.permute.xlu1 %448 }
 0x17e   :  { %v470_v12 = vcombine.low %v441_v9, %v449_v10  ;;  %v471_v13 = vcombine.high %v441_v9, %v449_v10 }
 0x180   :  { %v478_v20 = vrot.slane %v470_v12, %v2413_v11  ;;  %v485_v21 = vrot.slane %v471_v13, %v2413_v11  ;;  %v443_v22 = vpop.permute.xlu0 %442 }
 0x181   :  { %v451_v24 = vpop.permute.xlu1 %450 }
 0x182   :  { %v486_v27 = vcombine.low %v462_v15, %v478_v20  ;;  %v487_v28 = vcombine.high %v462_v15, %v478_v20  ;;  %v502_v29 = vcombine.low %v469_v18, %v485_v21  ;;  %v503_v30 = vcombine.high %v469_v18, %v485_v21 }
 0x183   :  { %v530_v31 = vcombine.low %v443_v22, %v451_v24 }
 0x184   :  { %v494_v32 = vrot.slane %v486_v27, %v2416_v14  ;;  %v501_v16 = vrot.slane %v487_v28, %v2416_v14  ;;  %v510_v33 = vrot.slane %v502_v29, %v2416_v14  ;;  %v517_v34 = vrot.slane %v503_v30, %v2416_v14  ;;  %v375_v35 = vpop.permute.xlu0 %374 }
 0x185   :  { %v537_v37 = vrot.slane %v530_v31, %v2413_v11  ;;  %v379_v38 = vpop.permute.xlu1 %378 }
 0x186   :  { %v546_v39 = vcombine.low %v494_v32, %v501_v16  ;;  %v1771_v40 = vcombine.high %v494_v32, %v501_v16  ;;  %v562_v41 = vcombine.low %v510_v33, %v517_v34  ;;  %v1772_v42 = vcombine.high %v510_v33, %v517_v34  ;;  %v362_v32 = vpop.f32.mrb[6].mxu1 }
 0x187   :  { %v538_v43 = vcombine.low %v529_v36, %v537_v37  ;;  %v389_v44 = vcombine.low %v375_v35, %v379_v38  ;;  %v364_v16 = vpop.f32.mrb[7].mxu1 }
 0x188   :  { %v553_v45 = vrot.slane %v546_v39, %v2413_v11  ;;  %v561_v46 = vrot.slane %v1771_v40, %v2413_v11  ;;  %v569_v47 = vrot.slane %v562_v41, %v2413_v11  ;;  %v577_v48 = vrot.slane %v1772_v42, %v2413_v11  ;;  %v368_v33 = vpop.f32.mrb[8].mxu1 }
 0x189   :  { %v545_v50 = vrot.slane %v538_v43, %v2416_v14  ;;  %v396_v51 = vrot.slane %v389_v44, %v2413_v11  ;;  %v370_v34 = vpop.f32.mrb[9].mxu1 }
 0x18a   :  { %v579_v52 = vcombine.high %v553_v45, %v561_v46  ;;  %v595_v53 = vcombine.high %v569_v47, %v577_v48  ;;  %v578_v54 = vcombine.low %v553_v45, %v561_v46  ;;  %v594_v55 = vcombine.low %v569_v47, %v577_v48 }
 0x18b   :  { %v621_v56 = vcombine.high %v545_v50, %v2093_v7  ;;  %v397_v57 = vcombine.low %v388_v49, %v396_v51  ;;  %v620_v25 = vrot.slane %v545_v50, %v2413_v11  ;;  %v284_v50 = vld [vmem:[%s2789_s7] sm:$0x3] }
 0x18c   :  { %v593_v58 = vrot.slane %v579_v52, %v2416_v14  ;;  %v609_v59 = vrot.slane %v595_v53, %v2416_v14  ;;  %v586_v60 = vrot.slane %v578_v54, %v2416_v14  ;;  %v602_v23 = vrot.slane %v594_v55, %v2416_v14 }
 0x18d   :  { %v404_v26 = vrot.slane %v397_v57, %v2416_v14  ;;  %v628_v61 = vrot.slane %v621_v56, %v2413_v11  ;;  %v289_v52 = vrot.slane %v284_v50, %v2324_v17  ;;  %v293_v54 = vrot.slane %v284_v50, %v2330_v19 }
 0x18e   :  { %v610_v62 = vcombine.low %v586_v60, %v602_v23  ;;  %v611_v63 = vcombine.high %v586_v60, %v602_v23  ;;  %v612_v0 = vcombine.low %v593_v58, %v609_v59  ;;  %v613_v2 = vcombine.high %v593_v58, %v609_v59 }
 0x18f   :  { %v412_v3 = vcombine.high %v404_v26, %v2093_v7  ;;  %v629_v4 = vcombine.low %v620_v25, %v628_v61  ;;  %v630_v5 = vcombine.high %v620_v25, %v628_v61  ;;  %v411_v10 = vrot.slane %v404_v26, %v2413_v11 }
 0x190   :  { %v363_v53 = vadd.f32 %v362_v32, %v289_v52  ;;  %v365_v55 = vadd.f32 %v364_v16, %v293_v54  ;;  %v371_v56 = vadd.f32 %v370_v34, %v293_v54  ;;  %v369_v57 = vadd.f32 %v368_v33, %v289_v52 }
 0x191   :  { %v419_v6 = vrot.slane %v412_v3, %v2413_v11  ;;  %v637_v8 = vrot.slane %v629_v4, %v2416_v14  ;;  %v644_v9 = vrot.slane %v630_v5, %v2416_v14 }
 0x193   :  { %v645_v13 = vcombine.high %v637_v8, %v2093_v7  ;;  %v1941_v15 = vpack.c.bf16 %v637_v8, %v610_v62  ;;  %v420_v18 = vcombine.low %v411_v10, %v419_v6  ;;  %v1949_v20 = vpack.c.bf16 %v644_v9, %v612_v0 }
 0x194   :  { %v646_v21 = vcombine.high %v644_v9, %v2093_v7  ;;  %v421_v28 = vcombine.high %v411_v10, %v419_v6  ;;  %v663_v62 = vcombine.low %v363_v53, %v365_v55 }
 0x195   :  { %1943 = vmatpush3.bf16.xpose.msk.msra.mxu0 %vm2453_vm2, %v1941_v15  ;;  %v1945_v22 = vpack.c.bf16 %v645_v13, %v611_v63  ;;  %v428_v27 = vrot.slane %v420_v18, %v2416_v14  ;;  %v664_v63 = vcombine.high %v363_v53, %v365_v55 }
 0x196   :  { %1948 = vmatprep.subr.bf16.mxu0 %v2095_v1  ;;  %v1953_v24 = vpack.c.bf16 %v646_v21, %v613_v2  ;;  %v435_v30 = vrot.slane %v421_v28, %v2416_v14  ;;  %v671_v8 = vrot.slane %v663_v62, %v2413_v11 }
 0x197   :  { %1947 = vmatpush3.bf16.xpose.msk.msra.mxu1 %vm2453_vm2, %v1945_v22  ;;  %v436_v29 = vcombine.high %v428_v27, %v2093_v7  ;;  %v678_v9 = vrot.slane %v664_v63, %v2413_v11 }
 0x198   :  { %1952 = vmatprep.subr.bf16.mxu1 %v2095_v1  ;;  %v437_v31 = vcombine.high %v435_v30, %v2093_v7 }
 0x19c   :  { %1825 = vmatmul.mubr.msk.f32.vlgmr.msra.gmra.mrb[0].mxu0 %vm184_vm0, %v428_v27  ;;  %v731_v27 = vcombine.low %v369_v57, %v371_v56 }
 0x19d   :  { %1951 = vmatpush3.bf16.xpose.msk.msra.mxu0 %vm2453_vm2, %v1949_v20  ;;  %1838 = vmatprep.mubr.msk.f32.mxu0 %vm2096_vm1, %v2093_v7 }
 0x19e   :  { %1832 = vmatmul.mubr.msk.f32.vlgmr.msra.gmra.mrb[10].mxu1 %vm184_vm0, %v436_v29  ;;  %1956 = vmatprep.subr.bf16.mxu0 %v2095_v1 }
 0x19f   :  { %1955 = vmatpush3.bf16.xpose.msk.msra.mxu1 %vm2453_vm2, %v1953_v24  ;;  %1845 = vmatprep.mubr.msk.f32.mxu1 %vm2096_vm1, %v2093_v7 }
 0x1a0   :  { %1960 = vmatprep.subr.bf16.mxu1 %v2095_v1 }
 0x1a4   :  { %1839 = vmatmul.mubr.msk.f32.vlgmr.msra.gmra.mrb[2].mxu0 %vm184_vm0, %v435_v30 }
 0x1a5   :  { %1852 = vmatprep.mubr.msk.f32.mxu0 %vm2096_vm1, %v2093_v7 }
 0x1a6   :  { %1846 = vmatmul.mubr.msk.f32.vlgmr.msra.gmra.mrb[12].mxu1 %vm184_vm0, %v437_v31 }
 0x1a7   :  { %1859 = vmatprep.mubr.msk.f32.mxu1 %vm2096_vm1, %v2093_v7 }
 0x26f   :  { %v931_v35 = vpop.f32.mrb[0].mxu0 }
 0x270   :  { %v1172_v36 = vmul.f32 0.125, %v931_v35  ;;  %v1826_v37 = vpop.f32.mrb[1].mxu0 }
 0x271   :  { %v1010_v38 = vpop.f32.mrb[10].mxu1 }
 0x272   :  { %v1173_v39 = vmul.f32 0.125, %v1010_v38  ;;  %v1833_v40 = vpop.f32.mrb[11].mxu1  ;;  %v1177_v41 = vsel %vm1176_vm3, %v1172_v36, -inf }
 0x273   :  { %1178 = vmax.xlane.f32.xlu0 %v1177_v41 }
 0x274   :  { %v1180_v42 = vsel %vm1176_vm3, %v1173_v39, -inf }
 0x275   :  { %1181 = vmax.xlane.f32.xlu1 %v1180_v42  ;;  %v738_v42 = vrot.slane %v731_v27, %v2413_v11 }
 0x277   :  { %v1089_v43 = vpop.f32.mrb[2].mxu0 }
 0x278   :  { %v1174_v44 = vmul.f32 0.125, %v1089_v43  ;;  %v1840_v45 = vpop.f32.mrb[3].mxu0 }
 0x279   :  { %v1168_v46 = vpop.f32.mrb[12].mxu1 }
 0x27a   :  { %v1175_v47 = vmul.f32 0.125, %v1168_v46  ;;  %v1847_v48 = vpop.f32.mrb[13].mxu1  ;;  %v1183_v49 = vsel %vm1176_vm3, %v1174_v44, -inf }
 0x27b   :  { %1184 = vmax.xlane.f32.xlu0 %v1183_v49 }
 0x27c   :  { %v1186_v51 = vsel %vm1176_vm3, %v1175_v47, -inf }
 0x27f   :  { %1187 = vmax.xlane.f32.xlu0 %v1186_v51 }
 0x286   :  { %649 = vrot.lane.b32.xlu1 %v363_v53, %s2094_s12 }
 0x28a   :  { %657 = vrot.lane.b32.xlu1 %v365_v55, %s2094_s12 }
 0x28e   :  { %659 = vrot.lane.b32.xlu1 %v371_v56, %s2094_s12 }
 0x295   :  { %651 = vrot.lane.b32.xlu0 %v369_v57, %s2094_s12 }
 0x300   :  { %v1179_v58 = vpop.xlane.xlu0 %1178 }
 0x301   :  { %v1189_v59 = vsub.f32 %v1172_v36, %v1179_v58 }
 0x302   :  { %v1182_v60 = vpop.xlane.xlu1 %1181 }
 0x303   :  { %v1193_v23 = vmul.f32 1.442695, %v1189_v59  ;;  %v1190_v25 = vsub.f32 %v1173_v39, %v1182_v60 }
 0x305   :  { %2053 = vpow2.f32 %v1193_v23  ;;  %v1195_v26 = vmul.f32 1.442695, %v1190_v25 }
 0x306   :  { %v650_v61 = vpop.permute.xlu1 %649 }
 0x307   :  { %2055 = vpow2.f32 %v1195_v26 }
 0x308   :  { %v1185_v0 = vpop.xlane.xlu0 %1184 }
 0x309   :  { %v1191_v2 = vsub.f32 %v1174_v44, %v1185_v0 }
 0x30a   :  { %v658_v3 = vpop.permute.xlu1 %657 }
 0x30b   :  { %v1197_v4 = vmul.f32 1.442695, %v1191_v2  ;;  %v679_v5 = vcombine.low %v650_v61, %v658_v3  ;;  %v680_v6 = vcombine.high %v650_v61, %v658_v3 }
 0x30c   :  { %v1188_v10 = vpop.xlane.xlu0 %1187 }
 0x30d   :  { %2057 = vpow2.f32 %v1197_v4  ;;  %v687_v12 = vrot.slane %v679_v5, %v2413_v11  ;;  %v694_v13 = vrot.slane %v680_v6, %v2413_v11  ;;  %v1192_v15 = vsub.f32 %v1175_v47, %v1188_v10  ;;  %v1618_v6 = vld [vmem:[%s2790_s8 + $0xc0] sm:$0xff] }
 0x30e   :  { %v660_v35 = vpop.permute.xlu1 %659 }
 0x30f   :  { %v2504_v18 = vpop.eup %2053  ;;  %v695_v20 = vcombine.low %v671_v8, %v687_v12  ;;  %v696_v21 = vcombine.high %v671_v8, %v687_v12  ;;  %v711_v22 = vcombine.low %v678_v9, %v694_v13  ;;  %v712_v24 = vcombine.high %v678_v9, %v694_v13 }
 0x310   :  { %v1199_v28 = vmul.f32 1.442695, %v1192_v15  ;;  %v652_v29 = vpop.permute.xlu0 %651  ;;  %v1201_v30 = vsel %vm1176_vm3, %v2504_v18, 0.0 }
 0x311   :  { %v2508_v31 = vpop.eup %2055  ;;  %v703_v32 = vrot.slane %v695_v20, %v2416_v14  ;;  %v710_v16 = vrot.slane %v696_v21, %v2416_v14  ;;  %v719_v33 = vrot.slane %v711_v22, %v2416_v14  ;;  %v726_v34 = vrot.slane %v712_v24, %v2416_v14  ;;  %1202 = vadd.xlane.f32.xlu1 %v1201_v30 }
 0x312   :  { %2059 = vpow2.f32 %v1199_v28  ;;  %v739_v36 = vcombine.low %v652_v29, %v660_v35  ;;  %v1204_v37 = vsel %vm1176_vm3, %v2508_v31, 0.0  ;;  %v1594_v35 = vld [vmem:[%s2790_s8] sm:$0xff] }
 0x313   :  { %v755_v38 = vcombine.low %v703_v32, %v710_v16  ;;  %v1773_v39 = vcombine.high %v703_v32, %v710_v16  ;;  %v771_v40 = vcombine.low %v719_v33, %v726_v34  ;;  %v1774_v41 = vcombine.high %v719_v33, %v726_v34  ;;  %1205 = vadd.xlane.f32.xlu0 %v1204_v37  ;;  %v1595_v33 = vld [vmem:[%s2790_s8 + $0x8] sm:$0xff]  ;;  %v1597_v34 = vld [vmem:[%s2790_s8 + $0x18] sm:$0xff]  ;;  %v1596_v37 = vld [vmem:[%s2790_s8 + $0x10] sm:$0xff] }
 0x314   :  { %v746_v43 = vrot.slane %v739_v36, %v2413_v11  ;;  %v1972_v36 = vpack.c.bf16 %v1597_v34, %v1595_v33  ;;  %v1635_v33 = vld [vmem:[%s2790_s8 + $0x148] sm:$0xff]  ;;  %v1637_v34 = vld [vmem:[%s2790_s8 + $0x158] sm:$0xff] }
 0x315   :  { %v762_v44 = vrot.slane %v755_v38, %v2413_v11  ;;  %v770_v45 = vrot.slane %v1773_v39, %v2413_v11  ;;  %v778_v46 = vrot.slane %v771_v40, %v2413_v11  ;;  %v786_v47 = vrot.slane %v1774_v41, %v2413_v11  ;;  %v1599_v38 = vld [vmem:[%s2790_s8 + $0x28] sm:$0xff]  ;;  %v1601_v39 = vld [vmem:[%s2790_s8 + $0x38] sm:$0xff] }
 0x316   :  { %v747_v48 = vcombine.low %v738_v42, %v746_v43  ;;  %v1974_v40 = vpack.c.bf16 %v1596_v37, %v1594_v35  ;;  %v1976_v41 = vpack.c.bf16 %v1601_v39, %v1599_v38  ;;  %v1598_v42 = vld [vmem:[%s2790_s8 + $0x20] sm:$0xff]  ;;  %v1600_v43 = vld [vmem:[%s2790_s8 + $0x30] sm:$0xff]  ;;  %v1639_v39 = vld [vmem:[%s2790_s8 + $0x168] sm:$0xff] }
 0x317   :  { %v2058_v49 = vpop.eup %2057  ;;  %v788_v50 = vcombine.high %v762_v44, %v770_v45  ;;  %v804_v51 = vcombine.high %v778_v46, %v786_v47  ;;  %v787_v52 = vcombine.low %v762_v44, %v770_v45  ;;  %v803_v53 = vcombine.low %v778_v46, %v786_v47  ;;  %v1603_v44 = vld [vmem:[%s2790_s8 + $0x48] sm:$0xff]  ;;  %v1605_v45 = vld [vmem:[%s2790_s8 + $0x58] sm:$0xff]  ;;  %v1634_v37 = vld [vmem:[%s2790_s8 + $0x140] sm:$0xff] }
 0x318   :  { %v754_v54 = vrot.slane %v747_v48, %v2416_v14  ;;  %v1207_v55 = vsel %vm1176_vm3, %v2058_v49, 0.0  ;;  %v1978_v46 = vpack.c.bf16 %v1600_v43, %v1598_v42  ;;  %v1980_v47 = vpack.c.bf16 %v1605_v45, %v1603_v44  ;;  %v1602_v48 = vld [vmem:[%s2790_s8 + $0x40] sm:$0xff]  ;;  %v1636_v38 = vld [vmem:[%s2790_s8 + $0x150] sm:$0xff]  ;;  %v1643_v45 = vld [vmem:[%s2790_s8 + $0x188] sm:$0xff] }
 0x319   :  { %v802_v56 = vrot.slane %v788_v50, %v2416_v14  ;;  %v818_v57 = vrot.slane %v804_v51, %v2416_v14  ;;  %1208 = vadd.xlane.f32.xlu0 %v1207_v55  ;;  %v795_v25 = vrot.slane %v787_v52, %v2416_v14  ;;  %v811_v26 = vrot.slane %v803_v53, %v2416_v14  ;;  %v1607_v50 = vld [vmem:[%s2790_s8 + $0x68] sm:$0xff]  ;;  %v1609_v51 = vld [vmem:[%s2790_s8 + $0x78] sm:$0xff]  ;;  %v1608_v55 = vld [vmem:[%s2790_s8 + $0x70] sm:$0xff] }
 0x31a   :  { %v830_v58 = vcombine.high %v754_v54, %v2093_v7  ;;  %v829_v61 = vrot.slane %v754_v54, %v2413_v11  ;;  %v1984_v53 = vpack.c.bf16 %v1609_v51, %v1607_v50  ;;  %v1606_v54 = vld [vmem:[%s2790_s8 + $0x60] sm:$0xff]  ;;  %v1640_v44 = vld [vmem:[%s2790_s8 + $0x170] sm:$0xff]  ;;  %v1647_v51 = vld [vmem:[%s2790_s8 + $0x1a8] sm:$0xff] }
 0x31b   :  { %v821_v59 = vcombine.low %v802_v56, %v818_v57  ;;  %v822_v60 = vcombine.high %v802_v56, %v818_v57  ;;  %v819_v5 = vcombine.low %v795_v25, %v811_v26  ;;  %v820_v8 = vcombine.high %v795_v25, %v811_v26  ;;  %v1611_v56 = vld [vmem:[%s2790_s8 + $0x88] sm:$0xff]  ;;  %v1613_v57 = vld [vmem:[%s2790_s8 + $0x98] sm:$0xff]  ;;  %v1638_v43 = vld [vmem:[%s2790_s8 + $0x160] sm:$0xff] }
 0x31c   :  { %v2060_v23 = vpop.eup %2059  ;;  %v837_v62 = vrot.slane %v830_v58, %v2413_v11  ;;  %v1986_v58 = vpack.c.bf16 %v1608_v55, %v1606_v54  ;;  %v1615_v25 = vld [vmem:[%s2790_s8 + $0xa8] sm:$0xff]  ;;  %v1617_v26 = vld [vmem:[%s2790_s8 + $0xb8] sm:$0xff]  ;;  %v1644_v50 = vld [vmem:[%s2790_s8 + $0x190] sm:$0xff] }
 0x31d   :  { %v1210_v63 = vsel %vm1176_vm3, %v2060_v23, 0.0  ;;  %v1646_v55 = vld [vmem:[%s2790_s8 + $0x1a0] sm:$0xff] }
 0x31e   :  { %v838_v0 = vcombine.low %v829_v61, %v837_v62  ;;  %v839_v2 = vcombine.high %v829_v61, %v837_v62  ;;  %1211 = vadd.xlane.f32.xlu1 %v1210_v63  ;;  %v1992_v62 = vpack.c.bf16 %v1617_v26, %v1615_v25  ;;  %v1614_v63 = vld [vmem:[%s2790_s8 + $0xa0] sm:$0xff]  ;;  %v1652_v25 = vld [vmem:[%s2790_s8 + $0x1d0] sm:$0xff] }
 0x320   :  { %v846_v3 = vrot.slane %v838_v0, %v2416_v14  ;;  %v853_v4 = vrot.slane %v839_v2, %v2416_v14  ;;  %v1616_v0 = vld [vmem:[%s2790_s8 + $0xb0] sm:$0xff]  ;;  %v1619_v2 = vld [vmem:[%s2790_s8 + $0xc8] sm:$0xff] }
 0x322   :  { %v1957_v9 = vpack.c.bf16 %v846_v3, %v819_v5  ;;  %v854_v10 = vcombine.high %v846_v3, %v2093_v7  ;;  %v1965_v12 = vpack.c.bf16 %v853_v4, %v821_v59  ;;  %v855_v13 = vcombine.high %v853_v4, %v2093_v7  ;;  %v1621_v3 = vld [vmem:[%s2790_s8 + $0xd8] sm:$0xff] }
 0x323   :  { %v1988_v59 = vpack.c.bf16 %v1613_v57, %v1611_v56  ;;  %v1994_v4 = vpack.c.bf16 %v1616_v0, %v1614_v63  ;;  %v1996_v5 = vpack.c.bf16 %v1621_v3, %v1619_v2  ;;  %v1648_v56 = vld [vmem:[%s2790_s8 + $0x1b0] sm:$0xff]  ;;  %v1651_v57 = vld [vmem:[%s2790_s8 + $0x1c8] sm:$0xff] }
 0x324   :  { %1959 = vmatpush3.bf16.msk.msra.mxu0 %vm2534_vm6, %v1957_v9  ;;  %v1961_v15 = vpack.c.bf16 %v854_v10, %v820_v8  ;;  %v1969_v20 = vpack.c.bf16 %v855_v13, %v822_v60  ;;  %v1610_v60 = vld [vmem:[%s2790_s8 + $0x80] sm:$0xff]  ;;  %v1620_v8 = vld [vmem:[%s2790_s8 + $0xd0] sm:$0xff]  ;;  %v1623_v9 = vld [vmem:[%s2790_s8 + $0xe8] sm:$0xff] }
 0x325   :  { %1964 = vmatprep.subr.bf16.mxu0 %v2095_v1  ;;  %v1625_v10 = vld [vmem:[%s2790_s8 + $0xf8] sm:$0xff] }
 0x326   :  { %1963 = vmatpush3.bf16.msk.msra.mxu1 %vm2534_vm6, %v1961_v15  ;;  %v2000_v13 = vpack.c.bf16 %v1625_v10, %v1623_v9  ;;  %v1622_v15 = vld [vmem:[%s2790_s8 + $0xe0] sm:$0xff] }
 0x327   :  { %1968 = vmatprep.subr.bf16.mxu1 %v2095_v1 }
 0x39e   :  { %v1203_v21 = vpop.xlane.xlu1 %1202 }
 0x39f   :  { %2061 = vrcp.f32 %v1203_v21  ;;  %v1627_v21 = vld [vmem:[%s2790_s8 + $0x108] sm:$0xff] }
 0x3a0   :  { %v1206_v22 = vpop.xlane.xlu0 %1205 }
 0x3a1   :  { %2063 = vrcp.f32 %v1206_v22  ;;  %v1629_v22 = vld [vmem:[%s2790_s8 + $0x118] sm:$0xff] }
 0x3a6   :  { %v1209_v24 = vpop.xlane.xlu0 %1208 }
 0x3a7   :  { %2065 = vrcp.f32 %v1209_v24 }
 0x3a9   :  { %v2062_v27 = vpop.eup %2061 }
 0x3aa   :  { %v1217_v28 = vmul.f32 %v2062_v27, %v2504_v18  ;;  %v2004_v27 = vpack.c.bf16 %v1629_v22, %v1627_v21  ;;  %v1654_v21 = vld [vmem:[%s2790_s8 + $0x1e0] sm:$0xff]  ;;  %v1656_v22 = vld [vmem:[%s2790_s8 + $0x1f0] sm:$0xff] }
 0x3ab   :  { %v2064_v29 = vpop.eup %2063  ;;  %v1212_v30 = vpop.xlane.xlu1 %1211 }
 0x3ac   :  { %v1218_v32 = vmul.f32 %v2064_v29, %v2508_v31  ;;  %2067 = vrcp.f32 %v1212_v30  ;;  %1853 = vmatmul.mubr.msk.f32.vlgmr.msra.gmra.mrb[4].mxu0 %vm1221_vm7, %v1217_v28  ;;  %v1626_v28 = vld [vmem:[%s2790_s8 + $0x100] sm:$0xff]  ;;  %v1628_v29 = vld [vmem:[%s2790_s8 + $0x110] sm:$0xff]  ;;  %v1631_v30 = vld [vmem:[%s2790_s8 + $0x128] sm:$0xff] }
 0x3ad   :  { %1967 = vmatpush3.bf16.msk.msra.mxu0 %vm2534_vm6, %v1965_v12  ;;  %1866 = vmatprep.mubr.msk.f32.mxu0 %vm2096_vm1, %v2093_v7  ;;  %v1998_v12 = vpack.c.bf16 %v1620_v8, %v1618_v6 }
 0x3ae   :  { %1860 = vmatmul.mubr.msk.f32.vlgmr.msra.gmra.mrb[14].mxu1 %vm1221_vm7, %v1218_v32  ;;  %1973 = vmatprep.subr.bf16.mxu0 %v1972_v36  ;;  %v1633_v32 = vld [vmem:[%s2790_s8 + $0x138] sm:$0xff]  ;;  %v2012_v36 = vpack.c.bf16 %v1637_v34, %v1635_v33 }
 0x3af   :  { %1971 = vmatpush3.bf16.msk.msra.mxu1 %vm2534_vm6, %v1969_v20  ;;  %1873 = vmatprep.mubr.msk.f32.mxu1 %vm2096_vm1, %v2093_v7  ;;  %v1624_v20 = vld [vmem:[%s2790_s8 + $0xf0] sm:$0xff] }
 0x3b0   :  { %v2002_v24 = vpack.c.bf16 %v1624_v20, %v1622_v15  ;;  %v1657_v15 = vld [vmem:[%s2790_s8 + $0x1f8] sm:$0xff] }
 0x3b1   :  { %v2066_v1 = vpop.eup %2065 }
 0x3b2   :  { %v1219_v18 = vmul.f32 %v2066_v1, %v2058_v49  ;;  %v1604_v49 = vld [vmem:[%s2790_s8 + $0x50] sm:$0xff]  ;;  %v2006_v1 = vpack.c.bf16 %v1628_v29, %v1626_v28 }
 0x3b3   :  { %v1982_v52 = vpack.c.bf16 %v1604_v49, %v1602_v48  ;;  %v1642_v49 = vld [vmem:[%s2790_s8 + $0x180] sm:$0xff] }
 0x3b4   :  { %1867 = vmatmul.mubr.msk.f32.vlgmr.msra.gmra.mrb[6].mxu0 %vm1221_vm7, %v1219_v18  ;;  %v2008_v18 = vpack.c.bf16 %v1633_v32, %v1631_v30 }
 0x3b5   :  { %1975 = vmatpush1.bf16.msra.mxu0 %v1974_v40  ;;  %v1641_v40 = vld [vmem:[%s2790_s8 + $0x178] sm:$0xff] }
 0x3b6   :  { %v2068_v31 = vpop.eup %2067  ;;  %1977 = vmatprep.subr.bf16.mxu0 %v1976_v41  ;;  %v2014_v41 = vpack.c.bf16 %v1636_v38, %v1634_v37  ;;  %v2016_v42 = vpack.c.bf16 %v1641_v40, %v1639_v39 }
 0x3b7   :  { %v1220_v16 = vmul.f32 %v2068_v31, %v2060_v23  ;;  %v1612_v23 = vld [vmem:[%s2790_s8 + $0x90] sm:$0xff]  ;;  %v1630_v31 = vld [vmem:[%s2790_s8 + $0x120] sm:$0xff] }
 0x3b8   :  { %v1990_v61 = vpack.c.bf16 %v1612_v23, %v1610_v60  ;;  %v1650_v23 = vld [vmem:[%s2790_s8 + $0x1c0] sm:$0xff] }
 0x3b9   :  { %1874 = vmatmul.mubr.msk.f32.vlgmr.msra.gmra.mrb[16].mxu1 %vm1221_vm7, %v1220_v16  ;;  %1979 = vmatpush1.bf16.msra.mxu0 %v1978_v46  ;;  %v1632_v16 = vld [vmem:[%s2790_s8 + $0x130] sm:$0xff]  ;;  %v1645_v46 = vld [vmem:[%s2790_s8 + $0x198] sm:$0xff]  ;;  %v2030_v26 = vpack.c.bf16 %v1652_v25, %v1650_v23 }
 0x3ba   :  { %1981 = vmatprep.subr.bf16.mxu0 %v1980_v47  ;;  %v2010_v35 = vpack.c.bf16 %v1632_v16, %v1630_v31  ;;  %v2018_v47 = vpack.c.bf16 %v1640_v44, %v1638_v43  ;;  %v2020_v48 = vpack.c.bf16 %v1645_v46, %v1643_v45 }
 0x3bd   :  { %1983 = vmatpush1.bf16.msra.mxu0 %v1982_v52  ;;  %v1649_v52 = vld [vmem:[%s2790_s8 + $0x1b8] sm:$0xff] }
 0x3be   :  { %1985 = vmatprep.subr.bf16.mxu0 %v1984_v53  ;;  %v2022_v53 = vpack.c.bf16 %v1644_v50, %v1642_v49  ;;  %v2024_v54 = vpack.c.bf16 %v1649_v52, %v1647_v51 }
 0x3c1   :  { %1987 = vmatpush1.bf16.msra.mxu0 %v1986_v58  ;;  %v1653_v58 = vld [vmem:[%s2790_s8 + $0x1d8] sm:$0xff] }
 0x3c2   :  { %1989 = vmatprep.subr.bf16.mxu0 %v1988_v59  ;;  %v2026_v59 = vpack.c.bf16 %v1648_v56, %v1646_v55  ;;  %v2028_v60 = vpack.c.bf16 %v1653_v58, %v1651_v57 }
 0x3c5   :  { %1991 = vmatpush1.bf16.msra.mxu0 %v1990_v61 }
 0x3c6   :  { %1993 = vmatprep.subr.bf16.mxu0 %v1992_v62 }
 0x3c9   :  { %1995 = vmatpush1.bf16.msra.mxu0 %v1994_v4 }
 0x3ca   :  { %1997 = vmatprep.subr.bf16.mxu0 %v1996_v5 }
 0x3cd   :  { %1999 = vmatpush1.bf16.msra.mxu0 %v1998_v12 }
 0x3ce   :  { %2001 = vmatprep.subr.bf16.mxu0 %v2000_v13  ;;  %v1655_v13 = vld [vmem:[%s2790_s8 + $0x1e8] sm:$0xff] }
 0x3cf   :  { %v2032_v20 = vpack.c.bf16 %v1657_v15, %v1655_v13 }
 0x3d1   :  { %2003 = vmatpush1.bf16.msra.mxu0 %v2002_v24 }
 0x3d2   :  { %2005 = vmatprep.subr.bf16.mxu0 %v2004_v27  ;;  %v2034_v27 = vpack.c.bf16 %v1656_v22, %v1654_v21 }
 0x3d5   :  { %2007 = vmatpush1.bf16.msra.mxu0 %v2006_v1 }
 0x3d6   :  { %2009 = vmatprep.subr.bf16.mxu0 %v2008_v18 }
 0x3d9   :  { %2011 = vmatpush1.bf16.msra.mxu0 %v2010_v35 }
 0x3da   :  { %2013 = vmatprep.subr.bf16.mxu0 %v2012_v36 }
 0x3dd   :  { %2015 = vmatpush1.bf16.msra.mxu0 %v2014_v41 }
 0x3de   :  { %2017 = vmatprep.subr.bf16.mxu0 %v2016_v42 }
 0x3e1   :  { %2019 = vmatpush1.bf16.msra.mxu0 %v2018_v47 }
 0x3e2   :  { %2021 = vmatprep.subr.bf16.mxu0 %v2020_v48 }
 0x3e5   :  { %2023 = vmatpush1.bf16.msra.mxu0 %v2022_v53 }
 0x3e6   :  { %2025 = vmatprep.subr.bf16.mxu0 %v2024_v54 }
 0x3e9   :  { %2027 = vmatpush1.bf16.msra.mxu0 %v2026_v59 }
 0x3ea   :  { %2029 = vmatprep.subr.bf16.mxu0 %v2028_v60 }
 0x3ed   :  { %2031 = vmatpush1.bf16.msra.mxu0 %v2030_v26 }
 0x3ee   :  { %2033 = vmatprep.subr.bf16.mxu0 %v2032_v20 }
 0x3f1   :  { %2035 = vmatpush1.bf16.msra.mxu0 %v2034_v27 }
 0x47f   :  { %v1295_v61 = vpop.f32.mrb[4].mxu0 }
 0x480   :  { %v1854_v62 = vpop.f32.mrb[5].mxu0 }
 0x481   :  { %v1371_v63 = vpop.f32.mrb[14].mxu1 }
 0x482   :  { %v1861_v0 = vpop.f32.mrb[15].mxu1 }
 0x487   :  { %v1447_v2 = vpop.f32.mrb[6].mxu0 }
 0x488   :  { %v1527_v3 = vcombine.low %v1295_v61, %v1447_v2  ;;  %v1868_v4 = vpop.f32.mrb[7].mxu0 }
 0x48a   :  { %v1534_v9 = vrot.slane %v1527_v3, %v2413_v11 }
 0x48c   :  { %v1523_v5 = vpop.f32.mrb[16].mxu1 }
 0x48d   :  { %v1535_v6 = vcombine.low %v1371_v63, %v1523_v5  ;;  %v1875_v8 = vpop.f32.mrb[17].mxu1 }
 0x48f   :  { %v1542_v10 = vrot.slane %v1535_v6, %v2413_v11 }
 0x491   :  { %v1543_v12 = vcombine.low %v1534_v9, %v1542_v10 }
 0x493   :  { %v1550_v24 = vrot.slane %v1543_v12, %v2416_v14 }
 0x495   :  { %v1558_v28 = vcombine.high %v1550_v24, %v2093_v7  ;;  %v1557_v29 = vrot.slane %v1550_v24, %v2413_v11 }
 0x497   :  { %v1565_v30 = vrot.slane %v1558_v28, %v2413_v11 }
 0x499   :  { %v1566_v32 = vcombine.low %v1557_v29, %v1565_v30  ;;  %v1567_v1 = vcombine.high %v1557_v29, %v1565_v30 }
 0x49b   :  { %v1574_v18 = vrot.slane %v1566_v32, %v2416_v14  ;;  %v1581_v31 = vrot.slane %v1567_v1, %v2416_v14  ;;  %v1658_v14 = vld [vmem:[%s2791_s9] sm:$0x3] }
 0x49c   :  { %v1663_v39 = vrot.slane %v1658_v14, %v2324_v17 }
 0x49d   :  { %v1582_v16 = vcombine.high %v1574_v18, %v2093_v7  ;;  %v1583_v33 = vcombine.high %v1581_v31, %v2093_v7  ;;  %v1667_v7 = vrot.slane %v1658_v14, %v2330_v19 }
 0x49f   :  { %v2044_v34 = vpack.i.bf16 %v1582_v16, %v1583_v33 }
 0x4a1   :  { %2045 = vrot.lane.b32.xlu0 %v2044_v34, %s2094_s12  ;;  %s2100_s12 = smov [#allocation2]  }
 0x4a2   :  { %s1759_s16 = sshll.u32 %s2100_s12, 4  ;;  %s1760_s16 = int_to_ptr.vmem [resolvable:$true] %s1759_s16 }
 0x4a3   :  { %s2069_s17 = scalar_lea.vmem %s1760_s16, 64  ;;  %p2074_p1 = scmp.lt.s32.totalorder %s1760_s16, %s1760_s16 }
 0x4a4   :  { %p2070_p0 = scmp.ne.s32.totalorder %s1760_s16, %s2069_s17  ;;  %p2075_p2 = scmp.lt.s32.totalorder %s2069_s17, %s2069_s17 }
 0x4a6   :  { %p2076_p3 = por %p2075_p2, %p2074_p1 }
 0x4a8   :  { %p2077_p4 = pnand %p2076_p3, %p2070_p0 }
 0x513   :  { %v2046_v35 = vpop.permute.xlu0 %2045 }
 0x514   :  { %v2048_v36 = vunpack.i.h.bf16 %v2046_v35  ;;  %v2047_v37 = vunpack.i.l.bf16 %v2046_v35 }
 0x516   :  { %v1593_v38 = vsel %vm184_vm0, %v1581_v31, %v2047_v37  ;;  %v1592_v11 = vsel %vm184_vm0, %v1574_v18, %v2048_v36 }
 0x517   :  { %1734 = vmatprep.mubr.f32.mxu0 %v1593_v38 }
 0x518   :  { %1735 = vmatmul.mubr.f32.vlgmr.msra.gmra.mrb[8].mxu0 %v1592_v11 }
 0x5eb   :  { %v1736_v40 = vpop.f32.mrb[8].mxu0 }
 0x5ec   :  { %v1737_v41 = vadd.f32 %v1736_v40, %v1663_v39  ;;  %v1738_v42 = vpop.f32.mrb[9].mxu0 }
 0x5ed   :  { %v1739_v43 = vadd.f32 %v1738_v42, %v1667_v7 }
 0x5ef   :  { %v1743_v44 = vcombine.low %v1737_v41, %v1739_v43 }
 0x5f1   :  { %1795 = vst.sshfl [vmem:[#allocation2] sm:$0x33 pattern:$0x76325410] %v1743_v44 }
 0x5f2   :  { %2080 = shalt.err (!%p2077_p4)
}
 0x5f3   :  { %s2081_s18 = scalar_lea.hbm %s2792_s10, 64 }
 0x5f4   :  { %p2082_p5 = scmp.ne.s32.totalorder %s2792_s10, %s2081_s18  ;;  %p2085_p6 = scmp.lt.u32.totalorder %s2081_s18, %s2792_s10 }
 0x5f6   :  { %p2087_p7 = pnand %p2085_p6, %p2082_p5 }
 0x5f8   :  { %2090 = shalt.err (!%p2087_p7)
}
 0x5f9   :  { %1762 = dma.vmem_to_hbm [thread:$0]  %s1760_s16, 64, %s2792_s10, [#allocation3]  }
 0x5fa   :  { %2091 = dma.done.wait [#allocation3], 64  }
 0x5fb   :  { %2092 = vsyncadd [#allocation3], 4294967232 }
 0x5fc   :  { %1766 = vsyncpa [#allocation3], 1 }

</bundles_post_ra>
